<compile_context>
chip_gen: v7x
topology: tpu7x:2x2x1
jax: 0.10.0
libtpu: 0.0.40
codegen_flags: <defaults>
</compile_context>

<pallas_src>
import jax
import jax.numpy as jnp
from jax.experimental import pallas as pl
from jax.experimental.pallas import tpu as pltpu


# ----------------------------------------------------------------------------
# Network plan (scaled-down CIFAR-10 CNN: 16x16x3 input, 10 classes)
# ----------------------------------------------------------------------------
CONV_PLAN = [(3, 8), (8, 16), (16, 32), (32, 32), (32, 64), (64, 64)]
FC_PLAN = [(64 * 2 * 2, 64), (64, 32), (32, 10)]
FEAT_C, FEAT_H, FEAT_W = 64, 2, 2


# ----------------------------------------------------------------------------
# In-kernel building blocks (pure jnp on VMEM-resident values)
# ----------------------------------------------------------------------------
def _conv3x3_relu(x, w, b):
    """'same' 3x3 conv + bias + ReLU for one image.

    x: (H, W, Cin) f32 activation
    w: (9*Cin, Cout) bf16, K ordered (kh, kw, cin)
    b: (1, Cout) f32
    returns (H*W, Cout) f32, rows ordered (h, w)
    """
    H, W, Cin = x.shape
    # Zero 'same' padding built in-register (never touches HBM).
    zr = jnp.zeros((1, W, Cin), jnp.float32)
    xp = jnp.concatenate([zr, x, zr], axis=0)             # (H+2, W, Cin)
    zc = jnp.zeros((H + 2, 1, Cin), jnp.float32)
    xp = jnp.concatenate([zc, xp, zc], axis=1)            # (H+2, W+2, Cin)
    # im2col -> one big-K MXU matmul (K = 9*Cin) instead of nine tiny dots.
    cols = [xp[kh:kh + H, kw:kw + W, :].reshape(H * W, Cin)
            for kh in range(3) for kw in range(3)]
    patches = jnp.concatenate(cols, axis=-1).astype(jnp.bfloat16)  # (H*W, 9*Cin)
    y = jnp.dot(patches, w, preferred_element_type=jnp.float32)
    return jnp.maximum(y + b, 0.0)                        # f32 epilogue


def _maxpool2x2(y, H, W):
    """Fused in-register 2x2/stride-2 maxpool.

    y: (H*W, C) f32, rows ordered (h, w). Returns (H//2, W//2, C) f32.
    """
    C = y.shape[-1]
    y = y.reshape(H // 2, 2, W, C)        # (h2, hp, w, c)
    y = jnp.max(y, axis=1)                # pool over h -> (H//2, W, C)
    y = y.reshape(H // 2, W // 2, 2, C)   # (h2, w2, wp, c)
    y = jnp.max(y, axis=2)                # pool over w -> (H//2, W//2, C)
    return y


def _linear(x, w, b, relu):
    """x: (M, Din) f32; w: (Din, Dout) bf16; b: (1, Dout) f32."""
    y = jnp.dot(x.astype(jnp.bfloat16), w, preferred_element_type=jnp.float32) + b
    return jnp.maximum(y, 0.0) if relu else y


# ----------------------------------------------------------------------------
# Fused kernel: entire forward pass for one image per grid step
# ----------------------------------------------------------------------------
def fused_cnn_kernel(x_ref, *refs):
    """refs = 6x(conv_w, conv_b) + 3x(fc_w, fc_b) + (out_ref,)."""
    o_ref = refs[-1]
    cparams = refs[:12]
    fparams = refs[12:18]

    x = x_ref[0]                                   # (16, 16, 3) f32
    H, W = x.shape[0], x.shape[1]

    # Three [conv -> conv -> maxpool] blocks, all VMEM/vreg resident.
    for blk in range(3):
        wa, ba, wb, bb = (r[...] for r in cparams[4 * blk: 4 * blk + 4])
        y = _conv3x3_relu(x, wa, ba)                       # (H*W, Ca)
        y = _conv3x3_relu(y.reshape(H, W, -1), wb, bb)     # (H*W, Cb)
        x = _maxpool2x2(y, H, W)                           # (H/2, W/2, Cb)
        H, W = H // 2, W // 2

    # Flatten in (h, w, c) order -> (1, H*W*C).  The first FC weight's rows
    # were permuted at pack time, so this matches PyTorch's (c, h, w) flatten.
    C = x.shape[-1]
    z = x.reshape(H * W, C)
    feat = jnp.concatenate([z[i:i + 1, :] for i in range(H * W)], axis=-1)

    fw0, fb0, fw1, fb1, fw2, fb2 = (r[...] for r in fparams)
    h = _linear(feat, fw0, fb0, relu=True)
    h = _linear(h, fw1, fb1, relu=True)
    logits = _linear(h, fw2, fb2, relu=False)
    o_ref[0] = logits.astype(o_ref.dtype)          # (1, num_classes)


# ----------------------------------------------------------------------------
# Wrapper
# ----------------------------------------------------------------------------
@jax.jit
def cifar10_cnn_forward(packed, xb_nchw):
    """xb_nchw: (N, 3, 16, 16) f32 (PyTorch layout). Returns (N, 10) logits."""
    N, _, H, W = xb_nchw.shape
    x = jnp.transpose(xb_nchw, (0, 2, 3, 1)).astype(jnp.float32)   # NHWC
    Cin = x.shape[-1]

    flat = []
    for (w, b) in list(packed["conv"]) + list(packed["fc"]):
        flat += [w, b]

    in_specs = [pl.BlockSpec((1, H, W, Cin), lambda n: (n, 0, 0, 0))]
    in_specs += [pl.BlockSpec(a.shape, lambda n: (0, 0)) for a in flat]

    num_classes = packed["fc"][-1][1].shape[-1]
    out = pl.pallas_call(
        fused_cnn_kernel,
        out_shape=jax.ShapeDtypeStruct((N, 1, num_classes), jnp.float32),
        grid=(N,),
        in_specs=in_specs,
        out_specs=pl.BlockSpec((1, 1, num_classes), lambda n: (n, 0, 0)),
        compiler_params=pltpu.CompilerParams(
            dimension_semantics=("parallel",)),   # v7x: one image per TensorCore
    )(x, *flat)
    return out.reshape(N, num_classes)


# ----------------------------------------------------------------------------
# Parameters: PyTorch-layout init + one-time packing into kernel layouts
# ----------------------------------------------------------------------------
def init_params(key):
    """Random params in PyTorch layouts (conv: (Cout,Cin,3,3); fc: (Dout,Din))."""
    params = {"conv": [], "fc": []}
    for (cin, cout) in CONV_PLAN:
        key, kw, kb = jax.random.split(key, 3)
        scale = 1.0 / jnp.sqrt(cin * 9.0)
        w = jax.random.normal(kw, (cout, cin, 3, 3), jnp.float32) * scale
        b = jax.random.normal(kb, (cout,), jnp.float32) * scale
        params["conv"].append((w, b))
    for (din, dout) in FC_PLAN:
        key, kw, kb = jax.random.split(key, 3)
        scale = 1.0 / jnp.sqrt(float(din))
        w = jax.random.normal(kw, (dout, din), jnp.float32) * scale
        b = jax.random.normal(kb, (dout,), jnp.float32) * scale
        params["fc"].append((w, b))
    return params


def pack_params(params):
    """One-time re-pack into kernel layouts (review: pre-transpose at init)."""
    conv = []
    for (w, b) in params["conv"]:
        cout, cin = w.shape[0], w.shape[1]
        # (Cout,Cin,3,3) -> (kh,kw,Cin,Cout) -> (9*Cin, Cout) bf16 MXU operand.
        wk = jnp.transpose(w, (2, 3, 1, 0)).reshape(9 * cin, cout)
        conv.append((wk.astype(jnp.bfloat16),
                     b.reshape(1, cout).astype(jnp.float32)))

    fc = []
    (w0, b0), (w1, b1), (w2, b2) = params["fc"]
    # PyTorch flattens NCHW -> (c,h,w); the kernel flattens NHWC -> (h,w,c).
    # Permute the first FC weight's rows once so results match exactly.
    d0 = w0.shape[0]
    w0k = jnp.transpose(w0.reshape(d0, FEAT_C, FEAT_H, FEAT_W), (2, 3, 1, 0))
    w0k = w0k.reshape(FEAT_H * FEAT_W * FEAT_C, d0)
    fc.append((w0k.astype(jnp.bfloat16), b0.reshape(1, -1).astype(jnp.float32)))
    for (w, b) in ((w1, b1), (w2, b2)):
        fc.append((jnp.transpose(w).astype(jnp.bfloat16),
                   b.reshape(1, -1).astype(jnp.float32)))
    return {"conv": conv, "fc": fc}


# ----------------------------------------------------------------------------
# Plain-JAX reference (identical bf16 quantization) for a correctness check
# ----------------------------------------------------------------------------
def reference_forward(packed, xb_nchw):
    x = jnp.transpose(xb_nchw, (0, 2, 3, 1)).astype(jnp.float32)   # NHWC

    def conv_block(x, w, b):
        N, H, W, Cin = x.shape
        xp = jnp.pad(x, ((0, 0), (1, 1), (1, 1), (0, 0)))
        cols = [xp[:, kh:kh + H, kw:kw + W, :].reshape(N * H * W, Cin)
                for kh in range(3) for kw in range(3)]
        patches = jnp.concatenate(cols, axis=-1).astype(jnp.bfloat16)
        y = jnp.dot(patches, w, preferred_element_type=jnp.float32)
        return jnp.maximum(y + b, 0.0).reshape(N, H, W, -1)

    def pool(x):
        N, H, W, C = x.shape
        return jnp.max(x.reshape(N, H // 2, 2, W // 2, 2, C), axis=(2, 4))

    conv = packed["conv"]
    x = pool(conv_block(conv_block(x, *conv[0]), *conv[1]))
    x = pool(conv_block(conv_block(x, *conv[2]), *conv[3]))
    x = pool(conv_block(conv_block(x, *conv[4]), *conv[5]))

    feat = x.reshape(x.shape[0], -1)          # (N, h*w*c)
    (fw0, fb0), (fw1, fb1), (fw2, fb2) = packed["fc"]
    h = jnp.maximum(jnp.dot(feat.astype(jnp.bfloat16), fw0,
                            preferred_element_type=jnp.float32) + fb0, 0.0)
    h = jnp.maximum(jnp.dot(h.astype(jnp.bfloat16), fw1,
                            preferred_element_type=jnp.float32) + fb1, 0.0)
    return jnp.dot(h.astype(jnp.bfloat16), fw2,
                   preferred_element_type=jnp.float32) + fb2


if __name__ == "__main__":
    key = jax.random.PRNGKey(0)
    k_in, k_par = jax.random.split(key)
    xb = jax.random.normal(k_in, (2, 3, 16, 16), jnp.float32)   # NCHW input
    params = init_params(k_par)        # PyTorch-layout weights
    packed = pack_params(params)       # one-time kernel-layout packing (bf16)

    logits = cifar10_cnn_forward(packed, xb)
    jax.block_until_ready(logits)
    assert logits.shape == (2, 10) and logits.dtype == jnp.float32

    ref = reference_forward(packed, xb)
    assert bool(jnp.all(jnp.isfinite(logits)))
    assert bool(jnp.allclose(logits, ref, atol=5e-2, rtol=5e-2)), (
        "Pallas kernel output mismatch vs plain-JAX reference")
    print("KERNEL_OK")
</pallas_src>

<mosaic_0001>
module attributes {stable_mosaic.version = 11 : i64} {
  func.func @fused_cnn_kernel(%arg0: i32, %arg1: memref<1x16x16x3xf32, #tpu.memory_space<vmem>>, %arg2: memref<27x8xbf16, #tpu.memory_space<vmem>>, %arg3: memref<1x8xf32, #tpu.memory_space<vmem>>, %arg4: memref<72x16xbf16, #tpu.memory_space<vmem>>, %arg5: memref<1x16xf32, #tpu.memory_space<vmem>>, %arg6: memref<144x32xbf16, #tpu.memory_space<vmem>>, %arg7: memref<1x32xf32, #tpu.memory_space<vmem>>, %arg8: memref<288x32xbf16, #tpu.memory_space<vmem>>, %arg9: memref<1x32xf32, #tpu.memory_space<vmem>>, %arg10: memref<288x64xbf16, #tpu.memory_space<vmem>>, %arg11: memref<1x64xf32, #tpu.memory_space<vmem>>, %arg12: memref<576x64xbf16, #tpu.memory_space<vmem>>, %arg13: memref<1x64xf32, #tpu.memory_space<vmem>>, %arg14: memref<256x64xbf16, #tpu.memory_space<vmem>>, %arg15: memref<1x64xf32, #tpu.memory_space<vmem>>, %arg16: memref<64x32xbf16, #tpu.memory_space<vmem>>, %arg17: memref<1x32xf32, #tpu.memory_space<vmem>>, %arg18: memref<32x10xbf16, #tpu.memory_space<vmem>>, %arg19: memref<1x10xf32, #tpu.memory_space<vmem>>, %arg20: memref<1x1x10xf32, #tpu.memory_space<vmem>>) attributes {dimension_semantics = [#tpu.dimension_semantics<parallel>], iteration_bounds = array<i64: 2>, scalar_prefetch = 0 : i64, scratch_operands = 0 : i64, tpu.core_type = #tpu.core_type<tc>, window_params = [{transform_indices = @transform_0, window_bounds = array<i64: 1, 16, 16, 3>}, {pipeline_mode = #tpu.pipeline_mode<synchronous>, transform_indices = @transform_1, window_bounds = array<i64: 27, 8>}, {pipeline_mode = #tpu.pipeline_mode<synchronous>, transform_indices = @transform_2, window_bounds = array<i64: 1, 8>}, {pipeline_mode = #tpu.pipeline_mode<synchronous>, transform_indices = @transform_3, window_bounds = array<i64: 72, 16>}, {pipeline_mode = #tpu.pipeline_mode<synchronous>, transform_indices = @transform_4, window_bounds = array<i64: 1, 16>}, {pipeline_mode = #tpu.pipeline_mode<synchronous>, transform_indices = @transform_5, window_bounds = array<i64: 144, 32>}, {pipeline_mode = #tpu.pipeline_mode<synchronous>, transform_indices = @transform_6, window_bounds = array<i64: 1, 32>}, {pipeline_mode = #tpu.pipeline_mode<synchronous>, transform_indices = @transform_7, window_bounds = array<i64: 288, 32>}, {pipeline_mode = #tpu.pipeline_mode<synchronous>, transform_indices = @transform_8, window_bounds = array<i64: 1, 32>}, {pipeline_mode = #tpu.pipeline_mode<synchronous>, transform_indices = @transform_9, window_bounds = array<i64: 288, 64>}, {pipeline_mode = #tpu.pipeline_mode<synchronous>, transform_indices = @transform_10, window_bounds = array<i64: 1, 64>}, {pipeline_mode = #tpu.pipeline_mode<synchronous>, transform_indices = @transform_11, window_bounds = array<i64: 576, 64>}, {pipeline_mode = #tpu.pipeline_mode<synchronous>, transform_indices = @transform_12, window_bounds = array<i64: 1, 64>}, {pipeline_mode = #tpu.pipeline_mode<synchronous>, transform_indices = @transform_13, window_bounds = array<i64: 256, 64>}, {pipeline_mode = #tpu.pipeline_mode<synchronous>, transform_indices = @transform_14, window_bounds = array<i64: 1, 64>}, {pipeline_mode = #tpu.pipeline_mode<synchronous>, transform_indices = @transform_15, window_bounds = array<i64: 64, 32>}, {pipeline_mode = #tpu.pipeline_mode<synchronous>, transform_indices = @transform_16, window_bounds = array<i64: 1, 32>}, {pipeline_mode = #tpu.pipeline_mode<synchronous>, transform_indices = @transform_17, window_bounds = array<i64: 32, 10>}, {pipeline_mode = #tpu.pipeline_mode<synchronous>, transform_indices = @transform_18, window_bounds = array<i64: 1, 10>}, {transform_indices = @transform_19, window_bounds = array<i64: 1, 1, 10>}]} {
    %c0 = arith.constant 0 : index
    %c0_0 = arith.constant 0 : index
    %c0_1 = arith.constant 0 : index
    %c0_2 = arith.constant 0 : index
    %0 = vector.load %arg1[%c0, %c0_0, %c0_1, %c0_2] : memref<1x16x16x3xf32, #tpu.memory_space<vmem>>, vector<1x16x16x3xf32>
    %1 = vector.shape_cast %0 : vector<1x16x16x3xf32> to vector<16x16x3xf32>
    %c0_3 = arith.constant 0 : index
    %c0_4 = arith.constant 0 : index
    %2 = vector.load %arg2[%c0_3, %c0_4] : memref<27x8xbf16, #tpu.memory_space<vmem>>, vector<27x8xbf16>
    %c0_5 = arith.constant 0 : index
    %c0_6 = arith.constant 0 : index
    %3 = vector.load %arg3[%c0_5, %c0_6] : memref<1x8xf32, #tpu.memory_space<vmem>>, vector<1x8xf32>
    %c0_7 = arith.constant 0 : index
    %c0_8 = arith.constant 0 : index
    %4 = vector.load %arg4[%c0_7, %c0_8] : memref<72x16xbf16, #tpu.memory_space<vmem>>, vector<72x16xbf16>
    %c0_9 = arith.constant 0 : index
    %c0_10 = arith.constant 0 : index
    %5 = vector.load %arg5[%c0_9, %c0_10] : memref<1x16xf32, #tpu.memory_space<vmem>>, vector<1x16xf32>
    %cst = arith.constant 0.000000e+00 : f32
    %6 = vector.broadcast %cst : f32 to vector<1x16x3xf32>
    %7 = tpu.concatenate %6, %1, %6 in 0 : vector<1x16x3xf32>, vector<16x16x3xf32>, vector<1x16x3xf32> -> vector<18x16x3xf32>
    %cst_11 = arith.constant 0.000000e+00 : f32
    %8 = vector.broadcast %cst_11 : f32 to vector<18x1x3xf32>
    %9 = tpu.concatenate %8, %7, %8 in 1 : vector<18x1x3xf32>, vector<18x16x3xf32>, vector<18x1x3xf32> -> vector<18x18x3xf32>
    %10 = vector.extract_strided_slice %9 {offsets = [0, 0, 0], sizes = [16, 16, 3], strides = [1, 1, 1]} : vector<18x18x3xf32> to vector<16x16x3xf32>
    %11 = vector.shape_cast %10 : vector<16x16x3xf32> to vector<256x3xf32>
    %12 = vector.extract_strided_slice %9 {offsets = [0, 1, 0], sizes = [16, 16, 3], strides = [1, 1, 1]} : vector<18x18x3xf32> to vector<16x16x3xf32>
    %13 = vector.shape_cast %12 : vector<16x16x3xf32> to vector<256x3xf32>
    %14 = vector.extract_strided_slice %9 {offsets = [0, 2, 0], sizes = [16, 16, 3], strides = [1, 1, 1]} : vector<18x18x3xf32> to vector<16x16x3xf32>
    %15 = vector.shape_cast %14 : vector<16x16x3xf32> to vector<256x3xf32>
    %16 = vector.extract_strided_slice %9 {offsets = [1, 0, 0], sizes = [16, 16, 3], strides = [1, 1, 1]} : vector<18x18x3xf32> to vector<16x16x3xf32>
    %17 = vector.shape_cast %16 : vector<16x16x3xf32> to vector<256x3xf32>
    %18 = vector.extract_strided_slice %9 {offsets = [1, 1, 0], sizes = [16, 16, 3], strides = [1, 1, 1]} : vector<18x18x3xf32> to vector<16x16x3xf32>
    %19 = vector.shape_cast %18 : vector<16x16x3xf32> to vector<256x3xf32>
    %20 = vector.extract_strided_slice %9 {offsets = [1, 2, 0], sizes = [16, 16, 3], strides = [1, 1, 1]} : vector<18x18x3xf32> to vector<16x16x3xf32>
    %21 = vector.shape_cast %20 : vector<16x16x3xf32> to vector<256x3xf32>
    %22 = vector.extract_strided_slice %9 {offsets = [2, 0, 0], sizes = [16, 16, 3], strides = [1, 1, 1]} : vector<18x18x3xf32> to vector<16x16x3xf32>
    %23 = vector.shape_cast %22 : vector<16x16x3xf32> to vector<256x3xf32>
    %24 = vector.extract_strided_slice %9 {offsets = [2, 1, 0], sizes = [16, 16, 3], strides = [1, 1, 1]} : vector<18x18x3xf32> to vector<16x16x3xf32>
    %25 = vector.shape_cast %24 : vector<16x16x3xf32> to vector<256x3xf32>
    %26 = vector.extract_strided_slice %9 {offsets = [2, 2, 0], sizes = [16, 16, 3], strides = [1, 1, 1]} : vector<18x18x3xf32> to vector<16x16x3xf32>
    %27 = vector.shape_cast %26 : vector<16x16x3xf32> to vector<256x3xf32>
    %28 = tpu.concatenate %11, %13, %15, %17, %19, %21, %23, %25, %27 in 1 : vector<256x3xf32>, vector<256x3xf32>, vector<256x3xf32>, vector<256x3xf32>, vector<256x3xf32>, vector<256x3xf32>, vector<256x3xf32>, vector<256x3xf32>, vector<256x3xf32> -> vector<256x27xf32>
    %29 = arith.truncf %28 : vector<256x27xf32> to vector<256x27xbf16>
    %cst_12 = arith.constant dense<0.000000e+00> : vector<256x8xf32>
    %30 = tpu.matmul %29, %2, %cst_12 {dimension_numbers = #tpu.dot_dimension_numbers<[1], [0], [0], [1], [0, 0, 1, 1], [], []>} : vector<256x27xbf16>, vector<27x8xbf16>, vector<256x8xf32> -> vector<256x8xf32>
    %31 = vector.broadcast %3 : vector<1x8xf32> to vector<256x8xf32>
    %32 = arith.addf %30, %31 : vector<256x8xf32>
    %cst_13 = arith.constant 0.000000e+00 : f32
    %33 = vector.broadcast %cst_13 : f32 to vector<256x8xf32>
    %34 = arith.maximumf %32, %33 : vector<256x8xf32>
    %35 = vector.shape_cast %34 : vector<256x8xf32> to vector<16x16x8xf32>
    %cst_14 = arith.constant 0.000000e+00 : f32
    %36 = vector.broadcast %cst_14 : f32 to vector<1x16x8xf32>
    %37 = tpu.concatenate %36, %35, %36 in 0 : vector<1x16x8xf32>, vector<16x16x8xf32>, vector<1x16x8xf32> -> vector<18x16x8xf32>
    %cst_15 = arith.constant 0.000000e+00 : f32
    %38 = vector.broadcast %cst_15 : f32 to vector<18x1x8xf32>
    %39 = tpu.concatenate %38, %37, %38 in 1 : vector<18x1x8xf32>, vector<18x16x8xf32>, vector<18x1x8xf32> -> vector<18x18x8xf32>
    %40 = vector.extract_strided_slice %39 {offsets = [0, 0, 0], sizes = [16, 16, 8], strides = [1, 1, 1]} : vector<18x18x8xf32> to vector<16x16x8xf32>
    %41 = vector.shape_cast %40 : vector<16x16x8xf32> to vector<256x8xf32>
    %42 = vector.extract_strided_slice %39 {offsets = [0, 1, 0], sizes = [16, 16, 8], strides = [1, 1, 1]} : vector<18x18x8xf32> to vector<16x16x8xf32>
    %43 = vector.shape_cast %42 : vector<16x16x8xf32> to vector<256x8xf32>
    %44 = vector.extract_strided_slice %39 {offsets = [0, 2, 0], sizes = [16, 16, 8], strides = [1, 1, 1]} : vector<18x18x8xf32> to vector<16x16x8xf32>
    %45 = vector.shape_cast %44 : vector<16x16x8xf32> to vector<256x8xf32>
    %46 = vector.extract_strided_slice %39 {offsets = [1, 0, 0], sizes = [16, 16, 8], strides = [1, 1, 1]} : vector<18x18x8xf32> to vector<16x16x8xf32>
    %47 = vector.shape_cast %46 : vector<16x16x8xf32> to vector<256x8xf32>
    %48 = vector.extract_strided_slice %39 {offsets = [1, 1, 0], sizes = [16, 16, 8], strides = [1, 1, 1]} : vector<18x18x8xf32> to vector<16x16x8xf32>
    %49 = vector.shape_cast %48 : vector<16x16x8xf32> to vector<256x8xf32>
    %50 = vector.extract_strided_slice %39 {offsets = [1, 2, 0], sizes = [16, 16, 8], strides = [1, 1, 1]} : vector<18x18x8xf32> to vector<16x16x8xf32>
    %51 = vector.shape_cast %50 : vector<16x16x8xf32> to vector<256x8xf32>
    %52 = vector.extract_strided_slice %39 {offsets = [2, 0, 0], sizes = [16, 16, 8], strides = [1, 1, 1]} : vector<18x18x8xf32> to vector<16x16x8xf32>
    %53 = vector.shape_cast %52 : vector<16x16x8xf32> to vector<256x8xf32>
    %54 = vector.extract_strided_slice %39 {offsets = [2, 1, 0], sizes = [16, 16, 8], strides = [1, 1, 1]} : vector<18x18x8xf32> to vector<16x16x8xf32>
    %55 = vector.shape_cast %54 : vector<16x16x8xf32> to vector<256x8xf32>
    %56 = vector.extract_strided_slice %39 {offsets = [2, 2, 0], sizes = [16, 16, 8], strides = [1, 1, 1]} : vector<18x18x8xf32> to vector<16x16x8xf32>
    %57 = vector.shape_cast %56 : vector<16x16x8xf32> to vector<256x8xf32>
    %58 = tpu.concatenate %41, %43, %45, %47, %49, %51, %53, %55, %57 in 1 : vector<256x8xf32>, vector<256x8xf32>, vector<256x8xf32>, vector<256x8xf32>, vector<256x8xf32>, vector<256x8xf32>, vector<256x8xf32>, vector<256x8xf32>, vector<256x8xf32> -> vector<256x72xf32>
    %59 = arith.truncf %58 : vector<256x72xf32> to vector<256x72xbf16>
    %cst_16 = arith.constant dense<0.000000e+00> : vector<256x16xf32>
    %60 = tpu.matmul %59, %4, %cst_16 {dimension_numbers = #tpu.dot_dimension_numbers<[1], [0], [0], [1], [0, 0, 1, 1], [], []>} : vector<256x72xbf16>, vector<72x16xbf16>, vector<256x16xf32> -> vector<256x16xf32>
    %61 = vector.broadcast %5 : vector<1x16xf32> to vector<256x16xf32>
    %62 = arith.addf %60, %61 : vector<256x16xf32>
    %cst_17 = arith.constant 0.000000e+00 : f32
    %63 = vector.broadcast %cst_17 : f32 to vector<256x16xf32>
    %64 = arith.maximumf %62, %63 : vector<256x16xf32>
    %65 = vector.shape_cast %64 : vector<256x16xf32> to vector<8x2x16x16xf32>
    %cst_18 = arith.constant dense<0xFF800000> : vector<8x16x16xf32>
    %66 = vector.multi_reduction <maximumf>, %65, %cst_18 [1] : vector<8x2x16x16xf32> to vector<8x16x16xf32>
    %67 = vector.shape_cast %66 : vector<8x16x16xf32> to vector<8x8x2x16xf32>
    %cst_19 = arith.constant dense<0xFF800000> : vector<8x8x16xf32>
    %68 = vector.multi_reduction <maximumf>, %67, %cst_19 [2] : vector<8x8x2x16xf32> to vector<8x8x16xf32>
    %c0_20 = arith.constant 0 : index
    %c0_21 = arith.constant 0 : index
    %69 = vector.load %arg6[%c0_20, %c0_21] : memref<144x32xbf16, #tpu.memory_space<vmem>>, vector<144x32xbf16>
    %c0_22 = arith.constant 0 : index
    %c0_23 = arith.constant 0 : index
    %70 = vector.load %arg7[%c0_22, %c0_23] : memref<1x32xf32, #tpu.memory_space<vmem>>, vector<1x32xf32>
    %c0_24 = arith.constant 0 : index
    %c0_25 = arith.constant 0 : index
    %71 = vector.load %arg8[%c0_24, %c0_25] : memref<288x32xbf16, #tpu.memory_space<vmem>>, vector<288x32xbf16>
    %c0_26 = arith.constant 0 : index
    %c0_27 = arith.constant 0 : index
    %72 = vector.load %arg9[%c0_26, %c0_27] : memref<1x32xf32, #tpu.memory_space<vmem>>, vector<1x32xf32>
    %cst_28 = arith.constant 0.000000e+00 : f32
    %73 = vector.broadcast %cst_28 : f32 to vector<1x8x16xf32>
    %74 = tpu.concatenate %73, %68, %73 in 0 : vector<1x8x16xf32>, vector<8x8x16xf32>, vector<1x8x16xf32> -> vector<10x8x16xf32>
    %cst_29 = arith.constant 0.000000e+00 : f32
    %75 = vector.broadcast %cst_29 : f32 to vector<10x1x16xf32>
    %76 = tpu.concatenate %75, %74, %75 in 1 : vector<10x1x16xf32>, vector<10x8x16xf32>, vector<10x1x16xf32> -> vector<10x10x16xf32>
    %77 = vector.extract_strided_slice %76 {offsets = [0, 0, 0], sizes = [8, 8, 16], strides = [1, 1, 1]} : vector<10x10x16xf32> to vector<8x8x16xf32>
    %78 = vector.shape_cast %77 : vector<8x8x16xf32> to vector<64x16xf32>
    %79 = vector.extract_strided_slice %76 {offsets = [0, 1, 0], sizes = [8, 8, 16], strides = [1, 1, 1]} : vector<10x10x16xf32> to vector<8x8x16xf32>
    %80 = vector.shape_cast %79 : vector<8x8x16xf32> to vector<64x16xf32>
    %81 = vector.extract_strided_slice %76 {offsets = [0, 2, 0], sizes = [8, 8, 16], strides = [1, 1, 1]} : vector<10x10x16xf32> to vector<8x8x16xf32>
    %82 = vector.shape_cast %81 : vector<8x8x16xf32> to vector<64x16xf32>
    %83 = vector.extract_strided_slice %76 {offsets = [1, 0, 0], sizes = [8, 8, 16], strides = [1, 1, 1]} : vector<10x10x16xf32> to vector<8x8x16xf32>
    %84 = vector.shape_cast %83 : vector<8x8x16xf32> to vector<64x16xf32>
    %85 = vector.extract_strided_slice %76 {offsets = [1, 1, 0], sizes = [8, 8, 16], strides = [1, 1, 1]} : vector<10x10x16xf32> to vector<8x8x16xf32>
    %86 = vector.shape_cast %85 : vector<8x8x16xf32> to vector<64x16xf32>
    %87 = vector.extract_strided_slice %76 {offsets = [1, 2, 0], sizes = [8, 8, 16], strides = [1, 1, 1]} : vector<10x10x16xf32> to vector<8x8x16xf32>
    %88 = vector.shape_cast %87 : vector<8x8x16xf32> to vector<64x16xf32>
    %89 = vector.extract_strided_slice %76 {offsets = [2, 0, 0], sizes = [8, 8, 16], strides = [1, 1, 1]} : vector<10x10x16xf32> to vector<8x8x16xf32>
    %90 = vector.shape_cast %89 : vector<8x8x16xf32> to vector<64x16xf32>
    %91 = vector.extract_strided_slice %76 {offsets = [2, 1, 0], sizes = [8, 8, 16], strides = [1, 1, 1]} : vector<10x10x16xf32> to vector<8x8x16xf32>
    %92 = vector.shape_cast %91 : vector<8x8x16xf32> to vector<64x16xf32>
    %93 = vector.extract_strided_slice %76 {offsets = [2, 2, 0], sizes = [8, 8, 16], strides = [1, 1, 1]} : vector<10x10x16xf32> to vector<8x8x16xf32>
    %94 = vector.shape_cast %93 : vector<8x8x16xf32> to vector<64x16xf32>
    %95 = tpu.concatenate %78, %80, %82, %84, %86, %88, %90, %92, %94 in 1 : vector<64x16xf32>, vector<64x16xf32>, vector<64x16xf32>, vector<64x16xf32>, vector<64x16xf32>, vector<64x16xf32>, vector<64x16xf32>, vector<64x16xf32>, vector<64x16xf32> -> vector<64x144xf32>
    %96 = arith.truncf %95 : vector<64x144xf32> to vector<64x144xbf16>
    %cst_30 = arith.constant dense<0.000000e+00> : vector<64x32xf32>
    %97 = tpu.matmul %96, %69, %cst_30 {dimension_numbers = #tpu.dot_dimension_numbers<[1], [0], [0], [1], [0, 0, 1, 1], [], []>} : vector<64x144xbf16>, vector<144x32xbf16>, vector<64x32xf32> -> vector<64x32xf32>
    %98 = vector.broadcast %70 : vector<1x32xf32> to vector<64x32xf32>
    %99 = arith.addf %97, %98 : vector<64x32xf32>
    %cst_31 = arith.constant 0.000000e+00 : f32
    %100 = vector.broadcast %cst_31 : f32 to vector<64x32xf32>
    %101 = arith.maximumf %99, %100 : vector<64x32xf32>
    %102 = vector.shape_cast %101 : vector<64x32xf32> to vector<8x8x32xf32>
    %cst_32 = arith.constant 0.000000e+00 : f32
    %103 = vector.broadcast %cst_32 : f32 to vector<1x8x32xf32>
    %104 = tpu.concatenate %103, %102, %103 in 0 : vector<1x8x32xf32>, vector<8x8x32xf32>, vector<1x8x32xf32> -> vector<10x8x32xf32>
    %cst_33 = arith.constant 0.000000e+00 : f32
    %105 = vector.broadcast %cst_33 : f32 to vector<10x1x32xf32>
    %106 = tpu.concatenate %105, %104, %105 in 1 : vector<10x1x32xf32>, vector<10x8x32xf32>, vector<10x1x32xf32> -> vector<10x10x32xf32>
    %107 = vector.extract_strided_slice %106 {offsets = [0, 0, 0], sizes = [8, 8, 32], strides = [1, 1, 1]} : vector<10x10x32xf32> to vector<8x8x32xf32>
    %108 = vector.shape_cast %107 : vector<8x8x32xf32> to vector<64x32xf32>
    %109 = vector.extract_strided_slice %106 {offsets = [0, 1, 0], sizes = [8, 8, 32], strides = [1, 1, 1]} : vector<10x10x32xf32> to vector<8x8x32xf32>
    %110 = vector.shape_cast %109 : vector<8x8x32xf32> to vector<64x32xf32>
    %111 = vector.extract_strided_slice %106 {offsets = [0, 2, 0], sizes = [8, 8, 32], strides = [1, 1, 1]} : vector<10x10x32xf32> to vector<8x8x32xf32>
    %112 = vector.shape_cast %111 : vector<8x8x32xf32> to vector<64x32xf32>
    %113 = vector.extract_strided_slice %106 {offsets = [1, 0, 0], sizes = [8, 8, 32], strides = [1, 1, 1]} : vector<10x10x32xf32> to vector<8x8x32xf32>
    %114 = vector.shape_cast %113 : vector<8x8x32xf32> to vector<64x32xf32>
    %115 = vector.extract_strided_slice %106 {offsets = [1, 1, 0], sizes = [8, 8, 32], strides = [1, 1, 1]} : vector<10x10x32xf32> to vector<8x8x32xf32>
    %116 = vector.shape_cast %115 : vector<8x8x32xf32> to vector<64x32xf32>
    %117 = vector.extract_strided_slice %106 {offsets = [1, 2, 0], sizes = [8, 8, 32], strides = [1, 1, 1]} : vector<10x10x32xf32> to vector<8x8x32xf32>
    %118 = vector.shape_cast %117 : vector<8x8x32xf32> to vector<64x32xf32>
    %119 = vector.extract_strided_slice %106 {offsets = [2, 0, 0], sizes = [8, 8, 32], strides = [1, 1, 1]} : vector<10x10x32xf32> to vector<8x8x32xf32>
    %120 = vector.shape_cast %119 : vector<8x8x32xf32> to vector<64x32xf32>
    %121 = vector.extract_strided_slice %106 {offsets = [2, 1, 0], sizes = [8, 8, 32], strides = [1, 1, 1]} : vector<10x10x32xf32> to vector<8x8x32xf32>
    %122 = vector.shape_cast %121 : vector<8x8x32xf32> to vector<64x32xf32>
    %123 = vector.extract_strided_slice %106 {offsets = [2, 2, 0], sizes = [8, 8, 32], strides = [1, 1, 1]} : vector<10x10x32xf32> to vector<8x8x32xf32>
    %124 = vector.shape_cast %123 : vector<8x8x32xf32> to vector<64x32xf32>
    %125 = tpu.concatenate %108, %110, %112, %114, %116, %118, %120, %122, %124 in 1 : vector<64x32xf32>, vector<64x32xf32>, vector<64x32xf32>, vector<64x32xf32>, vector<64x32xf32>, vector<64x32xf32>, vector<64x32xf32>, vector<64x32xf32>, vector<64x32xf32> -> vector<64x288xf32>
    %126 = arith.truncf %125 : vector<64x288xf32> to vector<64x288xbf16>
    %cst_34 = arith.constant dense<0.000000e+00> : vector<64x32xf32>
    %127 = tpu.matmul %126, %71, %cst_34 {dimension_numbers = #tpu.dot_dimension_numbers<[1], [0], [0], [1], [0, 0, 1, 1], [], []>} : vector<64x288xbf16>, vector<288x32xbf16>, vector<64x32xf32> -> vector<64x32xf32>
    %128 = vector.broadcast %72 : vector<1x32xf32> to vector<64x32xf32>
    %129 = arith.addf %127, %128 : vector<64x32xf32>
    %cst_35 = arith.constant 0.000000e+00 : f32
    %130 = vector.broadcast %cst_35 : f32 to vector<64x32xf32>
    %131 = arith.maximumf %129, %130 : vector<64x32xf32>
    %132 = vector.shape_cast %131 : vector<64x32xf32> to vector<4x2x8x32xf32>
    %cst_36 = arith.constant dense<0xFF800000> : vector<4x8x32xf32>
    %133 = vector.multi_reduction <maximumf>, %132, %cst_36 [1] : vector<4x2x8x32xf32> to vector<4x8x32xf32>
    %134 = vector.shape_cast %133 : vector<4x8x32xf32> to vector<4x4x2x32xf32>
    %cst_37 = arith.constant dense<0xFF800000> : vector<4x4x32xf32>
    %135 = vector.multi_reduction <maximumf>, %134, %cst_37 [2] : vector<4x4x2x32xf32> to vector<4x4x32xf32>
    %c0_38 = arith.constant 0 : index
    %c0_39 = arith.constant 0 : index
    %136 = vector.load %arg10[%c0_38, %c0_39] : memref<288x64xbf16, #tpu.memory_space<vmem>>, vector<288x64xbf16>
    %c0_40 = arith.constant 0 : index
    %c0_41 = arith.constant 0 : index
    %137 = vector.load %arg11[%c0_40, %c0_41] : memref<1x64xf32, #tpu.memory_space<vmem>>, vector<1x64xf32>
    %c0_42 = arith.constant 0 : index
    %c0_43 = arith.constant 0 : index
    %138 = vector.load %arg12[%c0_42, %c0_43] : memref<576x64xbf16, #tpu.memory_space<vmem>>, vector<576x64xbf16>
    %c0_44 = arith.constant 0 : index
    %c0_45 = arith.constant 0 : index
    %139 = vector.load %arg13[%c0_44, %c0_45] : memref<1x64xf32, #tpu.memory_space<vmem>>, vector<1x64xf32>
    %cst_46 = arith.constant 0.000000e+00 : f32
    %140 = vector.broadcast %cst_46 : f32 to vector<1x4x32xf32>
    %141 = tpu.concatenate %140, %135, %140 in 0 : vector<1x4x32xf32>, vector<4x4x32xf32>, vector<1x4x32xf32> -> vector<6x4x32xf32>
    %cst_47 = arith.constant 0.000000e+00 : f32
    %142 = vector.broadcast %cst_47 : f32 to vector<6x1x32xf32>
    %143 = tpu.concatenate %142, %141, %142 in 1 : vector<6x1x32xf32>, vector<6x4x32xf32>, vector<6x1x32xf32> -> vector<6x6x32xf32>
    %144 = vector.extract_strided_slice %143 {offsets = [0, 0, 0], sizes = [4, 4, 32], strides = [1, 1, 1]} : vector<6x6x32xf32> to vector<4x4x32xf32>
    %145 = vector.shape_cast %144 : vector<4x4x32xf32> to vector<16x32xf32>
    %146 = vector.extract_strided_slice %143 {offsets = [0, 1, 0], sizes = [4, 4, 32], strides = [1, 1, 1]} : vector<6x6x32xf32> to vector<4x4x32xf32>
    %147 = vector.shape_cast %146 : vector<4x4x32xf32> to vector<16x32xf32>
    %148 = vector.extract_strided_slice %143 {offsets = [0, 2, 0], sizes = [4, 4, 32], strides = [1, 1, 1]} : vector<6x6x32xf32> to vector<4x4x32xf32>
    %149 = vector.shape_cast %148 : vector<4x4x32xf32> to vector<16x32xf32>
    %150 = vector.extract_strided_slice %143 {offsets = [1, 0, 0], sizes = [4, 4, 32], strides = [1, 1, 1]} : vector<6x6x32xf32> to vector<4x4x32xf32>
    %151 = vector.shape_cast %150 : vector<4x4x32xf32> to vector<16x32xf32>
    %152 = vector.extract_strided_slice %143 {offsets = [1, 1, 0], sizes = [4, 4, 32], strides = [1, 1, 1]} : vector<6x6x32xf32> to vector<4x4x32xf32>
    %153 = vector.shape_cast %152 : vector<4x4x32xf32> to vector<16x32xf32>
    %154 = vector.extract_strided_slice %143 {offsets = [1, 2, 0], sizes = [4, 4, 32], strides = [1, 1, 1]} : vector<6x6x32xf32> to vector<4x4x32xf32>
    %155 = vector.shape_cast %154 : vector<4x4x32xf32> to vector<16x32xf32>
    %156 = vector.extract_strided_slice %143 {offsets = [2, 0, 0], sizes = [4, 4, 32], strides = [1, 1, 1]} : vector<6x6x32xf32> to vector<4x4x32xf32>
    %157 = vector.shape_cast %156 : vector<4x4x32xf32> to vector<16x32xf32>
    %158 = vector.extract_strided_slice %143 {offsets = [2, 1, 0], sizes = [4, 4, 32], strides = [1, 1, 1]} : vector<6x6x32xf32> to vector<4x4x32xf32>
    %159 = vector.shape_cast %158 : vector<4x4x32xf32> to vector<16x32xf32>
    %160 = vector.extract_strided_slice %143 {offsets = [2, 2, 0], sizes = [4, 4, 32], strides = [1, 1, 1]} : vector<6x6x32xf32> to vector<4x4x32xf32>
    %161 = vector.shape_cast %160 : vector<4x4x32xf32> to vector<16x32xf32>
    %162 = tpu.concatenate %145, %147, %149, %151, %153, %155, %157, %159, %161 in 1 : vector<16x32xf32>, vector<16x32xf32>, vector<16x32xf32>, vector<16x32xf32>, vector<16x32xf32>, vector<16x32xf32>, vector<16x32xf32>, vector<16x32xf32>, vector<16x32xf32> -> vector<16x288xf32>
    %163 = arith.truncf %162 : vector<16x288xf32> to vector<16x288xbf16>
    %cst_48 = arith.constant dense<0.000000e+00> : vector<16x64xf32>
    %164 = tpu.matmul %163, %136, %cst_48 {dimension_numbers = #tpu.dot_dimension_numbers<[1], [0], [0], [1], [0, 0, 1, 1], [], []>} : vector<16x288xbf16>, vector<288x64xbf16>, vector<16x64xf32> -> vector<16x64xf32>
    %165 = vector.broadcast %137 : vector<1x64xf32> to vector<16x64xf32>
    %166 = arith.addf %164, %165 : vector<16x64xf32>
    %cst_49 = arith.constant 0.000000e+00 : f32
    %167 = vector.broadcast %cst_49 : f32 to vector<16x64xf32>
    %168 = arith.maximumf %166, %167 : vector<16x64xf32>
    %169 = vector.shape_cast %168 : vector<16x64xf32> to vector<4x4x64xf32>
    %cst_50 = arith.constant 0.000000e+00 : f32
    %170 = vector.broadcast %cst_50 : f32 to vector<1x4x64xf32>
    %171 = tpu.concatenate %170, %169, %170 in 0 : vector<1x4x64xf32>, vector<4x4x64xf32>, vector<1x4x64xf32> -> vector<6x4x64xf32>
    %cst_51 = arith.constant 0.000000e+00 : f32
    %172 = vector.broadcast %cst_51 : f32 to vector<6x1x64xf32>
    %173 = tpu.concatenate %172, %171, %172 in 1 : vector<6x1x64xf32>, vector<6x4x64xf32>, vector<6x1x64xf32> -> vector<6x6x64xf32>
    %174 = vector.extract_strided_slice %173 {offsets = [0, 0, 0], sizes = [4, 4, 64], strides = [1, 1, 1]} : vector<6x6x64xf32> to vector<4x4x64xf32>
    %175 = vector.shape_cast %174 : vector<4x4x64xf32> to vector<16x64xf32>
    %176 = vector.extract_strided_slice %173 {offsets = [0, 1, 0], sizes = [4, 4, 64], strides = [1, 1, 1]} : vector<6x6x64xf32> to vector<4x4x64xf32>
    %177 = vector.shape_cast %176 : vector<4x4x64xf32> to vector<16x64xf32>
    %178 = vector.extract_strided_slice %173 {offsets = [0, 2, 0], sizes = [4, 4, 64], strides = [1, 1, 1]} : vector<6x6x64xf32> to vector<4x4x64xf32>
    %179 = vector.shape_cast %178 : vector<4x4x64xf32> to vector<16x64xf32>
    %180 = vector.extract_strided_slice %173 {offsets = [1, 0, 0], sizes = [4, 4, 64], strides = [1, 1, 1]} : vector<6x6x64xf32> to vector<4x4x64xf32>
    %181 = vector.shape_cast %180 : vector<4x4x64xf32> to vector<16x64xf32>
    %182 = vector.extract_strided_slice %173 {offsets = [1, 1, 0], sizes = [4, 4, 64], strides = [1, 1, 1]} : vector<6x6x64xf32> to vector<4x4x64xf32>
    %183 = vector.shape_cast %182 : vector<4x4x64xf32> to vector<16x64xf32>
    %184 = vector.extract_strided_slice %173 {offsets = [1, 2, 0], sizes = [4, 4, 64], strides = [1, 1, 1]} : vector<6x6x64xf32> to vector<4x4x64xf32>
    %185 = vector.shape_cast %184 : vector<4x4x64xf32> to vector<16x64xf32>
    %186 = vector.extract_strided_slice %173 {offsets = [2, 0, 0], sizes = [4, 4, 64], strides = [1, 1, 1]} : vector<6x6x64xf32> to vector<4x4x64xf32>
    %187 = vector.shape_cast %186 : vector<4x4x64xf32> to vector<16x64xf32>
    %188 = vector.extract_strided_slice %173 {offsets = [2, 1, 0], sizes = [4, 4, 64], strides = [1, 1, 1]} : vector<6x6x64xf32> to vector<4x4x64xf32>
    %189 = vector.shape_cast %188 : vector<4x4x64xf32> to vector<16x64xf32>
    %190 = vector.extract_strided_slice %173 {offsets = [2, 2, 0], sizes = [4, 4, 64], strides = [1, 1, 1]} : vector<6x6x64xf32> to vector<4x4x64xf32>
    %191 = vector.shape_cast %190 : vector<4x4x64xf32> to vector<16x64xf32>
    %192 = tpu.concatenate %175, %177, %179, %181, %183, %185, %187, %189, %191 in 1 : vector<16x64xf32>, vector<16x64xf32>, vector<16x64xf32>, vector<16x64xf32>, vector<16x64xf32>, vector<16x64xf32>, vector<16x64xf32>, vector<16x64xf32>, vector<16x64xf32> -> vector<16x576xf32>
    %193 = arith.truncf %192 : vector<16x576xf32> to vector<16x576xbf16>
    %cst_52 = arith.constant dense<0.000000e+00> : vector<16x64xf32>
    %194 = tpu.matmul %193, %138, %cst_52 {dimension_numbers = #tpu.dot_dimension_numbers<[1], [0], [0], [1], [0, 0, 1, 1], [], []>} : vector<16x576xbf16>, vector<576x64xbf16>, vector<16x64xf32> -> vector<16x64xf32>
    %195 = vector.broadcast %139 : vector<1x64xf32> to vector<16x64xf32>
    %196 = arith.addf %194, %195 : vector<16x64xf32>
    %cst_53 = arith.constant 0.000000e+00 : f32
    %197 = vector.broadcast %cst_53 : f32 to vector<16x64xf32>
    %198 = arith.maximumf %196, %197 : vector<16x64xf32>
    %199 = vector.shape_cast %198 : vector<16x64xf32> to vector<2x2x4x64xf32>
    %cst_54 = arith.constant dense<0xFF800000> : vector<2x4x64xf32>
    %200 = vector.multi_reduction <maximumf>, %199, %cst_54 [1] : vector<2x2x4x64xf32> to vector<2x4x64xf32>
    %201 = vector.shape_cast %200 : vector<2x4x64xf32> to vector<2x2x2x64xf32>
    %cst_55 = arith.constant dense<0xFF800000> : vector<2x2x64xf32>
    %202 = vector.multi_reduction <maximumf>, %201, %cst_55 [2] : vector<2x2x2x64xf32> to vector<2x2x64xf32>
    %203 = vector.shape_cast %202 : vector<2x2x64xf32> to vector<4x64xf32>
    %204 = vector.extract_strided_slice %203 {offsets = [0, 0], sizes = [1, 64], strides = [1, 1]} : vector<4x64xf32> to vector<1x64xf32>
    %205 = vector.extract_strided_slice %203 {offsets = [1, 0], sizes = [1, 64], strides = [1, 1]} : vector<4x64xf32> to vector<1x64xf32>
    %206 = vector.extract_strided_slice %203 {offsets = [2, 0], sizes = [1, 64], strides = [1, 1]} : vector<4x64xf32> to vector<1x64xf32>
    %207 = vector.extract_strided_slice %203 {offsets = [3, 0], sizes = [1, 64], strides = [1, 1]} : vector<4x64xf32> to vector<1x64xf32>
    %208 = tpu.concatenate %204, %205, %206, %207 in 1 : vector<1x64xf32>, vector<1x64xf32>, vector<1x64xf32>, vector<1x64xf32> -> vector<1x256xf32>
    %c0_56 = arith.constant 0 : index
    %c0_57 = arith.constant 0 : index
    %209 = vector.load %arg14[%c0_56, %c0_57] : memref<256x64xbf16, #tpu.memory_space<vmem>>, vector<256x64xbf16>
    %c0_58 = arith.constant 0 : index
    %c0_59 = arith.constant 0 : index
    %210 = vector.load %arg15[%c0_58, %c0_59] : memref<1x64xf32, #tpu.memory_space<vmem>>, vector<1x64xf32>
    %c0_60 = arith.constant 0 : index
    %c0_61 = arith.constant 0 : index
    %211 = vector.load %arg16[%c0_60, %c0_61] : memref<64x32xbf16, #tpu.memory_space<vmem>>, vector<64x32xbf16>
    %c0_62 = arith.constant 0 : index
    %c0_63 = arith.constant 0 : index
    %212 = vector.load %arg17[%c0_62, %c0_63] : memref<1x32xf32, #tpu.memory_space<vmem>>, vector<1x32xf32>
    %c0_64 = arith.constant 0 : index
    %c0_65 = arith.constant 0 : index
    %213 = vector.load %arg18[%c0_64, %c0_65] : memref<32x10xbf16, #tpu.memory_space<vmem>>, vector<32x10xbf16>
    %c0_66 = arith.constant 0 : index
    %c0_67 = arith.constant 0 : index
    %214 = vector.load %arg19[%c0_66, %c0_67] : memref<1x10xf32, #tpu.memory_space<vmem>>, vector<1x10xf32>
    %215 = arith.truncf %208 : vector<1x256xf32> to vector<1x256xbf16>
    %cst_68 = arith.constant dense<0.000000e+00> : vector<1x64xf32>
    %216 = tpu.matmul %215, %209, %cst_68 {dimension_numbers = #tpu.dot_dimension_numbers<[1], [0], [0], [1], [0, 0, 1, 1], [], []>} : vector<1x256xbf16>, vector<256x64xbf16>, vector<1x64xf32> -> vector<1x64xf32>
    %217 = arith.addf %216, %210 : vector<1x64xf32>
    %cst_69 = arith.constant 0.000000e+00 : f32
    %218 = vector.broadcast %cst_69 : f32 to vector<1x64xf32>
    %219 = arith.maximumf %217, %218 : vector<1x64xf32>
    %220 = arith.truncf %219 : vector<1x64xf32> to vector<1x64xbf16>
    %cst_70 = arith.constant dense<0.000000e+00> : vector<1x32xf32>
    %221 = tpu.matmul %220, %211, %cst_70 {dimension_numbers = #tpu.dot_dimension_numbers<[1], [0], [0], [1], [0, 0, 1, 1], [], []>} : vector<1x64xbf16>, vector<64x32xbf16>, vector<1x32xf32> -> vector<1x32xf32>
    %222 = arith.addf %221, %212 : vector<1x32xf32>
    %cst_71 = arith.constant 0.000000e+00 : f32
    %223 = vector.broadcast %cst_71 : f32 to vector<1x32xf32>
    %224 = arith.maximumf %222, %223 : vector<1x32xf32>
    %225 = arith.truncf %224 : vector<1x32xf32> to vector<1x32xbf16>
    %cst_72 = arith.constant dense<0.000000e+00> : vector<1x10xf32>
    %226 = tpu.matmul %225, %213, %cst_72 {dimension_numbers = #tpu.dot_dimension_numbers<[1], [0], [0], [1], [0, 0, 1, 1], [], []>} : vector<1x32xbf16>, vector<32x10xbf16>, vector<1x10xf32> -> vector<1x10xf32>
    %227 = arith.addf %226, %214 : vector<1x10xf32>
    %c0_73 = arith.constant 0 : index
    %c0_74 = arith.constant 0 : index
    %c0_75 = arith.constant 0 : index
    %228 = vector.load %arg20[%c0_73, %c0_74, %c0_75] : memref<1x1x10xf32, #tpu.memory_space<vmem>>, vector<1x1x10xf32>
    %229 = vector.shape_cast %228 : vector<1x1x10xf32> to vector<1x10xf32>
    %230 = vector.shape_cast %227 : vector<1x10xf32> to vector<1x1x10xf32>
    tpu.vector_store %arg20[%c0_73, %c0_74, %c0_75], %230 {strides = array<i32>} : memref<1x1x10xf32, #tpu.memory_space<vmem>>, vector<1x1x10xf32>,
    return
  }
  func.func @transform_0(%arg0: i32) -> (i32, i32, i32, i32) {
    %c0_i32 = arith.constant 0 : i32
    %c0_i32_0 = arith.constant 0 : i32
    %c0_i32_1 = arith.constant 0 : i32
    %c0_i32_2 = arith.constant 0 : i32
    return %arg0, %c0_i32, %c0_i32_0, %c0_i32_1 : i32, i32, i32, i32
  }
  func.func @transform_1(%arg0: i32) -> (i32, i32) {
    %c0_i32 = arith.constant 0 : i32
    %c0_i32_0 = arith.constant 0 : i32
    %c0_i32_1 = arith.constant 0 : i32
    return %c0_i32, %c0_i32_0 : i32, i32
  }
  func.func @transform_2(%arg0: i32) -> (i32, i32) {
    %c0_i32 = arith.constant 0 : i32
    %c0_i32_0 = arith.constant 0 : i32
    %c0_i32_1 = arith.constant 0 : i32
    return %c0_i32, %c0_i32_0 : i32, i32
  }
  func.func @transform_3(%arg0: i32) -> (i32, i32) {
    %c0_i32 = arith.constant 0 : i32
    %c0_i32_0 = arith.constant 0 : i32
    %c0_i32_1 = arith.constant 0 : i32
    return %c0_i32, %c0_i32_0 : i32, i32
  }
  func.func @transform_4(%arg0: i32) -> (i32, i32) {
    %c0_i32 = arith.constant 0 : i32
    %c0_i32_0 = arith.constant 0 : i32
    %c0_i32_1 = arith.constant 0 : i32
    return %c0_i32, %c0_i32_0 : i32, i32
  }
  func.func @transform_5(%arg0: i32) -> (i32, i32) {
    %c0_i32 = arith.constant 0 : i32
    %c0_i32_0 = arith.constant 0 : i32
    %c0_i32_1 = arith.constant 0 : i32
    return %c0_i32, %c0_i32_0 : i32, i32
  }
  func.func @transform_6(%arg0: i32) -> (i32, i32) {
    %c0_i32 = arith.constant 0 : i32
    %c0_i32_0 = arith.constant 0 : i32
    %c0_i32_1 = arith.constant 0 : i32
    return %c0_i32, %c0_i32_0 : i32, i32
  }
  func.func @transform_7(%arg0: i32) -> (i32, i32) {
    %c0_i32 = arith.constant 0 : i32
    %c0_i32_0 = arith.constant 0 : i32
    %c0_i32_1 = arith.constant 0 : i32
    return %c0_i32, %c0_i32_0 : i32, i32
  }
  func.func @transform_8(%arg0: i32) -> (i32, i32) {
    %c0_i32 = arith.constant 0 : i32
    %c0_i32_0 = arith.constant 0 : i32
    %c0_i32_1 = arith.constant 0 : i32
    return %c0_i32, %c0_i32_0 : i32, i32
  }
  func.func @transform_9(%arg0: i32) -> (i32, i32) {
    %c0_i32 = arith.constant 0 : i32
    %c0_i32_0 = arith.constant 0 : i32
    %c0_i32_1 = arith.constant 0 : i32
    return %c0_i32, %c0_i32_0 : i32, i32
  }
  func.func @transform_10(%arg0: i32) -> (i32, i32) {
    %c0_i32 = arith.constant 0 : i32
    %c0_i32_0 = arith.constant 0 : i32
    %c0_i32_1 = arith.constant 0 : i32
    return %c0_i32, %c0_i32_0 : i32, i32
  }
  func.func @transform_11(%arg0: i32) -> (i32, i32) {
    %c0_i32 = arith.constant 0 : i32
    %c0_i32_0 = arith.constant 0 : i32
    %c0_i32_1 = arith.constant 0 : i32
    return %c0_i32, %c0_i32_0 : i32, i32
  }
  func.func @transform_12(%arg0: i32) -> (i32, i32) {
    %c0_i32 = arith.constant 0 : i32
    %c0_i32_0 = arith.constant 0 : i32
    %c0_i32_1 = arith.constant 0 : i32
    return %c0_i32, %c0_i32_0 : i32, i32
  }
  func.func @transform_13(%arg0: i32) -> (i32, i32) {
    %c0_i32 = arith.constant 0 : i32
    %c0_i32_0 = arith.constant 0 : i32
    %c0_i32_1 = arith.constant 0 : i32
    return %c0_i32, %c0_i32_0 : i32, i32
  }
  func.func @transform_14(%arg0: i32) -> (i32, i32) {
    %c0_i32 = arith.constant 0 : i32
    %c0_i32_0 = arith.constant 0 : i32
    %c0_i32_1 = arith.constant 0 : i32
    return %c0_i32, %c0_i32_0 : i32, i32
  }
  func.func @transform_15(%arg0: i32) -> (i32, i32) {
    %c0_i32 = arith.constant 0 : i32
    %c0_i32_0 = arith.constant 0 : i32
    %c0_i32_1 = arith.constant 0 : i32
    return %c0_i32, %c0_i32_0 : i32, i32
  }
  func.func @transform_16(%arg0: i32) -> (i32, i32) {
    %c0_i32 = arith.constant 0 : i32
    %c0_i32_0 = arith.constant 0 : i32
    %c0_i32_1 = arith.constant 0 : i32
    return %c0_i32, %c0_i32_0 : i32, i32
  }
  func.func @transform_17(%arg0: i32) -> (i32, i32) {
    %c0_i32 = arith.constant 0 : i32
    %c0_i32_0 = arith.constant 0 : i32
    %c0_i32_1 = arith.constant 0 : i32
    return %c0_i32, %c0_i32_0 : i32, i32
  }
  func.func @transform_18(%arg0: i32) -> (i32, i32) {
    %c0_i32 = arith.constant 0 : i32
    %c0_i32_0 = arith.constant 0 : i32
    %c0_i32_1 = arith.constant 0 : i32
    return %c0_i32, %c0_i32_0 : i32, i32
  }
  func.func @transform_19(%arg0: i32) -> (i32, i32, i32) {
    %c0_i32 = arith.constant 0 : i32
    %c0_i32_0 = arith.constant 0 : i32
    %c0_i32_1 = arith.constant 0 : i32
    return %arg0, %c0_i32, %c0_i32_0 : i32, i32, i32
  }
}

</mosaic_0001>

<bundles_post_ra>
// kernel: cifar10_cnn_forward.1
= control target key start
LH: loop header
LB: loop body
LE: loop exit
PB: predicated region body
PF: predicated region fallthrough
CT: control target
= control target key end

     0   :  { %s13865_s0 = inlined_call_operand.vmem [shape: f32[2,16,16,3], index: 0, kind: input, shape index: {}]   ;;  %s13866_s1 = inlined_call_operand.vmem [shape: bf16[27,8], index: 1, kind: input, shape index: {}]   ;;  %s13867_s2 = inlined_call_operand.vmem [shape: f32[1,8], index: 2, kind: input, shape index: {}]   ;;  %s13868_s3 = inlined_call_operand.vmem [shape: bf16[72,16], index: 3, kind: input, shape index: {}]   ;;  %s13869_s4 = inlined_call_operand.vmem [shape: f32[1,16], index: 4, kind: input, shape index: {}]   ;;  %s13870_s5 = inlined_call_operand.vmem [shape: bf16[144,32], index: 5, kind: input, shape index: {}]   ;;  %s13871_s6 = inlined_call_operand.vmem [shape: f32[1,32], index: 6, kind: input, shape index: {}]   ;;  %s13872_s7 = inlined_call_operand.vmem [shape: bf16[288,32], index: 7, kind: input, shape index: {}]   ;;  %s13873_s8 = inlined_call_operand.vmem [shape: f32[1,32], index: 8, kind: input, shape index: {}]   ;;  %s13874_s9 = inlined_call_operand.vmem [shape: bf16[288,64], index: 9, kind: input, shape index: {}]   ;;  %s13875_s10 = inlined_call_operand.vmem [shape: f32[1,64], index: 10, kind: input, shape index: {}]   ;;  %s13876_s11 = inlined_call_operand.vmem [shape: bf16[576,64], index: 11, kind: input, shape index: {}]   ;;  %s13877_s12 = inlined_call_operand.vmem [shape: f32[1,64], index: 12, kind: input, shape index: {}]   ;;  %s13878_s13 = inlined_call_operand.vmem [shape: bf16[256,64], index: 13, kind: input, shape index: {}]   ;;  %s13879_s14 = inlined_call_operand.vmem [shape: f32[1,64], index: 14, kind: input, shape index: {}]   ;;  %s13880_s15 = inlined_call_operand.vmem [shape: bf16[64,32], index: 15, kind: input, shape index: {}]   ;;  %s13881_s16 = inlined_call_operand.vmem [shape: f32[1,32], index: 16, kind: input, shape index: {}]   ;;  %s13882_s17 = inlined_call_operand.vmem [shape: bf16[32,10], index: 17, kind: input, shape index: {}]   ;;  %s13883_s18 = inlined_call_operand.vmem [shape: f32[1,10], index: 18, kind: input, shape index: {}]   ;;  %s13884_s19 = inlined_call_operand.hbm [shape: f32[2,1,10], index: 19, kind: output, shape index: {}]  }
   0x1   :  { %13944 = sst [smem:[#allocation15_spill]] %s13865_s0 }
   0x2   :  { %13945 = sst [smem:[#allocation16_spill]] %s13866_s1 }
   0x3   :  { %13946 = sst [smem:[#allocation17_spill]] %s13867_s2 }
   0x4   :  { %13947 = sst [smem:[#allocation18_spill]] %s13868_s3 }
   0x5   :  { %13948 = sst [smem:[#allocation19_spill]] %s13869_s4 }
   0x6   :  { %13949 = sst [smem:[#allocation20_spill]] %s13870_s5 }
   0x7   :  { %24 = vsyncpa [#allocation3], 0 }
   0x8   :  { %26 = vsyncpa [#allocation3 + $0x1], 0  ;;  %s10194_s0 = smov 0   ;;  %s10196_s30 = smov 0  }
   0x9   :  { %s10198_s20 = smov 0   ;;  %s10200_s21 = smov 0  }
   0xa LB: > { %13950 = sst [smem:[#allocation5_spill]] %s10056_s0  ;;  %s10215_s1 = sadd.s32 4294967295, %s10068_s21   ;;  %s10068_s21 = sphi %s10200_s21, %s14049_s21   ;;  %s10064_s20 = sphi %s10198_s20, %s14054_s20   ;;  %s10060_s30 = sphi %s10196_s30, %s14053_s30   ;;  %s10056_s0 = sphi %s10194_s0, %s14052_s0  }
   0xb   : > { %13951 = sst [smem:[#allocation6_spill]] %s10064_s20  ;;  %s7734_s22 = sadd.s32 4294967294, %s10068_s21  }
   0xc   : > { %s10219_s2 = sadd.s32 1, %s10068_s21   ;;  %s443_s23 = sadd.s32 1, %s10064_s20 }
   0xd   : > { %13952 = sst [smem:[#allocation7_spill]] %s10219_s2  ;;  %s440_s24 = ssub.s32 %s10068_s21, %s10219_s2 }
   0xe   : > { %p453_p0 = scmp.ne.s32.totalorder %s10064_s20, %s10060_s30  ;;  %p441_p1 = scmp.eq.s32.totalorder %s440_s24, 0 }
   0xf   : > { %p454_p2 = scmp.eq.s32.totalorder %s10215_s1, 1  ;;  %p459_p3 = scmp.ne.s32.totalorder %s10060_s30, %s10056_s0 }
  0x10   : > { %p460_p4 = scmp.eq.s32.totalorder %s7734_s22, 1  ;;  %p7737_p7 = scmp.ge.s32.totalorder %s10068_s21, 1 }
  0x11   : > { %s10230_s25 = scalar_select %p441_p1, %s10064_s20, %s443_s23  }
  0x12   : > { %p10232_p5 = por %p454_p2, %p453_p0  ;;  %p10236_p6 = por %p460_p4, %p459_p3 }
  0x13   : > { %13953 = sst [smem:[#allocation8_spill]] %s10230_s25  ;;  %p540_p8 = scmp.lt.s32.totalorder %s10068_s21, 3 }
  0x14   : > { %s13955_s26 = scalar_select %p10236_p6, 1, 0 }
  0x15   : > { %p541_p9 = pnand %p7737_p7, %p540_p8 }
  0x16   : > { %13956 = sst [smem:[#allocation9_spill]] %s13955_s26 }
  0x17   : > { %544 = sbr.rel (%p541_p9) target bundleno = 3327 (0xcff), region = 96 }
  0x1e   : > { %vm681_vm0 = vcmask 1040384   ;;  %v13909_v0 = vmov 0.0   ;;  %p595_p10 = scmp.lt.s32.totalorder %s10215_s1, 1  ;;  %vm928_vm1 = vcmask 1045504   ;;  %vm847_vm2 = vcmask 1046528   ;;  %s13959_s23 = sld [smem:[#allocation15_spill]] }
  0x1f   : > { %v10243_v1 = vrot.slane %v13909_v0, 7  ;;  %s13888_s29 = smov 9   ;;  %s13894_s22 = smov 12   ;;  %vm13939_vm3 = vcmask 1044480   ;;  %vm1789_vm4 = vcmask 23552   ;;  %vm1822_vm5 = vcmask 48128  }
  0x20   : > { %s596_s27 = scalar_select %p595_p10, %s10215_s1, 1  ;;  %vm1855_vm6 = vcmask 72704   ;;  %vm1888_vm7 = vcmask 97280   ;;  %vm1921_vm8 = vcmask 121856   ;;  %vm1954_vm9 = vcmask 146432  }
  0x21   : > { %v10248_v2 = vsel %vm681_vm0, 0.0, %v10243_v1  ;;  %v10252_v3 = vsel %vm681_vm0, %v10243_v1, 0.0  ;;  %v930_v4 = vrot.slane %v10243_v1, 2  ;;  %v849_v5 = vrot.slane %v10243_v1, 1  ;;  %s13965_s25 = smov 15   ;;  %s13966_s20 = smov 18  }
  0x22   : > { %13957 = vst [vmem:[#allocation10_spill] sm:$0xff] %v10248_v2  ;;  %13958 = vst [vmem:[#allocation11_spill] sm:$0xff] %v10252_v3  ;;  %v13913_v6 = vrot.slane %v10248_v2, 2  ;;  %v13914_v7 = vrot.slane %v10252_v3, 2  ;;  %v13911_v8 = vrot.slane %v10248_v2, 1  ;;  %v13912_v9 = vrot.slane %v10252_v3, 1 }
  0x23   : > { %s7921_s28 = sshll.u32 %s596_s27, 8  ;;  %s13890_s27 = smov 6   ;;  %vm1987_vm10 = vcmask 171008   ;;  %vm2020_vm11 = vcmask 195584   ;;  %vm2086_vm12 = vcmask 220160   ;;  %vm3814_vm13 = vcmask 1043456  }
  0x24   : > { %v931_v10 = vsel %vm928_vm1, %v13913_v6, %v930_v4  ;;  %v933_v11 = vsel %vm928_vm1, %v930_v4, %v13914_v7  ;;  %v850_v12 = vsel %vm847_vm2, %v13911_v8, %v849_v5  ;;  %v852_v13 = vsel %vm847_vm2, %v849_v5, %v13912_v9  ;;  %s10276_s24 = scalar_lea.vmem %s13959_s23, %s7921_s28  ;;  %s13892_s28 = smov 3  }
  0x25   : > { %v10278_v14 = vpack.i.bf16 %v933_v11, %v931_v10  ;;  %v10280_v15 = vpack.i.bf16 %v852_v13, %v850_v12  ;;  %v603_v16 = vld [vmem:[%s10276_s24 + $0x10] sm:$0xff]  ;;  %v604_v17 = vld [vmem:[%s10276_s24 + $0x18] sm:$0xff]  ;;  %v601_v18 = vld [vmem:[%s10276_s24] sm:$0xff]  ;;  %s13961_s23 = smov 3   ;;  %s13967_s0 = smov 21   ;;  %vm3453_vm14 = vcmask 64512  }
  0x26   : > { %v687_v19 = vrot.slane %v603_v16, 7  ;;  %v688_v20 = vrot.slane %v604_v17, 7  ;;  %v602_v21 = vld [vmem:[%s10276_s24 + $0x8] sm:$0xff]  ;;  %v684_v22 = vrot.slane %v601_v18, 7  ;;  %v605_v23 = vld [vmem:[%s10276_s24 + $0x20] sm:$0xff]  ;;  %s13968_s2 = smov 24  }
  0x27   : > { %v606_v24 = vld [vmem:[%s10276_s24 + $0x28] sm:$0xff]  ;;  %8310 = vrot.lane.b32.xlu1 %v10278_v14, %s13890_s27  ;;  %8305 = vrot.lane.b32.xlu0 %v10280_v15, %s13892_s28  ;;  %v685_v25 = vrot.slane %v602_v21, 7  ;;  %v690_v26 = vrot.slane %v605_v23, 7  ;;  %v608_v21 = vld [vmem:[%s10276_s24 + $0x38] sm:$0xff]  ;;  %vm3486_vm15 = vcmask 130048   ;;  %s14013_s4 = sld [smem:[#allocation19_spill]] }
  0x28   : > { %v691_v27 = vrot.slane %v606_v24, 7  ;;  %v10293_v28 = vsel %vm681_vm0, %v687_v19, %v688_v20  ;;  %v10296_v29 = vsel %vm681_vm0, 0.0, %v687_v19  ;;  %v10299_v30 = vsel %vm681_vm0, 0.0, %v684_v22  ;;  %s14020_s5 = sld [smem:[#allocation20_spill]] }
  0x29   : > { %v800_v31 = vsel %vm681_vm0, %v688_v20, 0.0  ;;  %v8319_v32 = vpack.i.bf16 %v10293_v28, %v10296_v29  ;;  %v10305_v33 = vsel %vm681_vm0, %v684_v22, %v685_v25  ;;  %v799_v34 = vsel %vm681_vm0, %v685_v25, 0.0  ;;  %v607_v20 = vld [vmem:[%s10276_s24 + $0x30] sm:$0xff] }
  0x2a   : > { %v934_v35 = vrot.slane %v10299_v30, 2  ;;  %v8314_v36 = vpack.i.bf16 %v10305_v33, %v10299_v30  ;;  %v935_v37 = vrot.slane %v10305_v33, 2  ;;  %v937_v38 = vrot.slane %v799_v34, 2 }
  0x2b   : > { %v853_v39 = vrot.slane %v10299_v30, 1  ;;  %8320 = vrot.lane.b32.xlu1 %v8319_v32, %s13888_s29  ;;  %v854_v40 = vrot.slane %v10305_v33, 1  ;;  %v856_v41 = vrot.slane %v799_v34, 1  ;;  %v858_v42 = vrot.slane %v10296_v29, 1 }
  0x2c   : > { %v859_v43 = vrot.slane %v10293_v28, 1  ;;  %8315 = vrot.lane.b32.xlu0 %v8314_v36, %s13888_s29  ;;  %v936_v44 = vsel %vm928_vm1, %v934_v35, %v935_v37  ;;  %v938_v45 = vsel %vm928_vm1, %v935_v37, %v937_v38  ;;  %v861_v46 = vrot.slane %v800_v31, 1  ;;  %s13898_s29 = smov 21   ;;  %v609_v35 = vld [vmem:[%s10276_s24 + $0x40] sm:$0xff] }
  0x2d   : > { %v939_v47 = vrot.slane %v10296_v29, 2  ;;  %v8329_v48 = vpack.i.bf16 %v938_v45, %v936_v44  ;;  %v855_v49 = vsel %vm847_vm2, %v853_v39, %v854_v40  ;;  %v857_v50 = vsel %vm847_vm2, %v854_v40, %v856_v41  ;;  %v610_v40 = vld [vmem:[%s10276_s24 + $0x48] sm:$0xff] }
  0x2e   : > { %v860_v51 = vsel %vm847_vm2, %v858_v42, %v859_v43  ;;  %v8324_v52 = vpack.i.bf16 %v857_v50, %v855_v49  ;;  %v862_v53 = vsel %vm847_vm2, %v859_v43, %v861_v46  ;;  %v940_v54 = vrot.slane %v10293_v28, 2 }
  0x2f   : > { %8330 = vrot.lane.b32.xlu1 %v8329_v48, %s13890_s27  ;;  %v8339_v55 = vpack.i.bf16 %v862_v53, %v860_v51  ;;  %v942_v56 = vrot.slane %v800_v31, 2  ;;  %v10330_v58 = vsel %vm681_vm0, 0.0, %v690_v26  ;;  %v10334_v60 = vsel %vm681_vm0, %v690_v26, %v691_v27  ;;  %s13960_s27 = sld [smem:[#allocation16_spill]] }
  0x30   : > { %8325 = vrot.lane.b32.xlu0 %v8324_v52, %s13892_s28  ;;  %v941_v57 = vsel %vm928_vm1, %v939_v47, %v940_v54  ;;  %v801_v61 = vsel %vm681_vm0, %v691_v27, 0.0  ;;  %v863_v63 = vrot.slane %v10330_v58, 1  ;;  %v864_v4 = vrot.slane %v10334_v60, 1  ;;  %s13902_s28 = smov 15  }
  0x31   : > { %v943_v59 = vsel %vm928_vm1, %v940_v54, %v942_v56  ;;  %v866_v5 = vrot.slane %v801_v61, 1  ;;  %v8359_v11 = vpack.i.bf16 %v10334_v60, %v10330_v58  ;;  %v944_v17 = vrot.slane %v10330_v58, 2 }
  0x32   : > { %v8349_v62 = vpack.i.bf16 %v943_v59, %v941_v57  ;;  %v865_v12 = vsel %vm847_vm2, %v863_v63, %v864_v4  ;;  %v945_v18 = vrot.slane %v10334_v60, 2  ;;  %v947_v19 = vrot.slane %v801_v61, 2 }
  0x33   : > { %8340 = vrot.lane.b32.xlu1 %v8339_v55, %s13894_s22  ;;  %v867_v13 = vsel %vm847_vm2, %v864_v4, %v866_v5  ;;  %v693_v22 = vrot.slane %v607_v20, 7  ;;  %v694_v25 = vrot.slane %v608_v21, 7  ;;  %v696_v43 = vrot.slane %v609_v35, 7  ;;  %v611_v4 = vld [vmem:[%s10276_s24 + $0x50] sm:$0xff] }
  0x34   : > { %8335 = vrot.lane.b32.xlu0 %v8324_v52, %s13894_s22  ;;  %s13896_s22 = smov 18   ;;  %v8369_v16 = vpack.i.bf16 %v867_v13, %v865_v12  ;;  %v946_v23 = vsel %vm928_vm1, %v944_v17, %v945_v18  ;;  %v948_v24 = vsel %vm928_vm1, %v945_v18, %v947_v19  ;;  %v697_v46 = vrot.slane %v610_v40, 7  ;;  %v612_v12 = vld [vmem:[%s10276_s24 + $0x58] sm:$0xff] }
  0x35   : > { %v9894_v10 = vld [vmem:[%s13960_s27] sm:$0xff]   ;;  %v8384_v26 = vpack.i.bf16 %v948_v24, %v946_v23  ;;  %v10363_v27 = vsel %vm681_vm0, 0.0, %v693_v22  ;;  %v10366_v31 = vsel %vm681_vm0, %v693_v22, %v694_v25  ;;  %v10388_v50 = vsel %vm681_vm0, 0.0, %v696_v43  ;;  %v9895_v5 = vld [vmem:[%s13960_s27 + $0x8] sm:$0x3f]   ;;  %s13987_s27 = smov 56  }
  0x36   : > { %8111 = vmatprep.subr.bf16.mxu0 %v9894_v10  ;;  %v868_v34 = vrot.slane %v10363_v27, 1  ;;  %v869_v36 = vrot.slane %v10366_v31, 1  ;;  %v949_v38 = vrot.slane %v10363_v27, 2  ;;  %v950_v39 = vrot.slane %v10366_v31, 2 }
  0x37   : > { %8350 = vrot.lane.b32.xlu1 %v8349_v62, %s13902_s28  ;;  %8112 = vmatpush3.bf16.msra.mxu0 %v9894_v10  ;;  %v8409_v41 = vpack.i.bf16 %v10366_v31, %v10363_v27  ;;  %v10391_v51 = vsel %vm681_vm0, %v696_v43, %v697_v46  ;;  %v803_v52 = vsel %vm681_vm0, %v697_v46, 0.0  ;;  %v873_v54 = vrot.slane %v10388_v50, 1 }
  0x38   : > { %8345 = vrot.lane.b32.xlu0 %v8329_v48, %s13902_s28  ;;  %v870_v44 = vsel %vm847_vm2, %v868_v34, %v869_v36  ;;  %v951_v48 = vsel %vm928_vm1, %v949_v38, %v950_v39  ;;  %s13964_s28 = smov 12   ;;  %v876_v56 = vrot.slane %v803_v52, 1  ;;  %v8439_v57 = vpack.i.bf16 %v10391_v51, %v10388_v50 }
  0x39   : > { %v954_v63 = vrot.slane %v10388_v50, 2  ;;  %v955_v10 = vrot.slane %v10391_v51, 2  ;;  %v10079_v13 = vmov 65535   ;;  %v699_v21 = vrot.slane %v611_v4, 7 }
  0x3a   : > { %v700_v22 = vrot.slane %v612_v12, 7 }
  0x3b   : > { %8360 = vrot.lane.b32.xlu1 %v8359_v11, %s13896_s22  ;;  %v956_v19 = vsel %vm928_vm1, %v954_v63, %v955_v10 }
  0x3c   : > { %8355 = vrot.lane.b32.xlu0 %v8319_v32, %s13896_s22  ;;  %s13900_s22 = smov 24   ;;  %v802_v32 = vsel %vm681_vm0, %v694_v25, 0.0  ;;  %v10422_v24 = vsel %vm681_vm0, %v699_v21, %v700_v22  ;;  %v10425_v25 = vsel %vm681_vm0, 0.0, %v699_v21 }
  0x3d   : > { %v871_v37 = vrot.slane %v802_v32, 1  ;;  %v952_v42 = vrot.slane %v802_v32, 2  ;;  %v878_v32 = vrot.slane %v10425_v25, 1  ;;  %v879_v34 = vrot.slane %v10422_v24, 1 }
  0x3e   : > { %v959_v38 = vrot.slane %v10425_v25, 2  ;;  %v960_v40 = vrot.slane %v10422_v24, 2 }
  0x3f   : > { %8370 = vrot.lane.b32.xlu1 %v8369_v16, %s13898_s29  ;;  %v872_v45 = vsel %vm847_vm2, %v869_v36, %v871_v37  ;;  %v953_v49 = vsel %vm928_vm1, %v950_v39, %v952_v42  ;;  %v613_v36 = vld [vmem:[%s10276_s24 + $0x60] sm:$0xff]  ;;  %v614_v37 = vld [vmem:[%s10276_s24 + $0x68] sm:$0xff]  ;;  %v8489_v39 = vpack.i.bf16 %v10422_v24, %v10425_v25  ;;  %v880_v42 = vsel %vm847_vm2, %v878_v32, %v879_v34 }
  0x40   : > { %8365 = vrot.lane.b32.xlu0 %v8339_v55, %s13898_s29  ;;  %s13962_s29 = smov 6   ;;  %v8419_v47 = vpack.i.bf16 %v872_v45, %v870_v44  ;;  %v8429_v53 = vpack.i.bf16 %v953_v49, %v951_v48  ;;  %v702_v44 = vrot.slane %v613_v36, 7  ;;  %v703_v45 = vrot.slane %v614_v37, 7 }
  0x42   : > { %v10447_v49 = vsel %vm681_vm0, 0.0, %v702_v44 }
  0x43   : > { %8380 = vrot.lane.b32.xlu1 %v8339_v55, %s13961_s23  ;;  %v874_v55 = vrot.slane %v10391_v51, 1  ;;  %v964_v12 = vrot.slane %v10447_v49, 2 }
  0x44   : > { %8375 = vrot.lane.b32.xlu0 %v8349_v62, %s13900_s22 }
  0x45   : > { %v875_v59 = vsel %vm847_vm2, %v873_v54, %v874_v55  ;;  %v877_v61 = vsel %vm847_vm2, %v874_v55, %v876_v56  ;;  %v615_v54 = vld [vmem:[%s10276_s24 + $0x70] sm:$0xff]  ;;  %v883_v56 = vrot.slane %v10447_v49, 1 }
  0x46   : > { %v705_v4 = vrot.slane %v615_v54, 7 }
  0x47   : > { %8390 = vrot.lane.b32.xlu1 %v8369_v16, %s13961_s23 }
  0x48   : > { %8385 = vrot.lane.b32.xlu0 %v8384_v26, %s13900_s22  ;;  %s13963_s22 = smov 9  }
  0x4b   : > { %8400 = vrot.lane.b32.xlu1 %v8384_v26, %s13962_s29 }
  0x4c   : > { %8395 = vrot.lane.b32.xlu0 %v8349_v62, %s13962_s29  ;;  %v8449_v62 = vpack.i.bf16 %v877_v61, %v875_v59  ;;  %v616_v59 = vld [vmem:[%s10276_s24 + $0x78] sm:$0xff] }
  0x4f   : > { %8410 = vrot.lane.b32.xlu1 %v8409_v41, %s13963_s22 }
  0x50   : > { %8405 = vrot.lane.b32.xlu0 %v8359_v11, %s13963_s22  ;;  %v957_v11 = vrot.slane %v803_v52, 2  ;;  %v805_v52 = vsel %vm681_vm0, %v703_v45, 0.0 }
  0x51   : > { %v886_v61 = vrot.slane %v805_v52, 1 }
  0x52   : > { %v958_v20 = vsel %vm928_vm1, %v955_v10, %v957_v11 }
  0x53   : > { %8420 = vrot.lane.b32.xlu1 %v8419_v47, %s13964_s28  ;;  %v8464_v23 = vpack.i.bf16 %v958_v20, %v956_v19 }
  0x54   : > { %8415 = vrot.lane.b32.xlu0 %v8369_v16, %s13964_s28  ;;  %v2136_v16 = vsel %vm13939_vm3, 4294967295, %v10079_v13  ;;  %vm13941_vm3 = vcmask 654336  }
  0x55   : > { %v2137_v17 = vsel %vm928_vm1, %v2136_v16, 0  ;;  %v967_v16 = vrot.slane %v805_v52, 2 }
  0x56   : > { %v2139_v18 = vand.u32 %v9895_v5, %v2137_v17  ;;  %v706_v5 = vrot.slane %v616_v59, 7  ;;  %v10469_v17 = vsel %vm681_vm0, 0.0, %v705_v4 }
  0x57   : > { %8430 = vrot.lane.b32.xlu1 %v8429_v53, %s13965_s25  ;;  %v969_v36 = vrot.slane %v10469_v17, 2 }
  0x58   : > { %8425 = vrot.lane.b32.xlu0 %v8384_v26, %s13965_s25  ;;  %8113 = vmatprep.subr.bf16.mxu0 %v2139_v18  ;;  %v804_v26 = vsel %vm681_vm0, %v700_v22, 0.0  ;;  %v10476_v19 = vsel %vm681_vm0, %v705_v4, %v706_v5  ;;  %v888_v22 = vrot.slane %v10469_v17, 1  ;;  %v619_v4 = vld [vmem:[%s10276_s24 + $0x90] sm:$0xff] }
  0x59   : > { %8114 = vmatpush3.bf16.msra.mxu0 %v2139_v18  ;;  %v881_v35 = vrot.slane %v804_v26, 1  ;;  %v806_v18 = vsel %vm681_vm0, %v706_v5, 0.0  ;;  %v970_v37 = vrot.slane %v10476_v19, 2 }
  0x5b   : > { %8440 = vrot.lane.b32.xlu1 %v8439_v57, %s13966_s20  ;;  %v882_v43 = vsel %vm847_vm2, %v879_v34, %v881_v35  ;;  %v617_v34 = vld [vmem:[%s10276_s24 + $0x80] sm:$0xff]  ;;  %v618_v35 = vld [vmem:[%s10276_s24 + $0x88] sm:$0xff] }
  0x5c   : > { %8435 = vrot.lane.b32.xlu0 %v8409_v41, %s13966_s20  ;;  %v962_v41 = vrot.slane %v804_v26, 2  ;;  %v8499_v46 = vpack.i.bf16 %v882_v43, %v880_v42  ;;  %v891_v26 = vrot.slane %v806_v18, 1 }
  0x5e   : > { %v963_v48 = vsel %vm928_vm1, %v960_v40, %v962_v41  ;;  %v709_v41 = vrot.slane %v618_v35, 7 }
  0x5f   : > { %8450 = vrot.lane.b32.xlu1 %v8449_v62, %s13967_s0 }
  0x60   : > { %8445 = vrot.lane.b32.xlu0 %v8419_v47, %s13967_s0 }
  0x63   : > { %8460 = vrot.lane.b32.xlu1 %v8419_v47, %s13961_s23  ;;  %v961_v47 = vsel %vm928_vm1, %v959_v38, %v960_v40  ;;  %v708_v38 = vrot.slane %v617_v34, 7  ;;  %v972_v40 = vrot.slane %v806_v18, 2 }
  0x64   : > { %8455 = vrot.lane.b32.xlu0 %v8429_v53, %s13968_s2  ;;  %v8509_v55 = vpack.i.bf16 %v963_v48, %v961_v47  ;;  %v971_v47 = vsel %vm928_vm1, %v969_v36, %v970_v37 }
  0x65   : > { %v973_v48 = vsel %vm928_vm1, %v970_v37, %v972_v40  ;;  %v10505_v52 = vsel %vm681_vm0, %v708_v38, %v709_v41  ;;  %v621_v37 = vld [vmem:[%s10276_s24 + $0xa0] sm:$0xff] }
  0x66   : > { %v10508_v54 = vpack.i.bf16 %v973_v48, %v971_v47 }
  0x67   : > { %8470 = vrot.lane.b32.xlu1 %v8449_v62, %s13961_s23 }
  0x68   : > { %8465 = vrot.lane.b32.xlu0 %v8464_v23, %s13968_s2 }
  0x6b   : > { %8480 = vrot.lane.b32.xlu1 %v8464_v23, %s13962_s29 }
  0x6c   : > { %8475 = vrot.lane.b32.xlu0 %v8429_v53, %s13962_s29  ;;  %v10451_v53 = vsel %vm681_vm0, %v702_v44, %v703_v45  ;;  %v10498_v45 = vsel %vm681_vm0, 0.0, %v708_v38  ;;  %v622_v38 = vld [vmem:[%s10276_s24 + $0xa8] sm:$0xff] }
  0x6d   : > { %v8519_v63 = vpack.i.bf16 %v10451_v53, %v10447_v49  ;;  %v974_v18 = vrot.slane %v10498_v45, 2 }
  0x6f   : > { %8490 = vrot.lane.b32.xlu1 %v8489_v39, %s13963_s22 }
  0x70   : > { %8485 = vrot.lane.b32.xlu0 %v8439_v57, %s13963_s22  ;;  %v884_v57 = vrot.slane %v10451_v53, 1 }
  0x72   : > { %v885_v10 = vsel %vm847_vm2, %v883_v56, %v884_v57  ;;  %v887_v11 = vsel %vm847_vm2, %v884_v57, %v886_v61  ;;  %v894_v56 = vrot.slane %v10505_v52, 1  ;;  %v10517_v57 = vpack.i.bf16 %v10505_v52, %v10498_v45 }
  0x73   : > { %8500 = vrot.lane.b32.xlu1 %v8499_v46, %s13964_s28  ;;  %v8529_v13 = vpack.i.bf16 %v887_v11, %v885_v10  ;;  %v620_v11 = vld [vmem:[%s10276_s24 + $0x98] sm:$0xff] }
  0x74   : > { %8495 = vrot.lane.b32.xlu0 %v8449_v62, %s13964_s28  ;;  %v965_v62 = vrot.slane %v10451_v53, 2 }
  0x76   : > { %v966_v20 = vsel %vm928_vm1, %v964_v12, %v965_v62  ;;  %v968_v21 = vsel %vm928_vm1, %v965_v62, %v967_v16  ;;  %v711_v62 = vrot.slane %v619_v4, 7 }
  0x77   : > { %8510 = vrot.lane.b32.xlu1 %v8509_v55, %s13965_s25  ;;  %v8544_v32 = vpack.i.bf16 %v968_v21, %v966_v20  ;;  %v975_v20 = vrot.slane %v10505_v52, 2 }
  0x78   : > { %8505 = vrot.lane.b32.xlu0 %v8464_v23, %s13965_s25  ;;  %v889_v23 = vrot.slane %v10476_v19, 1 }
  0x79   : > { %v976_v35 = vsel %vm928_vm1, %v974_v18, %v975_v20 }
  0x7a   : > { %v890_v42 = vsel %vm847_vm2, %v888_v22, %v889_v23  ;;  %v892_v43 = vsel %vm847_vm2, %v889_v23, %v891_v26  ;;  %v10542_v23 = vsel %vm681_vm0, 0.0, %v711_v62 }
  0x7b   : > { %8520 = vrot.lane.b32.xlu1 %v8519_v63, %s13966_s20  ;;  %v8579_v44 = vpack.i.bf16 %v892_v43, %v890_v42  ;;  %v898_v40 = vrot.slane %v10542_v23, 1  ;;  %v979_v43 = vrot.slane %v10542_v23, 2 }
  0x7c   : > { %8515 = vrot.lane.b32.xlu0 %v8489_v39, %s13966_s20  ;;  %v8569_v39 = vpack.i.bf16 %v10476_v19, %v10469_v17 }
  0x7f   : > { %8530 = vrot.lane.b32.xlu1 %v8529_v13, %s13967_s0 }
  0x80   : > { %8525 = vrot.lane.b32.xlu0 %v8499_v46, %s13967_s0 }
  0x83   : > { %8540 = vrot.lane.b32.xlu1 %v8499_v46, %s13961_s23  ;;  %v807_v46 = vsel %vm681_vm0, %v709_v41, 0.0 }
  0x84   : > { %8535 = vrot.lane.b32.xlu0 %v8509_v55, %s13968_s2  ;;  %v896_v59 = vrot.slane %v807_v46, 1  ;;  %v977_v21 = vrot.slane %v807_v46, 2 }
  0x86   : > { %v978_v36 = vsel %vm928_vm1, %v975_v20, %v977_v21 }
  0x87   : > { %8550 = vrot.lane.b32.xlu1 %v8529_v13, %s13961_s23  ;;  %v10562_v47 = vpack.i.bf16 %v978_v36, %v976_v35 }
  0x88   : > { %8545 = vrot.lane.b32.xlu0 %v8544_v32, %s13968_s2 }
  0x8b   : > { %8560 = vrot.lane.b32.xlu1 %v8544_v32, %s13962_s29 }
  0x8c   : > { %8555 = vrot.lane.b32.xlu0 %v8509_v55, %s13962_s29  ;;  %v893_v55 = vrot.slane %v10498_v45, 1 }
  0x8e   : > { %v895_v61 = vsel %vm847_vm2, %v893_v55, %v894_v56  ;;  %v714_v55 = vrot.slane %v621_v37, 7 }
  0x8f   : > { %8570 = vrot.lane.b32.xlu1 %v8569_v39, %s13963_s22 }
  0x90   : > { %8565 = vrot.lane.b32.xlu0 %v8519_v63, %s13963_s22  ;;  %v897_v63 = vsel %vm847_vm2, %v894_v56, %v896_v59  ;;  %v715_v56 = vrot.slane %v622_v38, 7 }
  0x91   : > { %v10530_v12 = vpack.i.bf16 %v897_v63, %v895_v61 }
  0x92   : > { %v10583_v18 = vsel %vm681_vm0, %v715_v56, 0.0 }
  0x93   : > { %8580 = vrot.lane.b32.xlu1 %v8579_v44, %s13964_s28 }
  0x94   : > { %8575 = vrot.lane.b32.xlu0 %v8529_v13, %s13964_s28  ;;  %v712_v13 = vrot.slane %v620_v11, 7 }
  0x96   : > { %v10546_v26 = vsel %vm681_vm0, %v711_v62, %v712_v13  ;;  %v10577_v62 = vsel %vm681_vm0, %v714_v55, %v715_v56  ;;  %v10616_v56 = vld [vmem:[%s10276_s24 + $0xb8] sm:$0xff] }
  0x97   : > { %8590 = vrot.lane.b32.xlu1 %v10508_v54, %s13965_s25  ;;  %v899_v41 = vrot.slane %v10546_v26, 1  ;;  %v980_v46 = vrot.slane %v10546_v26, 2  ;;  %v10593_v38 = vpack.i.bf16 %v10546_v26, %v10542_v23 }
  0x98   : > { %8585 = vrot.lane.b32.xlu0 %v8544_v32, %s13965_s25  ;;  %v808_v32 = vsel %vm681_vm0, %v712_v13, 0.0  ;;  %v10580_v13 = vsel %vm681_vm0, 0.0, %v714_v55  ;;  %v10613_v55 = vld [vmem:[%s10276_s24 + $0xb0] sm:$0xff] }
  0x99   : > { %v10523_v5 = vpop.permute.xlu1 %8310  ;;  %v10525_v10 = vpop.permute.xlu0 %8305  ;;  %v901_v42 = vrot.slane %v808_v32, 1  ;;  %v982_v48 = vrot.slane %v808_v32, 2  ;;  %v900_v61 = vsel %vm847_vm2, %v898_v40, %v899_v41  ;;  %v981_v4 = vsel %vm928_vm1, %v979_v43, %v980_v46 }
  0x9a   : > { %v8308_v20 = vunpack.i.h.bf16 %v10525_v10  ;;  %v8307_v21 = vunpack.i.l.bf16 %v10525_v10  ;;  %v8313_v43 = vunpack.i.h.bf16 %v10523_v5 }
  0x9b   : > { %8600 = vrot.lane.b32.xlu1 %v10517_v57, %s13966_s20  ;;  %v902_v63 = vsel %vm847_vm2, %v899_v41, %v901_v42  ;;  %v983_v11 = vsel %vm928_vm1, %v980_v46, %v982_v48  ;;  %v903_v41 = vrot.slane %v10580_v13, 1  ;;  %v906_v42 = vrot.slane %v10583_v18, 1 }
  0x9c   : > { %8595 = vrot.lane.b32.xlu0 %v8569_v39, %s13966_s20  ;;  %v10595_v40 = vpack.i.bf16 %v902_v63, %v900_v61  ;;  %v10599_v10 = vpack.i.bf16 %v983_v11, %v981_v4  ;;  %v8312_v46 = vunpack.i.l.bf16 %v10523_v5  ;;  %v10610_v48 = vpack.i.bf16 %v10577_v62, %v10580_v13 }
  0x9d   : > { %v10533_v16 = vpop.permute.xlu1 %8320  ;;  %v1791_v61 = vsel %vm1789_vm4, %v10243_v1, %v8308_v20  ;;  %v1790_v63 = vsel %vm1789_vm4, %v10248_v2, %v8307_v21 }
  0x9e   : > { %v10537_v22 = vpop.permute.xlu0 %8315 }
  0x9f   : > { %8610 = vrot.lane.b32.xlu1 %v10530_v12, %s13967_s0  ;;  %v8318_v11 = vunpack.i.h.bf16 %v10537_v22  ;;  %v8317_v0 = vunpack.i.l.bf16 %v10537_v22  ;;  %v8323_v22 = vunpack.i.h.bf16 %v10533_v16 }
  0xa0   : > { %8605 = vrot.lane.b32.xlu0 %v8579_v44, %s13967_s0 }
  0xa1   : > { %v10549_v34 = vpop.permute.xlu1 %8330 }
  0xa2   : > { %v8326_v39 = vpop.permute.xlu0 %8325  ;;  %v8333_v5 = vunpack.i.h.bf16 %v10549_v34  ;;  %v8332_v4 = vunpack.i.l.bf16 %v10549_v34 }
  0xa3   : > { %8620 = vrot.lane.b32.xlu1 %v8579_v44, %s13961_s23  ;;  %v8328_v35 = vunpack.i.h.bf16 %v8326_v39  ;;  %v8327_v36 = vunpack.i.l.bf16 %v8326_v39  ;;  %v904_v39 = vrot.slane %v10577_v62, 1 }
  0xa4   : > { %8615 = vrot.lane.b32.xlu0 %v10508_v54, %s13968_s2 }
  0xa5   : > { %v10564_v59 = vpop.permute.xlu1 %8340  ;;  %v1793_v8 = vsel %vm1789_vm4, %v10305_v33, %v8328_v35  ;;  %v1792_v20 = vsel %vm1789_vm4, %v10299_v30, %v8327_v36  ;;  %v905_v34 = vsel %vm847_vm2, %v903_v41, %v904_v39  ;;  %v907_v21 = vsel %vm847_vm2, %v904_v39, %v906_v42 }
  0xa6   : > { %v10566_v44 = vpop.permute.xlu0 %8335  ;;  %v8322_v33 = vunpack.i.l.bf16 %v10533_v16  ;;  %v1823_v35 = vsel %vm1822_vm5, %v1790_v63, %v8312_v46  ;;  %v1824_v30 = vsel %vm1822_vm5, %v1791_v61, %v8313_v43  ;;  %v1826_v36 = vsel %vm1822_vm5, %v1793_v8, %v8333_v5 }
  0xa7   : > { %8630 = vrot.lane.b32.xlu1 %v10530_v12, %s13961_s23  ;;  %v1825_v41 = vsel %vm1822_vm5, %v1792_v20, %v8332_v4  ;;  %v8338_v39 = vunpack.i.h.bf16 %v10566_v44  ;;  %v8337_v42 = vunpack.i.l.bf16 %v10566_v44  ;;  %v1857_v7 = vsel %vm1855_vm6, %v1824_v30, %v8318_v11 }
  0xa8   : > { %8625 = vrot.lane.b32.xlu0 %v10562_v47, %s13968_s2  ;;  %v1856_v16 = vsel %vm1855_vm6, %v1823_v35, %v8317_v0  ;;  %v8342_v8 = vunpack.i.l.bf16 %v10564_v59  ;;  %v1858_v44 = vsel %vm1855_vm6, %v1825_v41, %v8322_v33  ;;  %v1859_v4 = vsel %vm1855_vm6, %v1826_v36, %v8323_v22 }
  0xa9   : > { %v10587_v32 = vpop.permute.xlu1 %8350  ;;  %v1889_v20 = vsel %vm1888_vm7, %v1856_v16, %v8337_v42 }
  0xaa   : > { %v10589_v37 = vpop.permute.xlu0 %8345 }
  0xab   : > { %8640 = vrot.lane.b32.xlu1 %v10562_v47, %s13962_s29  ;;  %v8348_v46 = vunpack.i.h.bf16 %v10589_v37  ;;  %v8347_v43 = vunpack.i.l.bf16 %v10589_v37  ;;  %v1890_v37 = vsel %vm1888_vm7, %v1857_v7, %v8338_v39 }
  0xac   : > { %8635 = vrot.lane.b32.xlu0 %v10508_v54, %s13962_s29 }
  0xad   : > { %v10624_v54 = vpop.permute.xlu1 %8360  ;;  %v1922_v30 = vsel %vm1921_vm8, %v1889_v20, %v8347_v43  ;;  %v1923_v33 = vsel %vm1921_vm8, %v1890_v37, %v8348_v46 }
  0xae   : > { %v8356_v9 = vpop.permute.xlu0 %8355  ;;  %v8363_v22 = vunpack.i.h.bf16 %v10624_v54  ;;  %v8362_v36 = vunpack.i.l.bf16 %v10624_v54  ;;  %v1891_v54 = vsel %vm1888_vm7, %v1858_v44, %v8342_v8 }
  0xaf   : > { %8650 = vrot.lane.b32.xlu1 %v10593_v38, %s13963_s22  ;;  %v8358_v63 = vunpack.i.h.bf16 %v8356_v9  ;;  %v8357_v5 = vunpack.i.l.bf16 %v8356_v9  ;;  %v8352_v9 = vunpack.i.l.bf16 %v10587_v32 }
  0xb0   : > { %8645 = vrot.lane.b32.xlu0 %v10517_v57, %s13963_s22  ;;  %v8343_v57 = vunpack.i.h.bf16 %v10564_v59  ;;  %v8353_v59 = vunpack.i.h.bf16 %v10587_v32 }
  0xb1   : > { %v8371_v6 = vpop.permute.xlu1 %8370  ;;  %v1955_v7 = vsel %vm1954_vm9, %v1922_v30, %v8357_v5  ;;  %v1956_v32 = vsel %vm1954_vm9, %v1923_v33, %v8358_v63  ;;  %v1924_v63 = vsel %vm1921_vm8, %v1891_v54, %v8352_v9  ;;  %v10686_v33 = vpack.i.bf16 %v907_v21, %v905_v34 }
  0xb2   : > { %v8366_v61 = vpop.permute.xlu0 %8365  ;;  %v8373_v39 = vunpack.i.h.bf16 %v8371_v6  ;;  %v8372_v42 = vunpack.i.l.bf16 %v8371_v6  ;;  %v1892_v43 = vsel %vm1888_vm7, %v1859_v4, %v8343_v57  ;;  %v984_v34 = vrot.slane %v10580_v13, 2 }
  0xb3   : > { %8660 = vrot.lane.b32.xlu1 %v10595_v40, %s13964_s28  ;;  %v8368_v11 = vunpack.i.h.bf16 %v8366_v61  ;;  %v8367_v0 = vunpack.i.l.bf16 %v8366_v61  ;;  %v1925_v6 = vsel %vm1921_vm8, %v1892_v43, %v8353_v59 }
  0xb4   : > { %8655 = vrot.lane.b32.xlu0 %v10530_v12, %s13964_s28  ;;  %v1958_v8 = vsel %vm1954_vm9, %v1925_v6, %v8363_v22  ;;  %v985_v22 = vrot.slane %v10577_v62, 2 }
  0xb5   : > { %v10664_v35 = vpop.permute.xlu1 %8380  ;;  %v1988_v16 = vsel %vm1987_vm10, %v1955_v7, %v8367_v0  ;;  %v1989_v46 = vsel %vm1987_vm10, %v1956_v32, %v8368_v11  ;;  %v1957_v11 = vsel %vm1954_vm9, %v1924_v63, %v8362_v36  ;;  %v1991_v0 = vsel %vm1987_vm10, %v1958_v8, %v8373_v39 }
  0xb6   : > { %v8376_v41 = vpop.permute.xlu0 %8375  ;;  %v1990_v4 = vsel %vm1987_vm10, %v1957_v11, %v8372_v42  ;;  %v987_v36 = vrot.slane %v10583_v18, 2  ;;  %v986_v43 = vsel %vm928_vm1, %v984_v34, %v985_v22 }
  0xb7   : > { %v8378_v12 = vunpack.i.h.bf16 %v8376_v41  ;;  %v8377_v61 = vunpack.i.l.bf16 %v8376_v41  ;;  %8670 = vrot.lane.b32.xlu1 %v10599_v10, %s13965_s25 }
  0xb8   : > { %8665 = vrot.lane.b32.xlu0 %v10562_v47, %s13965_s25 }
  0xb9   : > { %v10680_v37 = vpop.permute.xlu1 %8390  ;;  %v2021_v20 = vsel %vm2020_vm11, %v1988_v16, %v8377_v61  ;;  %v2022_v5 = vsel %vm2020_vm11, %v1989_v46, %v8378_v12  ;;  %v13970_v61 = vrot.slane %v10613_v55, 7  ;;  %v625_v16 = vld [vmem:[%s10276_s24 + $0xc0] sm:$0xff]  ;;  %v626_v46 = vld [vmem:[%s10276_s24 + $0xc8] sm:$0xff]  ;;  %v988_v55 = vsel %vm928_vm1, %v985_v22, %v987_v36 }
  0xba   : > { %v8386_v30 = vpop.permute.xlu0 %8385  ;;  %v2053_v47 = vpack.c.bf16 %v2022_v5, %v2021_v20  ;;  %v720_v11 = vrot.slane %v625_v16, 7  ;;  %v721_v8 = vrot.slane %v626_v46, 7 }
  0xbb   : > { %v8388_v44 = vunpack.i.h.bf16 %v8386_v30  ;;  %v8387_v57 = vunpack.i.l.bf16 %v8386_v30  ;;  %8680 = vrot.lane.b32.xlu1 %v10610_v48, %s13966_s20  ;;  %v13971_v32 = vmov %v13970_v61 }
  0xbc   : > { %8675 = vrot.lane.b32.xlu0 %v10593_v38, %s13966_s20  ;;  %8115 = vmatprep.mubr.msk.bf16.mxu0 %vm2086_vm12, %v2053_v47  ;;  %v13969_v38 = vrot.slane %v10616_v56, 7  ;;  %v10718_v39 = vsel %vm681_vm0, 0.0, %v13971_v32  ;;  %v10758_v22 = vsel %vm681_vm0, 0.0, %v720_v11 }
  0xbd   : > { %v2023_v21 = vsel %vm2020_vm11, %v1990_v4, %v8387_v57  ;;  %v2024_v59 = vsel %vm2020_vm11, %v1991_v0, %v8388_v44  ;;  %v10700_v9 = vpop.permute.xlu1 %8400  ;;  %v908_v5 = vrot.slane %v10718_v39, 1  ;;  %v989_v6 = vrot.slane %v10718_v39, 2 }
  0xbe   : > { %v10704_v41 = vpop.permute.xlu0 %8395  ;;  %v2054_v12 = vpack.c.bf16 %v2024_v59, %v2023_v21  ;;  %v10713_v7 = vsel %vm681_vm0, %v13970_v61, %v13969_v38  ;;  %v13972_v18 = vmov %v13969_v38  ;;  %v10742_v44 = vpack.i.bf16 %v988_v55, %v986_v43 }
  0xbf   : > { %8690 = vrot.lane.b32.xlu1 %v10686_v33, %s13967_s0  ;;  %v810_v42 = vsel %vm681_vm0, %v13972_v18, 0.0  ;;  %v909_v56 = vrot.slane %v10713_v7, 1  ;;  %v990_v30 = vrot.slane %v10713_v7, 2  ;;  %v10755_v59 = vsel %vm681_vm0, %v720_v11, %v721_v8  ;;  %v10797_v11 = vld [vmem:[%s10276_s24 + $0xd0] sm:$0xff] }
  0xc0   : > { %8685 = vrot.lane.b32.xlu0 %v10595_v40, %s13967_s0  ;;  %8116 = vmatmul.mubr.msk.bf16.vlgmr.msra.gmra.mrb[0].mxu0 %vm2086_vm12, %v2054_v12  ;;  %v911_v63 = vrot.slane %v810_v42, 1  ;;  %v992_v47 = vrot.slane %v810_v42, 2  ;;  %v10764_v36 = vpack.i.bf16 %v10713_v7, %v10718_v39  ;;  %v10767_v12 = vsel %vm681_vm0, %v721_v8, 0.0 }
  0xc1   : > { %v10728_v54 = vpop.permute.xlu1 %8410  ;;  %v910_v0 = vsel %vm847_vm2, %v908_v5, %v909_v56  ;;  %v8393_v38 = vunpack.i.h.bf16 %v10680_v37  ;;  %v8392_v61 = vunpack.i.l.bf16 %v10680_v37  ;;  %v913_v46 = vrot.slane %v10758_v22, 1 }
  0xc2   : > { %v10732_v20 = vpop.permute.xlu0 %8405  ;;  %v912_v34 = vsel %vm847_vm2, %v909_v56, %v911_v63  ;;  %v993_v21 = vsel %vm928_vm1, %v990_v30, %v992_v47  ;;  %v914_v43 = vrot.slane %v10755_v59, 1  ;;  %v10785_v55 = vpack.i.bf16 %v10755_v59, %v10758_v22 }
  0xc3   : > { %8700 = vrot.lane.b32.xlu1 %v10595_v40, %s13961_s23  ;;  %v991_v40 = vsel %vm928_vm1, %v989_v6, %v990_v30  ;;  %v10775_v42 = vpack.i.bf16 %v912_v34, %v910_v0  ;;  %v916_v37 = vrot.slane %v10767_v12, 1  ;;  %v8383_v63 = vunpack.i.h.bf16 %v10664_v35 }
  0xc4   : > { %8695 = vrot.lane.b32.xlu0 %v10599_v10, %s13968_s2  ;;  %v10777_v16 = vpack.i.bf16 %v993_v21, %v991_v40  ;;  %v8382_v6 = vunpack.i.l.bf16 %v10664_v35  ;;  %v8403_v30 = vunpack.i.h.bf16 %v10700_v9  ;;  %v8402_v47 = vunpack.i.l.bf16 %v10700_v9 }
  0xc5   : > { %v10744_v57 = vpop.permute.xlu1 %8420  ;;  %v1797_v8 = vsel %vm1789_vm4, %v10334_v60, %v8393_v38  ;;  %v1796_v0 = vsel %vm1789_vm4, %v10330_v58, %v8392_v61  ;;  %v8398_v34 = vunpack.i.h.bf16 %v10704_v41  ;;  %v8397_v40 = vunpack.i.l.bf16 %v10704_v41 }
  0xc6   : > { %v10746_v4 = vpop.permute.xlu0 %8415  ;;  %v8413_v21 = vunpack.i.h.bf16 %v10728_v54  ;;  %v8412_v9 = vunpack.i.l.bf16 %v10728_v54  ;;  %v8408_v60 = vunpack.i.h.bf16 %v10732_v20  ;;  %v8407_v38 = vunpack.i.l.bf16 %v10732_v20 }
  0xc7   : > { %8710 = vrot.lane.b32.xlu1 %v10686_v33, %s13961_s23  ;;  %v917_v58 = vsel %vm847_vm2, %v914_v43, %v916_v37  ;;  %v1795_v61 = vsel %vm1789_vm4, %v10293_v28, %v8383_v63  ;;  %v1794_v54 = vsel %vm1789_vm4, %v10296_v29, %v8382_v6  ;;  %v1830_v56 = vsel %vm1822_vm5, %v1797_v8, %v8403_v30 }
  0xc8   : > { %8705 = vrot.lane.b32.xlu0 %v10742_v44, %s13968_s2  ;;  %v1828_v20 = vsel %vm1822_vm5, %v1795_v61, %v8398_v34  ;;  %v1827_v3 = vsel %vm1822_vm5, %v1794_v54, %v8397_v40  ;;  %v8417_v37 = vunpack.i.l.bf16 %v10746_v4  ;;  %v1863_v29 = vsel %vm1855_vm6, %v1830_v56, %v8413_v21 }
  0xc9   : > { %v10771_v32 = vpop.permute.xlu1 %8430  ;;  %v8422_v34 = vunpack.i.l.bf16 %v10744_v57 }
  0xca   : > { %v10773_v18 = vpop.permute.xlu0 %8425  ;;  %v8433_v21 = vunpack.i.h.bf16 %v10771_v32 }
  0xcb   : > { %8720 = vrot.lane.b32.xlu1 %v10742_v44, %s13962_s29  ;;  %v8428_v63 = vunpack.i.h.bf16 %v10773_v18  ;;  %v8427_v6 = vunpack.i.l.bf16 %v10773_v18 }
  0xcc   : > { %8715 = vrot.lane.b32.xlu0 %v10599_v10, %s13962_s29  ;;  %v915_v10 = vsel %vm847_vm2, %v913_v46, %v914_v43  ;;  %v1829_v46 = vsel %vm1822_vm5, %v1796_v0, %v8402_v47  ;;  %v8418_v43 = vunpack.i.h.bf16 %v10746_v4  ;;  %v1861_v47 = vsel %vm1855_vm6, %v1828_v20, %v8408_v60 }
  0xcd   : > { %v10805_v35 = vpop.permute.xlu1 %8440  ;;  %v1862_v28 = vsel %vm1855_vm6, %v1829_v46, %v8412_v9  ;;  %v8423_v4 = vunpack.i.h.bf16 %v10744_v57 }
  0xce   : > { %v8436_v5 = vpop.permute.xlu0 %8435  ;;  %v8443_v57 = vunpack.i.h.bf16 %v10805_v35  ;;  %v8442_v61 = vunpack.i.l.bf16 %v10805_v35  ;;  %v1895_v35 = vsel %vm1888_vm7, %v1862_v28, %v8422_v34 }
  0xcf   : > { %8730 = vrot.lane.b32.xlu1 %v10764_v36, %s13963_s22  ;;  %v8438_v8 = vunpack.i.h.bf16 %v8436_v5  ;;  %v8437_v0 = vunpack.i.l.bf16 %v8436_v5  ;;  %v8432_v5 = vunpack.i.l.bf16 %v10771_v32 }
  0xd0   : > { %8725 = vrot.lane.b32.xlu0 %v10610_v48, %s13963_s22  ;;  %v1860_v48 = vsel %vm1855_vm6, %v1827_v3, %v8407_v38  ;;  %v1894_v3 = vsel %vm1888_vm7, %v1861_v47, %v8418_v43 }
  0xd1   : > { %v8451_v41 = vpop.permute.xlu1 %8450  ;;  %v1893_v18 = vsel %vm1888_vm7, %v1860_v48, %v8417_v37  ;;  %v1927_v38 = vsel %vm1921_vm8, %v1894_v3, %v8428_v63 }
  0xd2   : > { %v8446_v30 = vpop.permute.xlu0 %8445  ;;  %v1926_v60 = vsel %vm1921_vm8, %v1893_v18, %v8427_v6  ;;  %v1960_v46 = vsel %vm1954_vm9, %v1927_v38, %v8438_v8  ;;  %v8453_v32 = vunpack.i.h.bf16 %v8451_v41  ;;  %v8452_v37 = vunpack.i.l.bf16 %v8451_v41  ;;  %v629_v38 = vld [vmem:[%s10276_s24 + $0xe0] sm:$0xff] }
  0xd3   : > { %8740 = vrot.lane.b32.xlu1 %v10775_v42, %s13964_s28  ;;  %v8448_v40 = vunpack.i.h.bf16 %v8446_v30  ;;  %v8447_v56 = vunpack.i.l.bf16 %v8446_v30  ;;  %v1896_v30 = vsel %vm1888_vm7, %v1863_v29, %v8423_v4  ;;  %v1928_v41 = vsel %vm1921_vm8, %v1895_v35, %v8432_v5 }
  0xd4   : > { %8735 = vrot.lane.b32.xlu0 %v10686_v33, %s13964_s28  ;;  %v1959_v33 = vsel %vm1954_vm9, %v1926_v60, %v8437_v0  ;;  %v628_v0 = vld [vmem:[%s10276_s24 + $0xd8] sm:$0xff]  ;;  %v1961_v28 = vsel %vm1954_vm9, %v1928_v41, %v8442_v61 }
  0xd5   : > { %v10845_v9 = vpop.permute.xlu1 %8460  ;;  %v1992_v6 = vsel %vm1987_vm10, %v1959_v33, %v8447_v56  ;;  %v1993_v63 = vsel %vm1987_vm10, %v1960_v46, %v8448_v40  ;;  %v1929_v56 = vsel %vm1921_vm8, %v1896_v30, %v8433_v21  ;;  %v1994_v3 = vsel %vm1987_vm10, %v1961_v28, %v8452_v37 }
  0xd6   : > { %v8456_v54 = vpop.permute.xlu0 %8455  ;;  %v1962_v29 = vsel %vm1954_vm9, %v1929_v56, %v8443_v57  ;;  %v630_v57 = vld [vmem:[%s10276_s24 + $0xe8] sm:$0xff]  ;;  %v13973_v33 = vrot.slane %v10755_v59, 2  ;;  %v13977_v37 = vrot.slane %v10797_v11, 7  ;;  %v726_v30 = vrot.slane %v629_v38, 7 }
  0xd7   : > { %v8458_v20 = vunpack.i.h.bf16 %v8456_v54  ;;  %v8457_v43 = vunpack.i.l.bf16 %v8456_v54  ;;  %8750 = vrot.lane.b32.xlu1 %v10777_v16, %s13965_s25  ;;  %v1995_v5 = vsel %vm1987_vm10, %v1962_v29, %v8453_v32 }
  0xd8   : > { %8745 = vrot.lane.b32.xlu0 %v10742_v44, %s13965_s25  ;;  %v10868_v44 = vpack.i.bf16 %v917_v58, %v915_v10  ;;  %v724_v10 = vrot.slane %v628_v0, 7 }
  0xd9   : > { %v2025_v48 = vsel %vm2020_vm11, %v1992_v6, %v8457_v43  ;;  %v2026_v47 = vsel %vm2020_vm11, %v1993_v63, %v8458_v20  ;;  %v10863_v8 = vpop.permute.xlu1 %8470  ;;  %v13975_v20 = vrot.slane %v10767_v12, 2  ;;  %v13976_v43 = vmov %v13973_v33 }
  0xda   : > { %v8466_v18 = vpop.permute.xlu0 %8465  ;;  %v2055_v40 = vpack.c.bf16 %v2026_v47, %v2025_v48  ;;  %v10902_v6 = vsel %vm681_vm0, 0.0, %v13977_v37  ;;  %v13978_v63 = vmov %v13977_v37  ;;  %v812_v12 = vsel %vm681_vm0, %v724_v10, 0.0 }
  0xdb   : > { %v8468_v4 = vunpack.i.h.bf16 %v8466_v18  ;;  %v8467_v34 = vunpack.i.l.bf16 %v8466_v18  ;;  %8760 = vrot.lane.b32.xlu1 %v10785_v55, %s13966_s20  ;;  %v998_v32 = vsel %vm928_vm1, %v13976_v43, %v13975_v20  ;;  %v10910_v35 = vsel %vm681_vm0, %v13978_v63, %v724_v10 }
  0xdc   : > { %8755 = vrot.lane.b32.xlu0 %v10764_v36, %s13966_s20  ;;  %8119 = vmatprep.mubr.msk.bf16.mxu0 %vm2086_vm12, %v2055_v40  ;;  %v13974_v36 = vrot.slane %v10758_v22, 2  ;;  %v727_v48 = vrot.slane %v630_v57, 7  ;;  %v918_v56 = vrot.slane %v10902_v6, 1  ;;  %v919_v11 = vrot.slane %v10910_v35, 1 }
  0xdd   : > { %v2028_v58 = vsel %vm2020_vm11, %v1995_v5, %v8468_v4  ;;  %v2027_v21 = vsel %vm2020_vm11, %v1994_v3, %v8467_v34  ;;  %v10881_v60 = vpop.permute.xlu1 %8480  ;;  %v921_v18 = vrot.slane %v812_v12, 1  ;;  %v999_v40 = vrot.slane %v10902_v6, 2 }
  0xde   : > { %v10885_v61 = vpop.permute.xlu0 %8475  ;;  %v2056_v54 = vpack.c.bf16 %v2028_v58, %v2027_v21  ;;  %v996_v46 = vsel %vm928_vm1, %v13974_v36, %v13973_v33  ;;  %v1000_v28 = vrot.slane %v10910_v35, 2  ;;  %v1002_v29 = vrot.slane %v812_v12, 2 }
  0xdf   : > { %8770 = vrot.lane.b32.xlu1 %v10868_v44, %s13967_s0  ;;  %v10917_v41 = vpack.i.bf16 %v998_v32, %v996_v46  ;;  %v10928_v4 = vsel %vm681_vm0, %v726_v30, %v727_v48  ;;  %v10931_v34 = vsel %vm681_vm0, 0.0, %v726_v30  ;;  %v10934_v3 = vsel %vm681_vm0, %v727_v48, 0.0 }
  0xe0   : > { %8765 = vrot.lane.b32.xlu0 %v10775_v42, %s13967_s0  ;;  %8120 = vmatmul.mubr.msk.bf16.gmra.mrb[4].mxu0 %vm2086_vm12, %v2056_v54  ;;  %v923_v10 = vrot.slane %v10931_v34, 1  ;;  %v924_v58 = vrot.slane %v10928_v4, 1  ;;  %v926_v21 = vrot.slane %v10934_v3, 1  ;;  %v920_v38 = vsel %vm847_vm2, %v918_v56, %v919_v11 }
  0xe1   : > { %v10913_v47 = vpop.permute.xlu1 %8490  ;;  %v922_v57 = vsel %vm847_vm2, %v919_v11, %v921_v18  ;;  %v1001_v54 = vsel %vm928_vm1, %v999_v40, %v1000_v28  ;;  %v1003_v33 = vsel %vm928_vm1, %v1000_v28, %v1002_v29  ;;  %v8473_v36 = vunpack.i.h.bf16 %v10863_v8 }
  0xe2   : > { %v10915_v0 = vpop.permute.xlu0 %8485  ;;  %v8472_v46 = vunpack.i.l.bf16 %v10863_v8  ;;  %v10957_v32 = vpack.i.bf16 %v10910_v35, %v10902_v6  ;;  %v10961_v37 = vpack.i.bf16 %v922_v57, %v920_v38  ;;  %v10963_v63 = vpack.i.bf16 %v1003_v33, %v1001_v54 }
  0xe3   : > { %8780 = vrot.lane.b32.xlu1 %v10775_v42, %s13961_s23  ;;  %v925_v12 = vsel %vm847_vm2, %v923_v10, %v924_v58  ;;  %v927_v30 = vsel %vm847_vm2, %v924_v58, %v926_v21  ;;  %v8463_v8 = vunpack.i.h.bf16 %v10845_v9  ;;  %v8462_v48 = vunpack.i.l.bf16 %v10845_v9 }
  0xe4   : > { %8775 = vrot.lane.b32.xlu0 %v10777_v16, %s13968_s2  ;;  %v8483_v56 = vunpack.i.h.bf16 %v10881_v60  ;;  %v8482_v11 = vunpack.i.l.bf16 %v10881_v60  ;;  %v1801_v18 = vsel %vm1789_vm4, %v10391_v51, %v8473_v36  ;;  %v1800_v40 = vsel %vm1789_vm4, %v10388_v50, %v8472_v46 }
  0xe5   : > { %v10936_v42 = vpop.permute.xlu1 %8500  ;;  %v8478_v28 = vunpack.i.h.bf16 %v10885_v61  ;;  %v8477_v29 = vunpack.i.l.bf16 %v10885_v61  ;;  %v8493_v9 = vunpack.i.h.bf16 %v10913_v47  ;;  %v8492_v58 = vunpack.i.l.bf16 %v10913_v47 }
  0xe6   : > { %v10938_v5 = vpop.permute.xlu0 %8495  ;;  %v8488_v51 = vunpack.i.h.bf16 %v10915_v0  ;;  %v8487_v21 = vunpack.i.l.bf16 %v10915_v0  ;;  %v10991_v50 = vpack.i.bf16 %v927_v30, %v925_v12  ;;  %v1799_v61 = vsel %vm1789_vm4, %v10366_v31, %v8463_v8 }
  0xe7   : > { %8790 = vrot.lane.b32.xlu1 %v10868_v44, %s13961_s23  ;;  %v1798_v47 = vsel %vm1789_vm4, %v10363_v27, %v8462_v48  ;;  %v1833_v38 = vsel %vm1822_vm5, %v1800_v40, %v8482_v11  ;;  %v1834_v57 = vsel %vm1822_vm5, %v1801_v18, %v8483_v56  ;;  %v1832_v0 = vsel %vm1822_vm5, %v1799_v61, %v8478_v28 }
  0xe8   : > { %8785 = vrot.lane.b32.xlu0 %v10917_v41, %s13968_s2  ;;  %v1831_v54 = vsel %vm1822_vm5, %v1798_v47, %v8477_v29  ;;  %v8498_v33 = vunpack.i.h.bf16 %v10938_v5  ;;  %v8497_v36 = vunpack.i.l.bf16 %v10938_v5  ;;  %v1866_v31 = vsel %vm1855_vm6, %v1833_v38, %v8492_v58 }
  0xe9   : > { %v10953_v20 = vpop.permute.xlu1 %8510  ;;  %v1867_v27 = vsel %vm1855_vm6, %v1834_v57, %v8493_v9  ;;  %v1864_v48 = vsel %vm1855_vm6, %v1831_v54, %v8487_v21  ;;  %v8503_v18 = vunpack.i.h.bf16 %v10936_v42  ;;  %v8502_v5 = vunpack.i.l.bf16 %v10936_v42 }
  0xea   : > { %v8506_v43 = vpop.permute.xlu0 %8505  ;;  %v8513_v9 = vunpack.i.h.bf16 %v10953_v20  ;;  %v8512_v58 = vunpack.i.l.bf16 %v10953_v20 }
  0xeb   : > { %8800 = vrot.lane.b32.xlu1 %v10917_v41, %s13962_s29  ;;  %v8508_v12 = vunpack.i.h.bf16 %v8506_v43  ;;  %v8507_v30 = vunpack.i.l.bf16 %v8506_v43  ;;  %v1897_v43 = vsel %vm1888_vm7, %v1864_v48, %v8497_v36 }
  0xec   : > { %8795 = vrot.lane.b32.xlu0 %v10777_v16, %s13962_s29  ;;  %v10985_v16 = vpack.i.bf16 %v10928_v4, %v10931_v34 }
  0xed   : > { %v10979_v10 = vpop.permute.xlu1 %8520 }
  0xee   : > { %v8516_v60 = vpop.permute.xlu0 %8515  ;;  %v8523_v42 = vunpack.i.h.bf16 %v10979_v10  ;;  %v8522_v61 = vunpack.i.l.bf16 %v10979_v10  ;;  %v1899_v10 = vsel %vm1888_vm7, %v1866_v31, %v8502_v5 }
  0xef   : > { %8810 = vrot.lane.b32.xlu1 %v10957_v32, %s13963_s22  ;;  %v8518_v56 = vunpack.i.h.bf16 %v8516_v60  ;;  %v8517_v11 = vunpack.i.l.bf16 %v8516_v60 }
  0xf0   : > { %8805 = vrot.lane.b32.xlu0 %v10785_v55, %s13963_s22  ;;  %v1865_v55 = vsel %vm1855_vm6, %v1832_v0, %v8488_v51  ;;  %v1930_v51 = vsel %vm1921_vm8, %v1897_v43, %v8507_v30 }
  0xf1   : > { %v8531_v46 = vpop.permute.xlu1 %8530  ;;  %v1898_v29 = vsel %vm1888_vm7, %v1865_v55, %v8498_v33  ;;  %v1932_v55 = vsel %vm1921_vm8, %v1899_v10, %v8512_v58  ;;  %v1007_v58 = vrot.slane %v10934_v3, 2 }
  0xf2   : > { %v8526_v8 = vpop.permute.xlu0 %8525  ;;  %v1931_v21 = vsel %vm1921_vm8, %v1898_v29, %v8508_v12  ;;  %v8533_v20 = vunpack.i.h.bf16 %v8531_v46  ;;  %v8532_v54 = vunpack.i.l.bf16 %v8531_v46  ;;  %v1900_v12 = vsel %vm1888_vm7, %v1867_v27, %v8503_v18 }
  0xf3   : > { %8820 = vrot.lane.b32.xlu1 %v10961_v37, %s13964_s28  ;;  %v8528_v40 = vunpack.i.h.bf16 %v8526_v8  ;;  %v8527_v28 = vunpack.i.l.bf16 %v8526_v8  ;;  %v1964_v38 = vsel %vm1954_vm9, %v1931_v21, %v8518_v56  ;;  %v1933_v46 = vsel %vm1921_vm8, %v1900_v12, %v8513_v9 }
  0xf4   : > { %8815 = vrot.lane.b32.xlu0 %v10868_v44, %s13964_s28  ;;  %v1963_v44 = vsel %vm1954_vm9, %v1930_v51, %v8517_v11  ;;  %v1965_v31 = vsel %vm1954_vm9, %v1932_v55, %v8522_v61  ;;  %v1966_v27 = vsel %vm1954_vm9, %v1933_v46, %v8523_v42  ;;  %v1005_v9 = vrot.slane %v10928_v4, 2 }
  0xf5   : > { %v11019_v60 = vpop.permute.xlu1 %8540  ;;  %v1996_v33 = vsel %vm1987_vm10, %v1963_v44, %v8527_v28  ;;  %v1997_v36 = vsel %vm1987_vm10, %v1964_v38, %v8528_v40  ;;  %v1004_v40 = vrot.slane %v10931_v34, 2  ;;  %v631_v28 = vld [vmem:[%s10276_s24 + $0xf0] sm:$0xff]  ;;  %v1998_v43 = vsel %vm1987_vm10, %v1965_v31, %v8532_v54 }
  0xf6   : > { %v8536_v47 = vpop.permute.xlu0 %8535  ;;  %v1999_v29 = vsel %vm1987_vm10, %v1966_v27, %v8533_v20  ;;  %v729_v61 = vrot.slane %v631_v28, 7 }
  0xf7   : > { %v8538_v57 = vunpack.i.h.bf16 %v8536_v47  ;;  %v8537_v0 = vunpack.i.l.bf16 %v8536_v47  ;;  %8830 = vrot.lane.b32.xlu1 %v10963_v63, %s13965_s25 }
  0xf8   : > { %8825 = vrot.lane.b32.xlu0 %v10917_v41, %s13965_s25  ;;  %v632_v41 = vld [vmem:[%s10276_s24 + $0xf8] sm:$0xff]  ;;  %v797_v20 = vsel %vm681_vm0, 0.0, %v729_v61  ;;  %s13979_s24 = sld [smem:[#allocation17_spill]] }
  0xf9   : > { %v2029_v30 = vsel %vm2020_vm11, %v1996_v33, %v8537_v0  ;;  %v2030_v8 = vsel %vm2020_vm11, %v1997_v36, %v8538_v57  ;;  %v11037_v48 = vpop.permute.xlu1 %8550  ;;  %v730_v47 = vrot.slane %v632_v41, 7  ;;  %v1008_v57 = vsel %vm928_vm1, %v1005_v9, %v1007_v58 }
  0xfa   : > { %v8546_v56 = vpop.permute.xlu0 %8545  ;;  %v2057_v11 = vpack.c.bf16 %v2030_v8, %v2029_v30  ;;  %v1011_v10 = vrot.slane %v797_v20, 1  ;;  %v1016_v46 = vrot.slane %v797_v20, 2  ;;  %v8553_v28 = vunpack.i.h.bf16 %v11037_v48 }
  0xfb   : > { %v8548_v18 = vunpack.i.h.bf16 %v8546_v56  ;;  %v8547_v5 = vunpack.i.l.bf16 %v8546_v56  ;;  %8840 = vrot.lane.b32.xlu1 %v10985_v16, %s13966_s20  ;;  %v731_v0 = vsel %vm681_vm0, %v729_v61, %v730_v47  ;;  %v814_v54 = vsel %vm681_vm0, %v730_v47, 0.0 }
  0xfc   : > { %8835 = vrot.lane.b32.xlu0 %v10957_v32, %s13966_s20  ;;  %8123 = vmatprep.mubr.msk.bf16.mxu0 %vm2086_vm12, %v2057_v11  ;;  %v1006_v32 = vsel %vm928_vm1, %v1004_v40, %v1005_v9  ;;  %v1012_v12 = vrot.slane %v731_v0, 1  ;;  %v1014_v30 = vrot.slane %v814_v54, 1  ;;  %v1017_v56 = vrot.slane %v731_v0, 2 }
  0xfd   : > { %v2032_v51 = vsel %vm2020_vm11, %v1999_v29, %v8548_v18  ;;  %v2031_v21 = vsel %vm2020_vm11, %v1998_v43, %v8547_v5  ;;  %v8561_v42 = vpop.permute.xlu1 %8560  ;;  %v11071_v36 = vpack.i.bf16 %v1008_v57, %v1006_v32  ;;  %v1019_v11 = vrot.slane %v814_v54, 2 }
  0xfe   : > { %v8556_v44 = vpop.permute.xlu0 %8555  ;;  %v2058_v38 = vpack.c.bf16 %v2032_v51, %v2031_v21  ;;  %v1015_v40 = vsel %vm847_vm2, %v1012_v12, %v1014_v30  ;;  %v8552_v41 = vunpack.i.l.bf16 %v11037_v48  ;;  %v11087_v18 = vpack.i.bf16 %v731_v0, %v797_v20 }
  0xff   : > { %8850 = vrot.lane.b32.xlu1 %v10991_v50, %s13967_s0  ;;  %v1018_v43 = vsel %vm928_vm1, %v1016_v46, %v1017_v56  ;;  %v1020_v29 = vsel %vm928_vm1, %v1017_v56, %v1019_v11  ;;  %v8543_v9 = vunpack.i.h.bf16 %v11019_v60  ;;  %v8542_v58 = vunpack.i.l.bf16 %v11019_v60 }
 0x100   : > { %8845 = vrot.lane.b32.xlu0 %v10961_v37, %s13967_s0  ;;  %8124 = vmatmul.mubr.msk.bf16.gmra.mrb[8].mxu0 %vm2086_vm12, %v2058_v38  ;;  %v8563_v51 = vunpack.i.h.bf16 %v8561_v42  ;;  %v8562_v48 = vunpack.i.l.bf16 %v8561_v42  ;;  %v1805_v21 = vsel %vm1789_vm4, %v10451_v53, %v8553_v28  ;;  %v1804_v61 = vsel %vm1789_vm4, %v10447_v49, %v8552_v41 }
 0x101   : > { %v8571_v3 = vpop.permute.xlu1 %8570  ;;  %v8558_v47 = vunpack.i.h.bf16 %v8556_v44  ;;  %v8557_v38 = vunpack.i.l.bf16 %v8556_v44  ;;  %v11105_v54 = vpack.i.bf16 %v1020_v29, %v1018_v43  ;;  %v11111_v53 = vpack.i.bf16 %v10243_v1, %v10248_v2 }
 0x102   : > { %v8566_v33 = vpop.permute.xlu0 %8565  ;;  %v8573_v57 = vunpack.i.h.bf16 %v8571_v3  ;;  %v8572_v0 = vunpack.i.l.bf16 %v8571_v3  ;;  %v1803_v49 = vsel %vm1789_vm4, %v10422_v24, %v8543_v9  ;;  %v1837_v44 = vsel %vm1822_vm5, %v1804_v61, %v8562_v48 }
 0x103   : > { %8860 = vrot.lane.b32.xlu1 %v10961_v37, %s13961_s23  ;;  %v1013_v37 = vsel %vm847_vm2, %v1011_v10, %v1012_v12  ;;  %v8568_v60 = vunpack.i.h.bf16 %v8566_v33  ;;  %v8567_v42 = vunpack.i.l.bf16 %v8566_v33  ;;  %v1838_v3 = vsel %vm1822_vm5, %v1805_v21, %v8563_v51 }
 0x104   : > { %8855 = vrot.lane.b32.xlu0 %v10963_v63, %s13968_s2  ;;  %v11091_v5 = vpack.i.bf16 %v1015_v40, %v1013_v37  ;;  %v1836_v33 = vsel %vm1822_vm5, %v1803_v49, %v8558_v47  ;;  %v1870_v24 = vsel %vm1855_vm6, %v1837_v44, %v8572_v0 }
 0x105   : > { %v11073_v8 = vpop.permute.xlu1 %8580 }
 0x106   : > { %v11075_v55 = vpop.permute.xlu0 %8575  ;;  %v8583_v43 = vunpack.i.h.bf16 %v11073_v8 }
 0x107   : > { %8870 = vrot.lane.b32.xlu1 %v10991_v50, %s13961_s23  ;;  %v8578_v12 = vunpack.i.h.bf16 %v11075_v55  ;;  %v8577_v30 = vunpack.i.l.bf16 %v11075_v55  ;;  %v8582_v55 = vunpack.i.l.bf16 %v11073_v8  ;;  %s13929_s23 = smov 56  }
 0x108   : > { %8865 = vrot.lane.b32.xlu0 %v11071_v36, %s13968_s2 }
 0x109   : > { %v11085_v31 = vpop.permute.xlu1 %8590 }
 0x10a   : > { %v8586_v27 = vpop.permute.xlu0 %8585  ;;  %v8593_v51 = vunpack.i.h.bf16 %v11085_v31  ;;  %v8592_v48 = vunpack.i.l.bf16 %v11085_v31 }
 0x10b   : > { %8880 = vrot.lane.b32.xlu1 %v11071_v36, %s13962_s29  ;;  %v8588_v56 = vunpack.i.h.bf16 %v8586_v27  ;;  %v8587_v11 = vunpack.i.l.bf16 %v8586_v27 }
 0x10c   : > { %8875 = vrot.lane.b32.xlu0 %v10963_v63, %s13962_s29  ;;  %v1802_v63 = vsel %vm1789_vm4, %v10425_v25, %v8542_v58  ;;  %v1871_v25 = vsel %vm1855_vm6, %v1838_v3, %v8573_v57  ;;  %s13921_s29 = smov 40  }
 0x10d   : > { %v11103_v32 = vpop.permute.xlu1 %8600  ;;  %v1835_v10 = vsel %vm1822_vm5, %v1802_v63, %v8557_v38  ;;  %v1904_v44 = vsel %vm1888_vm7, %v1871_v25, %v8583_v43 }
 0x10e   : > { %v8596_v20 = vpop.permute.xlu0 %8595  ;;  %v1868_v40 = vsel %vm1855_vm6, %v1835_v10, %v8567_v42  ;;  %v8603_v8 = vunpack.i.h.bf16 %v11103_v32  ;;  %v8602_v38 = vunpack.i.l.bf16 %v11103_v32  ;;  %v1903_v32 = vsel %vm1888_vm7, %v1870_v24, %v8582_v55 }
 0x10f   : > { %8890 = vrot.lane.b32.xlu1 %v11087_v18, %s13963_s22  ;;  %v8598_v28 = vunpack.i.h.bf16 %v8596_v20  ;;  %v8597_v41 = vunpack.i.l.bf16 %v8596_v20  ;;  %v1901_v27 = vsel %vm1888_vm7, %v1868_v40, %v8577_v30  ;;  %v1937_v30 = vsel %vm1921_vm8, %v1904_v44, %v8593_v51 }
 0x110   : > { %8885 = vrot.lane.b32.xlu0 %v10985_v16, %s13963_s22  ;;  %v1869_v16 = vsel %vm1855_vm6, %v1836_v33, %v8568_v60  ;;  %v1934_v61 = vsel %vm1921_vm8, %v1901_v27, %v8587_v11  ;;  %s13925_s22 = smov 32  }
 0x111   : > { %v8611_v46 = vpop.permute.xlu1 %8610  ;;  %v1902_v58 = vsel %vm1888_vm7, %v1869_v16, %v8578_v12  ;;  %v1936_v12 = vsel %vm1921_vm8, %v1903_v32, %v8592_v48 }
 0x112   : > { %v8606_v37 = vpop.permute.xlu0 %8605  ;;  %v1935_v47 = vsel %vm1921_vm8, %v1902_v58, %v8588_v56  ;;  %v8613_v31 = vunpack.i.h.bf16 %v8611_v46  ;;  %v8612_v42 = vunpack.i.l.bf16 %v8611_v46  ;;  %v1969_v11 = vsel %vm1954_vm9, %v1936_v12, %v8602_v38 }
 0x113   : > { %8900 = vrot.lane.b32.xlu1 %v11091_v5, %s13964_s28  ;;  %v8608_v29 = vunpack.i.h.bf16 %v8606_v37  ;;  %v8607_v9 = vunpack.i.l.bf16 %v8606_v37  ;;  %v1968_v0 = vsel %vm1954_vm9, %v1935_v47, %v8598_v28  ;;  %v1970_v37 = vsel %vm1954_vm9, %v1937_v30, %v8603_v8 }
 0x114   : > { %8895 = vrot.lane.b32.xlu0 %v10991_v50, %s13964_s28  ;;  %v1967_v50 = vsel %vm1954_vm9, %v1934_v61, %v8597_v41  ;;  %v2002_v24 = vsel %vm1987_vm10, %v1969_v11, %v8612_v42  ;;  %v2003_v25 = vsel %vm1987_vm10, %v1970_v37, %v8613_v31  ;;  %s13927_s28 = smov 48  }
 0x115   : > { %v11139_v21 = vpop.permute.xlu1 %8620  ;;  %v2000_v49 = vsel %vm1987_vm10, %v1967_v50, %v8607_v9  ;;  %v2001_v63 = vsel %vm1987_vm10, %v1968_v0, %v8608_v29 }
 0x116   : > { %v8616_v57 = vpop.permute.xlu0 %8615  ;;  %v8623_v61 = vunpack.i.h.bf16 %v11139_v21  ;;  %v8622_v47 = vunpack.i.l.bf16 %v11139_v21 }
 0x117   : > { %v8618_v20 = vunpack.i.h.bf16 %v8616_v57  ;;  %v8617_v60 = vunpack.i.l.bf16 %v8616_v57  ;;  %8910 = vrot.lane.b32.xlu1 %v11105_v54, %s13965_s25 }
 0x118   : > { %8905 = vrot.lane.b32.xlu0 %v11071_v36, %s13965_s25  ;;  %v1806_v32 = vsel %vm1789_vm4, %v10469_v17, %v8622_v47  ;;  %s13923_s25 = smov 64  }
 0x119   : > { %v2033_v3 = vsel %vm2020_vm11, %v2000_v49, %v8617_v60  ;;  %v2034_v33 = vsel %vm2020_vm11, %v2001_v63, %v8618_v20  ;;  %v8631_v10 = vpop.permute.xlu1 %8630  ;;  %v1807_v63 = vsel %vm1789_vm4, %v10476_v19, %v8623_v61 }
 0x11a   : > { %v8626_v46 = vpop.permute.xlu0 %8625  ;;  %v2059_v56 = vpack.c.bf16 %v2034_v33, %v2033_v3  ;;  %v8633_v58 = vunpack.i.h.bf16 %v8631_v10  ;;  %v8632_v51 = vunpack.i.l.bf16 %v8631_v10 }
 0x11b   : > { %v8628_v36 = vunpack.i.h.bf16 %v8626_v46  ;;  %v8627_v40 = vunpack.i.l.bf16 %v8626_v46  ;;  %8920 = vrot.lane.b32.xlu1 %v11111_v53, %s13966_s20 }
 0x11c   : > { %8915 = vrot.lane.b32.xlu0 %v11087_v18, %s13966_s20  ;;  %8127 = vmatprep.mubr.msk.bf16.mxu0 %vm2086_vm12, %v2059_v56  ;;  %s13917_s20 = smov 8   ;;  %v1808_v57 = vsel %vm1789_vm4, %v10498_v45, %v8632_v51 }
 0x11d   : > { %v2036_v16 = vsel %vm2020_vm11, %v2003_v25, %v8628_v36  ;;  %v2035_v28 = vsel %vm2020_vm11, %v2002_v24, %v8627_v40  ;;  %v8641_v41 = vpop.permute.xlu1 %8640 }
 0x11e   : > { %v8636_v43 = vpop.permute.xlu0 %8635  ;;  %v2060_v55 = vpack.c.bf16 %v2036_v16, %v2035_v28  ;;  %v8643_v8 = vunpack.i.h.bf16 %v8641_v41  ;;  %v8642_v38 = vunpack.i.l.bf16 %v8641_v41 }
 0x11f   : > { %8930 = vrot.lane.b32.xlu1 %v10280_v15, %s13967_s0  ;;  %v8638_v50 = vunpack.i.h.bf16 %v8636_v43  ;;  %v8637_v0 = vunpack.i.l.bf16 %v8636_v43 }
 0x120   : > { %8925 = vrot.lane.b32.xlu0 %v11091_v5, %s13967_s0  ;;  %8128 = vmatmul.mubr.msk.bf16.gmra.mrb[12].mxu0 %vm2086_vm12, %v2060_v55  ;;  %s13919_s0 = smov 16   ;;  %v1841_v44 = vsel %vm1822_vm5, %v1808_v57, %v8642_v38 }
 0x121   : > { %v8651_v29 = vpop.permute.xlu1 %8650  ;;  %v1840_v45 = vsel %vm1822_vm5, %v1807_v63, %v8638_v50  ;;  %v1839_v3 = vsel %vm1822_vm5, %v1806_v32, %v8637_v0 }
 0x122   : > { %v8646_v9 = vpop.permute.xlu0 %8645  ;;  %v8653_v60 = vunpack.i.h.bf16 %v8651_v29  ;;  %v8652_v31 = vunpack.i.l.bf16 %v8651_v29 }
 0x123   : > { %8940 = vrot.lane.b32.xlu1 %v10278_v14, %s13968_s2  ;;  %v8648_v49 = vunpack.i.h.bf16 %v8646_v9  ;;  %v8647_v21 = vunpack.i.l.bf16 %v8646_v9 }
 0x124   : > { %8935 = vrot.lane.b32.xlu0 %v11105_v54, %s13968_s2  ;;  %v1809_v54 = vsel %vm1789_vm4, %v10505_v52, %v8633_v58  ;;  %v1874_v30 = vsel %vm1855_vm6, %v1841_v44, %v8652_v31 }
 0x125   : > { %v11179_v18 = vpop.permute.xlu1 %8660  ;;  %v1842_v52 = vsel %vm1822_vm5, %v1809_v54, %v8643_v8  ;;  %v1872_v17 = vsel %vm1855_vm6, %v1839_v3, %v8647_v21  ;;  %v1873_v37 = vsel %vm1855_vm6, %v1840_v45, %v8648_v49 }
 0x126   : > { %v8656_v27 = vpop.permute.xlu0 %8655  ;;  %v1875_v46 = vsel %vm1855_vm6, %v1842_v52, %v8653_v60  ;;  %v8663_v24 = vunpack.i.h.bf16 %v11179_v18  ;;  %v8662_v25 = vunpack.i.l.bf16 %v11179_v18 }
 0x127   : > { %v8658_v33 = vunpack.i.h.bf16 %v8656_v27  ;;  %v8657_v10 = vunpack.i.l.bf16 %v8656_v27 }
 0x128   : > { %8945 = vrot.lane.b32.xlu0 %v10280_v15, %s13917_s20  ;;  %v1907_v0 = vsel %vm1888_vm7, %v1874_v30, %v8662_v25  ;;  %v1908_v60 = vsel %vm1888_vm7, %v1875_v46, %v8663_v24 }
 0x129   : > { %v11183_v5 = vpop.permute.xlu1 %8670  ;;  %v1905_v41 = vsel %vm1888_vm7, %v1872_v17, %v8657_v10  ;;  %v1906_v43 = vsel %vm1888_vm7, %v1873_v37, %v8658_v33 }
 0x12a   : > { %v8666_v48 = vpop.permute.xlu0 %8665  ;;  %v8673_v55 = vunpack.i.h.bf16 %v11183_v5  ;;  %v8672_v29 = vunpack.i.l.bf16 %v11183_v5 }
 0x12b   : > { %v8668_v56 = vunpack.i.h.bf16 %v8666_v48  ;;  %v8667_v19 = vunpack.i.l.bf16 %v8666_v48 }
 0x12c   : > { %8950 = vrot.lane.b32.xlu0 %v10278_v14, %s13919_s0  ;;  %v1940_v49 = vsel %vm1921_vm8, %v1907_v0, %v8672_v29  ;;  %v1941_v21 = vsel %vm1921_vm8, %v1908_v60, %v8673_v55 }
 0x12d   : > { %v8681_v20 = vpop.permute.xlu1 %8680  ;;  %v1938_v27 = vsel %vm1921_vm8, %v1905_v41, %v8667_v19  ;;  %v1939_v58 = vsel %vm1921_vm8, %v1906_v43, %v8668_v56 }
 0x12e   : > { %v8676_v42 = vpop.permute.xlu0 %8675  ;;  %v8683_v51 = vunpack.i.h.bf16 %v8681_v20  ;;  %v8682_v48 = vunpack.i.l.bf16 %v8681_v20 }
 0x12f   : > { %v8678_v36 = vunpack.i.h.bf16 %v8676_v42  ;;  %v8677_v40 = vunpack.i.l.bf16 %v8676_v42 }
 0x130   : > { %v1973_v44 = vsel %vm1954_vm9, %v1940_v49, %v8682_v48  ;;  %v1974_v52 = vsel %vm1954_vm9, %v1941_v21, %v8683_v51 }
 0x131   : > { %v8691_v12 = vpop.permute.xlu1 %8690  ;;  %v1971_v18 = vsel %vm1954_vm9, %v1938_v27, %v8677_v40  ;;  %v1972_v47 = vsel %vm1954_vm9, %v1939_v58, %v8678_v36 }
 0x132   : > { %v8686_v11 = vpop.permute.xlu0 %8685  ;;  %v8693_v54 = vunpack.i.h.bf16 %v8691_v12  ;;  %v8692_v57 = vunpack.i.l.bf16 %v8691_v12 }
 0x133   : > { %v8688_v16 = vunpack.i.h.bf16 %v8686_v11  ;;  %v8687_v28 = vunpack.i.l.bf16 %v8686_v11 }
 0x134   : > { %v2006_v33 = vsel %vm1987_vm10, %v1973_v44, %v8692_v57  ;;  %v2007_v10 = vsel %vm1987_vm10, %v1974_v52, %v8693_v54 }
 0x135   : > { %v8701_v9 = vpop.permute.xlu1 %8700  ;;  %v2004_v50 = vsel %vm1987_vm10, %v1971_v18, %v8687_v28  ;;  %v2005_v5 = vsel %vm1987_vm10, %v1972_v47, %v8688_v16 }
 0x136   : > { %v8696_v61 = vpop.permute.xlu0 %8695  ;;  %v8703_v28 = vunpack.i.h.bf16 %v8701_v9  ;;  %v8702_v41 = vunpack.i.l.bf16 %v8701_v9 }
 0x137   : > { %v8698_v8 = vunpack.i.h.bf16 %v8696_v61  ;;  %v8697_v38 = vunpack.i.l.bf16 %v8696_v61 }
 0x138   : > { %v1811_v54 = vsel %vm1789_vm4, %v10546_v26, %v8703_v28  ;;  %v1810_v9 = vsel %vm1789_vm4, %v10542_v23, %v8702_v41 }
 0x139   : > { %v2037_v31 = vsel %vm2020_vm11, %v2004_v50, %v8697_v38  ;;  %v2038_v20 = vsel %vm2020_vm11, %v2005_v5, %v8698_v8  ;;  %v8711_v42 = vpop.permute.xlu1 %8710 }
 0x13a   : > { %v8706_v63 = vpop.permute.xlu0 %8705  ;;  %v2061_v32 = vpack.c.bf16 %v2038_v20, %v2037_v31  ;;  %v8713_v40 = vunpack.i.h.bf16 %v8711_v42  ;;  %v8712_v24 = vunpack.i.l.bf16 %v8711_v42 }
 0x13b   : > { %v8708_v45 = vunpack.i.h.bf16 %v8706_v63  ;;  %v8707_v3 = vunpack.i.l.bf16 %v8706_v63 }
 0x13c   : > { %8131 = vmatprep.mubr.msk.bf16.mxu0 %vm2086_vm12, %v2061_v32  ;;  %v1813_v29 = vsel %vm1789_vm4, %v10577_v62, %v8713_v40  ;;  %v1812_v27 = vsel %vm1789_vm4, %v10580_v13, %v8712_v24 }
 0x13d   : > { %v2040_v12 = vsel %vm2020_vm11, %v2007_v10, %v8708_v45  ;;  %v2039_v30 = vsel %vm2020_vm11, %v2006_v33, %v8707_v3  ;;  %v8721_v46 = vpop.permute.xlu1 %8720 }
 0x13e   : > { %v8716_v56 = vpop.permute.xlu0 %8715  ;;  %v2062_v19 = vpack.c.bf16 %v2040_v12, %v2039_v30  ;;  %v8723_v43 = vunpack.i.h.bf16 %v8721_v46  ;;  %v8722_v55 = vunpack.i.l.bf16 %v8721_v46 }
 0x13f   : > { %v8718_v58 = vunpack.i.h.bf16 %v8716_v56  ;;  %v8717_v51 = vunpack.i.l.bf16 %v8716_v56 }
 0x140   : > { %8132 = vmatmul.mubr.msk.bf16.gmra.mrb[16].mxu0 %vm2086_vm12, %v2062_v19  ;;  %v1845_v57 = vsel %vm1822_vm5, %v1812_v27, %v8722_v55  ;;  %v1846_v62 = vsel %vm1822_vm5, %v1813_v29, %v8723_v43 }
 0x141   : > { %v8731_v11 = vpop.permute.xlu1 %8730  ;;  %v1844_v13 = vsel %vm1822_vm5, %v1811_v54, %v8718_v58  ;;  %v1843_v50 = vsel %vm1822_vm5, %v1810_v9, %v8717_v51 }
 0x142   : > { %v8726_v17 = vpop.permute.xlu0 %8725  ;;  %v8733_v61 = vunpack.i.h.bf16 %v8731_v11  ;;  %v8732_v18 = vunpack.i.l.bf16 %v8731_v11 }
 0x143   : > { %v8728_v8 = vunpack.i.h.bf16 %v8726_v17  ;;  %v8727_v38 = vunpack.i.l.bf16 %v8726_v17 }
 0x144   : > { %v1878_v31 = vsel %vm1855_vm6, %v1845_v57, %v8732_v18  ;;  %v1879_v20 = vsel %vm1855_vm6, %v1846_v62, %v8733_v61 }
 0x145   : > { %v11231_v37 = vpop.permute.xlu1 %8740  ;;  %v1876_v23 = vsel %vm1855_vm6, %v1843_v50, %v8727_v38  ;;  %v1877_v21 = vsel %vm1855_vm6, %v1844_v13, %v8728_v8 }
 0x146   : > { %v8736_v36 = vpop.permute.xlu0 %8735  ;;  %v8743_v44 = vunpack.i.h.bf16 %v11231_v37  ;;  %v8742_v52 = vunpack.i.l.bf16 %v11231_v37 }
 0x147   : > { %v8738_v5 = vunpack.i.h.bf16 %v8736_v36  ;;  %v8737_v0 = vunpack.i.l.bf16 %v8736_v36 }
 0x148   : > { %v1911_v55 = vsel %vm1888_vm7, %v1878_v31, %v8742_v52  ;;  %v1912_v29 = vsel %vm1888_vm7, %v1879_v20, %v8743_v44 }
 0x149   : > { %v11233_v25 = vpop.permute.xlu1 %8750  ;;  %v1909_v33 = vsel %vm1888_vm7, %v1876_v23, %v8737_v0  ;;  %v1910_v10 = vsel %vm1888_vm7, %v1877_v21, %v8738_v5 }
 0x14a   : > { %v8746_v16 = vpop.permute.xlu0 %8745  ;;  %v8753_v12 = vunpack.i.h.bf16 %v11233_v25  ;;  %v8752_v30 = vunpack.i.l.bf16 %v11233_v25 }
 0x14b   : > { %v8748_v42 = vunpack.i.h.bf16 %v8746_v16  ;;  %v8747_v26 = vunpack.i.l.bf16 %v8746_v16 }
 0x14c   : > { %v1945_v61 = vsel %vm1921_vm8, %v1912_v29, %v8753_v12 }
 0x14d   : > { %v8761_v48 = vpop.permute.xlu1 %8760  ;;  %v1942_v56 = vsel %vm1921_vm8, %v1909_v33, %v8747_v26  ;;  %v1943_v19 = vsel %vm1921_vm8, %v1910_v10, %v8748_v42 }
 0x14e   : > { %v8756_v47 = vpop.permute.xlu0 %8755  ;;  %v8763_v11 = vunpack.i.h.bf16 %v8761_v48  ;;  %v8762_v17 = vunpack.i.l.bf16 %v8761_v48  ;;  %v1944_v48 = vsel %vm1921_vm8, %v1911_v55, %v8752_v30 }
 0x14f   : > { %v8758_v63 = vunpack.i.h.bf16 %v8756_v47  ;;  %v8757_v32 = vunpack.i.l.bf16 %v8756_v47 }
 0x150   : > { %v1977_v8 = vsel %vm1954_vm9, %v1944_v48, %v8762_v17  ;;  %v1978_v38 = vsel %vm1954_vm9, %v1945_v61, %v8763_v11 }
 0x151   : > { %v8771_v60 = vpop.permute.xlu1 %8770  ;;  %v1975_v37 = vsel %vm1954_vm9, %v1942_v56, %v8757_v32  ;;  %v1976_v40 = vsel %vm1954_vm9, %v1943_v19, %v8758_v63 }
 0x152   : > { %v8766_v49 = vpop.permute.xlu0 %8765  ;;  %v8773_v28 = vunpack.i.h.bf16 %v8771_v60  ;;  %v8772_v41 = vunpack.i.l.bf16 %v8771_v60 }
 0x153   : > { %v8768_v45 = vunpack.i.h.bf16 %v8766_v49  ;;  %v8767_v3 = vunpack.i.l.bf16 %v8766_v49 }
 0x154   : > { %v2010_v57 = vsel %vm1987_vm10, %v1977_v8, %v8772_v41  ;;  %v2011_v62 = vsel %vm1987_vm10, %v1978_v38, %v8773_v28 }
 0x155   : > { %v8781_v46 = vpop.permute.xlu1 %8780  ;;  %v2008_v43 = vsel %vm1987_vm10, %v1975_v37, %v8767_v3  ;;  %v2009_v25 = vsel %vm1987_vm10, %v1976_v40, %v8768_v45 }
 0x156   : > { %v8776_v36 = vpop.permute.xlu0 %8775  ;;  %v8783_v32 = vunpack.i.h.bf16 %v8781_v46  ;;  %v8782_v44 = vunpack.i.l.bf16 %v8781_v46 }
 0x157   : > { %v8778_v24 = vunpack.i.h.bf16 %v8776_v36  ;;  %v8777_v16 = vunpack.i.l.bf16 %v8776_v36 }
 0x158   : > { %v1815_v37 = vsel %vm1789_vm4, %v10713_v7, %v8783_v32  ;;  %v1814_v46 = vsel %vm1789_vm4, %v10718_v39, %v8782_v44 }
 0x159   : > { %v2041_v27 = vsel %vm2020_vm11, %v2008_v43, %v8777_v16  ;;  %v2042_v58 = vsel %vm2020_vm11, %v2009_v25, %v8778_v24  ;;  %v8791_v51 = vpop.permute.xlu1 %8790 }
 0x15a   : > { %v8786_v18 = vpop.permute.xlu0 %8785  ;;  %v2063_v47 = vpack.c.bf16 %v2042_v58, %v2041_v27  ;;  %v8793_v49 = vunpack.i.h.bf16 %v8791_v51  ;;  %v8792_v23 = vunpack.i.l.bf16 %v8791_v51 }
 0x15b   : > { %v8788_v54 = vunpack.i.h.bf16 %v8786_v18  ;;  %v8787_v9 = vunpack.i.l.bf16 %v8786_v18 }
 0x15c   : > { %8135 = vmatprep.mubr.msk.bf16.mxu0 %vm2086_vm12, %v2063_v47  ;;  %v1817_v3 = vsel %vm1789_vm4, %v10755_v59, %v8793_v49  ;;  %v1816_v33 = vsel %vm1789_vm4, %v10758_v22, %v8792_v23 }
 0x15d   : > { %v2044_v13 = vsel %vm2020_vm11, %v2011_v62, %v8788_v54  ;;  %v2043_v50 = vsel %vm2020_vm11, %v2010_v57, %v8787_v9  ;;  %v8801_v5 = vpop.permute.xlu1 %8800 }
 0x15e   : > { %v8796_v0 = vpop.permute.xlu0 %8795  ;;  %v2064_v60 = vpack.c.bf16 %v2044_v13, %v2043_v50  ;;  %v8803_v52 = vunpack.i.h.bf16 %v8801_v5  ;;  %v8802_v45 = vunpack.i.l.bf16 %v8801_v5 }
 0x15f   : > { %v8798_v10 = vunpack.i.h.bf16 %v8796_v0  ;;  %v8797_v12 = vunpack.i.l.bf16 %v8796_v0 }
 0x160   : > { %8136 = vmatmul.mubr.msk.bf16.gmra.mrb[20].mxu0 %vm2086_vm12, %v2064_v60  ;;  %v1849_v40 = vsel %vm1822_vm5, %v1816_v33, %v8802_v45  ;;  %v1850_v59 = vsel %vm1822_vm5, %v1817_v3, %v8803_v52 }
 0x161   : > { %v8811_v31 = vpop.permute.xlu1 %8810  ;;  %v1848_v22 = vsel %vm1822_vm5, %v1815_v37, %v8798_v10  ;;  %v1847_v24 = vsel %vm1822_vm5, %v1814_v46, %v8797_v12 }
 0x162   : > { %v8806_v20 = vpop.permute.xlu0 %8805  ;;  %v8813_v56 = vunpack.i.h.bf16 %v8811_v31  ;;  %v8812_v19 = vunpack.i.l.bf16 %v8811_v31 }
 0x163   : > { %v8808_v17 = vunpack.i.h.bf16 %v8806_v20  ;;  %v8807_v36 = vunpack.i.l.bf16 %v8806_v20 }
 0x164   : > { %v1882_v43 = vsel %vm1855_vm6, %v1849_v40, %v8812_v19  ;;  %v1883_v25 = vsel %vm1855_vm6, %v1850_v59, %v8813_v56 }
 0x165   : > { %v11277_v42 = vpop.permute.xlu1 %8820  ;;  %v1880_v39 = vsel %vm1855_vm6, %v1847_v24, %v8807_v36  ;;  %v1881_v27 = vsel %vm1855_vm6, %v1848_v22, %v8808_v17 }
 0x166   : > { %v8816_v26 = vpop.permute.xlu0 %8815  ;;  %v8823_v48 = vunpack.i.h.bf16 %v11277_v42  ;;  %v8822_v61 = vunpack.i.l.bf16 %v11277_v42 }
 0x167   : > { %v8818_v16 = vunpack.i.h.bf16 %v8816_v26  ;;  %v8817_v28 = vunpack.i.l.bf16 %v8816_v26 }
 0x168   : > { %v1916_v32 = vsel %vm1888_vm7, %v1883_v25, %v8823_v48 }
 0x169   : > { %v11279_v21 = vpop.permute.xlu1 %8830  ;;  %v1913_v8 = vsel %vm1888_vm7, %v1880_v39, %v8817_v28  ;;  %v1914_v38 = vsel %vm1888_vm7, %v1881_v27, %v8818_v16 }
 0x16a   : > { %v8826_v63 = vpop.permute.xlu0 %8825  ;;  %v8833_v54 = vunpack.i.h.bf16 %v11279_v21  ;;  %v8832_v9 = vunpack.i.l.bf16 %v11279_v21 }
 0x16b   : > { %v8828_v55 = vunpack.i.h.bf16 %v8826_v63  ;;  %v8827_v7 = vunpack.i.l.bf16 %v8826_v63  ;;  %v1915_v63 = vsel %vm1888_vm7, %v1882_v43, %v8822_v61 }
 0x16c   : > { %v1948_v3 = vsel %vm1921_vm8, %v1915_v63, %v8832_v9  ;;  %v1949_v33 = vsel %vm1921_vm8, %v1916_v32, %v8833_v54 }
 0x16d   : > { %v8841_v30 = vpop.permute.xlu1 %8840  ;;  %v1946_v62 = vsel %vm1921_vm8, %v1913_v8, %v8827_v7  ;;  %v1947_v13 = vsel %vm1921_vm8, %v1914_v38, %v8828_v55 }
 0x16e   : > { %v8836_v11 = vpop.permute.xlu0 %8835  ;;  %v8843_v50 = vunpack.i.h.bf16 %v8841_v30  ;;  %v8842_v5 = vunpack.i.l.bf16 %v8841_v30 }
 0x16f   : > { %v8838_v58 = vunpack.i.h.bf16 %v8836_v11  ;;  %v8837_v51 = vunpack.i.l.bf16 %v8836_v11 }
 0x170   : > { %v1981_v30 = vsel %vm1954_vm9, %v1948_v3, %v8842_v5  ;;  %v1982_v56 = vsel %vm1954_vm9, %v1949_v33, %v8843_v50 }
 0x171   : > { %v8851_v41 = vpop.permute.xlu1 %8850  ;;  %v1979_v60 = vsel %vm1954_vm9, %v1946_v62, %v8837_v51  ;;  %v1980_v31 = vsel %vm1954_vm9, %v1947_v13, %v8838_v58 }
 0x172   : > { %v8846_v29 = vpop.permute.xlu0 %8845  ;;  %v8853_v26 = vunpack.i.h.bf16 %v8851_v41  ;;  %v8852_v49 = vunpack.i.l.bf16 %v8851_v41 }
 0x173   : > { %v8848_v18 = vunpack.i.h.bf16 %v8846_v29  ;;  %v8847_v47 = vunpack.i.l.bf16 %v8846_v29 }
 0x174   : > { %v2014_v17 = vsel %vm1987_vm10, %v1981_v30, %v8852_v49  ;;  %v2015_v36 = vsel %vm1987_vm10, %v1982_v56, %v8853_v26 }
 0x175   : > { %v8861_v57 = vpop.permute.xlu1 %8860  ;;  %v2012_v23 = vsel %vm1987_vm10, %v1979_v60, %v8847_v47  ;;  %v2013_v21 = vsel %vm1987_vm10, %v1980_v31, %v8848_v18 }
 0x176   : > { %v8856_v0 = vpop.permute.xlu0 %8855  ;;  %v8863_v25 = vunpack.i.h.bf16 %v8861_v57  ;;  %v8862_v55 = vunpack.i.l.bf16 %v8861_v57 }
 0x177   : > { %v8858_v20 = vunpack.i.h.bf16 %v8856_v0  ;;  %v8857_v42 = vunpack.i.l.bf16 %v8856_v0 }
 0x178   : > { %v1819_v18 = vsel %vm1789_vm4, %v10910_v35, %v8863_v25  ;;  %v1818_v47 = vsel %vm1789_vm4, %v10902_v6, %v8862_v55 }
 0x179   : > { %v2045_v44 = vsel %vm2020_vm11, %v2012_v23, %v8857_v42  ;;  %v2046_v52 = vsel %vm2020_vm11, %v2013_v21, %v8858_v20  ;;  %v8871_v45 = vpop.permute.xlu1 %8870 }
 0x17a   : > { %v8866_v10 = vpop.permute.xlu0 %8865  ;;  %v2065_v12 = vpack.c.bf16 %v2046_v52, %v2045_v44  ;;  %v8873_v28 = vunpack.i.h.bf16 %v8871_v45  ;;  %v8872_v41 = vunpack.i.l.bf16 %v8871_v45 }
 0x17b   : > { %v8868_v19 = vunpack.i.h.bf16 %v8866_v10  ;;  %v8867_v11 = vunpack.i.l.bf16 %v8866_v10 }
 0x17c   : > { %8139 = vmatprep.mubr.msk.bf16.mxu0 %vm2086_vm12, %v2065_v12  ;;  %v1821_v27 = vsel %vm1789_vm4, %v10928_v4, %v8873_v28  ;;  %v1820_v58 = vsel %vm1789_vm4, %v10931_v34, %v8872_v41  ;;  %vm3551_vm4 = vcmask 261120  }
 0x17d   : > { %v2048_v37 = vsel %vm2020_vm11, %v2015_v36, %v8868_v19  ;;  %v2047_v46 = vsel %vm2020_vm11, %v2014_v17, %v8867_v11  ;;  %v8881_v40 = vpop.permute.xlu1 %8880  ;;  %v11348_v11 = vld [vmem:[%s13979_s24] ss:$0 sm:$0xff] }
 0x17e   : > { %v8876_v59 = vpop.permute.xlu0 %8875  ;;  %v2066_v22 = vpack.c.bf16 %v2048_v37, %v2047_v46  ;;  %v8883_v29 = vunpack.i.h.bf16 %v8881_v40  ;;  %v8882_v39 = vunpack.i.l.bf16 %v8881_v40 }
 0x17f   : > { %v8878_v51 = vunpack.i.h.bf16 %v8876_v59  ;;  %v8877_v48 = vunpack.i.l.bf16 %v8876_v59 }
 0x180   : > { %8140 = vmatmul.mubr.msk.bf16.gmra.mrb[24].mxu0 %vm2086_vm12, %v2066_v22  ;;  %v1853_v9 = vsel %vm1822_vm5, %v1820_v58, %v8882_v39  ;;  %v1854_v57 = vsel %vm1822_vm5, %v1821_v27, %v8883_v29 }
 0x181   : > { %v8891_v24 = vpop.permute.xlu1 %8890  ;;  %v1852_v34 = vsel %vm1822_vm5, %v1819_v18, %v8878_v51  ;;  %v1851_v13 = vsel %vm1822_vm5, %v1818_v47, %v8877_v48  ;;  %vm3584_vm5 = vcmask 326656  }
 0x182   : > { %v8886_v16 = vpop.permute.xlu0 %8885  ;;  %v8893_v8 = vunpack.i.h.bf16 %v8891_v24  ;;  %v8892_v38 = vunpack.i.l.bf16 %v8891_v24 }
 0x183   : > { %v8888_v4 = vunpack.i.h.bf16 %v8886_v16  ;;  %v8887_v62 = vunpack.i.l.bf16 %v8886_v16 }
 0x184   : > { %v1886_v20 = vsel %vm1855_vm6, %v1853_v9, %v8892_v38  ;;  %v1887_v42 = vsel %vm1855_vm6, %v1854_v57, %v8893_v8 }
 0x185   : > { %v8901_v43 = vpop.permute.xlu1 %8900  ;;  %v1884_v21 = vsel %vm1855_vm6, %v1851_v13, %v8887_v62  ;;  %v1885_v63 = vsel %vm1855_vm6, %v1852_v34, %v8888_v4  ;;  %vm13940_vm6 = vcmask 392192  }
 0x186   : > { %v8896_v7 = vpop.permute.xlu0 %8895  ;;  %v8903_v50 = vunpack.i.h.bf16 %v8901_v43  ;;  %v8902_v5 = vunpack.i.l.bf16 %v8901_v43 }
 0x187   : > { %v8898_v0 = vunpack.i.h.bf16 %v8896_v7  ;;  %v8897_v35 = vunpack.i.l.bf16 %v8896_v7 }
 0x188   : > { %v1919_v52 = vsel %vm1888_vm7, %v1886_v20, %v8902_v5  ;;  %v1920_v45 = vsel %vm1888_vm7, %v1887_v42, %v8903_v50 }
 0x189   : > { %v8911_v61 = vpop.permute.xlu1 %8910  ;;  %v1917_v10 = vsel %vm1888_vm7, %v1884_v21, %v8897_v35  ;;  %v1918_v12 = vsel %vm1888_vm7, %v1885_v63, %v8898_v0  ;;  %vm3650_vm7 = vcmask 457728  }
 0x18a   : > { %v8906_v54 = vpop.permute.xlu0 %8905  ;;  %v8913_v60 = vunpack.i.h.bf16 %v8911_v61  ;;  %v8912_v31 = vunpack.i.l.bf16 %v8911_v61 }
 0x18b   : > { %v8908_v26 = vunpack.i.h.bf16 %v8906_v54  ;;  %v8907_v49 = vunpack.i.l.bf16 %v8906_v54 }
 0x18c   : > { %v1952_v30 = vsel %vm1921_vm8, %v1919_v52, %v8912_v31  ;;  %v1953_v56 = vsel %vm1921_vm8, %v1920_v45, %v8913_v60 }
 0x18d   : > { %v8921_v6 = vpop.permute.xlu1 %8920  ;;  %v1950_v17 = vsel %vm1921_vm8, %v1917_v10, %v8907_v49  ;;  %v1951_v36 = vsel %vm1921_vm8, %v1918_v12, %v8908_v26  ;;  %vm3683_vm8 = vcmask 523264  }
 0x18e   : > { %v8916_v23 = vpop.permute.xlu0 %8915  ;;  %v8923_v32 = vunpack.i.h.bf16 %v8921_v6  ;;  %v8922_v44 = vunpack.i.l.bf16 %v8921_v6 }
 0x18f   : > { %v8918_v3 = vunpack.i.h.bf16 %v8916_v23  ;;  %v8917_v33 = vunpack.i.l.bf16 %v8916_v23 }
 0x190   : > { %v1985_v59 = vsel %vm1954_vm9, %v1952_v30, %v8922_v44  ;;  %v1986_v22 = vsel %vm1954_vm9, %v1953_v56, %v8923_v32 }
 0x191   : > { %v8931_v19 = vpop.permute.xlu1 %8930  ;;  %v1983_v41 = vsel %vm1954_vm9, %v1950_v17, %v8917_v33  ;;  %v1984_v43 = vsel %vm1954_vm9, %v1951_v36, %v8918_v3  ;;  %vm3765_vm9 = vcmask 588800  }
 0x192   : > { %v8933_v37 = vunpack.i.h.bf16 %v8931_v19  ;;  %v8932_v46 = vunpack.i.l.bf16 %v8931_v19  ;;  %v8926_v40 = vpop.permute.xlu0 %8925 }
 0x193   : > { %v8928_v24 = vunpack.i.h.bf16 %v8926_v40  ;;  %v8927_v16 = vunpack.i.l.bf16 %v8926_v40  ;;  %v8117_v28 = vpop.f32.mrb[0].mxu0 }
 0x194   : > { %v2018_v25 = vsel %vm1987_vm10, %v1985_v59, %v8932_v46  ;;  %v2184_v55 = vadd.f32 %v8117_v28, %v11348_v11  ;;  %v2175_v7 = vpop.f32.mrb[1].mxu0  ;;  %v2019_v29 = vsel %vm1987_vm10, %v1986_v22, %v8933_v37 }
 0x195   : > { %v2016_v39 = vsel %vm1987_vm10, %v1983_v41, %v8927_v16  ;;  %v2017_v27 = vsel %vm1987_vm10, %v1984_v43, %v8928_v24  ;;  %v2176_v58 = vadd.f32 %v11348_v11, %v2175_v7  ;;  %v8118_v51 = vpop.f32.mrb[2].mxu0  ;;  %v8941_v48 = vpop.permute.xlu1 %8940  ;;  %vm4411_vm10 = vcmask 123904  }
 0x196   : > { %v2304_v61 = vmax.f32 %v2184_v55, 0.0  ;;  %v2187_v18 = vadd.f32 %v8118_v51, %v11348_v11  ;;  %v8943_v47 = vunpack.i.h.bf16 %v8941_v48  ;;  %v8942_v8 = vunpack.i.l.bf16 %v8941_v48  ;;  %v8936_v38 = vpop.permute.xlu0 %8935  ;;  %v2178_v54 = vpop.f32.mrb[3].mxu0 }
 0x197   : > { %v2302_v9 = vmax.f32 %v2176_v58, 0.0  ;;  %v8938_v57 = vunpack.i.h.bf16 %v8936_v38  ;;  %v8937_v4 = vunpack.i.l.bf16 %v8936_v38  ;;  %v2179_v62 = vadd.f32 %v11348_v11, %v2178_v54 }
 0x198   : > { %v2369_v34 = vrot.slane %v2304_v61, 7  ;;  %v2305_v13 = vmax.f32 %v2187_v18, 0.0  ;;  %v2051_v50 = vsel %vm2020_vm11, %v2018_v25, %v8942_v8  ;;  %v2052_v5 = vsel %vm2020_vm11, %v2019_v29, %v8943_v47 }
 0x199   : > { %v2049_v0 = vsel %vm2020_vm11, %v2016_v39, %v8937_v4  ;;  %v2050_v35 = vsel %vm2020_vm11, %v2017_v27, %v8938_v57  ;;  %v2303_v60 = vmax.f32 %v2179_v62, 0.0  ;;  %v2068_v20 = vpack.c.bf16 %v2052_v5, %v2051_v50 }
 0x19a   : > { %v2370_v31 = vrot.slane %v2305_v13, 7  ;;  %v2067_v6 = vpack.c.bf16 %v2050_v35, %v2049_v0  ;;  %v11369_v42 = vsel %vm681_vm0, 0.0, %v2369_v34  ;;  %v2366_v49 = vrot.slane %v2302_v9, 7 }
 0x19b   : > { %v2367_v26 = vrot.slane %v2303_v60, 7  ;;  %v2528_v44 = vrot.slane %v11369_v42, 1  ;;  %v2603_v30 = vrot.slane %v11369_v42, 2 }
 0x19c   : > { %v11372_v23 = vsel %vm681_vm0, %v2369_v34, %v2370_v31  ;;  %v2478_v21 = vsel %vm681_vm0, %v2370_v31, 0.0  ;;  %8143 = vmatprep.mubr.msk.bf16.mxu0 %vm2086_vm12, %v2067_v6  ;;  %v11391_v56 = vsel %vm681_vm0, 0.0, %v2366_v49 }
 0x19d   : > { %v2529_v63 = vrot.slane %v11372_v23, 1  ;;  %v2531_v32 = vrot.slane %v2478_v21, 1  ;;  %8144 = vmatmul.mubr.msk.bf16.gmra.mrb[28].mxu0 %vm2086_vm12, %v2068_v20  ;;  %v11380_v52 = vsel %vm681_vm0, %v2366_v49, %v2367_v26  ;;  %v8959_v45 = vpack.i.bf16 %v11372_v23, %v11369_v42 }
 0x19e   : > { %v2604_v33 = vrot.slane %v11372_v23, 2  ;;  %v2606_v10 = vrot.slane %v2478_v21, 2  ;;  %v8964_v17 = vpack.i.bf16 %v11380_v52, %v11391_v56  ;;  %v2477_v46 = vsel %vm681_vm0, %v2367_v26, 0.0 }
 0x19f   : > { %v2532_v3 = vsel %vm847_vm2, %v2529_v63, %v2531_v32  ;;  %8960 = vrot.lane.b32.xlu0 %v8959_v45, %s13927_s28  ;;  %8955 = vrot.lane.b32.xlu1 %v8959_v45, %s13968_s2  ;;  %v2530_v12 = vsel %vm847_vm2, %v2528_v44, %v2529_v63  ;;  %v2524_v59 = vrot.slane %v11380_v52, 1  ;;  %v2526_v22 = vrot.slane %v2477_v46, 1 }
 0x1a0   : > { %v8969_v19 = vpack.i.bf16 %v2532_v3, %v2530_v12  ;;  %v2607_v36 = vsel %vm928_vm1, %v2604_v33, %v2606_v10  ;;  %v2605_v37 = vsel %vm928_vm1, %v2603_v30, %v2604_v33  ;;  %v2523_v24 = vrot.slane %v11391_v56, 1 }
 0x1a1   : > { %v8974_v40 = vpack.i.bf16 %v2607_v36, %v2605_v37  ;;  %v2599_v16 = vrot.slane %v11380_v52, 2  ;;  %v2601_v28 = vrot.slane %v2477_v46, 2  ;;  %v2527_v43 = vsel %vm847_vm2, %v2524_v59, %v2526_v22 }
 0x1a2   : > { %v2525_v41 = vsel %vm847_vm2, %v2523_v24, %v2524_v59  ;;  %v2598_v25 = vrot.slane %v11391_v56, 2  ;;  %vm4982_vm12 = vcmask 1042434  }
 0x1a3   : > { %8970 = vrot.lane.b32.xlu1 %v8969_v19, %s13925_s22  ;;  %8965 = vrot.lane.b32.xlu0 %v8964_v17, %s13968_s2  ;;  %v8999_v55 = vpack.i.bf16 %v2527_v43, %v2525_v41  ;;  %v2602_v29 = vsel %vm928_vm1, %v2599_v16, %v2601_v28 }
 0x1a4   : > { %v2600_v7 = vsel %vm928_vm1, %v2598_v25, %v2599_v16 }
 0x1a5   : > { %v9004_v39 = vpack.i.bf16 %v2602_v29, %v2600_v7 }
 0x1a7   : > { %8975 = vrot.lane.b32.xlu1 %v8974_v40, %s13921_s29  ;;  %8980 = vrot.lane.b32.xlu0 %v8969_v19, %s13929_s23 }
 0x1ab   : > { %8990 = vrot.lane.b32.xlu1 %v8969_v19, %s13917_s20  ;;  %8985 = vrot.lane.b32.xlu0 %v8974_v40, %s13923_s25  ;;  %s13988_s25 = smov 48  }
 0x1af   : > { %8995 = vrot.lane.b32.xlu0 %v8974_v40, %s13919_s0  ;;  %9000 = vrot.lane.b32.xlu1 %v8999_v55, %s13917_s20  ;;  %s13983_s20 = smov 64  }
 0x1b3   : > { %v8121_v27 = vpop.f32.mrb[4].mxu0  ;;  %9010 = vrot.lane.b32.xlu0 %v8999_v55, %s13925_s22  ;;  %9005 = vrot.lane.b32.xlu1 %v9004_v39, %s13919_s0  ;;  %s13980_s0 = sld [smem:[#allocation18_spill]]  ;;  %s13982_s22 = smov 32  }
 0x1b4   : > { %v2200_v58 = vadd.f32 %v8121_v27, %v11348_v11  ;;  %v2191_v51 = vpop.f32.mrb[5].mxu0 }
 0x1b5   : > { %v2192_v48 = vadd.f32 %v11348_v11, %v2191_v51  ;;  %v8122_v61 = vpop.f32.mrb[6].mxu0 }
 0x1b6   : > { %v2308_v18 = vmax.f32 %v2200_v58, 0.0  ;;  %v2203_v47 = vadd.f32 %v8122_v61, %v11348_v11  ;;  %v2194_v8 = vpop.f32.mrb[7].mxu0 }
 0x1b7   : > { %v2195_v38 = vadd.f32 %v11348_v11, %v2194_v8  ;;  %v2306_v54 = vmax.f32 %v2192_v48, 0.0  ;;  %9015 = vrot.lane.b32.xlu0 %v9004_v39, %s13921_s29 }
 0x1b8   : > { %v2309_v9 = vmax.f32 %v2203_v47, 0.0  ;;  %v2375_v57 = vrot.slane %v2308_v18, 7 }
 0x1b9   : > { %v2307_v4 = vmax.f32 %v2195_v38, 0.0  ;;  %v2372_v13 = vrot.slane %v2306_v54, 7  ;;  %s13981_s29 = smov %s13980_s0  ;;  %v9896_v45 = vld [vmem:[%s13980_s0] sm:$0xff]   ;;  %s13984_s0 = smov 40  }
 0x1ba   : > { %v2376_v62 = vrot.slane %v2309_v9, 7  ;;  %v11426_v0 = vsel %vm681_vm0, 0.0, %v2375_v57  ;;  %v9897_v3 = vld [vmem:[%s13981_s29 + $0x8] sm:$0xff]   ;;  %8147 = vmatprep.subr.bf16.mxu1 %v9896_v45  ;;  %v9898_v19 = vld [vmem:[%s13981_s29 + $0x10] sm:$0xff]   ;;  %v9899_v22 = vld [vmem:[%s13981_s29 + $0x18] sm:$0xff]  }
 0x1bb   : > { %v2373_v34 = vrot.slane %v2307_v4, 7  ;;  %v2538_v20 = vrot.slane %v11426_v0, 1  ;;  %v11438_v26 = vsel %vm681_vm0, 0.0, %v2372_v13  ;;  %v2613_v33 = vrot.slane %v11426_v0, 2  ;;  %8148 = vmatpush3.bf16.msra.mxu1 %v9896_v45  ;;  %v9900_v55 = vld [vmem:[%s13981_s29 + $0x20] ss:$0 sps:$4 sm:$0xff]  }
 0x1bc   : > { %v11422_v50 = vsel %vm681_vm0, %v2375_v57, %v2376_v62  ;;  %v2480_v5 = vsel %vm681_vm0, %v2376_v62, 0.0  ;;  %8149 = vmatprep.subr.bf16.mxu1 %v9897_v3  ;;  %v2533_v24 = vrot.slane %v11438_v26, 1  ;;  %v2608_v16 = vrot.slane %v11438_v26, 2  ;;  %s10088_s29 = smov 80  }
 0x1bd   : > { %v11429_v35 = vsel %vm681_vm0, %v2372_v13, %v2373_v34  ;;  %v9024_v60 = vpack.i.bf16 %v11422_v50, %v11426_v0  ;;  %v2539_v31 = vrot.slane %v11422_v50, 1  ;;  %v2541_v6 = vrot.slane %v2480_v5, 1 }
 0x1be   : > { %v9034_v49 = vpack.i.bf16 %v11429_v35, %v11438_v26  ;;  %v2614_v63 = vrot.slane %v11422_v50, 2  ;;  %v2616_v32 = vrot.slane %v2480_v5, 2  ;;  %v2479_v17 = vsel %vm681_vm0, %v2373_v34, 0.0 }
 0x1bf   : > { %9025 = vrot.lane.b32.xlu0 %v9024_v60, %s13927_s28  ;;  %9020 = vrot.lane.b32.xlu1 %v9024_v60, %s13968_s2  ;;  %v2542_v21 = vsel %vm847_vm2, %v2539_v31, %v2541_v6  ;;  %v2540_v44 = vsel %vm847_vm2, %v2538_v20, %v2539_v31  ;;  %v2534_v37 = vrot.slane %v11429_v35, 1  ;;  %v2536_v46 = vrot.slane %v2479_v17, 1 }
 0x1c0   : > { %v9049_v10 = vpack.i.bf16 %v2542_v21, %v2540_v44  ;;  %v2617_v12 = vsel %vm928_vm1, %v2614_v63, %v2616_v32  ;;  %v2615_v30 = vsel %vm928_vm1, %v2613_v33, %v2614_v63  ;;  %8150 = vmatpush3.bf16.msra.mxu1 %v9897_v3  ;;  %v2609_v40 = vrot.slane %v11429_v35, 2 }
 0x1c1   : > { %v9054_v36 = vpack.i.bf16 %v2617_v12, %v2615_v30  ;;  %v2611_v59 = vrot.slane %v2479_v17, 2  ;;  %8151 = vmatprep.subr.bf16.mxu1 %v9898_v19  ;;  %v2537_v28 = vsel %vm847_vm2, %v2534_v37, %v2536_v46  ;;  %v2535_v25 = vsel %vm847_vm2, %v2533_v24, %v2534_v37 }
 0x1c2   : > { %v2610_v43 = vsel %vm928_vm1, %v2608_v16, %v2609_v40  ;;  %v9069_v29 = vpack.i.bf16 %v2537_v28, %v2535_v25  ;;  %v3816_v27 = vsel %vm3814_vm13, %v9900_v55, 0 }
 0x1c3   : > { %9035 = vrot.lane.b32.xlu0 %v9034_v49, %s13968_s2  ;;  %9030 = vrot.lane.b32.xlu1 %v9034_v49, %s13927_s28  ;;  %v2612_v41 = vsel %vm928_vm1, %v2609_v40, %v2611_v59  ;;  %s13985_s28 = smov 16  }
 0x1c4   : > { %8152 = vmatpush3.bf16.msra.mxu1 %v9898_v19  ;;  %v9074_v7 = vpack.i.bf16 %v2612_v41, %v2610_v43 }
 0x1c5   : > { %8153 = vmatprep.subr.bf16.mxu1 %v9899_v22 }
 0x1c7   : > { %9050 = vrot.lane.b32.xlu0 %v9049_v10, %s13929_s23  ;;  %9040 = vrot.lane.b32.xlu1 %v9049_v10, %s13982_s22  ;;  %s13986_s23 = smov 8  }
 0x1c8   : > { %8154 = vmatpush3.bf16.msra.mxu1 %v9899_v22 }
 0x1c9   : > { %8241 = vmatprep.subr.msk.bf16.mxu1 %vm3814_vm13, %v9900_v55  ;;  %vm4984_vm13 = vcmask 1043459  }
 0x1cb   : > { %9055 = vrot.lane.b32.xlu0 %v9054_v36, %s13983_s20  ;;  %9045 = vrot.lane.b32.xlu1 %v9054_v36, %s13984_s0 }
 0x1cc   : > { %8156 = vmatpush3.bf16.msra.mxu1 %v3816_v27 }
 0x1cf   : > { %9065 = vrot.lane.b32.xlu0 %v9054_v36, %s13985_s28  ;;  %9060 = vrot.lane.b32.xlu1 %v9049_v10, %s13986_s23 }
 0x1d3   : > { %v8125_v39 = vpop.f32.mrb[8].mxu0  ;;  %9075 = vrot.lane.b32.xlu0 %v9074_v7, %s13983_s20  ;;  %9070 = vrot.lane.b32.xlu1 %v9069_v29, %s13987_s27 }
 0x1d4   : > { %v2216_v58 = vadd.f32 %v8125_v39, %v11348_v11  ;;  %v2207_v51 = vpop.f32.mrb[9].mxu0 }
 0x1d5   : > { %v2208_v48 = vadd.f32 %v11348_v11, %v2207_v51  ;;  %v8126_v61 = vpop.f32.mrb[10].mxu0 }
 0x1d6   : > { %v2312_v18 = vmax.f32 %v2216_v58, 0.0  ;;  %v2219_v47 = vadd.f32 %v8126_v61, %v11348_v11  ;;  %v2210_v8 = vpop.f32.mrb[11].mxu0 }
 0x1d7   : > { %v2211_v38 = vadd.f32 %v11348_v11, %v2210_v8  ;;  %v2310_v54 = vmax.f32 %v2208_v48, 0.0  ;;  %9090 = vrot.lane.b32.xlu0 %v9069_v29, %s13982_s22  ;;  %9080 = vrot.lane.b32.xlu1 %v9069_v29, %s13986_s23 }
 0x1d8   : > { %v2313_v9 = vmax.f32 %v2219_v47, 0.0  ;;  %v2381_v57 = vrot.slane %v2312_v18, 7 }
 0x1d9   : > { %v2311_v4 = vmax.f32 %v2211_v38, 0.0  ;;  %v2378_v13 = vrot.slane %v2310_v54, 7 }
 0x1da   : > { %v2382_v62 = vrot.slane %v2313_v9, 7  ;;  %v11495_v31 = vsel %vm681_vm0, 0.0, %v2381_v57 }
 0x1db   : > { %v2379_v34 = vrot.slane %v2311_v4, 7  ;;  %9095 = vrot.lane.b32.xlu0 %v9074_v7, %s13984_s0  ;;  %9085 = vrot.lane.b32.xlu1 %v9074_v7, %s13985_s28  ;;  %v2548_v63 = vrot.slane %v11495_v31, 1  ;;  %v11507_v32 = vsel %vm681_vm0, 0.0, %v2378_v13  ;;  %v2623_v12 = vrot.slane %v11495_v31, 2 }
 0x1dc   : > { %v11489_v5 = vsel %vm681_vm0, %v2381_v57, %v2382_v62  ;;  %v2482_v60 = vsel %vm681_vm0, %v2382_v62, 0.0  ;;  %v2543_v24 = vrot.slane %v11507_v32, 1  ;;  %v2618_v16 = vrot.slane %v11507_v32, 2 }
 0x1dd   : > { %v11498_v6 = vsel %vm681_vm0, %v2378_v13, %v2379_v34  ;;  %v9104_v20 = vpack.i.bf16 %v11489_v5, %v11495_v31  ;;  %v2549_v49 = vrot.slane %v11489_v5, 1  ;;  %v2551_v21 = vrot.slane %v2482_v60, 1 }
 0x1de   : > { %v9114_v44 = vpack.i.bf16 %v11498_v6, %v11507_v32  ;;  %v2624_v3 = vrot.slane %v11489_v5, 2  ;;  %v2626_v33 = vrot.slane %v2482_v60, 2  ;;  %v2481_v36 = vsel %vm681_vm0, %v2379_v34, 0.0 }
 0x1df   : > { %9105 = vrot.lane.b32.xlu0 %v9104_v20, %s13988_s25  ;;  %9100 = vrot.lane.b32.xlu1 %v9104_v20, %s13968_s2  ;;  %v2552_v45 = vsel %vm847_vm2, %v2549_v49, %v2551_v21  ;;  %v2550_v10 = vsel %vm847_vm2, %v2548_v63, %v2549_v49  ;;  %v2544_v46 = vrot.slane %v11498_v6, 1  ;;  %v2546_v40 = vrot.slane %v2481_v36, 1 }
 0x1e0   : > { %v9129_v30 = vpack.i.bf16 %v2552_v45, %v2550_v10  ;;  %v2627_v19 = vsel %vm928_vm1, %v2624_v3, %v2626_v33  ;;  %v2625_v17 = vsel %vm928_vm1, %v2623_v12, %v2624_v3  ;;  %v2619_v59 = vrot.slane %v11498_v6, 2 }
 0x1e1   : > { %v9134_v37 = vpack.i.bf16 %v2627_v19, %v2625_v17  ;;  %v2621_v22 = vrot.slane %v2481_v36, 2  ;;  %v2547_v28 = vsel %vm847_vm2, %v2544_v46, %v2546_v40  ;;  %v2545_v25 = vsel %vm847_vm2, %v2543_v24, %v2544_v46  ;;  %v11571_v36 = vpop.permute.xlu0 %8945 }
 0x1e2   : > { %v2620_v43 = vsel %vm928_vm1, %v2618_v16, %v2619_v59  ;;  %v9149_v7 = vpack.i.bf16 %v2547_v28, %v2545_v25 }
 0x1e3   : > { %9115 = vrot.lane.b32.xlu0 %v9114_v44, %s13968_s2  ;;  %9110 = vrot.lane.b32.xlu1 %v9114_v44, %s13988_s25  ;;  %v2622_v41 = vsel %vm928_vm1, %v2619_v59, %v2621_v22 }
 0x1e4   : > { %v9154_v55 = vpack.i.bf16 %v2622_v41, %v2620_v43 }
 0x1e5   : > { %v11582_v41 = vpop.permute.xlu0 %8950 }
 0x1e7   : > { %9130 = vrot.lane.b32.xlu0 %v9129_v30, %s13987_s27  ;;  %9120 = vrot.lane.b32.xlu1 %v9129_v30, %s13982_s22 }
 0x1eb   : > { %9135 = vrot.lane.b32.xlu0 %v9134_v37, %s13983_s20  ;;  %9125 = vrot.lane.b32.xlu1 %v9134_v37, %s13984_s0 }
 0x1ef   : > { %9145 = vrot.lane.b32.xlu0 %v9134_v37, %s13985_s28  ;;  %9140 = vrot.lane.b32.xlu1 %v9129_v30, %s13986_s23 }
 0x1f3   : > { %v8129_v29 = vpop.f32.mrb[12].mxu0  ;;  %9155 = vrot.lane.b32.xlu0 %v9154_v55, %s13983_s20  ;;  %9150 = vrot.lane.b32.xlu1 %v9149_v7, %s13987_s27 }
 0x1f4   : > { %v2232_v39 = vadd.f32 %v8129_v29, %v11348_v11  ;;  %v2223_v27 = vpop.f32.mrb[13].mxu0 }
 0x1f5   : > { %v2224_v58 = vadd.f32 %v11348_v11, %v2223_v27  ;;  %v8130_v51 = vpop.f32.mrb[14].mxu0 }
 0x1f6   : > { %v2316_v48 = vmax.f32 %v2232_v39, 0.0  ;;  %v2235_v61 = vadd.f32 %v8130_v51, %v11348_v11  ;;  %v2226_v18 = vpop.f32.mrb[15].mxu0 }
 0x1f7   : > { %v2227_v47 = vadd.f32 %v11348_v11, %v2226_v18  ;;  %v2314_v8 = vmax.f32 %v2224_v58, 0.0  ;;  %9170 = vrot.lane.b32.xlu0 %v9149_v7, %s13982_s22  ;;  %9160 = vrot.lane.b32.xlu1 %v9149_v7, %s13986_s23 }
 0x1f8   : > { %v2317_v38 = vmax.f32 %v2235_v61, 0.0  ;;  %v2387_v54 = vrot.slane %v2316_v48, 7 }
 0x1f9   : > { %v2315_v9 = vmax.f32 %v2227_v47, 0.0  ;;  %v2384_v62 = vrot.slane %v2314_v8, 7 }
 0x1fa   : > { %v2388_v57 = vrot.slane %v2317_v38, 7  ;;  %v11549_v60 = vsel %vm681_vm0, 0.0, %v2387_v54 }
 0x1fb   : > { %v2385_v4 = vrot.slane %v2315_v9, 7  ;;  %9175 = vrot.lane.b32.xlu0 %v9154_v55, %s13984_s0  ;;  %9165 = vrot.lane.b32.xlu1 %v9154_v55, %s13985_s28  ;;  %v2558_v44 = vrot.slane %v11549_v60, 1  ;;  %v11561_v45 = vsel %vm681_vm0, 0.0, %v2384_v62  ;;  %v2633_v19 = vrot.slane %v11549_v60, 2 }
 0x1fc   : > { %v11543_v34 = vsel %vm681_vm0, %v2387_v54, %v2388_v57  ;;  %v2484_v13 = vsel %vm681_vm0, %v2388_v57, 0.0  ;;  %v2553_v43 = vrot.slane %v11561_v45, 1  ;;  %v2628_v25 = vrot.slane %v11561_v45, 2 }
 0x1fd   : > { %v11552_v20 = vsel %vm681_vm0, %v2384_v62, %v2385_v4  ;;  %v9184_v49 = vpack.i.bf16 %v11543_v34, %v11549_v60  ;;  %v2559_v21 = vrot.slane %v11543_v34, 1  ;;  %v2561_v63 = vrot.slane %v2484_v13, 1 }
 0x1fe   : > { %v9194_v3 = vpack.i.bf16 %v11552_v20, %v11561_v45  ;;  %v2634_v10 = vrot.slane %v11543_v34, 2  ;;  %v2636_v12 = vrot.slane %v2484_v13, 2  ;;  %v2483_v40 = vsel %vm681_vm0, %v2385_v4, 0.0 }
 0x1ff   : > { %9185 = vrot.lane.b32.xlu0 %v9184_v49, %s13988_s25  ;;  %9180 = vrot.lane.b32.xlu1 %v9184_v49, %s13968_s2  ;;  %v2562_v33 = vsel %vm847_vm2, %v2559_v21, %v2561_v63  ;;  %v2560_v30 = vsel %vm847_vm2, %v2558_v44, %v2559_v21  ;;  %v2554_v22 = vrot.slane %v11552_v20, 1  ;;  %v2556_v24 = vrot.slane %v2483_v40, 1 }
 0x200   : > { %v9209_v17 = vpack.i.bf16 %v2562_v33, %v2560_v30  ;;  %v2637_v37 = vsel %vm928_vm1, %v2634_v10, %v2636_v12  ;;  %v2635_v46 = vsel %vm928_vm1, %v2633_v19, %v2634_v10  ;;  %v2629_v16 = vrot.slane %v11552_v20, 2 }
 0x201   : > { %v9214_v59 = vpack.i.bf16 %v2637_v37, %v2635_v46  ;;  %v2631_v28 = vrot.slane %v2483_v40, 2  ;;  %v2557_v55 = vsel %vm847_vm2, %v2554_v22, %v2556_v24  ;;  %v2555_v39 = vsel %vm847_vm2, %v2553_v43, %v2554_v22 }
 0x202   : > { %v2630_v29 = vsel %vm928_vm1, %v2628_v25, %v2629_v16  ;;  %v9229_v48 = vpack.i.bf16 %v2557_v55, %v2555_v39  ;;  %v8947_v19 = vunpack.i.l.bf16 %v11571_v36  ;;  %v8948_v46 = vunpack.i.h.bf16 %v11571_v36 }
 0x203   : > { %9195 = vrot.lane.b32.xlu0 %v9194_v3, %s13968_s2  ;;  %9190 = vrot.lane.b32.xlu1 %v9194_v3, %s13988_s25  ;;  %v2632_v7 = vsel %vm928_vm1, %v2629_v16, %v2631_v28  ;;  %v8952_v16 = vunpack.i.l.bf16 %v11582_v41 }
 0x204   : > { %v9234_v51 = vpack.i.bf16 %v2632_v7, %v2630_v29  ;;  %v3454_v36 = vsel %vm3453_vm14, %v10248_v2, %v8947_v19 }
 0x207   : > { %9210 = vrot.lane.b32.xlu0 %v9209_v17, %s13987_s27  ;;  %9200 = vrot.lane.b32.xlu1 %v9209_v17, %s13982_s22 }
 0x20b   : > { %9215 = vrot.lane.b32.xlu0 %v9214_v59, %s13983_s20  ;;  %9205 = vrot.lane.b32.xlu1 %v9214_v59, %s13984_s0 }
 0x20f   : > { %9225 = vrot.lane.b32.xlu0 %v9214_v59, %s13985_s28  ;;  %9220 = vrot.lane.b32.xlu1 %v9209_v17, %s13986_s23  ;;  %v8953_v59 = vunpack.i.h.bf16 %v11582_v41 }
 0x211   : > { %v11592_v27 = vpop.permute.xlu0 %8960  ;;  %v11594_v58 = vpop.permute.xlu1 %8955 }
 0x213   : > { %v8133_v61 = vpop.f32.mrb[16].mxu0  ;;  %9235 = vrot.lane.b32.xlu0 %v9234_v51, %s13983_s20  ;;  %9230 = vrot.lane.b32.xlu1 %v9229_v48, %s13987_s27 }
 0x214   : > { %v2248_v18 = vadd.f32 %v8133_v61, %v11348_v11  ;;  %v2239_v47 = vpop.f32.mrb[17].mxu0 }
 0x215   : > { %v2240_v8 = vadd.f32 %v11348_v11, %v2239_v47  ;;  %v8134_v38 = vpop.f32.mrb[18].mxu0  ;;  %v11600_v9 = vpop.permute.xlu1 %8970 }
 0x216   : > { %v2320_v54 = vmax.f32 %v2248_v18, 0.0  ;;  %v2251_v57 = vadd.f32 %v8134_v38, %v11348_v11  ;;  %v11603_v4 = vpop.permute.xlu0 %8965  ;;  %v2242_v13 = vpop.f32.mrb[19].mxu0 }
 0x217   : > { %v2318_v62 = vmax.f32 %v2240_v8, 0.0  ;;  %v2243_v21 = vadd.f32 %v11348_v11, %v2242_v13  ;;  %9250 = vrot.lane.b32.xlu0 %v9229_v48, %s13982_s22  ;;  %9240 = vrot.lane.b32.xlu1 %v9229_v48, %s13986_s23  ;;  %v3487_v8 = vsel %vm3486_vm15, %v3454_v36, %v8952_v16 }
 0x218   : > { %v2321_v49 = vmax.f32 %v2251_v57, 0.0  ;;  %v2393_v63 = vrot.slane %v2320_v54, 7 }
 0x219   : > { %v2319_v3 = vmax.f32 %v2243_v21, 0.0  ;;  %v2390_v10 = vrot.slane %v2318_v62, 7  ;;  %v11613_v30 = vpop.permute.xlu1 %8975  ;;  %v8967_v62 = vunpack.i.l.bf16 %v11603_v4 }
 0x21a   : > { %v2394_v44 = vrot.slane %v2321_v49, 7  ;;  %v11608_v33 = vpop.permute.xlu0 %8980  ;;  %v11631_v28 = vsel %vm681_vm0, 0.0, %v2393_v63 }
 0x21b   : > { %9255 = vrot.lane.b32.xlu0 %v9234_v51, %s13984_s0  ;;  %9245 = vrot.lane.b32.xlu1 %v9234_v51, %s13985_s28  ;;  %v2391_v17 = vrot.slane %v2319_v3, 7  ;;  %v11622_v40 = vsel %vm681_vm0, 0.0, %v2390_v10  ;;  %v3455_v51 = vsel %vm3453_vm14, %v10243_v1, %v8948_v46  ;;  %v8968_v1 = vunpack.i.h.bf16 %v11603_v4 }
 0x21c   : > { %v11611_v12 = vsel %vm681_vm0, %v2393_v63, %v2394_v44  ;;  %v2638_v55 = vrot.slane %v11622_v40, 2  ;;  %v2563_v38 = vrot.slane %v11622_v40, 1  ;;  %v3488_v57 = vsel %vm3486_vm15, %v3455_v51, %v8953_v59 }
 0x21d   : > { %v11626_v22 = vsel %vm681_vm0, %v2390_v10, %v2391_v17  ;;  %v2485_v24 = vsel %vm681_vm0, %v2391_v17, 0.0  ;;  %v11637_v7 = vpop.permute.xlu1 %8990  ;;  %v11641_v29 = vpack.i.bf16 %v11611_v12, %v11631_v28  ;;  %v2486_v63 = vsel %vm681_vm0, %v2394_v44, 0.0 }
 0x21e   : > { %v11618_v37 = vpop.permute.xlu0 %8985  ;;  %v2639_v43 = vrot.slane %v11626_v22, 2  ;;  %v2641_v25 = vrot.slane %v2485_v24, 2  ;;  %v9269_v41 = vpack.i.bf16 %v11626_v22, %v11622_v40  ;;  %v2564_v48 = vrot.slane %v11626_v22, 1 }
 0x21f   : > { %v2566_v61 = vrot.slane %v2485_v24, 1  ;;  %9260 = vrot.lane.b32.xlu1 %v11641_v29, %s13968_s2  ;;  %v8963_v4 = vunpack.i.h.bf16 %v11592_v27  ;;  %v8962_v17 = vunpack.i.l.bf16 %v11592_v27  ;;  %v3520_v46 = vsel %vm2020_vm11, %v3488_v57, %v8968_v1 }
 0x220   : > { %v2642_v18 = vsel %vm928_vm1, %v2639_v43, %v2641_v25  ;;  %9270 = vrot.lane.b32.xlu0 %v9269_v41, %s13968_s2  ;;  %v2640_v47 = vsel %vm928_vm1, %v2638_v55, %v2639_v43  ;;  %v2565_v21 = vsel %vm847_vm2, %v2563_v38, %v2564_v48  ;;  %v3519_v59 = vsel %vm2020_vm11, %v3487_v8, %v8967_v62 }
 0x221   : > { %v9279_v54 = vpack.i.bf16 %v2642_v18, %v2640_v47  ;;  %v2567_v49 = vsel %vm847_vm2, %v2564_v48, %v2566_v61  ;;  %v11663_v3 = vpop.permute.xlu1 %9000  ;;  %v2569_v16 = vrot.slane %v11611_v12, 1  ;;  %v2571_v43 = vrot.slane %v2486_v63, 1 }
 0x222   : > { %v11645_v39 = vpop.permute.xlu0 %8995  ;;  %v9274_v44 = vpack.i.bf16 %v2567_v49, %v2565_v21  ;;  %v8983_v55 = vunpack.i.h.bf16 %v11608_v33  ;;  %v8988_v48 = vunpack.i.h.bf16 %v11618_v37  ;;  %v8987_v61 = vunpack.i.l.bf16 %v11618_v37 }
 0x223   : > { %9265 = vrot.lane.b32.xlu1 %v9269_v41, %s13988_s25  ;;  %v8982_v41 = vunpack.i.l.bf16 %v11608_v33  ;;  %v2568_v62 = vrot.slane %v11631_v28, 1  ;;  %v2644_v49 = vrot.slane %v11611_v12, 2  ;;  %v2646_v21 = vrot.slane %v2486_v63, 2 }
 0x224   : > { %9280 = vrot.lane.b32.xlu0 %v9279_v54, %s13983_s20 }
 0x225   : > { %v9006_v8 = vpop.permute.xlu1 %9005 }
 0x226   : > { %v9011_v13 = vpop.permute.xlu0 %9010 }
 0x227   : > { %v9013_v10 = vunpack.i.h.bf16 %v9011_v13  ;;  %v9012_v19 = vunpack.i.l.bf16 %v9011_v13  ;;  %9275 = vrot.lane.b32.xlu1 %v9274_v44, %s13987_s27 }
 0x228   : > { %9295 = vrot.lane.b32.xlu0 %v9274_v44, %s13982_s22 }
 0x229   : > { %v3553_v51 = vsel %vm3551_vm4, %v3520_v46, %v9013_v10  ;;  %v3552_v27 = vsel %vm3551_vm4, %v3519_v59, %v9012_v19  ;;  %v2572_v19 = vsel %vm847_vm2, %v2569_v16, %v2571_v43  ;;  %v2570_v46 = vsel %vm847_vm2, %v2568_v62, %v2569_v16 }
 0x22a   : > { %v9016_v24 = vpop.permute.xlu0 %9015  ;;  %v2647_v43 = vsel %vm928_vm1, %v2644_v49, %v2646_v21 }
 0x22b   : > { %v9018_v25 = vunpack.i.h.bf16 %v9016_v24  ;;  %v9017_v36 = vunpack.i.l.bf16 %v9016_v24  ;;  %9285 = vrot.lane.b32.xlu1 %v9274_v44, %s13986_s23  ;;  %v2643_v44 = vrot.slane %v11631_v28, 2 }
 0x22c   : > { %9305 = vrot.lane.b32.xlu0 %v9279_v54, %s13984_s0 }
 0x22d   : > { %v3585_v18 = vsel %vm3584_vm5, %v3552_v27, %v9017_v36  ;;  %v3586_v47 = vsel %vm3584_vm5, %v3553_v51, %v9018_v25  ;;  %v11705_v25 = vpack.i.bf16 %v2572_v19, %v2570_v46  ;;  %v8958_v19 = vunpack.i.h.bf16 %v11594_v58 }
 0x22e   : > { %v3618_v38 = vsel %vm13940_vm6, %v3585_v18, %v8962_v17  ;;  %v3619_v33 = vsel %vm13940_vm6, %v3586_v47, %v8963_v4  ;;  %v9002_v18 = vunpack.i.l.bf16 %v11663_v3 }
 0x22f   : > { %v3651_v57 = vsel %vm3650_vm7, %v3618_v38, %v8982_v41  ;;  %v3652_v1 = vsel %vm3650_vm7, %v3619_v33, %v8983_v55  ;;  %9290 = vrot.lane.b32.xlu1 %v9279_v54, %s13985_s28  ;;  %v2645_v54 = vsel %vm928_vm1, %v2643_v44, %v2644_v49  ;;  %v9008_v33 = vunpack.i.h.bf16 %v9006_v8 }
 0x230   : > { %v3684_v37 = vsel %vm3683_vm8, %v3651_v57, %v8987_v61  ;;  %v3685_v13 = vsel %vm3683_vm8, %v3652_v1, %v8988_v48  ;;  %9315 = vrot.lane.b32.xlu0 %v11641_v29, %s13988_s25  ;;  %v9003_v61 = vunpack.i.h.bf16 %v11663_v3  ;;  %v9007_v57 = vunpack.i.l.bf16 %v9006_v8 }
 0x231   : > { %v3716_v10 = vpack.c.bf16 %v3685_v13, %v3684_v37  ;;  %v11693_v4 = vpop.permute.xlu0 %9025  ;;  %v11695_v17 = vpop.permute.xlu1 %9020  ;;  %v11721_v1 = vpack.i.bf16 %v2647_v43, %v2645_v54  ;;  %v8972_v44 = vunpack.i.l.bf16 %v11600_v9 }
 0x233   : > { %8157 = vmatprep.mubr.msk.bf16.mxu1 %vm3765_vm9, %v3716_v10  ;;  %v8137_v59 = vpop.f32.mrb[20].mxu0  ;;  %9300 = vrot.lane.b32.xlu1 %v11705_v25, %s13982_s22  ;;  %v3457_v10 = vsel %vm3453_vm14, %v11380_v52, %v9003_v61 }
 0x234   : > { %v2264_v63 = vadd.f32 %v8137_v59, %v11348_v11  ;;  %v2255_v24 = vpop.f32.mrb[21].mxu0  ;;  %9325 = vrot.lane.b32.xlu0 %v11705_v25, %s13987_s27  ;;  %v3490_v52 = vsel %vm3486_vm15, %v3457_v10, %v9008_v33  ;;  %v8957_v59 = vunpack.i.l.bf16 %v11594_v58 }
 0x235   : > { %v2256_v36 = vadd.f32 %v11348_v11, %v2255_v24  ;;  %v8138_v16 = vpop.f32.mrb[22].mxu0  ;;  %v11709_v51 = vpop.permute.xlu0 %9035  ;;  %v3522_v54 = vsel %vm2020_vm11, %v3490_v52, %v8958_v19 }
 0x236   : > { %v2324_v55 = vmax.f32 %v2264_v63, 0.0  ;;  %v2267_v41 = vadd.f32 %v8138_v16, %v11348_v11  ;;  %v11711_v27 = vpop.permute.xlu1 %9030  ;;  %v2258_v48 = vpop.f32.mrb[23].mxu0  ;;  %v8977_v16 = vunpack.i.l.bf16 %v11613_v30 }
 0x237   : > { %v2322_v29 = vmax.f32 %v2256_v36, 0.0  ;;  %v2259_v38 = vadd.f32 %v11348_v11, %v2258_v48  ;;  %v3456_v11 = vsel %vm3453_vm14, %v11391_v56, %v9002_v18  ;;  %9310 = vrot.lane.b32.xlu1 %v11721_v1, %s13984_s0  ;;  %v8973_v56 = vunpack.i.h.bf16 %v11600_v9 }
 0x238   : > { %v2325_v47 = vmax.f32 %v2267_v41, 0.0  ;;  %v11723_v62 = vrot.slane %v2324_v55, 7  ;;  %9335 = vrot.lane.b32.xlu0 %v11721_v1, %s13983_s20  ;;  %v3489_v46 = vsel %vm3486_vm15, %v3456_v11, %v9007_v57  ;;  %v8978_v36 = vunpack.i.h.bf16 %v11613_v30 }
 0x239   : > { %v2323_v13 = vmax.f32 %v2259_v38, 0.0  ;;  %v11727_v49 = vpop.permute.xlu0 %9050  ;;  %v2396_v21 = vrot.slane %v2322_v29, 7  ;;  %v8993_v55 = vunpack.i.h.bf16 %v11637_v7  ;;  %v3521_v58 = vsel %vm2020_vm11, %v3489_v46, %v8957_v59 }
 0x23a   : > { %v11725_v37 = vrot.slane %v2325_v47, 7  ;;  %v11729_v3 = vpop.permute.xlu1 %9040  ;;  %v8992_v47 = vunpack.i.l.bf16 %v11637_v7  ;;  %v3554_v10 = vsel %vm3551_vm4, %v3521_v58, %v8972_v44  ;;  %v3555_v11 = vsel %vm3551_vm4, %v3522_v54, %v8973_v56 }
 0x23b   : > { %v2397_v63 = vrot.slane %v2323_v13, 7  ;;  %v11758_v41 = vsel %vm681_vm0, 0.0, %v2396_v21  ;;  %v9033_v7 = vunpack.i.h.bf16 %v11711_v27  ;;  %v9032_v52 = vunpack.i.l.bf16 %v11711_v27 }
 0x23c   : > { %v11738_v8 = vsel %vm681_vm0, %v11723_v62, %v11725_v37  ;;  %v2573_v38 = vrot.slane %v11758_v41, 1  ;;  %v2648_v33 = vrot.slane %v11758_v41, 2  ;;  %v8998_v56 = vunpack.i.h.bf16 %v11645_v39 }
 0x23d   : > { %v11750_v24 = vpop.permute.xlu0 %9055  ;;  %v11763_v9 = vsel %vm681_vm0, %v2396_v21, %v2397_v63  ;;  %v2487_v29 = vsel %vm681_vm0, %v2397_v63, 0.0  ;;  %v8997_v44 = vunpack.i.l.bf16 %v11645_v39  ;;  %v3587_v58 = vsel %vm3584_vm5, %v3554_v10, %v8977_v16 }
 0x23e   : > { %v11752_v43 = vpop.permute.xlu1 %9045  ;;  %v2574_v48 = vrot.slane %v11763_v9, 1  ;;  %v2576_v61 = vrot.slane %v2487_v29, 1  ;;  %v2649_v18 = vrot.slane %v11763_v9, 2  ;;  %v2651_v30 = vrot.slane %v2487_v29, 2 }
 0x23f   : > { %v9319_v57 = vpack.i.bf16 %v11763_v9, %v11758_v41  ;;  %v3588_v54 = vsel %vm3584_vm5, %v3555_v11, %v8978_v36  ;;  %v3620_v39 = vsel %vm13940_vm6, %v3587_v58, %v9032_v52  ;;  %v9038_v11 = vunpack.i.h.bf16 %v11709_v51 }
 0x240   : > { %v2577_v19 = vsel %vm847_vm2, %v2574_v48, %v2576_v61  ;;  %v2652_v46 = vsel %vm928_vm1, %v2649_v18, %v2651_v30  ;;  %v2650_v59 = vsel %vm928_vm1, %v2648_v33, %v2649_v18  ;;  %v2575_v63 = vsel %vm847_vm2, %v2573_v38, %v2574_v48 }
 0x241   : > { %v11773_v13 = vpop.permute.xlu0 %9065  ;;  %9320 = vrot.lane.b32.xlu1 %v9319_v57, %s13988_s25  ;;  %v11786_v29 = vpack.i.bf16 %v2652_v46, %v2650_v59  ;;  %v11788_v2 = vpack.i.bf16 %v2577_v19, %v2575_v63  ;;  %v3459_v33 = vsel %vm3453_vm14, %v11372_v23, %v8993_v55  ;;  %v3458_v19 = vsel %vm3453_vm14, %v11369_v42, %v8992_v47 }
 0x242   : > { %v11775_v21 = vpop.permute.xlu1 %9060  ;;  %v3621_v16 = vsel %vm13940_vm6, %v3588_v54, %v9033_v7  ;;  %v9037_v46 = vunpack.i.l.bf16 %v11709_v51  ;;  %v3492_v47 = vsel %vm3486_vm15, %v3459_v33, %v8998_v56  ;;  %v3491_v7 = vsel %vm3486_vm15, %v3458_v19, %v8997_v44 }
 0x243   : > { %9345 = vrot.lane.b32.xlu0 %v11786_v29, %s13983_s20  ;;  %v9028_v52 = vunpack.i.h.bf16 %v11693_v4  ;;  %v11817_v63 = vsel %vm681_vm0, 0.0, %v11723_v62  ;;  %v2488_v51 = vsel %vm681_vm0, %v11725_v37, 0.0  ;;  %v9027_v44 = vunpack.i.l.bf16 %v11693_v4 }
 0x244   : > { %v2578_v62 = vrot.slane %v11817_v63, 1  ;;  %v2654_v33 = vrot.slane %v11738_v8, 2  ;;  %v2656_v19 = vrot.slane %v2488_v51, 2 }
 0x245   : > { %v9076_v61 = vpop.permute.xlu0 %9075  ;;  %9330 = vrot.lane.b32.xlu1 %v11788_v2, %s13987_s27 }
 0x246   : > { %v9071_v27 = vpop.permute.xlu1 %9070  ;;  %v9078_v18 = vunpack.i.h.bf16 %v9076_v61  ;;  %v9077_v30 = vunpack.i.l.bf16 %v9076_v61 }
 0x247   : > { %v9073_v48 = vunpack.i.h.bf16 %v9071_v27  ;;  %v9072_v38 = vunpack.i.l.bf16 %v9071_v27  ;;  %9355 = vrot.lane.b32.xlu0 %v11721_v1, %s13985_s28  ;;  %v9022_v27 = vunpack.i.l.bf16 %v11695_v17  ;;  %v3523_v1 = vsel %vm2020_vm11, %v3491_v7, %v9037_v46 }
 0x248   : > { %v9052_v7 = vunpack.i.l.bf16 %v11727_v49 }
 0x249   : > { %v3653_v36 = vsel %vm3650_vm7, %v3620_v39, %v9072_v38  ;;  %v3654_v10 = vsel %vm3650_vm7, %v3621_v16, %v9073_v48  ;;  %v9091_v59 = vpop.permute.xlu0 %9090  ;;  %9340 = vrot.lane.b32.xlu1 %v11705_v25, %s13986_s23  ;;  %v2579_v25 = vrot.slane %v11738_v8, 1  ;;  %v2581_v48 = vrot.slane %v2488_v51, 1 }
 0x24a   : > { %v11808_v23 = vpop.permute.xlu1 %9080  ;;  %v3686_v42 = vsel %vm3683_vm8, %v3653_v36, %v9077_v30  ;;  %v3687_v55 = vsel %vm3683_vm8, %v3654_v10, %v9078_v18  ;;  %v9093_v58 = vunpack.i.h.bf16 %v9091_v59  ;;  %v9092_v54 = vunpack.i.l.bf16 %v9091_v59 }
 0x24b   : > { %v3717_v56 = vpack.c.bf16 %v3687_v55, %v3686_v42  ;;  %v3524_v18 = vsel %vm2020_vm11, %v3492_v47, %v9038_v11  ;;  %9365 = vrot.lane.b32.xlu0 %v9319_v57, %s13968_s2  ;;  %v2653_v36 = vrot.slane %v11817_v63, 2  ;;  %v9053_v57 = vunpack.i.h.bf16 %v11727_v49  ;;  %v11865_v49 = vld [vmem:[%s13979_s24] ss:$0 sm:$0xff] }
 0x24c   : > { %v3556_v39 = vsel %vm3551_vm4, %v3523_v1, %v9092_v54  ;;  %v3557_v16 = vsel %vm3551_vm4, %v3524_v18, %v9093_v58  ;;  %v2582_v47 = vsel %vm847_vm2, %v2579_v25, %v2581_v48  ;;  %v9067_v51 = vunpack.i.l.bf16 %v11773_v13 }
 0x24d   : > { %8158 = vmatmul.mubr.msk.bf16.vlgmr.msra.gmra.mrb[0].mxu1 %vm3765_vm9, %v3717_v56  ;;  %v9096_v37 = vpop.permute.xlu0 %9095  ;;  %9350 = vrot.lane.b32.xlu1 %v11788_v2, %s13986_s23  ;;  %v2657_v56 = vsel %vm928_vm1, %v2654_v33, %v2656_v19  ;;  %v9369_v19 = vpack.i.bf16 %v11738_v8, %v11817_v63 }
 0x24e   : > { %v11832_v30 = vpop.permute.xlu1 %9085  ;;  %v9098_v4 = vunpack.i.h.bf16 %v9096_v37  ;;  %v9097_v38 = vunpack.i.l.bf16 %v9096_v37 }
 0x24f   : > { %9375 = vrot.lane.b32.xlu0 %v11788_v2, %s13982_s22  ;;  %v9087_v58 = vunpack.i.l.bf16 %v11832_v30 }
 0x250   : > { %v3589_v10 = vsel %vm3584_vm5, %v3556_v39, %v9097_v38  ;;  %v3590_v11 = vsel %vm3584_vm5, %v3557_v16, %v9098_v4 }
 0x251   : > { %v3622_v46 = vsel %vm13940_vm6, %v3589_v10, %v9027_v44  ;;  %v3623_v59 = vsel %vm13940_vm6, %v3590_v11, %v9028_v52  ;;  %v11847_v42 = vpop.permute.xlu0 %9105  ;;  %v9058_v52 = vunpack.i.h.bf16 %v11750_v24  ;;  %v9057_v44 = vunpack.i.l.bf16 %v11750_v24  ;;  %9360 = vrot.lane.b32.xlu1 %v11786_v29, %s13985_s28 }
 0x252   : > { %v11849_v55 = vpop.permute.xlu1 %9100  ;;  %v3655_v48 = vsel %vm3650_vm7, %v3622_v46, %v9052_v7  ;;  %v3656_v4 = vsel %vm3650_vm7, %v3623_v59, %v9053_v57  ;;  %v9062_v24 = vunpack.i.l.bf16 %v11775_v21  ;;  %v9083_v11 = vunpack.i.h.bf16 %v11808_v23 }
 0x253   : > { %v8141_v54 = vpop.f32.mrb[24].mxu0  ;;  %9385 = vrot.lane.b32.xlu0 %v11786_v29, %s13984_s0  ;;  %v2580_v59 = vsel %vm847_vm2, %v2578_v62, %v2579_v25 }
 0x254   : > { %v2280_v18 = vadd.f32 %v11865_v49, %v8141_v54  ;;  %v2271_v1 = vpop.f32.mrb[25].mxu0  ;;  %v9082_v54 = vunpack.i.l.bf16 %v11808_v23  ;;  %v9088_v23 = vunpack.i.h.bf16 %v11832_v30  ;;  %v11893_v62 = vpack.i.bf16 %v2582_v47, %v2580_v59 }
 0x255   : > { %v2272_v2 = vadd.f32 %v11865_v49, %v2271_v1  ;;  %v8142_v37 = vpop.f32.mrb[26].mxu0  ;;  %v11875_v16 = vpop.permute.xlu0 %9115  ;;  %9370 = vrot.lane.b32.xlu1 %v9369_v19, %s13968_s2  ;;  %v3688_v1 = vsel %vm3683_vm8, %v3655_v48, %v9057_v44  ;;  %v9063_v44 = vunpack.i.h.bf16 %v11775_v21  ;;  %v3462_v30 = vsel %vm3453_vm14, %v11426_v0, %v9062_v24 }
 0x256   : > { %v2328_v38 = vmax.f32 %v2280_v18, 0.0  ;;  %v2283_v39 = vadd.f32 %v11865_v49, %v8142_v37  ;;  %v11877_v10 = vpop.permute.xlu1 %9110  ;;  %v2274_v46 = vpop.f32.mrb[27].mxu0  ;;  %v3689_v37 = vsel %vm3683_vm8, %v3656_v4, %v9058_v52  ;;  %v2655_v4 = vsel %vm928_vm1, %v2653_v36, %v2654_v33 }
 0x257   : > { %v2326_v57 = vmax.f32 %v2272_v2, 0.0  ;;  %v2275_v18 = vadd.f32 %v11865_v49, %v2274_v46  ;;  %v3718_v52 = vpack.c.bf16 %v3689_v37, %v3688_v1  ;;  %9395 = vrot.lane.b32.xlu0 %v9369_v19, %s13988_s25  ;;  %v3460_v47 = vsel %vm3453_vm14, %v11438_v26, %v9082_v54 }
 0x258   : > { %v2329_v7 = vmax.f32 %v2283_v39, 0.0  ;;  %v11891_v29 = vrot.slane %v2328_v38, 7  ;;  %v3461_v38 = vsel %vm3453_vm14, %v11429_v35, %v9083_v11  ;;  %v9048_v21 = vunpack.i.h.bf16 %v11752_v43 }
 0x259   : > { %v2327_v61 = vmax.f32 %v2275_v18, 0.0  ;;  %v11895_v25 = vpop.permute.xlu0 %9130  ;;  %v2402_v48 = vrot.slane %v2326_v57, 7  ;;  %9380 = vrot.lane.b32.xlu1 %v11893_v62, %s13982_s22  ;;  %v3493_v33 = vsel %vm3486_vm15, %v3460_v47, %v9087_v58  ;;  %v3494_v36 = vsel %vm3486_vm15, %v3461_v38, %v9088_v23  ;;  %8161 = vmatprep.mubr.msk.bf16.mxu1 %vm3765_vm9, %v3718_v52 }
 0x25a   : > { %v2406_v2 = vrot.slane %v2329_v7, 7  ;;  %v11897_v39 = vpop.permute.xlu1 %9120  ;;  %v9047_v0 = vunpack.i.l.bf16 %v11752_v43  ;;  %v9068_v35 = vunpack.i.h.bf16 %v11773_v13  ;;  %v11920_v24 = vpack.i.bf16 %v2657_v56, %v2655_v4 }
 0x25b   : > { %v2403_v26 = vrot.slane %v2327_v61, 7  ;;  %v3463_v54 = vsel %vm3453_vm14, %v11422_v50, %v9063_v44  ;;  %v11929_v58 = vsel %vm681_vm0, 0.0, %v2402_v48  ;;  %v3495_v57 = vsel %vm3486_vm15, %v3462_v30, %v9067_v51  ;;  %9405 = vrot.lane.b32.xlu0 %v11893_v62, %s13987_s27 }
 0x25c   : > { %v11910_v46 = vsel %vm681_vm0, %v11891_v29, %v2406_v2  ;;  %13989 = vst [vmem:[#allocation12_spill] sm:$0xff] %v11929_v58  ;;  %v3525_v43 = vsel %vm2020_vm11, %v3493_v33, %v9022_v27  ;;  %v13990_v13 = vunpack.i.h.bf16 %v11695_v17  ;;  %v2583_v27 = vrot.slane %v11929_v58, 1 }
 0x25d   : > { %v11922_v19 = vpop.permute.xlu0 %9135  ;;  %v11941_v56 = vsel %vm681_vm0, %v2402_v48, %v2403_v26  ;;  %v2489_v50 = vsel %vm681_vm0, %v2403_v26, 0.0  ;;  %9390 = vrot.lane.b32.xlu1 %v11920_v24, %s13984_s0  ;;  %v2658_v17 = vrot.slane %v11929_v58, 2  ;;  %v3496_v1 = vsel %vm3486_vm15, %v3463_v54, %v9068_v35 }
 0x25e   : > { %v11924_v11 = vpop.permute.xlu1 %9125  ;;  %v3526_v61 = vsel %vm2020_vm11, %v3494_v36, %v13990_v13  ;;  %13991 = vst [vmem:[#allocation13_spill] sm:$0xff] %v11941_v56  ;;  %v2584_v51 = vrot.slane %v11941_v56, 1  ;;  %v2586_v59 = vrot.slane %v2489_v50, 1  ;;  %v2659_v7 = vrot.slane %v11941_v56, 2 }
 0x25f   : > { %v2661_v18 = vrot.slane %v2489_v50, 2  ;;  %v11953_v37 = vpack.i.bf16 %v11941_v56, %v11929_v58  ;;  %v13992_v48 = vunpack.i.l.bf16 %v11729_v3  ;;  %v13993_v4 = vunpack.i.h.bf16 %v11729_v3  ;;  %9415 = vrot.lane.b32.xlu0 %v11920_v24, %s13983_s20 }
 0x260   : > { %v2587_v38 = vsel %vm847_vm2, %v2584_v51, %v2586_v59  ;;  %v9113_v33 = vunpack.i.h.bf16 %v11877_v10  ;;  %v9112_v36 = vunpack.i.l.bf16 %v11877_v10  ;;  %v2660_v35 = vsel %vm928_vm1, %v2658_v17, %v2659_v7 }
 0x261   : > { %v11955_v23 = vpop.permute.xlu0 %9145  ;;  %v3558_v52 = vsel %vm3551_vm4, %v3525_v43, %v13992_v48  ;;  %v3559_v30 = vsel %vm3551_vm4, %v3526_v61, %v13993_v4  ;;  %v2662_v47 = vsel %vm928_vm1, %v2659_v7, %v2661_v18  ;;  %9400 = vrot.lane.b32.xlu1 %v11953_v37, %s13988_s25  ;;  %v2585_v3 = vsel %vm847_vm2, %v2583_v27, %v2584_v51 }
 0x262   : > { %v11957_v44 = vpop.permute.xlu1 %9140  ;;  %v11975_v26 = vpack.i.bf16 %v2662_v47, %v2660_v35  ;;  %v11977_v54 = vpack.i.bf16 %v2587_v38, %v2585_v3  ;;  %v2490_v13 = vsel %vm681_vm0, %v2406_v2, 0.0  ;;  %v3591_v61 = vsel %vm3584_vm5, %v3558_v52, %v9047_v0 }
 0x263   : > { %v3592_v50 = vsel %vm3584_vm5, %v3559_v30, %v9048_v21  ;;  %v9118_v17 = vunpack.i.h.bf16 %v11875_v16  ;;  %v9117_v48 = vunpack.i.l.bf16 %v11875_v16  ;;  %v3624_v4 = vsel %vm13940_vm6, %v3591_v61, %v9112_v36 }
 0x264   : > { %9425 = vrot.lane.b32.xlu0 %v11975_v26, %s13983_s20  ;;  %v3625_v2 = vsel %vm13940_vm6, %v3592_v50, %v9113_v33  ;;  %v11994_v0 = vsel %vm681_vm0, 0.0, %v11891_v29  ;;  %v13935_v38 = vrot.slane %v11910_v46, 1  ;;  %v2591_v16 = vrot.slane %v2490_v13, 1 }
 0x265   : > { %v9156_v10 = vpop.permute.xlu0 %9155  ;;  %9410 = vrot.lane.b32.xlu1 %v11977_v54, %s13987_s27  ;;  %13994 = vst [vmem:[#allocation14_spill] sm:$0xff] %v11994_v0  ;;  %v2664_v61 = vrot.slane %v11910_v46, 2  ;;  %v2666_v50 = vrot.slane %v2490_v13, 2  ;;  %v9142_v13 = vunpack.i.l.bf16 %v11957_v44 }
 0x266   : > { %v9151_v59 = vpop.permute.xlu1 %9150  ;;  %v9158_v7 = vunpack.i.h.bf16 %v9156_v10  ;;  %v9157_v18 = vunpack.i.l.bf16 %v9156_v10  ;;  %v2588_v10 = vrot.slane %v11994_v0, 1 }
 0x267   : > { %v9153_v51 = vunpack.i.h.bf16 %v9151_v59  ;;  %v9152_v27 = vunpack.i.l.bf16 %v9151_v59  ;;  %v3527_v59 = vsel %vm2020_vm11, %v3495_v57, %v9117_v48  ;;  %v9143_v57 = vunpack.i.h.bf16 %v11957_v44 }
 0x268   : > { %9435 = vrot.lane.b32.xlu0 %v11920_v24, %s13985_s28  ;;  %v12021_v24 = vsel %vm847_vm2, %v13935_v38, %v2591_v16 }
 0x269   : > { %v3657_v52 = vsel %vm3650_vm7, %v3624_v4, %v9152_v27  ;;  %v3658_v30 = vsel %vm3650_vm7, %v3625_v2, %v9153_v51  ;;  %v11999_v47 = vpop.permute.xlu0 %9170  ;;  %v3528_v51 = vsel %vm2020_vm11, %v3496_v1, %v9118_v17  ;;  %9420 = vrot.lane.b32.xlu1 %v11893_v62, %s13986_s23  ;;  %v12027_v17 = vsel %vm928_vm1, %v2664_v61, %v2666_v50 }
 0x26a   : > { %v12001_v36 = vpop.permute.xlu1 %9160  ;;  %v3690_v33 = vsel %vm3683_vm8, %v3657_v52, %v9157_v18  ;;  %v3691_v35 = vsel %vm3683_vm8, %v3658_v30, %v9158_v7  ;;  %v2663_v18 = vrot.slane %v11994_v0, 2  ;;  %v9449_v50 = vpack.i.bf16 %v11910_v46, %v11994_v0 }
 0x26b   : > { %v3719_v7 = vpack.c.bf16 %v3691_v35, %v3690_v33  ;;  %v9172_v48 = vunpack.i.l.bf16 %v11999_v47  ;;  %v12046_v30 = vsel %vm3453_vm14, %v11489_v5, %v9143_v57  ;;  %v9173_v52 = vunpack.i.h.bf16 %v11999_v47 }
 0x26c   : > { %9445 = vrot.lane.b32.xlu0 %v11953_v37, %s13968_s2  ;;  %v9163_v3 = vunpack.i.h.bf16 %v12001_v36  ;;  %v9162_v5 = vunpack.i.l.bf16 %v12001_v36 }
 0x26d   : > { %8162 = vmatmul.mubr.msk.bf16.gmra.mrb[4].mxu1 %vm3765_vm9, %v3719_v7  ;;  %v9176_v1 = vpop.permute.xlu0 %9175  ;;  %9430 = vrot.lane.b32.xlu1 %v11977_v54, %s13986_s23  ;;  %v3560_v47 = vsel %vm3551_vm4, %v3527_v59, %v9172_v48  ;;  %v13995_v59 = vrot.slane %v11910_v46, 1 }
 0x26e   : > { %v9166_v62 = vpop.permute.xlu1 %9165  ;;  %v9177_v16 = vunpack.i.l.bf16 %v9176_v1  ;;  %v9178_v57 = vunpack.i.h.bf16 %v9176_v1  ;;  %v3561_v1 = vsel %vm3551_vm4, %v3528_v51, %v9173_v52  ;;  %v13996_v51 = vunpack.i.l.bf16 %v11847_v42 }
 0x26f   : > { %v9168_v21 = vunpack.i.h.bf16 %v9166_v62  ;;  %v9167_v38 = vunpack.i.l.bf16 %v9166_v62 }
 0x270   : > { %v8145_v35 = vpop.f32.mrb[28].mxu0  ;;  %9455 = vrot.lane.b32.xlu0 %v11977_v54, %s13982_s22  ;;  %v3594_v62 = vsel %vm3584_vm5, %v3561_v1, %v9178_v57 }
 0x271   : > { %v2287_v37 = vpop.f32.mrb[29].mxu0  ;;  %v12048_v33 = vpop.permute.xlu0 %9185  ;;  %v2296_v7 = vadd.f32 %v11865_v49, %v8145_v35  ;;  %9440 = vrot.lane.b32.xlu1 %v11975_v26, %s13985_s28 }
 0x272   : > { %v12050_v2 = vpop.permute.xlu1 %9180  ;;  %v2288_v44 = vadd.f32 %v11865_v49, %v2287_v37  ;;  %v8146_v27 = vpop.f32.mrb[30].mxu0  ;;  %v3593_v37 = vsel %vm3584_vm5, %v3560_v47, %v9177_v16 }
 0x273   : > { %v2299_v29 = vadd.f32 %v11865_v49, %v8146_v27  ;;  %v2290_v4 = vpop.f32.mrb[31].mxu0  ;;  %v2332_v43 = vmax.f32 %v2296_v7, 0.0  ;;  %v2590_v27 = vsel %vm847_vm2, %v2588_v10, %v13995_v59  ;;  %v13997_v7 = vunpack.i.h.bf16 %v11847_v42 }
 0x274   : > { %v2330_v54 = vmax.f32 %v2288_v44, 0.0  ;;  %v2291_v35 = vadd.f32 %v11865_v49, %v2290_v4  ;;  %9465 = vrot.lane.b32.xlu0 %v11975_v26, %s13984_s0  ;;  %v2665_v49 = vsel %vm928_vm1, %v2663_v18, %v2664_v61  ;;  %v3465_v4 = vsel %vm3453_vm14, %v11498_v6, %v9163_v3 }
 0x275   : > { %v2333_v0 = vmax.f32 %v2299_v29, 0.0  ;;  %v12065_v58 = vpop.permute.xlu0 %9195  ;;  %v3464_v29 = vsel %vm3453_vm14, %v11507_v32, %v9162_v5  ;;  %9450 = vrot.lane.b32.xlu1 %v9449_v50, %s13968_s2  ;;  %v3626_v26 = vsel %vm13940_vm6, %v3593_v37, %v13996_v51  ;;  %v2411_v52 = vrot.slane %v2332_v43, 7 }
 0x276   : > { %v12067_v36 = vpop.permute.xlu1 %9190  ;;  %v2331_v56 = vmax.f32 %v2291_v35, 0.0  ;;  %v2408_v16 = vrot.slane %v2330_v54, 7  ;;  %v12087_v61 = vsel %vm3453_vm14, %v11495_v31, %v9142_v13  ;;  %v3497_v6 = vsel %vm3486_vm15, %v3464_v29, %v9167_v38 }
 0x277   : > { %v2412_v48 = vrot.slane %v2333_v0, 7  ;;  %v3498_v32 = vsel %vm3486_vm15, %v3465_v4, %v9168_v21  ;;  %v12092_v3 = vpack.i.bf16 %v12021_v24, %v2590_v27  ;;  %v3627_v43 = vsel %vm13940_vm6, %v3594_v62, %v13997_v7 }
 0x278   : > { %v2409_v10 = vrot.slane %v2331_v56, 7  ;;  %9475 = vrot.lane.b32.xlu0 %v9449_v50, %s13988_s25  ;;  %v13998_v21 = vunpack.i.l.bf16 %v11895_v25  ;;  %v12115_v42 = vpack.i.bf16 %v12027_v17, %v2665_v49  ;;  %v13999_v13 = vunpack.i.l.bf16 %v11849_v55 }
 0x279   : > { %v12094_v0 = vpop.permute.xlu0 %9210  ;;  %v12102_v56 = vsel %vm681_vm0, %v2411_v52, %v2412_v48  ;;  %9460 = vrot.lane.b32.xlu1 %v12092_v3, %s13982_s22  ;;  %v14000_v5 = vunpack.i.h.bf16 %v11849_v55  ;;  %v12124_v50 = vsel %vm681_vm0, 0.0, %v2408_v16  ;;  %v14001_v35 = vunpack.i.h.bf16 %v11895_v25 }
 0x27a   : > { %v12096_v18 = vpop.permute.xlu1 %9200  ;;  %v12105_v31 = vsel %vm681_vm0, %v2408_v16, %v2409_v10  ;;  %v2491_v38 = vsel %vm681_vm0, %v2409_v10, 0.0  ;;  %v3659_v24 = vsel %vm3650_vm7, %v3626_v26, %v13998_v21  ;;  %v3529_v44 = vsel %vm2020_vm11, %v3497_v6, %v13999_v13 }
 0x27b   : > { %v3530_v57 = vsel %vm2020_vm11, %v3498_v32, %v14000_v5  ;;  %v2669_v47 = vrot.slane %v12105_v31, 2  ;;  %v2671_v54 = vrot.slane %v2491_v38, 2  ;;  %v3660_v37 = vsel %vm3650_vm7, %v3627_v43, %v14001_v35 }
 0x27c   : > { %v2594_v59 = vrot.slane %v12105_v31, 1  ;;  %v2596_v27 = vrot.slane %v2491_v38, 1  ;;  %v14002_v55 = vunpack.i.l.bf16 %v11922_v19  ;;  %v14003_v4 = vunpack.i.h.bf16 %v11922_v19  ;;  %9485 = vrot.lane.b32.xlu0 %v12092_v3, %s13987_s27 }
 0x27d   : > { %v12130_v17 = vpop.permute.xlu0 %9215  ;;  %v2668_v25 = vrot.slane %v12124_v50, 2  ;;  %v14004_v62 = vunpack.i.l.bf16 %v11897_v39  ;;  %v14005_v26 = vunpack.i.h.bf16 %v11897_v39  ;;  %9470 = vrot.lane.b32.xlu1 %v12115_v42, %s13984_s0  ;;  %v2593_v19 = vrot.slane %v12124_v50, 1 }
 0x27e   : > { %v12132_v1 = vpop.permute.xlu1 %9205  ;;  %v3692_v49 = vsel %vm3683_vm8, %v3659_v24, %v14002_v55  ;;  %v3693_v29 = vsel %vm3683_vm8, %v3660_v37, %v14003_v4  ;;  %v2492_v6 = vsel %vm681_vm0, %v2412_v48, 0.0  ;;  %v9193_v32 = vunpack.i.h.bf16 %v12067_v36 }
 0x27f   : > { %v3562_v51 = vsel %vm3551_vm4, %v3529_v44, %v14004_v62  ;;  %v3563_v16 = vsel %vm3551_vm4, %v3530_v57, %v14005_v26  ;;  %v3720_v10 = vpack.c.bf16 %v3693_v29, %v3692_v49  ;;  %v9192_v7 = vunpack.i.l.bf16 %v12067_v36 }
 0x280   : > { %v2476_v43 = vsel %vm681_vm0, 0.0, %v2411_v52  ;;  %v2672_v38 = vsel %vm928_vm1, %v2669_v47, %v2671_v54  ;;  %v9479_v39 = vpack.i.bf16 %v12105_v31, %v12124_v50  ;;  %v2670_v13 = vsel %vm928_vm1, %v2668_v25, %v2669_v47  ;;  %9495 = vrot.lane.b32.xlu0 %v12115_v42, %s13983_s20 }
 0x281   : > { %8165 = vmatprep.mubr.msk.bf16.mxu1 %vm3765_vm9, %v3720_v10  ;;  %v12161_v21 = vpop.permute.xlu0 %9225  ;;  %v2597_v48 = vsel %vm847_vm2, %v2594_v59, %v2596_v27  ;;  %v14006_v44 = vunpack.i.l.bf16 %v11924_v11  ;;  %v14007_v52 = vunpack.i.h.bf16 %v11924_v11  ;;  %v2595_v57 = vsel %vm847_vm2, %v2593_v19, %v2594_v59 }
 0x282   : > { %v12163_v24 = vpop.permute.xlu1 %9220  ;;  %v2676_v54 = vrot.slane %v12102_v56, 1  ;;  %v2678_v35 = vrot.slane %v2492_v6, 1  ;;  %v2681_v47 = vrot.slane %v12102_v56, 2  ;;  %v9198_v37 = vunpack.i.h.bf16 %v12065_v58  ;;  %9480 = vrot.lane.b32.xlu1 %v9479_v39, %s13988_s25 }
 0x283   : > { %v3595_v36 = vsel %vm3584_vm5, %v3562_v51, %v14006_v44  ;;  %v3596_v5 = vsel %vm3584_vm5, %v3563_v16, %v14007_v52  ;;  %v2675_v27 = vrot.slane %v2476_v43, 1  ;;  %v2680_v55 = vrot.slane %v2476_v43, 2 }
 0x284   : > { %v2683_v49 = vrot.slane %v2492_v6, 2  ;;  %v12180_v11 = vpack.i.bf16 %v2672_v38, %v2670_v13  ;;  %v3628_v4 = vsel %vm13940_vm6, %v3595_v36, %v9192_v7  ;;  %v3629_v29 = vsel %vm13940_vm6, %v3596_v5, %v9193_v32 }
 0x285   : > { %v9489_v25 = vpack.i.bf16 %v2597_v48, %v2595_v57  ;;  %v9236_v59 = vpop.permute.xlu0 %9235  ;;  %v12185_v51 = vpack.i.bf16 %v12102_v56, %v2476_v43  ;;  %v2677_v6 = vsel %vm847_vm2, %v2675_v27, %v2676_v54  ;;  %v2679_v7 = vsel %vm847_vm2, %v2676_v54, %v2678_v35 }
 0x286   : > { %v9231_v62 = vpop.permute.xlu1 %9230  ;;  %9505 = vrot.lane.b32.xlu0 %v12180_v11, %s13983_s20  ;;  %v9238_v26 = vunpack.i.h.bf16 %v9236_v59  ;;  %v9237_v16 = vunpack.i.l.bf16 %v9236_v59  ;;  %v2682_v32 = vsel %vm928_vm1, %v2680_v55, %v2681_v47  ;;  %v12195_v43 = vpack.i.bf16 %v2679_v7, %v2677_v6 }
 0x287   : > { %v9233_v10 = vunpack.i.h.bf16 %v9231_v62  ;;  %v9232_v19 = vunpack.i.l.bf16 %v9231_v62  ;;  %9490 = vrot.lane.b32.xlu1 %v9489_v25, %s13987_s27  ;;  %v9197_v13 = vunpack.i.l.bf16 %v12065_v58  ;;  %v2684_v5 = vsel %vm928_vm1, %v2681_v47, %v2683_v49 }
 0x288   : > { %v14008_v57 = vunpack.i.l.bf16 %v11955_v23  ;;  %v14009_v35 = vunpack.i.h.bf16 %v11955_v23  ;;  %v12213_v47 = vpack.i.bf16 %v2684_v5, %v2682_v32  ;;  %v9188_v49 = vunpack.i.h.bf16 %v12048_v33 }
 0x289   : > { %v3661_v38 = vsel %vm3650_vm7, %v3628_v4, %v9232_v19  ;;  %v3662_v56 = vsel %vm3650_vm7, %v3629_v29, %v9233_v10  ;;  %v9251_v48 = vpop.permute.xlu0 %9250  ;;  %v9217_v62 = vunpack.i.l.bf16 %v12130_v17 }
 0x28a   : > { %v9241_v44 = vpop.permute.xlu1 %9240  ;;  %v3694_v36 = vsel %vm3683_vm8, %v3661_v38, %v9237_v16  ;;  %v3695_v52 = vsel %vm3683_vm8, %v3662_v56, %v9238_v26  ;;  %v3499_v54 = vsel %vm3486_vm15, %v12087_v61, %v14008_v57  ;;  %v3500_v27 = vsel %vm3486_vm15, %v12046_v30, %v14009_v35  ;;  %9515 = vrot.lane.b32.xlu0 %v12115_v42, %s13985_s28 }
 0x28b   : > { %v9253_v58 = vunpack.i.h.bf16 %v9251_v48  ;;  %9500 = vrot.lane.b32.xlu1 %v12092_v3, %s13986_s23  ;;  %v9252_v55 = vunpack.i.l.bf16 %v9251_v48  ;;  %v3721_v4 = vpack.c.bf16 %v3695_v52, %v3694_v36  ;;  %v9187_v61 = vunpack.i.l.bf16 %v12048_v33 }
 0x28c   : > { %v3532_v23 = vsel %vm2020_vm11, %v3500_v27, %v9198_v37  ;;  %v3531_v29 = vsel %vm2020_vm11, %v3499_v54, %v9197_v13  ;;  %v9213_v30 = vunpack.i.h.bf16 %v12094_v0  ;;  %v9212_v42 = vunpack.i.l.bf16 %v12094_v0 }
 0x28d   : > { %8166 = vmatmul.mubr.msk.bf16.gmra.mrb[8].mxu1 %vm3765_vm9, %v3721_v4  ;;  %v9256_v59 = vpop.permute.xlu0 %9255  ;;  %v9218_v3 = vunpack.i.h.bf16 %v12130_v17  ;;  %v3564_v37 = vsel %vm3551_vm4, %v3531_v29, %v9252_v55  ;;  %v3565_v10 = vsel %vm3551_vm4, %v3532_v23, %v9253_v58  ;;  %v9243_v19 = vunpack.i.h.bf16 %v9241_v44 }
 0x28e   : > { %9525 = vrot.lane.b32.xlu0 %v9479_v39, %s13968_s2  ;;  %v9258_v26 = vunpack.i.h.bf16 %v9256_v59  ;;  %v9257_v16 = vunpack.i.l.bf16 %v9256_v59  ;;  %v9246_v33 = vpop.permute.xlu1 %9245  ;;  %v9242_v0 = vunpack.i.l.bf16 %v9241_v44  ;;  %v9183_v27 = vunpack.i.h.bf16 %v12050_v2 }
 0x28f   : > { %9510 = vrot.lane.b32.xlu1 %v9489_v25, %s13986_s23  ;;  %v9248_v39 = vunpack.i.h.bf16 %v9246_v33  ;;  %v9247_v38 = vunpack.i.l.bf16 %v9246_v33  ;;  %v3469_v36 = vsel %vm3453_vm14, %v11552_v20, %v9243_v19  ;;  %v9182_v58 = vunpack.i.l.bf16 %v12050_v2  ;;  %s7918_s23 = sshll.u32 %s10215_s1, 4 }
 0x290   : > { %v3597_v6 = vsel %vm3584_vm5, %v3564_v37, %v9257_v16  ;;  %v3598_v7 = vsel %vm3584_vm5, %v3565_v10, %v9258_v26  ;;  %v3468_v52 = vsel %vm3453_vm14, %v11561_v45, %v9242_v0  ;;  %v9203_v55 = vunpack.i.h.bf16 %v12096_v18 }
 0x291   : > { %v3630_v32 = vsel %vm13940_vm6, %v3597_v6, %v9187_v61  ;;  %v3631_v17 = vsel %vm13940_vm6, %v3598_v7, %v9188_v49  ;;  %v3502_v57 = vsel %vm3486_vm15, %v3469_v36, %v9248_v39  ;;  %v9202_v4 = vunpack.i.l.bf16 %v12096_v18 }
 0x292   : > { %9535 = vrot.lane.b32.xlu0 %v9489_v25, %s13982_s22  ;;  %v3663_v56 = vsel %vm3650_vm7, %v3630_v32, %v9212_v42  ;;  %v3664_v13 = vsel %vm3650_vm7, %v3631_v17, %v9213_v30  ;;  %v3501_v25 = vsel %vm3486_vm15, %v3468_v52, %v9247_v38  ;;  %v12245_v54 = vpop.permute.xlu1 %9260  ;;  %v12247_v35 = vpop.permute.xlu0 %9270  ;;  %v3534_v45 = vsel %vm2020_vm11, %v3502_v57, %v9183_v27 }
 0x293   : > { %9520 = vrot.lane.b32.xlu1 %v12180_v11, %s13985_s28  ;;  %v3696_v48 = vsel %vm3683_vm8, %v3663_v56, %v9217_v62  ;;  %v3697_v44 = vsel %vm3683_vm8, %v3664_v13, %v9218_v3  ;;  %v3533_v20 = vsel %vm2020_vm11, %v3501_v25, %v9182_v58  ;;  %v3567_v29 = vsel %vm3551_vm4, %v3534_v45, %v9203_v55 }
 0x294   : > { %v3722_v5 = vpack.c.bf16 %v3697_v44, %v3696_v48  ;;  %v3566_v23 = vsel %vm3551_vm4, %v3533_v20, %v9202_v4  ;;  %v9208_v30 = vunpack.i.h.bf16 %v12132_v1  ;;  %v9207_v42 = vunpack.i.l.bf16 %v12132_v1 }
 0x295   : > { %v9222_v17 = vunpack.i.l.bf16 %v12163_v24  ;;  %v9228_v13 = vunpack.i.h.bf16 %v12161_v21  ;;  %v9227_v48 = vunpack.i.l.bf16 %v12161_v21  ;;  %v9272_v36 = vunpack.i.l.bf16 %v12247_v35 }
 0x296   : > { %9545 = vrot.lane.b32.xlu0 %v12180_v11, %s13984_s0  ;;  %8169 = vmatprep.mubr.msk.bf16.mxu1 %vm3765_vm9, %v3722_v5  ;;  %v9266_v49 = vpop.permute.xlu1 %9265  ;;  %v9281_v61 = vpop.permute.xlu0 %9280  ;;  %v3599_v3 = vsel %vm3584_vm5, %v3566_v23, %v9207_v42  ;;  %v3600_v62 = vsel %vm3584_vm5, %v3567_v29, %v9208_v30 }
 0x297   : > { %9530 = vrot.lane.b32.xlu1 %v12185_v51, %s13968_s2  ;;  %v9268_v2 = vunpack.i.h.bf16 %v9266_v49  ;;  %v9267_v11 = vunpack.i.l.bf16 %v9266_v49  ;;  %v9283_v37 = vunpack.i.h.bf16 %v9281_v61  ;;  %v9282_v10 = vunpack.i.l.bf16 %v9281_v61  ;;  %s10091_s2 = smov 112  }
 0x299   : > { %v3632_v16 = vsel %vm13940_vm6, %v3599_v3, %v9267_v11  ;;  %v3633_v33 = vsel %vm13940_vm6, %v3600_v62, %v9268_v2 }
 0x29a   : > { %9555 = vrot.lane.b32.xlu0 %v12185_v51, %s13988_s25  ;;  %v9276_v59 = vpop.permute.xlu1 %9275  ;;  %v9296_v18 = vpop.permute.xlu0 %9295 }
 0x29b   : > { %9540 = vrot.lane.b32.xlu1 %v12195_v43, %s13982_s22  ;;  %v9278_v51 = vunpack.i.h.bf16 %v9276_v59  ;;  %v9277_v26 = vunpack.i.l.bf16 %v9276_v59  ;;  %v9297_v52 = vunpack.i.l.bf16 %v9296_v18 }
 0x29d   : > { %v3665_v1 = vsel %vm3650_vm7, %v3632_v16, %v9277_v26  ;;  %v3666_v19 = vsel %vm3650_vm7, %v3633_v33, %v9278_v51 }
 0x29e   : > { %9565 = vrot.lane.b32.xlu0 %v12195_v43, %s13987_s27  ;;  %v9286_v0 = vpop.permute.xlu1 %9285  ;;  %v9306_v6 = vpop.permute.xlu0 %9305  ;;  %v3698_v7 = vsel %vm3683_vm8, %v3665_v1, %v9282_v10  ;;  %v3699_v32 = vsel %vm3683_vm8, %v3666_v19, %v9283_v37  ;;  %v9223_v43 = vunpack.i.h.bf16 %v12163_v24  ;;  %v9273_v24 = vunpack.i.h.bf16 %v12247_v35 }
 0x29f   : > { %9550 = vrot.lane.b32.xlu1 %v12213_v47, %s13984_s0  ;;  %v3723_v39 = vpack.c.bf16 %v3699_v32, %v3698_v7  ;;  %v9308_v5 = vunpack.i.h.bf16 %v9306_v6  ;;  %v9307_v25 = vunpack.i.l.bf16 %v9306_v6  ;;  %v9263_v32 = vunpack.i.h.bf16 %v12245_v54  ;;  %s13823_s0 = scalar_lea.hbm %s13884_s19, %s7918_s23 }
 0x2a0   : > { %v3471_v44 = vsel %vm3453_vm14, %v11543_v34, %v9223_v43  ;;  %v9262_v43 = vunpack.i.l.bf16 %v12245_v54 }
 0x2a1   : > { %8170 = vmatmul.mubr.msk.bf16.gmra.mrb[12].mxu1 %vm3765_vm9, %v3723_v39  ;;  %v3504_v27 = vsel %vm3486_vm15, %v3471_v44, %v9228_v13 }
 0x2a2   : > { %9575 = vrot.lane.b32.xlu0 %v12213_v47, %s13983_s20  ;;  %v9291_v38 = vpop.permute.xlu1 %9290  ;;  %v9316_v56 = vpop.permute.xlu0 %9315  ;;  %v3470_v47 = vsel %vm3453_vm14, %v11549_v60, %v9222_v17  ;;  %v3536_v20 = vsel %vm2020_vm11, %v3504_v27, %v9273_v24 }
 0x2a3   : > { %9560 = vrot.lane.b32.xlu1 %v11111_v53, %s13988_s25  ;;  %v9298_v53 = vunpack.i.h.bf16 %v9296_v18  ;;  %v3503_v21 = vsel %vm3486_vm15, %v3470_v47, %v9227_v48  ;;  %v9318_v34 = vunpack.i.h.bf16 %v9316_v56  ;;  %v9317_v58 = vunpack.i.l.bf16 %v9316_v56 }
 0x2a4   : > { %v3535_v60 = vsel %vm2020_vm11, %v3503_v21, %v9272_v36  ;;  %v9287_v18 = vunpack.i.l.bf16 %v9286_v0  ;;  %v9293_v51 = vunpack.i.h.bf16 %v9291_v38  ;;  %v9292_v26 = vunpack.i.l.bf16 %v9291_v38 }
 0x2a5   : > { %v3569_v4 = vsel %vm3551_vm4, %v3536_v20, %v9298_v53 }
 0x2a6   : > { %v9326_v57 = vpop.permute.xlu0 %9325  ;;  %v9301_v45 = vpop.permute.xlu1 %9300  ;;  %v3602_v61 = vsel %vm3584_vm5, %v3569_v4, %v9308_v5  ;;  %v3472_v10 = vsel %vm3453_vm14, %v11622_v40, %v9287_v18 }
 0x2a7   : > { %9570 = vrot.lane.b32.xlu1 %v10280_v15, %s13987_s27  ;;  %v9328_v35 = vunpack.i.h.bf16 %v9326_v57  ;;  %v9327_v55 = vunpack.i.l.bf16 %v9326_v57  ;;  %v3568_v15 = vsel %vm3551_vm4, %v3535_v60, %v9297_v52  ;;  %v3635_v23 = vsel %vm13940_vm6, %v3602_v61, %v9318_v34  ;;  %s13942_s27 = smov 96  }
 0x2a8   : > { %v3601_v49 = vsel %vm3584_vm5, %v3568_v15, %v9307_v25  ;;  %v3505_v1 = vsel %vm3486_vm15, %v3472_v10, %v9292_v26  ;;  %v9302_v6 = vunpack.i.l.bf16 %v9301_v45 }
 0x2a9   : > { %v3634_v11 = vsel %vm13940_vm6, %v3601_v49, %v9317_v58  ;;  %v3668_v59 = vsel %vm3650_vm7, %v3635_v23, %v9328_v35 }
 0x2aa   : > { %v9336_v2 = vpop.permute.xlu0 %9335  ;;  %v3667_v42 = vsel %vm3650_vm7, %v3634_v11, %v9327_v55  ;;  %v9311_v16 = vpop.permute.xlu1 %9310 }
 0x2ab   : > { %9580 = vrot.lane.b32.xlu1 %v10278_v14, %s13983_s20  ;;  %v9338_v29 = vunpack.i.h.bf16 %v9336_v2  ;;  %v9337_v30 = vunpack.i.l.bf16 %v9336_v2  ;;  %v9288_v14 = vunpack.i.h.bf16 %v9286_v0  ;;  %v9303_v0 = vunpack.i.h.bf16 %v9301_v45 }
 0x2ac   : > { %v9313_v17 = vunpack.i.h.bf16 %v9311_v16  ;;  %v9312_v39 = vunpack.i.l.bf16 %v9311_v16 }
 0x2ad   : > { %v3700_v3 = vsel %vm3683_vm8, %v3667_v42, %v9337_v30  ;;  %v3701_v62 = vsel %vm3683_vm8, %v3668_v59, %v9338_v29  ;;  %v3473_v37 = vsel %vm3453_vm14, %v11626_v22, %v9288_v14  ;;  %v3537_v22 = vsel %vm2020_vm11, %v3505_v1, %v9262_v43 }
 0x2ae   : > { %v3724_v33 = vpack.c.bf16 %v3701_v62, %v3700_v3  ;;  %v3506_v19 = vsel %vm3486_vm15, %v3473_v37, %v9293_v51  ;;  %v3570_v48 = vsel %vm3551_vm4, %v3537_v22, %v9302_v6 }
 0x2af   : > { %v3538_v13 = vsel %vm2020_vm11, %v3506_v19, %v9263_v32  ;;  %v3603_v24 = vsel %vm3584_vm5, %v3570_v48, %v9312_v39 }
 0x2b0   : > { %8173 = vmatprep.mubr.msk.bf16.mxu1 %vm3765_vm9, %v3724_v33  ;;  %v3571_v44 = vsel %vm3551_vm4, %v3538_v13, %v9303_v0 }
 0x2b1   : > { %v3604_v36 = vsel %vm3584_vm5, %v3571_v44, %v9313_v17 }
 0x2b3   : > { %v9321_v7 = vpop.permute.xlu1 %9320 }
 0x2b4   : > { %v9323_v38 = vunpack.i.h.bf16 %v9321_v7  ;;  %v9322_v56 = vunpack.i.l.bf16 %v9321_v7 }
 0x2b5   : > { %v9346_v40 = vpop.permute.xlu0 %9345 }
 0x2b6   : > { %v3636_v52 = vsel %vm13940_vm6, %v3603_v24, %v9322_v56  ;;  %v3637_v5 = vsel %vm13940_vm6, %v3604_v36, %v9323_v38  ;;  %v9348_v25 = vunpack.i.h.bf16 %v9346_v40  ;;  %v9347_v57 = vunpack.i.l.bf16 %v9346_v40 }
 0x2b7   : > { %v9331_v47 = vpop.permute.xlu1 %9330 }
 0x2b8   : > { %v9333_v53 = vunpack.i.h.bf16 %v9331_v47  ;;  %v9332_v54 = vunpack.i.l.bf16 %v9331_v47 }
 0x2b9   : > { %v9356_v34 = vpop.permute.xlu0 %9355 }
 0x2ba   : > { %v3669_v21 = vsel %vm3650_vm7, %v3636_v52, %v9332_v54  ;;  %v3670_v27 = vsel %vm3650_vm7, %v3637_v5, %v9333_v53  ;;  %v9358_v30 = vunpack.i.h.bf16 %v9356_v34  ;;  %v9357_v42 = vunpack.i.l.bf16 %v9356_v34 }
 0x2bb   : > { %v9341_v58 = vpop.permute.xlu1 %9340  ;;  %v3702_v60 = vsel %vm3683_vm8, %v3669_v21, %v9347_v57  ;;  %v3703_v20 = vsel %vm3683_vm8, %v3670_v27, %v9348_v25 }
 0x2bc   : > { %v3725_v45 = vpack.c.bf16 %v3703_v20, %v3702_v60  ;;  %v9343_v49 = vunpack.i.h.bf16 %v9341_v58  ;;  %v9342_v61 = vunpack.i.l.bf16 %v9341_v58 }
 0x2bd   : > { %v9366_v35 = vpop.permute.xlu0 %9365 }
 0x2be   : > { %8174 = vmatmul.mubr.msk.bf16.gmra.mrb[16].mxu1 %vm3765_vm9, %v3725_v45  ;;  %v3475_v23 = vsel %vm3453_vm14, %v11611_v12, %v9343_v49  ;;  %v3474_v29 = vsel %vm3453_vm14, %v11631_v28, %v9342_v61  ;;  %v9368_v59 = vunpack.i.h.bf16 %v9366_v35  ;;  %v9367_v14 = vunpack.i.l.bf16 %v9366_v35 }
 0x2bf   : > { %v9351_v55 = vpop.permute.xlu1 %9350  ;;  %v3507_v3 = vsel %vm3486_vm15, %v3474_v29, %v9357_v42  ;;  %v3508_v62 = vsel %vm3486_vm15, %v3475_v23, %v9358_v30 }
 0x2c0   : > { %v9353_v51 = vunpack.i.h.bf16 %v9351_v55  ;;  %v9352_v26 = vunpack.i.l.bf16 %v9351_v55  ;;  %v3539_v12 = vsel %vm2020_vm11, %v3507_v3, %v9367_v14  ;;  %v3540_v28 = vsel %vm2020_vm11, %v3508_v62, %v9368_v59 }
 0x2c1   : > { %v9376_v15 = vpop.permute.xlu0 %9375 }
 0x2c2   : > { %v9378_v33 = vunpack.i.h.bf16 %v9376_v15  ;;  %v9377_v37 = vunpack.i.l.bf16 %v9376_v15  ;;  %v3477_v7 = vsel %vm3453_vm14, %v11763_v9, %v9353_v51  ;;  %v3476_v32 = vsel %vm3453_vm14, %v11758_v41, %v9352_v26 }
 0x2c3   : > { %v9361_v4 = vpop.permute.xlu1 %9360 }
 0x2c4   : > { %v9363_v10 = vunpack.i.h.bf16 %v9361_v4  ;;  %v9362_v1 = vunpack.i.l.bf16 %v9361_v4  ;;  %v3572_v38 = vsel %vm3551_vm4, %v3539_v12, %v9377_v37  ;;  %v3573_v56 = vsel %vm3551_vm4, %v3540_v28, %v9378_v33 }
 0x2c5   : > { %v9386_v2 = vpop.permute.xlu0 %9385 }
 0x2c6   : > { %v9388_v19 = vunpack.i.h.bf16 %v9386_v2  ;;  %v9387_v0 = vunpack.i.l.bf16 %v9386_v2  ;;  %v3509_v40 = vsel %vm3486_vm15, %v3476_v32, %v9362_v1  ;;  %v3510_v48 = vsel %vm3486_vm15, %v3477_v7, %v9363_v10 }
 0x2c7   : > { %v9371_v11 = vpop.permute.xlu1 %9370 }
 0x2c8   : > { %v9373_v44 = vunpack.i.h.bf16 %v9371_v11  ;;  %v9372_v47 = vunpack.i.l.bf16 %v9371_v11  ;;  %v3605_v9 = vsel %vm3584_vm5, %v3572_v38, %v9387_v0  ;;  %v3606_v24 = vsel %vm3584_vm5, %v3573_v56, %v9388_v19 }
 0x2c9   : > { %v9396_v18 = vpop.permute.xlu0 %9395 }
 0x2ca   : > { %v9398_v43 = vunpack.i.h.bf16 %v9396_v18  ;;  %v9397_v17 = vunpack.i.l.bf16 %v9396_v18  ;;  %v3541_v55 = vsel %vm2020_vm11, %v3509_v40, %v9372_v47  ;;  %v3542_v15 = vsel %vm2020_vm11, %v3510_v48, %v9373_v44 }
 0x2cb   : > { %v9381_v16 = vpop.permute.xlu1 %9380 }
 0x2cc   : > { %v9383_v41 = vunpack.i.h.bf16 %v9381_v16  ;;  %v9382_v36 = vunpack.i.l.bf16 %v9381_v16  ;;  %v3638_v54 = vsel %vm13940_vm6, %v3605_v9, %v9397_v17  ;;  %v3639_v52 = vsel %vm13940_vm6, %v3606_v24, %v9398_v43 }
 0x2cd   : > { %v9406_v6 = vpop.permute.xlu0 %9405 }
 0x2ce   : > { %v9408_v22 = vunpack.i.h.bf16 %v9406_v6  ;;  %v9407_v13 = vunpack.i.l.bf16 %v9406_v6  ;;  %v3574_v61 = vsel %vm3551_vm4, %v3541_v55, %v9382_v36  ;;  %v3575_v2 = vsel %vm3551_vm4, %v3542_v15, %v9383_v41 }
 0x2cf   : > { %v9391_v39 = vpop.permute.xlu1 %9390 }
 0x2d0   : > { %v3671_v21 = vsel %vm3650_vm7, %v3638_v54, %v9407_v13  ;;  %v3672_v27 = vsel %vm3650_vm7, %v3639_v52, %v9408_v22  ;;  %v9393_v34 = vunpack.i.h.bf16 %v9391_v39  ;;  %v9392_v58 = vunpack.i.l.bf16 %v9391_v39 }
 0x2d1   : > { %v9416_v53 = vpop.permute.xlu0 %9415 }
 0x2d2   : > { %v9418_v5 = vunpack.i.h.bf16 %v9416_v53  ;;  %v9417_v25 = vunpack.i.l.bf16 %v9416_v53  ;;  %v3607_v23 = vsel %vm3584_vm5, %v3574_v61, %v9392_v58  ;;  %v3608_v29 = vsel %vm3584_vm5, %v3575_v2, %v9393_v34 }
 0x2d3   : > { %v9401_v57 = vpop.permute.xlu1 %9400 }
 0x2d4   : > { %v3704_v60 = vsel %vm3683_vm8, %v3671_v21, %v9417_v25  ;;  %v3705_v20 = vsel %vm3683_vm8, %v3672_v27, %v9418_v5  ;;  %v9403_v45 = vunpack.i.h.bf16 %v9401_v57  ;;  %v9402_v35 = vunpack.i.l.bf16 %v9401_v57  ;;  %v14010_v25 = vld [vmem:[#allocation13_spill] sm:$0xff]  ;;  %v14011_v21 = vld [vmem:[#allocation12_spill] sm:$0xff] }
 0x2d5   : > { %v3726_v4 = vpack.c.bf16 %v3705_v20, %v3704_v60 }
 0x2d6   : > { %v9426_v49 = vpop.permute.xlu0 %9425  ;;  %v3640_v59 = vsel %vm13940_vm6, %v3607_v23, %v9402_v35  ;;  %v3641_v14 = vsel %vm13940_vm6, %v3608_v29, %v9403_v45 }
 0x2d7   : > { %v9411_v11 = vpop.permute.xlu1 %9410  ;;  %8177 = vmatprep.mubr.msk.bf16.mxu1 %vm3765_vm9, %v3726_v4  ;;  %v9428_v18 = vunpack.i.h.bf16 %v9426_v49  ;;  %v9427_v3 = vunpack.i.l.bf16 %v9426_v49 }
 0x2d8   : > { %v9413_v30 = vunpack.i.h.bf16 %v9411_v11  ;;  %v9412_v42 = vunpack.i.l.bf16 %v9411_v11 }
 0x2da   : > { %v3673_v62 = vsel %vm3650_vm7, %v3640_v59, %v9412_v42  ;;  %v3674_v51 = vsel %vm3650_vm7, %v3641_v14, %v9413_v30  ;;  %v9436_v26 = vpop.permute.xlu0 %9435 }
 0x2db   : > { %v9421_v16 = vpop.permute.xlu1 %9420  ;;  %v3706_v33 = vsel %vm3683_vm8, %v3673_v62, %v9427_v3  ;;  %v3707_v37 = vsel %vm3683_vm8, %v3674_v51, %v9428_v18  ;;  %v9438_v39 = vunpack.i.h.bf16 %v9436_v26  ;;  %v9437_v38 = vunpack.i.l.bf16 %v9436_v26 }
 0x2dc   : > { %v3727_v10 = vpack.c.bf16 %v3707_v37, %v3706_v33  ;;  %v9423_v0 = vunpack.i.h.bf16 %v9421_v16  ;;  %v9422_v6 = vunpack.i.l.bf16 %v9421_v16 }
 0x2de   : > { %v9446_v1 = vpop.permute.xlu0 %9445  ;;  %8178 = vmatmul.mubr.msk.bf16.gmra.mrb[20].mxu1 %vm3765_vm9, %v3727_v10  ;;  %v3479_v43 = vsel %vm3453_vm14, %v11738_v8, %v9423_v0  ;;  %v3478_v17 = vsel %vm3453_vm14, %v11817_v63, %v9422_v6 }
 0x2df   : > { %v9431_v12 = vpop.permute.xlu1 %9430  ;;  %v9448_v56 = vunpack.i.h.bf16 %v9446_v1  ;;  %v9447_v22 = vunpack.i.l.bf16 %v9446_v1  ;;  %v3511_v40 = vsel %vm3486_vm15, %v3478_v17, %v9437_v38  ;;  %v3512_v48 = vsel %vm3486_vm15, %v3479_v43, %v9438_v39 }
 0x2e0   : > { %v9433_v44 = vunpack.i.h.bf16 %v9431_v12  ;;  %v9432_v47 = vunpack.i.l.bf16 %v9431_v12 }
 0x2e1   : > { %v3543_v8 = vsel %vm2020_vm11, %v3511_v40, %v9447_v22  ;;  %v3544_v63 = vsel %vm2020_vm11, %v3512_v48, %v9448_v56 }
 0x2e2   : > { %v9456_v28 = vpop.permute.xlu0 %9455  ;;  %v3481_v57 = vsel %vm3453_vm14, %v14010_v25, %v9433_v44  ;;  %v3480_v27 = vsel %vm3453_vm14, %v14011_v21, %v9432_v47 }
 0x2e3   : > { %v9441_v19 = vpop.permute.xlu1 %9440  ;;  %v9458_v24 = vunpack.i.h.bf16 %v9456_v28  ;;  %v9457_v41 = vunpack.i.l.bf16 %v9456_v28 }
 0x2e4   : > { %v9443_v36 = vunpack.i.h.bf16 %v9441_v19  ;;  %v9442_v53 = vunpack.i.l.bf16 %v9441_v19 }
 0x2e5   : > { %v3576_v20 = vsel %vm3551_vm4, %v3543_v8, %v9457_v41  ;;  %v3577_v45 = vsel %vm3551_vm4, %v3544_v63, %v9458_v24 }
 0x2e6   : > { %v9466_v7 = vpop.permute.xlu0 %9465  ;;  %v3513_v15 = vsel %vm3486_vm15, %v3480_v27, %v9442_v53  ;;  %v3514_v4 = vsel %vm3486_vm15, %v3481_v57, %v9443_v36  ;;  %v14012_v27 = vld [vmem:[#allocation14_spill] sm:$0xff] }
 0x2e7   : > { %v9451_v32 = vpop.permute.xlu1 %9450  ;;  %v9468_v54 = vunpack.i.h.bf16 %v9466_v7  ;;  %v9467_v52 = vunpack.i.l.bf16 %v9466_v7 }
 0x2e8   : > { %v9453_v49 = vunpack.i.h.bf16 %v9451_v32  ;;  %v9452_v61 = vunpack.i.l.bf16 %v9451_v32 }
 0x2e9   : > { %v3609_v2 = vsel %vm3584_vm5, %v3576_v20, %v9467_v52  ;;  %v3610_v11 = vsel %vm3584_vm5, %v3577_v45, %v9468_v54 }
 0x2ea   : > { %v9476_v13 = vpop.permute.xlu0 %9475  ;;  %v3545_v12 = vsel %vm2020_vm11, %v3513_v15, %v9452_v61  ;;  %v3546_v28 = vsel %vm2020_vm11, %v3514_v4, %v9453_v49 }
 0x2eb   : > { %v9461_v9 = vpop.permute.xlu1 %9460  ;;  %v9478_v34 = vunpack.i.h.bf16 %v9476_v13  ;;  %v9477_v58 = vunpack.i.l.bf16 %v9476_v13 }
 0x2ec   : > { %v9463_v23 = vunpack.i.h.bf16 %v9461_v9  ;;  %v9462_v29 = vunpack.i.l.bf16 %v9461_v9 }
 0x2ed   : > { %v3642_v42 = vsel %vm13940_vm6, %v3609_v2, %v9477_v58  ;;  %v3643_v59 = vsel %vm13940_vm6, %v3610_v11, %v9478_v34 }
 0x2ee   : > { %v9486_v5 = vpop.permute.xlu0 %9485  ;;  %v3578_v6 = vsel %vm3551_vm4, %v3545_v12, %v9462_v29  ;;  %v3579_v7 = vsel %vm3551_vm4, %v3546_v28, %v9463_v23 }
 0x2ef   : > { %v9471_v60 = vpop.permute.xlu1 %9470  ;;  %v9488_v35 = vunpack.i.h.bf16 %v9486_v5  ;;  %v9487_v55 = vunpack.i.l.bf16 %v9486_v5 }
 0x2f0   : > { %v9473_v26 = vunpack.i.h.bf16 %v9471_v60  ;;  %v9472_v16 = vunpack.i.l.bf16 %v9471_v60 }
 0x2f1   : > { %v3675_v62 = vsel %vm3650_vm7, %v3642_v42, %v9487_v55  ;;  %v3676_v51 = vsel %vm3650_vm7, %v3643_v59, %v9488_v35 }
 0x2f2   : > { %v9496_v30 = vpop.permute.xlu0 %9495  ;;  %v3611_v43 = vsel %vm3584_vm5, %v3578_v6, %v9472_v16  ;;  %v3612_v17 = vsel %vm3584_vm5, %v3579_v7, %v9473_v26 }
 0x2f3   : > { %v9498_v14 = vunpack.i.h.bf16 %v9496_v30  ;;  %v9497_v18 = vunpack.i.l.bf16 %v9496_v30 }
 0x2f4   : > { %v9481_v3 = vpop.permute.xlu1 %9480 }
 0x2f5   : > { %v3708_v33 = vsel %vm3683_vm8, %v3675_v62, %v9497_v18  ;;  %v3709_v37 = vsel %vm3683_vm8, %v3676_v51, %v9498_v14  ;;  %v9483_v10 = vunpack.i.h.bf16 %v9481_v3  ;;  %v9482_v1 = vunpack.i.l.bf16 %v9481_v3 }
 0x2f6   : > { %v3728_v19 = vpack.c.bf16 %v3709_v37, %v3708_v33 }
 0x2f7   : > { %v3644_v56 = vsel %vm13940_vm6, %v3611_v43, %v9482_v1  ;;  %v3645_v22 = vsel %vm13940_vm6, %v3612_v17, %v9483_v10 }
 0x2f8   : > { %v9506_v0 = vpop.permute.xlu0 %9505  ;;  %8181 = vmatprep.mubr.msk.bf16.mxu1 %vm3765_vm9, %v3728_v19 }
 0x2f9   : > { %v9491_v32 = vpop.permute.xlu1 %9490  ;;  %v9508_v13 = vunpack.i.h.bf16 %v9506_v0  ;;  %v9507_v40 = vunpack.i.l.bf16 %v9506_v0 }
 0x2fa   : > { %v9493_v39 = vunpack.i.h.bf16 %v9491_v32  ;;  %v9492_v38 = vunpack.i.l.bf16 %v9491_v32 }
 0x2fc   : > { %v3677_v48 = vsel %vm3650_vm7, %v3644_v56, %v9492_v38  ;;  %v3678_v44 = vsel %vm3650_vm7, %v3645_v22, %v9493_v39  ;;  %v9516_v47 = vpop.permute.xlu0 %9515 }
 0x2fd   : > { %v9501_v9 = vpop.permute.xlu1 %9500  ;;  %v3710_v24 = vsel %vm3683_vm8, %v3677_v48, %v9507_v40  ;;  %v3711_v41 = vsel %vm3683_vm8, %v3678_v44, %v9508_v13  ;;  %v9518_v60 = vunpack.i.h.bf16 %v9516_v47  ;;  %v9517_v20 = vunpack.i.l.bf16 %v9516_v47 }
 0x2fe   : > { %v3729_v36 = vpack.c.bf16 %v3711_v41, %v3710_v24  ;;  %v9503_v52 = vunpack.i.h.bf16 %v9501_v9  ;;  %v9502_v5 = vunpack.i.l.bf16 %v9501_v9 }
 0x300   : > { %v9526_v53 = vpop.permute.xlu0 %9525  ;;  %8182 = vmatmul.mubr.msk.bf16.gmra.mrb[24].mxu1 %vm3765_vm9, %v3729_v36  ;;  %v3483_v21 = vsel %vm3453_vm14, %v11910_v46, %v9503_v52  ;;  %v3482_v34 = vsel %vm3453_vm14, %v14012_v27, %v9502_v5 }
 0x301   : > { %v9511_v8 = vpop.permute.xlu1 %9510  ;;  %v9528_v35 = vunpack.i.h.bf16 %v9526_v53  ;;  %v9527_v55 = vunpack.i.l.bf16 %v9526_v53  ;;  %v3515_v15 = vsel %vm3486_vm15, %v3482_v34, %v9517_v20  ;;  %v3516_v4 = vsel %vm3486_vm15, %v3483_v21, %v9518_v60 }
 0x302   : > { %v9513_v51 = vunpack.i.h.bf16 %v9511_v8  ;;  %v9512_v26 = vunpack.i.l.bf16 %v9511_v8  ;;  %v10087_v21 = vmov 1983009808   ;;  %v4079_v34 = vlaneseq }
 0x303   : > { %v3547_v42 = vsel %vm2020_vm11, %v3515_v15, %v9527_v55  ;;  %v3548_v59 = vsel %vm2020_vm11, %v3516_v4, %v9528_v35  ;;  %v4077_v27 = vunpack.c.l.s4 %v10087_v21  ;;  %v12447_v35 = vld [vmem:[%s14013_s4] ss:$0 sm:$0xff] }
 0x304   : > { %v9536_v63 = vpop.permute.xlu0 %9535  ;;  %v3485_v40 = vsel %vm3453_vm14, %v12105_v31, %v9513_v51  ;;  %v3484_v48 = vsel %vm3453_vm14, %v12124_v50, %v9512_v26  ;;  %vm4986_vm14 = vcmask 1044484  }
 0x305   : > { %v9521_v54 = vpop.permute.xlu1 %9520  ;;  %v9538_v49 = vunpack.i.h.bf16 %v9536_v63  ;;  %v9537_v61 = vunpack.i.l.bf16 %v9536_v63 }
 0x306   : > { %v9523_v0 = vunpack.i.h.bf16 %v9521_v54  ;;  %v9522_v6 = vunpack.i.l.bf16 %v9521_v54 }
 0x307   : > { %v3580_v3 = vsel %vm3551_vm4, %v3547_v42, %v9537_v61  ;;  %v3581_v62 = vsel %vm3551_vm4, %v3548_v59, %v9538_v49 }
 0x308   : > { %v9546_v25 = vpop.permute.xlu0 %9545  ;;  %v3517_v24 = vsel %vm3486_vm15, %v3484_v48, %v9522_v6  ;;  %v3518_v41 = vsel %vm3486_vm15, %v3485_v40, %v9523_v0 }
 0x309   : > { %v9531_v57 = vpop.permute.xlu1 %9530  ;;  %v9548_v2 = vunpack.i.h.bf16 %v9546_v25  ;;  %v9547_v11 = vunpack.i.l.bf16 %v9546_v25 }
 0x30a   : > { %v9533_v43 = vunpack.i.h.bf16 %v9531_v57  ;;  %v9532_v17 = vunpack.i.l.bf16 %v9531_v57 }
 0x30b   : > { %v3613_v16 = vsel %vm3584_vm5, %v3580_v3, %v9547_v11  ;;  %v3614_v33 = vsel %vm3584_vm5, %v3581_v62, %v9548_v2 }
 0x30c   : > { %v9556_v58 = vpop.permute.xlu0 %9555  ;;  %v3549_v8 = vsel %vm2020_vm11, %v3517_v24, %v9532_v17  ;;  %v3550_v63 = vsel %vm2020_vm11, %v3518_v41, %v9533_v43  ;;  %vm4980_vm11 = vcmask 1041409  }
 0x30d   : > { %v9541_v45 = vpop.permute.xlu1 %9540  ;;  %v9558_v29 = vunpack.i.h.bf16 %v9556_v58  ;;  %v9557_v46 = vunpack.i.l.bf16 %v9556_v58 }
 0x30e   : > { %v9543_v56 = vunpack.i.h.bf16 %v9541_v45  ;;  %v9542_v22 = vunpack.i.l.bf16 %v9541_v45 }
 0x30f   : > { %v3646_v10 = vsel %vm13940_vm6, %v3613_v16, %v9557_v46  ;;  %v3647_v1 = vsel %vm13940_vm6, %v3614_v33, %v9558_v29  ;;  %v4078_v29 = vunpack.c.0.s8 %v4077_v27  ;;  %v4080_v46 = vshrl.u32 %v4079_v34, 7 }
 0x310   : > { %v9566_v23 = vpop.permute.xlu0 %9565  ;;  %v3582_v52 = vsel %vm3551_vm4, %v3549_v8, %v9542_v22  ;;  %v3583_v50 = vsel %vm3551_vm4, %v3550_v63, %v9543_v56 }
 0x311   : > { %v9551_v30 = vpop.permute.xlu1 %9550  ;;  %v9568_v14 = vunpack.i.h.bf16 %v9566_v23  ;;  %v9567_v18 = vunpack.i.l.bf16 %v9566_v23  ;;  %v12459_v26 = vsub.s32 %v4078_v29, %v4080_v46 }
 0x312   : > { %v9553_v44 = vunpack.i.h.bf16 %v9551_v30  ;;  %v9552_v47 = vunpack.i.l.bf16 %v9551_v30 }
 0x313   : > { %v3679_v7 = vsel %vm3650_vm7, %v3646_v10, %v9567_v18  ;;  %v3680_v32 = vsel %vm3650_vm7, %v3647_v1, %v9568_v14 }
 0x314   : > { %v9576_v37 = vpop.permute.xlu0 %9575  ;;  %v3615_v5 = vsel %vm3584_vm5, %v3582_v52, %v9552_v47  ;;  %v3616_v25 = vsel %vm3584_vm5, %v3583_v50, %v9553_v44  ;;  %vm4988_vm5 = vcmask 1045509  }
 0x315   : > { %v9578_v12 = vunpack.i.h.bf16 %v9576_v37  ;;  %v9577_v28 = vunpack.i.l.bf16 %v9576_v37  ;;  %v9561_v19 = vpop.permute.xlu1 %9560 }
 0x316   : > { %v9563_v36 = vunpack.i.h.bf16 %v9561_v19  ;;  %v9562_v53 = vunpack.i.l.bf16 %v9561_v19 }
 0x317   : > { %v3712_v39 = vsel %vm3683_vm8, %v3679_v7, %v9577_v28  ;;  %v3713_v38 = vsel %vm3683_vm8, %v3680_v32, %v9578_v12 }
 0x318   : > { %v3730_v13 = vpack.c.bf16 %v3713_v38, %v3712_v39  ;;  %v3648_v58 = vsel %vm13940_vm6, %v3615_v5, %v9562_v53  ;;  %v3649_v60 = vsel %vm13940_vm6, %v3616_v25, %v9563_v36 }
 0x319   : > { %v9571_v9 = vpop.permute.xlu1 %9570 }
 0x31a   : > { %8185 = vmatprep.mubr.msk.bf16.mxu1 %vm3765_vm9, %v3730_v13  ;;  %v9573_v54 = vunpack.i.h.bf16 %v9571_v9  ;;  %v9572_v31 = vunpack.i.l.bf16 %v9571_v9 }
 0x31c   : > { %v3681_v55 = vsel %vm3650_vm7, %v3648_v58, %v9572_v31  ;;  %v3682_v15 = vsel %vm3650_vm7, %v3649_v60, %v9573_v54  ;;  %vm4990_vm7 = vcmask 1046534  }
 0x31d   : > { %v9581_v57 = vpop.permute.xlu1 %9580 }
 0x31e   : > { %v9583_v20 = vunpack.i.h.bf16 %v9581_v57  ;;  %v9582_v45 = vunpack.i.l.bf16 %v9581_v57 }
 0x320   : > { %v3714_v4 = vsel %vm3683_vm8, %v3681_v55, %v9582_v45  ;;  %v3715_v49 = vsel %vm3683_vm8, %v3682_v15, %v9583_v20  ;;  %v8159_v61 = vpop.f32.mrb[0].mxu1 }
 0x321   : > { %v3731_v2 = vpack.c.bf16 %v3715_v49, %v3714_v4  ;;  %v3861_v11 = vadd.f32 %v8159_v61, %v12447_v35  ;;  %v3852_v23 = vpop.f32.mrb[1].mxu1 }
 0x322   : > { %v3853_v30 = vadd.f32 %v12447_v35, %v3852_v23  ;;  %v8160_v42 = vpop.f32.mrb[2].mxu1 }
 0x323   : > { %v3981_v59 = vmax.f32 %v3861_v11, 0.0  ;;  %8186 = vmatmul.mubr.msk.bf16.gmra.mrb[28].mxu1 %vm3765_vm9, %v3731_v2  ;;  %v3864_v14 = vadd.f32 %v8160_v42, %v12447_v35  ;;  %v3855_v18 = vpop.f32.mrb[3].mxu1  ;;  %vm4992_vm9 = vcmask 1047559  }
 0x324   : > { %v3979_v3 = vmax.f32 %v3853_v30, 0.0  ;;  %v3856_v62 = vadd.f32 %v12447_v35, %v3855_v18 }
 0x325   : > { %v4012_v51 = vsel %vm3486_vm15, %v3981_v59, -inf  ;;  %v3982_v16 = vmax.f32 %v3864_v14, 0.0 }
 0x326   : > { %v4011_v33 = vsel %vm3486_vm15, %v3979_v3, -inf  ;;  %v3980_v37 = vmax.f32 %v3856_v62, 0.0 }
 0x327   : > { %v4013_v10 = vmax.f32 %v4011_v33, %v4012_v51  ;;  %v4015_v1 = vsel %vm3486_vm15, %v3982_v16, -inf }
 0x328   : > { %v4014_v12 = vsel %vm3486_vm15, %v3980_v37, -inf }
 0x329   : > { %v4075_v28 = vcombine.high %v4013_v10, %v4013_v10  ;;  %v4082_v19 = vrot.slane %v4013_v10, %v12459_v26  ;;  %v4016_v0 = vmax.f32 %v4014_v12, %v4015_v1 }
 0x32b   : > { %v4089_v6 = vrot.slane %v4075_v28, %v12459_v26  ;;  %v4090_v7 = vcombine.high %v4082_v19, %v4082_v19  ;;  %v4412_v32 = vsel %vm4411_vm10, %v4082_v19, -inf  ;;  %v4092_v43 = vcombine.high %v4016_v0, %v4016_v0 }
 0x32c   : > { %v4413_v17 = vrot.slane %v4412_v32, 4  ;;  %v4099_v39 = vrot.slane %v4016_v0, %v12459_v26 }
 0x32d   : > { %v4091_v38 = vcombine.high %v4089_v6, %v4089_v6  ;;  %v4419_v56 = vsel %vm4411_vm10, %v4090_v7, -inf  ;;  %v4426_v22 = vsel %vm4411_vm10, %v4089_v6, -inf  ;;  %v4106_v13 = vrot.slane %v4092_v43, %v12459_v26 }
 0x32e   : > { %v4414_v40 = vmax.f32 %v4412_v32, %v4413_v17  ;;  %v4420_v48 = vrot.slane %v4419_v56, 4  ;;  %v4427_v44 = vrot.slane %v4426_v22, 4  ;;  %v4107_v47 = vcombine.high %v4099_v39, %v4099_v39 }
 0x32f   : > { %v4433_v9 = vsel %vm4411_vm10, %v4091_v38, -inf  ;;  %v4108_v24 = vcombine.high %v4106_v13, %v4106_v13  ;;  %v4440_v41 = vsel %vm4411_vm10, %v4099_v39, -inf  ;;  %v4454_v36 = vsel %vm4411_vm10, %v4106_v13, -inf }
 0x330   : > { %v4415_v53 = vrot.slane %v4414_v40, 2  ;;  %v4421_v8 = vmax.f32 %v4419_v56, %v4420_v48  ;;  %v4428_v63 = vmax.f32 %v4426_v22, %v4427_v44  ;;  %v4434_v54 = vrot.slane %v4433_v9, 4 }
 0x331   : > { %v4441_v31 = vrot.slane %v4440_v41, 4  ;;  %v4447_v52 = vsel %vm4411_vm10, %v4107_v47, -inf  ;;  %v4455_v50 = vrot.slane %v4454_v36, 4  ;;  %v4461_v5 = vsel %vm4411_vm10, %v4108_v24, -inf }
 0x332   : > { %v4416_v25 = vmax.f32 %v4414_v40, %v4415_v53  ;;  %v4422_v57 = vrot.slane %v4421_v8, 2  ;;  %v4429_v21 = vrot.slane %v4428_v63, 2  ;;  %v4435_v27 = vmax.f32 %v4433_v9, %v4434_v54  ;;  %v14014_v53 = vld [vmem:[#allocation11_spill] sm:$0xff] }
 0x333   : > { %v4442_v34 = vmax.f32 %v4440_v41, %v4441_v31  ;;  %v4448_v58 = vrot.slane %v4447_v52, 4  ;;  %v4456_v60 = vmax.f32 %v4454_v36, %v4455_v50  ;;  %v4462_v20 = vrot.slane %v4461_v5, 4 }
 0x334   : > { %v4417_v45 = vrot.slane %v4416_v25, 1  ;;  %v4423_v55 = vmax.f32 %v4421_v8, %v4422_v57  ;;  %v4430_v15 = vmax.f32 %v4428_v63, %v4429_v21  ;;  %v4436_v4 = vrot.slane %v4435_v27, 2  ;;  %v14016_v63 = vld [vmem:[#allocation10_spill] sm:$0xff] }
 0x335   : > { %v4443_v49 = vrot.slane %v4442_v34, 2  ;;  %v4449_v61 = vmax.f32 %v4447_v52, %v4448_v58  ;;  %v4457_v2 = vrot.slane %v4456_v60, 2  ;;  %v4463_v11 = vmax.f32 %v4461_v5, %v4462_v20 }
 0x336   : > { %v4424_v23 = vrot.slane %v4423_v55, 1  ;;  %v4431_v29 = vrot.slane %v4430_v15, 1  ;;  %v4437_v46 = vmax.f32 %v4435_v27, %v4436_v4  ;;  %v4418_v18 = vmax.f32 %v4416_v25, %v4417_v45 }
 0x337   : > { %v4444_v30 = vmax.f32 %v4442_v34, %v4443_v49  ;;  %v4450_v42 = vrot.slane %v4449_v61, 2  ;;  %v4458_v59 = vmax.f32 %v4456_v60, %v4457_v2  ;;  %v4464_v14 = vrot.slane %v4463_v11, 2 }
 0x338   : > { %v4425_v3 = vmax.f32 %v4423_v55, %v4424_v23  ;;  %v4432_v62 = vmax.f32 %v4430_v15, %v4431_v29  ;;  %v4438_v51 = vrot.slane %v4437_v46, 1  ;;  %v14015_v8 = vrot.slane %v14014_v53, 2 }
 0x339   : > { %v4445_v16 = vrot.slane %v4444_v30, 1  ;;  %v4451_v33 = vmax.f32 %v4449_v61, %v4450_v42  ;;  %v4465_v37 = vmax.f32 %v4463_v11, %v4464_v14  ;;  %v4459_v12 = vrot.slane %v4458_v59, 1 }
 0x33a   : > { %v4439_v10 = vmax.f32 %v4437_v46, %v4438_v51  ;;  %v4981_v1 = vsel %vm4980_vm11, %v4425_v3, %v4418_v18  ;;  %v14017_v54 = vrot.slane %v14016_v63, 2  ;;  %v14018_v52 = vrot.slane %v14014_v53, 1 }
 0x33b   : > { %v4983_v28 = vsel %vm4982_vm12, %v4432_v62, %v4981_v1  ;;  %v4446_v19 = vmax.f32 %v4444_v30, %v4445_v16  ;;  %v4452_v0 = vrot.slane %v4451_v33, 1  ;;  %v4466_v6 = vrot.slane %v4465_v37, 1 }
 0x33c   : > { %v4985_v7 = vsel %vm4984_vm13, %v4439_v10, %v4983_v28  ;;  %v4460_v17 = vmax.f32 %v4458_v59, %v4459_v12  ;;  %v12491_v31 = vsel %vm928_vm1, %v14017_v54, %v14015_v8  ;;  %v14019_v50 = vrot.slane %v14016_v63, 1 }
 0x33d   : > { %v4453_v32 = vmax.f32 %v4451_v33, %v4452_v0  ;;  %v4987_v43 = vsel %vm4986_vm14, %v4446_v19, %v4985_v7  ;;  %v4467_v39 = vmax.f32 %v4465_v37, %v4466_v6 }
 0x33e   : > { %v12498_v5 = vsel %vm847_vm2, %v14019_v50, %v14018_v52 }
 0x33f   : > { %v4989_v38 = vsel %vm4988_vm5, %v4453_v32, %v4987_v43 }
 0x340   : > { %v8163_v56 = vpop.f32.mrb[4].mxu1  ;;  %v4991_v22 = vsel %vm4990_vm7, %v4460_v17, %v4989_v38 }
 0x341   : > { %v3877_v13 = vadd.f32 %v8163_v56, %v12447_v35  ;;  %v3868_v40 = vpop.f32.mrb[5].mxu1  ;;  %v4993_v48 = vsel %vm4992_vm9, %v4467_v39, %v4991_v22 }
 0x342   : > { %v3869_v44 = vadd.f32 %v12447_v35, %v3868_v40  ;;  %v8164_v47 = vpop.f32.mrb[6].mxu1  ;;  %v5043_v9 = vrot.slane %v4993_v48, 7 }
 0x343   : > { %v3985_v24 = vmax.f32 %v3877_v13, 0.0  ;;  %v3880_v41 = vadd.f32 %v8164_v47, %v12447_v35  ;;  %v3871_v36 = vpop.f32.mrb[7].mxu1 }
 0x344   : > { %v3983_v25 = vmax.f32 %v3869_v44, 0.0  ;;  %v3872_v57 = vadd.f32 %v12447_v35, %v3871_v36  ;;  %v12502_v21 = vsel %vm681_vm0, 0.0, %v5043_v9  ;;  %v5067_v27 = vsel %vm681_vm0, %v5043_v9, 0.0 }
 0x345   : > { %v4018_v34 = vsel %vm3486_vm15, %v3985_v24, -inf  ;;  %v3986_v58 = vmax.f32 %v3880_v41, 0.0  ;;  %v5112_v60 = vrot.slane %v12502_v21, 2  ;;  %v5113_v20 = vrot.slane %v5067_v27, 2 }
 0x346   : > { %v4017_v45 = vsel %vm3486_vm15, %v3983_v25, -inf  ;;  %v3984_v55 = vmax.f32 %v3872_v57, 0.0  ;;  %v5090_v15 = vrot.slane %v12502_v21, 1  ;;  %v5091_v4 = vrot.slane %v5067_v27, 1 }
 0x347   : > { %v4019_v49 = vmax.f32 %v4017_v45, %v4018_v34  ;;  %v4021_v61 = vsel %vm3486_vm15, %v3986_v58, -inf  ;;  %v12511_v2 = vsel %vm928_vm1, %v5112_v60, %v5113_v20 }
 0x348   : > { %v4020_v11 = vsel %vm3486_vm15, %v3984_v55, -inf  ;;  %v9589_v23 = vpack.i.bf16 %v12511_v2, %v12491_v31  ;;  %v12517_v29 = vsel %vm847_vm2, %v5090_v15, %v5091_v4 }
 0x349   : > { %v4109_v46 = vcombine.high %v4019_v49, %v4019_v49  ;;  %v4116_v30 = vrot.slane %v4019_v49, %v12459_v26  ;;  %v4022_v42 = vmax.f32 %v4020_v11, %v4021_v61  ;;  %v9584_v59 = vpack.i.bf16 %v12517_v29, %v12498_v5 }
 0x34a   : > { %9590 = vrot.lane.b32.xlu1 %v9589_v23, %s13982_s22 }
 0x34b   : > { %v4123_v14 = vrot.slane %v4109_v46, %v12459_v26  ;;  %v4124_v18 = vcombine.high %v4116_v30, %v4116_v30  ;;  %v4468_v3 = vsel %vm4411_vm10, %v4116_v30, -inf  ;;  %v4126_v62 = vcombine.high %v4022_v42, %v4022_v42  ;;  %9585 = vrot.lane.b32.xlu0 %v9584_v59, %s13985_s28 }
 0x34c   : > { %v4469_v51 = vrot.slane %v4468_v3, 4  ;;  %v4133_v16 = vrot.slane %v4022_v42, %v12459_v26 }
 0x34d   : > { %v4125_v33 = vcombine.high %v4123_v14, %v4123_v14  ;;  %v4475_v37 = vsel %vm4411_vm10, %v4124_v18, -inf  ;;  %v4482_v10 = vsel %vm4411_vm10, %v4123_v14, -inf  ;;  %v4140_v1 = vrot.slane %v4126_v62, %v12459_v26 }
 0x34e   : > { %v4470_v12 = vmax.f32 %v4468_v3, %v4469_v51  ;;  %v4476_v28 = vrot.slane %v4475_v37, 4  ;;  %v4483_v19 = vrot.slane %v4482_v10, 4  ;;  %v4141_v0 = vcombine.high %v4133_v16, %v4133_v16 }
 0x34f   : > { %v4489_v6 = vsel %vm4411_vm10, %v4125_v33, -inf  ;;  %v4142_v7 = vcombine.high %v4140_v1, %v4140_v1  ;;  %v4496_v32 = vsel %vm4411_vm10, %v4133_v16, -inf  ;;  %v4510_v43 = vsel %vm4411_vm10, %v4140_v1, -inf }
 0x350   : > { %v4471_v17 = vrot.slane %v4470_v12, 2  ;;  %v4477_v39 = vmax.f32 %v4475_v37, %v4476_v28  ;;  %v4484_v38 = vmax.f32 %v4482_v10, %v4483_v19  ;;  %v4490_v56 = vrot.slane %v4489_v6, 4 }
 0x351   : > { %v4497_v22 = vrot.slane %v4496_v32, 4  ;;  %v4503_v13 = vsel %vm4411_vm10, %v4141_v0, -inf  ;;  %v4511_v40 = vrot.slane %v4510_v43, 4  ;;  %v4517_v48 = vsel %vm4411_vm10, %v4142_v7, -inf }
 0x352   : > { %v4472_v44 = vmax.f32 %v4470_v12, %v4471_v17  ;;  %v4478_v47 = vrot.slane %v4477_v39, 2  ;;  %v4485_v9 = vrot.slane %v4484_v38, 2  ;;  %v4491_v24 = vmax.f32 %v4489_v6, %v4490_v56 }
 0x353   : > { %v4498_v41 = vmax.f32 %v4496_v32, %v4497_v22  ;;  %v4504_v36 = vrot.slane %v4503_v13, 4  ;;  %v4512_v53 = vmax.f32 %v4510_v43, %v4511_v40  ;;  %v4518_v8 = vrot.slane %v4517_v48, 4 }
 0x354   : > { %v4473_v54 = vrot.slane %v4472_v44, 1  ;;  %v4479_v52 = vmax.f32 %v4477_v39, %v4478_v47  ;;  %v4486_v50 = vmax.f32 %v4484_v38, %v4485_v9  ;;  %v4492_v25 = vrot.slane %v4491_v24, 2 }
 0x355   : > { %v4499_v57 = vrot.slane %v4498_v41, 2  ;;  %v4505_v27 = vmax.f32 %v4503_v13, %v4504_v36  ;;  %v4513_v34 = vrot.slane %v4512_v53, 2  ;;  %v4519_v58 = vmax.f32 %v4517_v48, %v4518_v8 }
 0x356   : > { %v4480_v60 = vrot.slane %v4479_v52, 1  ;;  %v4487_v20 = vrot.slane %v4486_v50, 1  ;;  %v4493_v45 = vmax.f32 %v4491_v24, %v4492_v25  ;;  %v4474_v61 = vmax.f32 %v4472_v44, %v4473_v54 }
 0x357   : > { %v4500_v55 = vmax.f32 %v4498_v41, %v4499_v57  ;;  %v4506_v15 = vrot.slane %v4505_v27, 2  ;;  %v4514_v4 = vmax.f32 %v4512_v53, %v4513_v34  ;;  %v4520_v49 = vrot.slane %v4519_v58, 2 }
 0x358   : > { %v4481_v11 = vmax.f32 %v4479_v52, %v4480_v60  ;;  %v4488_v23 = vmax.f32 %v4486_v50, %v4487_v20  ;;  %v4494_v46 = vrot.slane %v4493_v45, 1 }
 0x359   : > { %v4501_v30 = vrot.slane %v4500_v55, 1  ;;  %v4507_v42 = vmax.f32 %v4505_v27, %v4506_v15  ;;  %v4521_v59 = vmax.f32 %v4519_v58, %v4520_v49  ;;  %v4515_v3 = vrot.slane %v4514_v4, 1 }
 0x35a   : > { %v4495_v14 = vmax.f32 %v4493_v45, %v4494_v46  ;;  %v4994_v18 = vsel %vm4980_vm11, %v4481_v11, %v4474_v61 }
 0x35b   : > { %v4995_v62 = vsel %vm4982_vm12, %v4488_v23, %v4994_v18  ;;  %v4502_v51 = vmax.f32 %v4500_v55, %v4501_v30  ;;  %v4508_v16 = vrot.slane %v4507_v42, 1  ;;  %v4522_v33 = vrot.slane %v4521_v59, 1 }
 0x35c   : > { %v4996_v37 = vsel %vm4984_vm13, %v4495_v14, %v4995_v62  ;;  %v4516_v12 = vmax.f32 %v4514_v4, %v4515_v3 }
 0x35d   : > { %v4509_v10 = vmax.f32 %v4507_v42, %v4508_v16  ;;  %v4997_v1 = vsel %vm4986_vm14, %v4502_v51, %v4996_v37  ;;  %v4523_v28 = vmax.f32 %v4521_v59, %v4522_v33 }
 0x35f   : > { %v4998_v19 = vsel %vm4988_vm5, %v4509_v10, %v4997_v1 }
 0x360   : > { %v8167_v0 = vpop.f32.mrb[8].mxu1  ;;  %v4999_v6 = vsel %vm4990_vm7, %v4516_v12, %v4998_v19 }
 0x361   : > { %v3893_v7 = vadd.f32 %v8167_v0, %v12447_v35  ;;  %v3884_v32 = vpop.f32.mrb[9].mxu1  ;;  %v5000_v43 = vsel %vm4992_vm9, %v4523_v28, %v4999_v6 }
 0x362   : > { %v3885_v17 = vadd.f32 %v12447_v35, %v3884_v32  ;;  %v8168_v39 = vpop.f32.mrb[10].mxu1  ;;  %v5044_v38 = vrot.slane %v5000_v43, 7 }
 0x363   : > { %v3989_v56 = vmax.f32 %v3893_v7, 0.0  ;;  %v3896_v22 = vadd.f32 %v8168_v39, %v12447_v35  ;;  %v3887_v13 = vpop.f32.mrb[11].mxu1 }
 0x364   : > { %v3987_v40 = vmax.f32 %v3885_v17, 0.0  ;;  %v3888_v48 = vadd.f32 %v12447_v35, %v3887_v13  ;;  %v12547_v44 = vsel %vm681_vm0, 0.0, %v5044_v38  ;;  %v5068_v47 = vsel %vm681_vm0, %v5044_v38, 0.0 }
 0x365   : > { %v4024_v9 = vsel %vm3486_vm15, %v3989_v56, -inf  ;;  %v3990_v24 = vmax.f32 %v3896_v22, 0.0  ;;  %v9594_v41 = vpack.i.bf16 %v12547_v44, %v12502_v21  ;;  %v5093_v36 = vrot.slane %v12547_v44, 1 }
 0x366   : > { %v4023_v53 = vsel %vm3486_vm15, %v3987_v40, -inf  ;;  %v3988_v8 = vmax.f32 %v3888_v48, 0.0  ;;  %v5094_v54 = vrot.slane %v5068_v47, 1  ;;  %v5115_v52 = vrot.slane %v12547_v44, 2 }
 0x367   : > { %v4025_v50 = vmax.f32 %v4023_v53, %v4024_v9  ;;  %v4027_v25 = vsel %vm3486_vm15, %v3990_v24, -inf  ;;  %9595 = vrot.lane.b32.xlu0 %v9594_v41, %s13988_s25  ;;  %v5116_v57 = vrot.slane %v5068_v47, 2 }
 0x368   : > { %v4026_v27 = vsel %vm3486_vm15, %v3988_v8, -inf  ;;  %v12560_v34 = vsel %vm847_vm2, %v5093_v36, %v5094_v54 }
 0x369   : > { %v4143_v58 = vcombine.high %v4025_v50, %v4025_v50  ;;  %v4150_v60 = vrot.slane %v4025_v50, %v12459_v26  ;;  %v4028_v20 = vmax.f32 %v4026_v27, %v4027_v25  ;;  %v9599_v45 = vpack.i.bf16 %v12560_v34, %v12517_v29 }
 0x36a   : > { %v12566_v55 = vsel %vm928_vm1, %v5115_v52, %v5116_v57 }
 0x36b   : > { %v4157_v15 = vrot.slane %v4143_v58, %v12459_v26  ;;  %v4158_v4 = vcombine.high %v4150_v60, %v4150_v60  ;;  %v4524_v49 = vsel %vm4411_vm10, %v4150_v60, -inf  ;;  %v4160_v61 = vcombine.high %v4028_v20, %v4028_v20  ;;  %9600 = vrot.lane.b32.xlu1 %v9599_v45, %s13983_s20 }
 0x36c   : > { %v4525_v11 = vrot.slane %v4524_v49, 4  ;;  %v4167_v23 = vrot.slane %v4028_v20, %v12459_v26  ;;  %v9604_v46 = vpack.i.bf16 %v12566_v55, %v12511_v2 }
 0x36d   : > { %v4159_v30 = vcombine.high %v4157_v15, %v4157_v15  ;;  %v4531_v29 = vsel %vm4411_vm10, %v4158_v4, -inf  ;;  %v4538_v42 = vsel %vm4411_vm10, %v4157_v15, -inf  ;;  %v4174_v59 = vrot.slane %v4160_v61, %v12459_v26 }
 0x36e   : > { %v4526_v14 = vmax.f32 %v4524_v49, %v4525_v11  ;;  %v4532_v18 = vrot.slane %v4531_v29, 4  ;;  %v4539_v3 = vrot.slane %v4538_v42, 4  ;;  %v4175_v62 = vcombine.high %v4167_v23, %v4167_v23  ;;  %9605 = vrot.lane.b32.xlu0 %v9604_v46, %s10088_s29 }
 0x36f   : > { %v4545_v51 = vsel %vm4411_vm10, %v4159_v30, -inf  ;;  %v4176_v16 = vcombine.high %v4174_v59, %v4174_v59  ;;  %v4552_v33 = vsel %vm4411_vm10, %v4167_v23, -inf  ;;  %v4566_v2 = vsel %vm4411_vm10, %v4174_v59, -inf }
 0x370   : > { %v4527_v37 = vrot.slane %v4526_v14, 2  ;;  %v4533_v10 = vmax.f32 %v4531_v29, %v4532_v18  ;;  %v4540_v1 = vmax.f32 %v4538_v42, %v4539_v3  ;;  %v4546_v12 = vrot.slane %v4545_v51, 4 }
 0x371   : > { %v4553_v28 = vrot.slane %v4552_v33, 4  ;;  %v4559_v19 = vsel %vm4411_vm10, %v4175_v62, -inf  ;;  %v4567_v0 = vrot.slane %v4566_v2, 4  ;;  %v4573_v6 = vsel %vm4411_vm10, %v4176_v16, -inf }
 0x372   : > { %v4528_v7 = vmax.f32 %v4526_v14, %v4527_v37  ;;  %v4534_v32 = vrot.slane %v4533_v10, 2  ;;  %v4541_v43 = vrot.slane %v4540_v1, 2  ;;  %v4547_v17 = vmax.f32 %v4545_v51, %v4546_v12 }
 0x373   : > { %v4554_v39 = vmax.f32 %v4552_v33, %v4553_v28  ;;  %v4560_v38 = vrot.slane %v4559_v19, 4  ;;  %v4568_v56 = vmax.f32 %v4566_v2, %v4567_v0  ;;  %v4574_v22 = vrot.slane %v4573_v6, 4  ;;  %v9901_v2 = vld [vmem:[%s14020_s5] sm:$0xff]  }
 0x374   : > { %v4529_v13 = vrot.slane %v4528_v7, 1  ;;  %v4535_v40 = vmax.f32 %v4533_v10, %v4534_v32  ;;  %v4542_v48 = vmax.f32 %v4540_v1, %v4541_v43  ;;  %v4548_v47 = vrot.slane %v4547_v17, 2  ;;  %v8171_v45 = vpop.f32.mrb[12].mxu1 }
 0x375   : > { %v4555_v9 = vrot.slane %v4554_v39, 2  ;;  %v4561_v24 = vmax.f32 %v4559_v19, %v4560_v38  ;;  %v4569_v41 = vrot.slane %v4568_v56, 2  ;;  %v4575_v36 = vmax.f32 %v4573_v6, %v4574_v22  ;;  %v3900_v11 = vpop.f32.mrb[13].mxu1 }
 0x376   : > { %v4536_v53 = vrot.slane %v4535_v40, 1  ;;  %v4543_v8 = vrot.slane %v4542_v48, 1  ;;  %v4549_v54 = vmax.f32 %v4547_v17, %v4548_v47  ;;  %v4530_v27 = vmax.f32 %v4528_v7, %v4529_v13  ;;  %v8172_v42 = vpop.f32.mrb[14].mxu1 }
 0x377   : > { %v4556_v52 = vmax.f32 %v4554_v39, %v4555_v9  ;;  %v4562_v50 = vrot.slane %v4561_v24, 2  ;;  %v4570_v25 = vmax.f32 %v4568_v56, %v4569_v41  ;;  %v4576_v57 = vrot.slane %v4575_v36, 2  ;;  %v3903_v3 = vpop.f32.mrb[15].mxu1  ;;  %v9902_v56 = vld [vmem:[%s14020_s5 + $0x8] sm:$0xff]  }
 0x378   : > { %v4537_v58 = vmax.f32 %v4535_v40, %v4536_v53  ;;  %v4544_v60 = vmax.f32 %v4542_v48, %v4543_v8  ;;  %v4550_v20 = vrot.slane %v4549_v54, 1  ;;  %v3909_v30 = vadd.f32 %v8171_v45, %v12447_v35 }
 0x379   : > { %v4557_v15 = vrot.slane %v4556_v52, 1  ;;  %v4563_v4 = vmax.f32 %v4561_v24, %v4562_v50  ;;  %v4571_v49 = vrot.slane %v4570_v25, 1  ;;  %v4577_v61 = vmax.f32 %v4575_v36, %v4576_v57  ;;  %v9903_v50 = vld [vmem:[%s14020_s5 + $0x10] sm:$0xff]  }
 0x37a   : > { %v4551_v23 = vmax.f32 %v4549_v54, %v4550_v20  ;;  %v5001_v46 = vsel %vm4980_vm11, %v4537_v58, %v4530_v27  ;;  %v3901_v29 = vadd.f32 %v12447_v35, %v3900_v11  ;;  %v3993_v16 = vmax.f32 %v3909_v30, 0.0 }
 0x37b   : > { %v5002_v59 = vsel %vm4982_vm12, %v4544_v60, %v5001_v46  ;;  %v4558_v14 = vmax.f32 %v4556_v52, %v4557_v15  ;;  %v4564_v18 = vrot.slane %v4563_v4, 1  ;;  %v4578_v62 = vrot.slane %v4577_v61, 1 }
 0x37c   : > { %v5003_v51 = vsel %vm4984_vm13, %v4551_v23, %v5002_v59  ;;  %v3991_v33 = vmax.f32 %v3901_v29, 0.0  ;;  %v3912_v1 = vadd.f32 %v8172_v42, %v12447_v35  ;;  %v3904_v12 = vadd.f32 %v12447_v35, %v3903_v3  ;;  %v9904_v42 = vld [vmem:[%s14020_s5 + $0x18] sm:$0xff]  }
 0x37d   : > { %v4565_v37 = vmax.f32 %v4563_v4, %v4564_v18  ;;  %v5004_v10 = vsel %vm4986_vm14, %v4558_v14, %v5003_v51  ;;  %v4572_v28 = vmax.f32 %v4570_v25, %v4571_v49  ;;  %v4030_v19 = vsel %vm3486_vm15, %v3993_v16, -inf }
 0x37e   : > { %v4029_v0 = vsel %vm3486_vm15, %v3991_v33, -inf  ;;  %v3994_v32 = vmax.f32 %v3912_v1, 0.0  ;;  %v3992_v43 = vmax.f32 %v3904_v12, 0.0  ;;  %v10089_v17 = vmov 0  }
 0x37f   : > { %v5005_v6 = vsel %vm4988_vm5, %v4565_v37, %v5004_v10  ;;  %v4031_v7 = vmax.f32 %v4029_v0, %v4030_v19  ;;  %5456 = vmatprep.subr.bf16.mxu0 %v10089_v17  ;;  %v4579_v39 = vmax.f32 %v4577_v61, %v4578_v62 }
 0x380   : > { %v5006_v38 = vsel %vm4990_vm7, %v4572_v28, %v5005_v6  ;;  %5457 = vmatpush1.bf16.msra.mxu0 %v9901_v2  ;;  %v4033_v40 = vsel %vm3486_vm15, %v3994_v32, -inf  ;;  %v4032_v48 = vsel %vm3486_vm15, %v3992_v43, -inf  ;;  %v9905_v6 = vld [vmem:[%s14020_s5 + $0x20] sm:$0xff]  }
 0x381   : > { %v4177_v22 = vcombine.high %v4031_v7, %v4031_v7  ;;  %v4184_v13 = vrot.slane %v4031_v7, %v12459_v26  ;;  %5458 = vmatprep.subr.bf16.mxu0 %v10089_v17  ;;  %v4034_v47 = vmax.f32 %v4032_v48, %v4033_v40  ;;  %v12607_v9 = vsel %vm4992_vm9, %v4579_v39, %v5006_v38 }
 0x382   : > { %v5045_v53 = vrot.slane %v12607_v9, 7 }
 0x383   : > { %v4191_v24 = vrot.slane %v4177_v22, %v12459_v26  ;;  %v4192_v41 = vcombine.high %v4184_v13, %v4184_v13  ;;  %v4580_v36 = vsel %vm4411_vm10, %v4184_v13, -inf  ;;  %v4194_v54 = vcombine.high %v4034_v47, %v4034_v47 }
 0x384   : > { %v4581_v8 = vrot.slane %v4580_v36, 4  ;;  %v4201_v52 = vrot.slane %v4034_v47, %v12459_v26  ;;  %5459 = vmatpush1.bf16.msra.mxu0 %v9902_v56  ;;  %v12619_v58 = vsel %vm681_vm0, 0.0, %v5045_v53 }
 0x385   : > { %v4193_v25 = vcombine.high %v4191_v24, %v4191_v24  ;;  %v4587_v57 = vsel %vm4411_vm10, %v4192_v41, -inf  ;;  %v4594_v27 = vsel %vm4411_vm10, %v4191_v24, -inf  ;;  %5460 = vmatprep.subr.bf16.mxu0 %v10089_v17  ;;  %v4208_v15 = vrot.slane %v4194_v54, %v12459_v26  ;;  %v9906_v54 = vld [vmem:[%s14020_s5 + $0x28] sm:$0xff]  }
 0x386   : > { %v4582_v60 = vmax.f32 %v4580_v36, %v4581_v8  ;;  %v4588_v20 = vrot.slane %v4587_v57, 4  ;;  %v4595_v45 = vrot.slane %v4594_v27, 4  ;;  %v4209_v49 = vcombine.high %v4201_v52, %v4201_v52 }
 0x387   : > { %v4601_v4 = vsel %vm4411_vm10, %v4193_v25, -inf  ;;  %v4608_v61 = vsel %vm4411_vm10, %v4201_v52, -inf  ;;  %v9609_v11 = vpack.i.bf16 %v12619_v58, %v12547_v44  ;;  %v4210_v59 = vcombine.high %v4208_v15, %v4208_v15 }
 0x388   : > { %v4583_v23 = vrot.slane %v4582_v60, 2  ;;  %v4589_v46 = vmax.f32 %v4587_v57, %v4588_v20  ;;  %v4596_v30 = vmax.f32 %v4594_v27, %v4595_v45  ;;  %v4602_v29 = vrot.slane %v4601_v4, 4  ;;  %5461 = vmatpush1.bf16.msra.mxu0 %v9903_v50 }
 0x389   : > { %v4609_v14 = vrot.slane %v4608_v61, 4  ;;  %v4615_v18 = vsel %vm4411_vm10, %v4209_v49, -inf  ;;  %v4622_v3 = vsel %vm4411_vm10, %v4208_v15, -inf  ;;  %9610 = vrot.lane.b32.xlu1 %v9609_v11, %s13942_s27  ;;  %5462 = vmatprep.subr.bf16.mxu0 %v10089_v17  ;;  %v4629_v1 = vsel %vm4411_vm10, %v4210_v59, -inf }
 0x38a   : > { %v4584_v62 = vmax.f32 %v4582_v60, %v4583_v23  ;;  %v4590_v51 = vrot.slane %v4589_v46, 2  ;;  %v4597_v16 = vrot.slane %v4596_v30, 2  ;;  %v4603_v33 = vmax.f32 %v4601_v4, %v4602_v29 }
 0x38b   : > { %v4610_v2 = vmax.f32 %v4608_v61, %v4609_v14  ;;  %v4616_v37 = vrot.slane %v4615_v18, 4  ;;  %v4623_v10 = vrot.slane %v4622_v3, 4  ;;  %v4630_v39 = vrot.slane %v4629_v1, 4 }
 0x38c   : > { %v4585_v12 = vrot.slane %v4584_v62, 1  ;;  %v4591_v28 = vmax.f32 %v4589_v46, %v4590_v51  ;;  %v4598_v19 = vmax.f32 %v4596_v30, %v4597_v16  ;;  %v4604_v0 = vrot.slane %v4603_v33, 2  ;;  %5463 = vmatpush1.bf16.msra.mxu0 %v9904_v42  ;;  %v9907_v42 = vld [vmem:[%s14020_s5 + $0x30] sm:$0xff]  }
 0x38d   : > { %v4611_v7 = vrot.slane %v4610_v2, 2  ;;  %v4617_v32 = vmax.f32 %v4615_v18, %v4616_v37  ;;  %v4624_v43 = vmax.f32 %v4622_v3, %v4623_v10  ;;  %5464 = vmatprep.subr.bf16.mxu0 %v10089_v17  ;;  %v4631_v9 = vmax.f32 %v4629_v1, %v4630_v39 }
 0x38e   : > { %v4586_v38 = vmax.f32 %v4584_v62, %v4585_v12  ;;  %v4592_v56 = vrot.slane %v4591_v28, 1  ;;  %v4599_v22 = vrot.slane %v4598_v19, 1  ;;  %v4605_v13 = vmax.f32 %v4603_v33, %v4604_v0 }
 0x38f   : > { %v4612_v40 = vmax.f32 %v4610_v2, %v4611_v7  ;;  %v4618_v48 = vrot.slane %v4617_v32, 2  ;;  %v4625_v47 = vrot.slane %v4624_v43, 2  ;;  %v5069_v8 = vsel %vm681_vm0, %v5045_v53, 0.0  ;;  %v9908_v7 = vld [vmem:[%s14020_s5 + $0x38] sm:$0xff]  }
 0x390   : > { %v4593_v24 = vmax.f32 %v4591_v28, %v4592_v56  ;;  %v4600_v41 = vmax.f32 %v4598_v19, %v4599_v22  ;;  %v4606_v36 = vrot.slane %v4605_v13, 1  ;;  %5465 = vmatpush1.bf16.msra.mxu0 %v9905_v6  ;;  %v4632_v57 = vrot.slane %v4631_v9, 2 }
 0x391   : > { %v4613_v52 = vrot.slane %v4612_v40, 1  ;;  %v4619_v50 = vmax.f32 %v4617_v32, %v4618_v48  ;;  %v4626_v25 = vmax.f32 %v4624_v43, %v4625_v47  ;;  %5466 = vmatprep.subr.bf16.mxu0 %v10089_v17  ;;  %v5118_v20 = vrot.slane %v12619_v58, 2  ;;  %v8175_v61 = vpop.f32.mrb[16].mxu1  ;;  %v9909_v47 = vld [vmem:[%s14020_s5 + $0x40] sm:$0xff]  }
 0x392   : > { %v4607_v27 = vmax.f32 %v4605_v13, %v4606_v36  ;;  %v5008_v60 = vsel %vm4980_vm11, %v4593_v24, %v4586_v38  ;;  %v5119_v45 = vrot.slane %v5069_v8, 2  ;;  %v4633_v11 = vmax.f32 %v4631_v9, %v4632_v57  ;;  %v3916_v29 = vpop.f32.mrb[17].mxu1 }
 0x393   : > { %v5009_v15 = vsel %vm4982_vm12, %v4600_v41, %v5008_v60  ;;  %v4614_v53 = vmax.f32 %v4612_v40, %v4613_v52  ;;  %v4620_v4 = vrot.slane %v4619_v50, 1  ;;  %v4627_v49 = vrot.slane %v4626_v25, 1  ;;  %v8176_v62 = vpop.f32.mrb[18].mxu1 }
 0x394   : > { %v5010_v23 = vsel %vm4984_vm13, %v4607_v27, %v5009_v15  ;;  %v12649_v46 = vsel %vm928_vm1, %v5118_v20, %v5119_v45  ;;  %v5096_v30 = vrot.slane %v12619_v58, 1  ;;  %5467 = vmatpush1.bf16.msra.mxu0 %v9906_v54  ;;  %v4634_v51 = vrot.slane %v4633_v11, 1  ;;  %v3919_v37 = vpop.f32.mrb[19].mxu1 }
 0x395   : > { %v4621_v59 = vmax.f32 %v4619_v50, %v4620_v4  ;;  %v4628_v14 = vmax.f32 %v4626_v25, %v4627_v49  ;;  %v5011_v18 = vsel %vm4986_vm14, %v4614_v53, %v5010_v23  ;;  %v5377_v3 = vpack.c.bf16 %v12649_v46, %v12566_v55  ;;  %5468 = vmatprep.subr.bf16.mxu0 %v10089_v17 }
 0x396   : > { %v5097_v16 = vrot.slane %v5069_v8, 1  ;;  %v9624_v33 = vpack.i.bf16 %v12649_v46, %v12566_v55  ;;  %v3925_v2 = vadd.f32 %v8175_v61, %v12447_v35  ;;  %v3917_v1 = vadd.f32 %v12447_v35, %v3916_v29 }
 0x397   : > { %v5012_v10 = vsel %vm4988_vm5, %v4621_v59, %v5011_v18  ;;  %7791 = vmatprep.mubr.msk.bf16.mxu0 %vm3486_vm15, %v5377_v3  ;;  %v3928_v12 = vadd.f32 %v8176_v62, %v12447_v35  ;;  %v3920_v28 = vadd.f32 %v12447_v35, %v3919_v37  ;;  %v4635_v19 = vmax.f32 %v4633_v11, %v4634_v51 }
 0x398   : > { %v12668_v0 = vsel %vm847_vm2, %v5096_v30, %v5097_v16  ;;  %v3997_v6 = vmax.f32 %v3925_v2, 0.0  ;;  %v5013_v55 = vsel %vm4990_vm7, %v4628_v14, %v5012_v10  ;;  %5469 = vmatpush1.bf16.msra.mxu0 %v9907_v42  ;;  %v3995_v43 = vmax.f32 %v3917_v1, 0.0 }
 0x399   : > { %v9614_v32 = vpack.i.bf16 %v12668_v0, %v12560_v34  ;;  %v3998_v39 = vmax.f32 %v3928_v12, 0.0  ;;  %5470 = vmatprep.subr.bf16.mxu0 %v10089_v17  ;;  %v3996_v38 = vmax.f32 %v3920_v28, 0.0  ;;  %v5014_v56 = vsel %vm4992_vm9, %v4635_v19, %v5013_v55 }
 0x39a   : > { %v4036_v35 = vsel %vm3486_vm15, %v3997_v6, -inf  ;;  %v4035_v22 = vsel %vm3486_vm15, %v3995_v43, -inf  ;;  %v5046_v40 = vrot.slane %v5014_v56, 7 }
 0x39b   : > { %9615 = vrot.lane.b32.xlu0 %v9614_v32, %s10091_s2  ;;  %9620 = vrot.lane.b32.xlu1 %v9614_v32, %s13985_s28  ;;  %v4039_v13 = vsel %vm3486_vm15, %v3998_v39, -inf  ;;  %v4037_v34 = vmax.f32 %v4035_v22, %v4036_v35  ;;  %v4038_v48 = vsel %vm3486_vm15, %v3996_v38, -inf }
 0x39c   : > { %5471 = vmatpush1.bf16.msra.mxu0 %v9908_v7  ;;  %v4040_v9 = vmax.f32 %v4038_v48, %v4039_v13  ;;  %v12688_v24 = vsel %vm681_vm0, 0.0, %v5046_v40  ;;  %v12691_v41 = vsel %vm681_vm0, %v5046_v40, 0.0 }
 0x39d   : > { %5472 = vmatprep.subr.bf16.mxu0 %v10089_v17  ;;  %v4211_v36 = vcombine.high %v4037_v34, %v4037_v34  ;;  %v4218_v8 = vrot.slane %v4037_v34, %v12459_v26  ;;  %v9629_v54 = vpack.i.bf16 %v12688_v24, %v12619_v58  ;;  %v5099_v25 = vrot.slane %v12688_v24, 1 }
 0x39e   : > { %v4228_v52 = vcombine.high %v4040_v9, %v4040_v9  ;;  %v4235_v50 = vrot.slane %v4040_v9, %v12459_v26  ;;  %v5100_v57 = vrot.slane %v12691_v41, 1  ;;  %v5121_v20 = vrot.slane %v12688_v24, 2 }
 0x39f   : > { %9625 = vrot.lane.b32.xlu0 %v9624_v33, %s13982_s22  ;;  %v4225_v27 = vrot.slane %v4211_v36, %v12459_v26  ;;  %v4226_v60 = vcombine.high %v4218_v8, %v4218_v8  ;;  %v4636_v17 = vsel %vm4411_vm10, %v4218_v8, -inf  ;;  %9630 = vrot.lane.b32.xlu1 %v9629_v54, %s13988_s25  ;;  %v5122_v48 = vrot.slane %v12691_v41, 2 }
 0x3a0   : > { %5473 = vmatpush1.bf16.msra.mxu0 %v9909_v47  ;;  %v4637_v45 = vrot.slane %v4636_v17, 4  ;;  %v4242_v15 = vrot.slane %v4228_v52, %v12459_v26  ;;  %v4243_v53 = vcombine.high %v4235_v50, %v4235_v50  ;;  %v4664_v4 = vsel %vm4411_vm10, %v4235_v50, -inf }
 0x3a1   : > { %v4227_v49 = vcombine.high %v4225_v27, %v4225_v27  ;;  %v4643_v61 = vsel %vm4411_vm10, %v4226_v60, -inf  ;;  %v4650_v11 = vsel %vm4411_vm10, %v4225_v27, -inf  ;;  %v4665_v23 = vrot.slane %v4664_v4, 4 }
 0x3a2   : > { %v4638_v30 = vmax.f32 %v4636_v17, %v4637_v45  ;;  %v4644_v29 = vrot.slane %v4643_v61, 4  ;;  %v4651_v42 = vrot.slane %v4650_v11, 4  ;;  %v4244_v59 = vcombine.high %v4242_v15, %v4242_v15 }
 0x3a3   : > { %v4657_v14 = vsel %vm4411_vm10, %v4227_v49, -inf  ;;  %v4666_v18 = vmax.f32 %v4664_v4, %v4665_v23  ;;  %v4671_v3 = vsel %vm4411_vm10, %v4243_v53, -inf  ;;  %v4678_v62 = vsel %vm4411_vm10, %v4242_v15, -inf }
 0x3a4   : > { %v4639_v51 = vrot.slane %v4638_v30, 2  ;;  %v4645_v16 = vmax.f32 %v4643_v61, %v4644_v29  ;;  %v4652_v33 = vmax.f32 %v4650_v11, %v4651_v42  ;;  %v4658_v2 = vrot.slane %v4657_v14, 4 }
 0x3a5   : > { %v4667_v37 = vrot.slane %v4666_v18, 2  ;;  %v4672_v10 = vrot.slane %v4671_v3, 4  ;;  %v4679_v1 = vrot.slane %v4678_v62, 4  ;;  %v4685_v12 = vsel %vm4411_vm10, %v4244_v59, -inf }
 0x3a6   : > { %v4640_v28 = vmax.f32 %v4638_v30, %v4639_v51  ;;  %v4646_v19 = vrot.slane %v4645_v16, 2  ;;  %v4653_v6 = vrot.slane %v4652_v33, 2  ;;  %v4659_v55 = vmax.f32 %v4657_v14, %v4658_v2 }
 0x3a7   : > { %v4668_v7 = vmax.f32 %v4666_v18, %v4667_v37  ;;  %v4673_v32 = vmax.f32 %v4671_v3, %v4672_v10  ;;  %v4680_v43 = vmax.f32 %v4678_v62, %v4679_v1  ;;  %v4686_v39 = vrot.slane %v4685_v12, 4  ;;  %v12731_v62 = vld [vmem:[%s14013_s4] ss:$0 sm:$0xff] }
 0x3a8   : > { %v4641_v35 = vrot.slane %v4640_v28, 1  ;;  %v4647_v38 = vmax.f32 %v4645_v16, %v4646_v19  ;;  %v4654_v56 = vmax.f32 %v4652_v33, %v4653_v6  ;;  %v4660_v22 = vrot.slane %v4659_v55, 2 }
 0x3a9   : > { %v4674_v13 = vrot.slane %v4673_v32, 2  ;;  %v4681_v40 = vrot.slane %v4680_v43, 2  ;;  %v4687_v34 = vmax.f32 %v4685_v12, %v4686_v39  ;;  %v4669_v8 = vrot.slane %v4668_v7, 1 }
 0x3aa   : > { %v4648_v47 = vrot.slane %v4647_v38, 1  ;;  %v4655_v9 = vrot.slane %v4654_v56, 1  ;;  %v4661_v36 = vmax.f32 %v4659_v55, %v4660_v22  ;;  %v4642_v54 = vmax.f32 %v4640_v28, %v4641_v35 }
 0x3ab   : > { %v4675_v52 = vmax.f32 %v4673_v32, %v4674_v13  ;;  %v4682_v50 = vmax.f32 %v4680_v43, %v4681_v40  ;;  %v4688_v27 = vrot.slane %v4687_v34, 2  ;;  %v5101_v15 = vsel %vm847_vm2, %v5099_v25, %v5100_v57 }
 0x3ac   : > { %v4649_v60 = vmax.f32 %v4647_v38, %v4648_v47  ;;  %v4656_v17 = vmax.f32 %v4654_v56, %v4655_v9  ;;  %v4662_v45 = vrot.slane %v4661_v36, 1  ;;  %v9634_v61 = vpack.i.bf16 %v5101_v15, %v12668_v0 }
 0x3ad   : > { %v4676_v53 = vrot.slane %v4675_v52, 1  ;;  %v4683_v4 = vrot.slane %v4682_v50, 1  ;;  %v4689_v49 = vmax.f32 %v4687_v34, %v4688_v27  ;;  %v12718_v23 = vsel %vm928_vm1, %v5121_v20, %v5122_v48 }
 0x3ae   : > { %v4663_v11 = vmax.f32 %v4661_v36, %v4662_v45  ;;  %v5015_v41 = vsel %vm4980_vm11, %v4649_v60, %v4642_v54  ;;  %v4670_v29 = vmax.f32 %v4668_v7, %v4669_v8  ;;  %9635 = vrot.lane.b32.xlu0 %v9634_v61, %s13983_s20  ;;  %v9639_v57 = vpack.i.bf16 %v12718_v23, %v12649_v46 }
 0x3af   : > { %v5016_v30 = vsel %vm4982_vm12, %v4656_v17, %v5015_v41  ;;  %v4690_v42 = vrot.slane %v4689_v49, 1  ;;  %v4677_v59 = vmax.f32 %v4675_v52, %v4676_v53  ;;  %v4684_v14 = vmax.f32 %v4682_v50, %v4683_v4 }
 0x3b0   : > { %v5017_v25 = vsel %vm4984_vm13, %v4663_v11, %v5016_v30  ;;  %9640 = vrot.lane.b32.xlu1 %v9639_v57, %s10088_s29 }
 0x3b1   : > { %v5018_v0 = vsel %vm4986_vm14, %v4670_v29, %v5017_v25  ;;  %v4691_v18 = vmax.f32 %v4689_v49, %v4690_v42  ;;  %v8179_v20 = vpop.f32.mrb[20].mxu1 }
 0x3b2   : > { %v5019_v3 = vsel %vm4988_vm5, %v4677_v59, %v5018_v0  ;;  %v3941_v51 = vadd.f32 %v12731_v62, %v8179_v20  ;;  %v3932_v16 = vpop.f32.mrb[21].mxu1 }
 0x3b3   : > { %v5020_v33 = vsel %vm4990_vm7, %v4684_v14, %v5019_v3  ;;  %v3933_v46 = vadd.f32 %v12731_v62, %v3932_v16  ;;  %v8180_v2 = vpop.f32.mrb[22].mxu1 }
 0x3b4   : > { %v5021_v37 = vsel %vm4992_vm9, %v4691_v18, %v5020_v33  ;;  %v4001_v10 = vmax.f32 %v3941_v51, 0.0  ;;  %v3944_v1 = vadd.f32 %v12731_v62, %v8180_v2  ;;  %v3935_v12 = vpop.f32.mrb[23].mxu1 }
 0x3b5   : > { %v5047_v28 = vrot.slane %v5021_v37, 7  ;;  %v3999_v19 = vmax.f32 %v3933_v46, 0.0  ;;  %v3936_v6 = vadd.f32 %v12731_v62, %v3935_v12 }
 0x3b6   : > { %v4042_v55 = vsel %vm3486_vm15, %v4001_v10, -inf  ;;  %v4002_v7 = vmax.f32 %v3944_v1, 0.0 }
 0x3b7   : > { %v12741_v32 = vsel %vm681_vm0, 0.0, %v5047_v28  ;;  %v12744_v43 = vsel %vm681_vm0, %v5047_v28, 0.0  ;;  %v4041_v39 = vsel %vm3486_vm15, %v3999_v19, -inf  ;;  %v4000_v35 = vmax.f32 %v3936_v6, 0.0 }
 0x3b8   : > { %v9644_v38 = vpack.i.bf16 %v12741_v32, %v12688_v24  ;;  %v5102_v56 = vrot.slane %v12741_v32, 1  ;;  %v4043_v22 = vmax.f32 %v4041_v39, %v4042_v55  ;;  %v4045_v13 = vsel %vm3486_vm15, %v4002_v7, -inf }
 0x3b9   : > { %v5103_v40 = vrot.slane %v12744_v43, 1  ;;  %v4044_v34 = vsel %vm3486_vm15, %v4000_v35, -inf  ;;  %v5124_v45 = vrot.slane %v12741_v32, 2 }
 0x3ba   : > { %9645 = vrot.lane.b32.xlu0 %v9644_v38, %s13942_s27  ;;  %v4245_v48 = vcombine.high %v4043_v22, %v4043_v22  ;;  %v4252_v47 = vrot.slane %v4043_v22, %v12459_v26  ;;  %v4046_v9 = vmax.f32 %v4044_v34, %v4045_v13  ;;  %v5125_v34 = vrot.slane %v12744_v43, 2 }
 0x3bb   : > { %v12756_v36 = vsel %vm847_vm2, %v5102_v56, %v5103_v40 }
 0x3bc   : > { %v9649_v8 = vpack.i.bf16 %v12756_v36, %v5101_v15  ;;  %v4259_v54 = vrot.slane %v4245_v48, %v12459_v26  ;;  %v4260_v52 = vcombine.high %v4252_v47, %v4252_v47  ;;  %v4692_v50 = vsel %vm4411_vm10, %v4252_v47, -inf }
 0x3bd   : > { %v4262_v27 = vcombine.high %v4046_v9, %v4046_v9  ;;  %v4693_v60 = vrot.slane %v4692_v50, 4  ;;  %v4269_v17 = vrot.slane %v4046_v9, %v12459_v26 }
 0x3be   : > { %9650 = vrot.lane.b32.xlu1 %v9649_v8, %s10091_s2  ;;  %9655 = vrot.lane.b32.xlu0 %v9649_v8, %s13985_s28  ;;  %v4261_v53 = vcombine.high %v4259_v54, %v4259_v54  ;;  %v4699_v4 = vsel %vm4411_vm10, %v4260_v52, -inf  ;;  %v4706_v15 = vsel %vm4411_vm10, %v4259_v54, -inf }
 0x3bf   : > { %v4276_v49 = vrot.slane %v4262_v27, %v12459_v26  ;;  %v4694_v61 = vmax.f32 %v4692_v50, %v4693_v60  ;;  %v4700_v11 = vrot.slane %v4699_v4, 4  ;;  %v4707_v41 = vrot.slane %v4706_v15, 4 }
 0x3c0   : > { %v4277_v30 = vcombine.high %v4269_v17, %v4269_v17  ;;  %v4713_v29 = vsel %vm4411_vm10, %v4261_v53, -inf  ;;  %v4720_v59 = vsel %vm4411_vm10, %v4269_v17, -inf }
 0x3c1   : > { %v4278_v42 = vcombine.high %v4276_v49, %v4276_v49  ;;  %v4734_v25 = vsel %vm4411_vm10, %v4276_v49, -inf  ;;  %v4695_v57 = vrot.slane %v4694_v61, 2  ;;  %v4701_v14 = vmax.f32 %v4699_v4, %v4700_v11 }
 0x3c2   : > { %v4708_v0 = vmax.f32 %v4706_v15, %v4707_v41  ;;  %v4714_v18 = vrot.slane %v4713_v29, 4  ;;  %v4721_v3 = vrot.slane %v4720_v59, 4  ;;  %v4727_v20 = vsel %vm4411_vm10, %v4277_v30, -inf }
 0x3c3   : > { %v4735_v51 = vrot.slane %v4734_v25, 4  ;;  %v4741_v16 = vsel %vm4411_vm10, %v4278_v42, -inf  ;;  %v4696_v33 = vmax.f32 %v4694_v61, %v4695_v57  ;;  %v4702_v46 = vrot.slane %v4701_v14, 2 }
 0x3c4   : > { %v4709_v2 = vrot.slane %v4708_v0, 2  ;;  %v4715_v37 = vmax.f32 %v4713_v29, %v4714_v18  ;;  %v4722_v10 = vmax.f32 %v4720_v59, %v4721_v3  ;;  %v4728_v1 = vrot.slane %v4727_v20, 4 }
 0x3c5   : > { %v4736_v12 = vmax.f32 %v4734_v25, %v4735_v51  ;;  %v4742_v28 = vrot.slane %v4741_v16, 4  ;;  %v4697_v19 = vrot.slane %v4696_v33, 1  ;;  %v4703_v6 = vmax.f32 %v4701_v14, %v4702_v46 }
 0x3c6   : > { %v4710_v55 = vmax.f32 %v4708_v0, %v4709_v2  ;;  %v4716_v7 = vrot.slane %v4715_v37, 2  ;;  %v4723_v39 = vrot.slane %v4722_v10, 2  ;;  %v4729_v35 = vmax.f32 %v4727_v20, %v4728_v1 }
 0x3c7   : > { %v4737_v38 = vrot.slane %v4736_v12, 2  ;;  %v4743_v56 = vmax.f32 %v4741_v16, %v4742_v28  ;;  %v4704_v22 = vrot.slane %v4703_v6, 1  ;;  %v4698_v54 = vmax.f32 %v4696_v33, %v4697_v19 }
 0x3c8   : > { %v4711_v13 = vrot.slane %v4710_v55, 1  ;;  %v4717_v40 = vmax.f32 %v4715_v37, %v4716_v7  ;;  %v4724_v48 = vmax.f32 %v4722_v10, %v4723_v39  ;;  %v4730_v47 = vrot.slane %v4729_v35, 2 }
 0x3c9   : > { %v4738_v9 = vmax.f32 %v4736_v12, %v4737_v38  ;;  %v4744_v8 = vrot.slane %v4743_v56, 2  ;;  %v4705_v52 = vmax.f32 %v4703_v6, %v4704_v22  ;;  %v12776_v61 = vsel %vm928_vm1, %v5124_v45, %v5125_v34 }
 0x3ca   : > { %v4712_v50 = vmax.f32 %v4710_v55, %v4711_v13  ;;  %v4718_v27 = vrot.slane %v4717_v40, 1  ;;  %v4725_v60 = vrot.slane %v4724_v48, 1  ;;  %v4731_v17 = vmax.f32 %v4729_v35, %v4730_v47  ;;  %v12805_v13 = vpop.permute.xlu0 %9585 }
 0x3cb   : > { %v4745_v53 = vmax.f32 %v4743_v56, %v4744_v8  ;;  %v5022_v15 = vsel %vm4980_vm11, %v4705_v52, %v4698_v54  ;;  %v4739_v49 = vrot.slane %v4738_v9, 1  ;;  %v9659_v42 = vpack.i.bf16 %v12776_v61, %v12718_v23 }
 0x3cc   : > { %v4719_v4 = vmax.f32 %v4717_v40, %v4718_v27  ;;  %v5023_v43 = vsel %vm4982_vm12, %v4712_v50, %v5022_v15  ;;  %v4726_v11 = vmax.f32 %v4724_v48, %v4725_v60  ;;  %v4732_v41 = vrot.slane %v4731_v17, 1 }
 0x3cd   : > { %v4746_v30 = vrot.slane %v4745_v53, 1  ;;  %v5379_v57 = vpack.c.bf16 %v12776_v61, %v12718_v23  ;;  %v4740_v14 = vmax.f32 %v4738_v9, %v4739_v49  ;;  %9660 = vrot.lane.b32.xlu1 %v9659_v42, %s13982_s22  ;;  %v9588_v52 = vunpack.i.h.bf16 %v12805_v13 }
 0x3ce   : > { %v5024_v29 = vsel %vm4984_vm13, %v4719_v4, %v5023_v43  ;;  %v4733_v59 = vmax.f32 %v4731_v17, %v4732_v41 }
 0x3cf   : > { %v5025_v25 = vsel %vm4986_vm14, %v4726_v11, %v5024_v29  ;;  %v4747_v45 = vmax.f32 %v4745_v53, %v4746_v30 }
 0x3d0   : > { %v5026_v0 = vsel %vm4988_vm5, %v4733_v59, %v5025_v25 }
 0x3d1   : > { %v5027_v3 = vsel %vm4990_vm7, %v4740_v14, %v5026_v0 }
 0x3d2   : > { %v5028_v16 = vsel %vm4992_vm9, %v4747_v45, %v5027_v3 }
 0x3d3   : > { %v8183_v18 = vpop.f32.mrb[24].mxu1  ;;  %v5048_v2 = vrot.slane %v5028_v16, 7 }
 0x3d4   : > { %v3957_v20 = vadd.f32 %v12731_v62, %v8183_v18  ;;  %v3948_v51 = vpop.f32.mrb[25].mxu1 }
 0x3d5   : > { %v3949_v33 = vadd.f32 %v12731_v62, %v3948_v51  ;;  %v8184_v46 = vpop.f32.mrb[26].mxu1  ;;  %v12794_v19 = vsel %vm681_vm0, 0.0, %v5048_v2  ;;  %v12797_v6 = vsel %vm681_vm0, %v5048_v2, 0.0 }
 0x3d6   : > { %v4005_v37 = vmax.f32 %v3957_v20, 0.0  ;;  %v3960_v10 = vadd.f32 %v12731_v62, %v8184_v46  ;;  %v3951_v1 = vpop.f32.mrb[27].mxu1  ;;  %v9664_v39 = vpack.i.bf16 %v12794_v19, %v12741_v32  ;;  %v5105_v35 = vrot.slane %v12794_v19, 1 }
 0x3d7   : > { %v4003_v12 = vmax.f32 %v3949_v33, 0.0  ;;  %v3952_v28 = vadd.f32 %v12731_v62, %v3951_v1  ;;  %v5106_v22 = vrot.slane %v12797_v6, 1  ;;  %v5127_v49 = vrot.slane %v12794_v19, 2 }
 0x3d8   : > { %v4048_v55 = vsel %vm3486_vm15, %v4005_v37, -inf  ;;  %v4006_v7 = vmax.f32 %v3960_v10, 0.0  ;;  %9665 = vrot.lane.b32.xlu0 %v9664_v39, %s13988_s25  ;;  %v5128_v43 = vrot.slane %v12797_v6, 2 }
 0x3d9   : > { %v4047_v38 = vsel %vm3486_vm15, %v4003_v12, -inf  ;;  %v4004_v56 = vmax.f32 %v3952_v28, 0.0  ;;  %v12811_v47 = vsel %vm847_vm2, %v5105_v35, %v5106_v22 }
 0x3da   : > { %v4049_v40 = vmax.f32 %v4047_v38, %v4048_v55  ;;  %v4051_v34 = vsel %vm3486_vm15, %v4006_v7, -inf  ;;  %v9669_v50 = vpack.i.bf16 %v12811_v47, %v12756_v36 }
 0x3db   : > { %v4050_v48 = vsel %vm3486_vm15, %v4004_v56, -inf }
 0x3dc   : > { %v4279_v9 = vcombine.high %v4049_v40, %v4049_v40  ;;  %v4286_v8 = vrot.slane %v4049_v40, %v12459_v26  ;;  %v4052_v54 = vmax.f32 %v4050_v48, %v4051_v34  ;;  %9670 = vrot.lane.b32.xlu1 %v9669_v50, %s13983_s20 }
 0x3de   : > { %v4293_v27 = vrot.slane %v4279_v9, %v12459_v26  ;;  %v4294_v60 = vcombine.high %v4286_v8, %v4286_v8  ;;  %v4748_v17 = vsel %vm4411_vm10, %v4286_v8, -inf  ;;  %v4296_v53 = vcombine.high %v4052_v54, %v4052_v54 }
 0x3df   : > { %v4749_v4 = vrot.slane %v4748_v17, 4  ;;  %v4303_v15 = vrot.slane %v4052_v54, %v12459_v26 }
 0x3e0   : > { %v4295_v11 = vcombine.high %v4293_v27, %v4293_v27  ;;  %v4755_v41 = vsel %vm4411_vm10, %v4294_v60, -inf  ;;  %v4762_v36 = vsel %vm4411_vm10, %v4293_v27, -inf  ;;  %v4310_v30 = vrot.slane %v4296_v53, %v12459_v26 }
 0x3e1   : > { %v4750_v29 = vmax.f32 %v4748_v17, %v4749_v4  ;;  %v4756_v42 = vrot.slane %v4755_v41, 4  ;;  %v4763_v59 = vrot.slane %v4762_v36, 4  ;;  %v4311_v25 = vcombine.high %v4303_v15, %v4303_v15 }
 0x3e2   : > { %v4769_v14 = vsel %vm4411_vm10, %v4295_v11, -inf  ;;  %v4312_v45 = vcombine.high %v4310_v30, %v4310_v30  ;;  %v4776_v0 = vsel %vm4411_vm10, %v4303_v15, -inf  ;;  %v4790_v18 = vsel %vm4411_vm10, %v4310_v30, -inf }
 0x3e3   : > { %v4751_v3 = vrot.slane %v4750_v29, 2  ;;  %v4757_v20 = vmax.f32 %v4755_v41, %v4756_v42  ;;  %v4764_v51 = vmax.f32 %v4762_v36, %v4763_v59  ;;  %v4770_v16 = vrot.slane %v4769_v14, 4 }
 0x3e4   : > { %v4777_v33 = vrot.slane %v4776_v0, 4  ;;  %v4783_v46 = vsel %vm4411_vm10, %v4311_v25, -inf  ;;  %v4791_v2 = vrot.slane %v4790_v18, 4  ;;  %v4797_v37 = vsel %vm4411_vm10, %v4312_v45, -inf  ;;  %v9591_v25 = vpop.permute.xlu1 %9590 }
 0x3e5   : > { %v4752_v10 = vmax.f32 %v4750_v29, %v4751_v3  ;;  %v4758_v1 = vrot.slane %v4757_v20, 2  ;;  %v4765_v12 = vrot.slane %v4764_v51, 2  ;;  %v4771_v28 = vmax.f32 %v4769_v14, %v4770_v16  ;;  %v9596_v16 = vpop.permute.xlu0 %9595 }
 0x3e6   : > { %v4778_v6 = vmax.f32 %v4776_v0, %v4777_v33  ;;  %v4784_v55 = vrot.slane %v4783_v46, 4  ;;  %v4792_v7 = vmax.f32 %v4790_v18, %v4791_v2  ;;  %v4798_v39 = vrot.slane %v4797_v37, 4 }
 0x3e7   : > { %v4753_v35 = vrot.slane %v4752_v10, 1  ;;  %v4759_v38 = vmax.f32 %v4757_v20, %v4758_v1  ;;  %v4766_v56 = vmax.f32 %v4764_v51, %v4765_v12  ;;  %v4772_v22 = vrot.slane %v4771_v28, 2 }
 0x3e8   : > { %v4779_v40 = vrot.slane %v4778_v6, 2  ;;  %v4785_v34 = vmax.f32 %v4783_v46, %v4784_v55  ;;  %v4793_v48 = vrot.slane %v4792_v7, 2  ;;  %v4799_v9 = vmax.f32 %v4797_v37, %v4798_v39  ;;  %v9601_v39 = vpop.permute.xlu1 %9600 }
 0x3e9   : > { %v4760_v8 = vrot.slane %v4759_v38, 1  ;;  %v4767_v54 = vrot.slane %v4766_v56, 1  ;;  %v4773_v50 = vmax.f32 %v4771_v28, %v4772_v22  ;;  %v12832_v27 = vsel %vm928_vm1, %v5127_v49, %v5128_v43 }
 0x3ea   : > { %v4780_v60 = vmax.f32 %v4778_v6, %v4779_v40  ;;  %v4786_v17 = vrot.slane %v4785_v34, 2  ;;  %v4794_v53 = vmax.f32 %v4792_v7, %v4793_v48  ;;  %v4800_v4 = vrot.slane %v4799_v9, 2 }
 0x3eb   : > { %v4754_v15 = vmax.f32 %v4752_v10, %v4753_v35  ;;  %v4761_v11 = vmax.f32 %v4759_v38, %v4760_v8  ;;  %v4768_v41 = vmax.f32 %v4766_v56, %v4767_v54  ;;  %v4774_v36 = vrot.slane %v4773_v50, 1 }
 0x3ec   : > { %v9587_v30 = vunpack.i.l.bf16 %v12805_v13  ;;  %v4781_v29 = vrot.slane %v4780_v60, 1  ;;  %v4787_v42 = vmax.f32 %v4785_v34, %v4786_v17  ;;  %v4801_v59 = vmax.f32 %v4799_v9, %v4800_v4 }
 0x3ed   : > { %v4775_v14 = vmax.f32 %v4773_v50, %v4774_v36  ;;  %v5029_v45 = vsel %vm4980_vm11, %v4761_v11, %v4754_v15  ;;  %v4795_v0 = vrot.slane %v4794_v53, 1  ;;  %v9674_v49 = vpack.i.bf16 %v12832_v27, %v12776_v61  ;;  %v9606_v11 = vpop.permute.xlu0 %9605 }
 0x3ee   : > { %v5030_v43 = vsel %vm4982_vm12, %v4768_v41, %v5029_v45  ;;  %v4782_v18 = vmax.f32 %v4780_v60, %v4781_v29  ;;  %v4788_v3 = vrot.slane %v4787_v42, 1  ;;  %v4802_v20 = vrot.slane %v4801_v59, 1 }
 0x3ef   : > { %v5031_v51 = vsel %vm4984_vm13, %v4775_v14, %v5030_v43  ;;  %9675 = vrot.lane.b32.xlu0 %v9674_v49, %s10088_s29  ;;  %v9593_v33 = vunpack.i.h.bf16 %v9591_v25  ;;  %v9592_v37 = vunpack.i.l.bf16 %v9591_v25  ;;  %v5318_v10 = vsel %vm3486_vm15, %v12502_v21, %v9588_v52 }
 0x3f0   : > { %v4789_v46 = vmax.f32 %v4787_v42, %v4788_v3  ;;  %v5032_v2 = vsel %vm4986_vm14, %v4782_v18, %v5031_v51  ;;  %v5317_v1 = vsel %vm3486_vm15, %v14016_v63, %v9587_v30  ;;  %v4796_v12 = vmax.f32 %v4794_v53, %v4795_v0 }
 0x3f1   : > { %v4803_v28 = vmax.f32 %v4801_v59, %v4802_v20  ;;  %v9598_v55 = vunpack.i.h.bf16 %v9596_v16  ;;  %v9597_v7 = vunpack.i.l.bf16 %v9596_v16  ;;  %v5325_v56 = vsel %vm3551_vm4, %v5317_v1, %v9592_v37 }
 0x3f2   : > { %v5033_v6 = vsel %vm4988_vm5, %v4789_v46, %v5032_v2  ;;  %v5326_v13 = vsel %vm3551_vm4, %v5318_v10, %v9593_v33  ;;  %v9602_v40 = vunpack.i.l.bf16 %v9601_v39  ;;  %v9603_v48 = vunpack.i.h.bf16 %v9601_v39 }
 0x3f3   : > { %v5034_v35 = vsel %vm4990_vm7, %v4796_v12, %v5033_v6  ;;  %v5333_v21 = vsel %vm13940_vm6, %v5325_v56, %v9597_v7  ;;  %v5334_v52 = vsel %vm13940_vm6, %v5326_v13, %v9598_v55  ;;  %v9608_v3 = vunpack.i.h.bf16 %v9606_v11 }
 0x3f4   : > { %v5035_v38 = vsel %vm4992_vm9, %v4803_v28, %v5034_v35  ;;  %v5341_v59 = vsel %vm3683_vm8, %v5333_v21, %v9602_v40  ;;  %v9607_v20 = vunpack.i.l.bf16 %v9606_v11  ;;  %vm5358_vm6 = vcmask 785408  }
 0x3f5   : > { %v5049_v22 = vrot.slane %v5035_v38, 7 }
 0x3f6   : > { %v8187_v34 = vpop.f32.mrb[28].mxu1  ;;  %v12893_v55 = vsel %vm13941_vm3, %v5341_v59, %v9607_v20 }
 0x3f7   : > { %v3973_v9 = vadd.f32 %v12731_v62, %v8187_v34  ;;  %v3964_v8 = vpop.f32.mrb[29].mxu1  ;;  %v12857_v54 = vsel %vm681_vm0, 0.0, %v5049_v22  ;;  %v5073_v50 = vsel %vm681_vm0, %v5049_v22, 0.0 }
 0x3f8   : > { %v3965_v60 = vadd.f32 %v12731_v62, %v3964_v8  ;;  %v8188_v17 = vpop.f32.mrb[30].mxu1  ;;  %v9679_v53 = vpack.i.bf16 %v12857_v54, %v12794_v19  ;;  %v5108_v4 = vrot.slane %v12857_v54, 1  ;;  %v5109_v15 = vrot.slane %v5073_v50, 1 }
 0x3f9   : > { %v4009_v41 = vmax.f32 %v3973_v9, 0.0  ;;  %v3976_v36 = vadd.f32 %v12731_v62, %v8188_v17  ;;  %v3967_v30 = vpop.f32.mrb[31].mxu1  ;;  %v5130_v29 = vrot.slane %v12857_v54, 2  ;;  %v5131_v42 = vrot.slane %v5073_v50, 2 }
 0x3fa   : > { %v4007_v25 = vmax.f32 %v3965_v60, 0.0  ;;  %v3968_v14 = vadd.f32 %v12731_v62, %v3967_v30  ;;  %9680 = vrot.lane.b32.xlu1 %v9679_v53, %s13942_s27  ;;  %v12870_v45 = vsel %vm847_vm2, %v5108_v4, %v5109_v15  ;;  %v5342_v62 = vsel %vm3683_vm8, %v5334_v52, %v9603_v48 }
 0x3fb   : > { %v4054_v0 = vsel %vm3486_vm15, %v4009_v41, -inf  ;;  %v4010_v49 = vmax.f32 %v3976_v36, 0.0  ;;  %v12873_v43 = vpop.permute.xlu1 %9610  ;;  %v9684_v18 = vpack.i.bf16 %v12870_v45, %v12811_v47  ;;  %v12882_v2 = vsel %vm928_vm1, %v5130_v29, %v5131_v42 }
 0x3fc   : > { %v4053_v51 = vsel %vm3486_vm15, %v4007_v25, -inf  ;;  %v4008_v16 = vmax.f32 %v3968_v14, 0.0  ;;  %v9613_v47 = vunpack.i.h.bf16 %v12873_v43  ;;  %v9694_v10 = vpack.i.bf16 %v12882_v2, %v12832_v27 }
 0x3fd   : > { %v4055_v33 = vmax.f32 %v4053_v51, %v4054_v0  ;;  %v4057_v46 = vsel %vm3486_vm15, %v4010_v49, -inf  ;;  %9685 = vrot.lane.b32.xlu0 %v9684_v18, %s10091_s2  ;;  %v5381_v6 = vpack.c.bf16 %v12882_v2, %v12832_v27  ;;  %v5351_v7 = vsel %vm13941_vm3, %v5342_v62, %v9608_v3 }
 0x3fe   : > { %v4056_v37 = vsel %vm3486_vm15, %v4008_v16, -inf  ;;  %9690 = vrot.lane.b32.xlu1 %v9684_v18, %s13985_s28  ;;  %v9612_v21 = vunpack.i.l.bf16 %v12873_v43  ;;  %v5360_v52 = vsel %vm5358_vm6, %v5351_v7, %v9613_v47  ;;  %vm5367_vm3 = vcmask 916480  }
 0x3ff   : > { %v4313_v1 = vcombine.high %v4055_v33, %v4055_v33  ;;  %v4320_v12 = vrot.slane %v4055_v33, %v12459_v26  ;;  %v4058_v28 = vmax.f32 %v4056_v37, %v4057_v46 }
 0x401   : > { %v4327_v39 = vrot.slane %v4313_v1, %v12459_v26  ;;  %v4328_v35 = vcombine.high %v4320_v12, %v4320_v12  ;;  %v4804_v38 = vsel %vm4411_vm10, %v4320_v12, -inf  ;;  %v4330_v56 = vcombine.high %v4058_v28, %v4058_v28  ;;  %9695 = vrot.lane.b32.xlu0 %v9694_v10, %s13982_s22 }
 0x402   : > { %v4805_v13 = vrot.slane %v4804_v38, 4  ;;  %v4337_v22 = vrot.slane %v4058_v28, %v12459_v26 }
 0x403   : > { %v4329_v40 = vcombine.high %v4327_v39, %v4327_v39  ;;  %v4811_v34 = vsel %vm4411_vm10, %v4328_v35, -inf  ;;  %v4818_v48 = vsel %vm4411_vm10, %v4327_v39, -inf  ;;  %v4344_v9 = vrot.slane %v4330_v56, %v12459_v26 }
 0x404   : > { %v4806_v8 = vmax.f32 %v4804_v38, %v4805_v13  ;;  %v4812_v50 = vrot.slane %v4811_v34, 4  ;;  %v4819_v60 = vrot.slane %v4818_v48, 4  ;;  %v4345_v17 = vcombine.high %v4337_v22, %v4337_v22 }
 0x405   : > { %v4825_v53 = vsel %vm4411_vm10, %v4329_v40, -inf  ;;  %v4346_v4 = vcombine.high %v4344_v9, %v4344_v9  ;;  %v4832_v15 = vsel %vm4411_vm10, %v4337_v22, -inf  ;;  %v4846_v11 = vsel %vm4411_vm10, %v4344_v9, -inf }
 0x406   : > { %v4807_v41 = vrot.slane %v4806_v8, 2  ;;  %v4813_v36 = vmax.f32 %v4811_v34, %v4812_v50  ;;  %v4820_v30 = vmax.f32 %v4818_v48, %v4819_v60  ;;  %v4826_v29 = vrot.slane %v4825_v53, 4 }
 0x407   : > { %v4833_v42 = vrot.slane %v4832_v15, 4  ;;  %v4839_v59 = vsel %vm4411_vm10, %v4345_v17, -inf  ;;  %v4847_v25 = vrot.slane %v4846_v11, 4  ;;  %v4853_v14 = vsel %vm4411_vm10, %v4346_v4, -inf }
 0x408   : > { %v4808_v0 = vmax.f32 %v4806_v8, %v4807_v41  ;;  %v4814_v49 = vrot.slane %v4813_v36, 2  ;;  %v4821_v18 = vrot.slane %v4820_v30, 2  ;;  %v4827_v3 = vmax.f32 %v4825_v53, %v4826_v29 }
 0x409   : > { %v4834_v20 = vmax.f32 %v4832_v15, %v4833_v42  ;;  %v4840_v51 = vrot.slane %v4839_v59, 4  ;;  %v4848_v16 = vmax.f32 %v4846_v11, %v4847_v25  ;;  %v4854_v62 = vrot.slane %v4853_v14, 4 }
 0x40a   : > { %v4809_v33 = vrot.slane %v4808_v0, 1  ;;  %v4815_v46 = vmax.f32 %v4813_v36, %v4814_v49  ;;  %v4822_v37 = vmax.f32 %v4820_v30, %v4821_v18  ;;  %v4828_v47 = vrot.slane %v4827_v3, 2 }
 0x40b   : > { %v4835_v10 = vrot.slane %v4834_v20, 2  ;;  %v4841_v1 = vmax.f32 %v4839_v59, %v4840_v51  ;;  %v4849_v12 = vrot.slane %v4848_v16, 2  ;;  %v4855_v28 = vmax.f32 %v4853_v14, %v4854_v62 }
 0x40c   : > { %v4810_v7 = vmax.f32 %v4808_v0, %v4809_v33  ;;  %v4816_v39 = vrot.slane %v4815_v46, 1  ;;  %v4823_v35 = vrot.slane %v4822_v37, 1  ;;  %v4829_v38 = vmax.f32 %v4827_v3, %v4828_v47 }
 0x40d   : > { %v4836_v56 = vmax.f32 %v4834_v20, %v4835_v10  ;;  %v4842_v13 = vrot.slane %v4841_v1, 2  ;;  %v4850_v22 = vmax.f32 %v4848_v16, %v4849_v12  ;;  %v4856_v40 = vrot.slane %v4855_v28, 2  ;;  %v9616_v34 = vpop.permute.xlu0 %9615  ;;  %v9621_v12 = vpop.permute.xlu1 %9620 }
 0x40e   : > { %v4817_v48 = vmax.f32 %v4815_v46, %v4816_v39  ;;  %v4824_v9 = vmax.f32 %v4822_v37, %v4823_v35  ;;  %v4830_v8 = vrot.slane %v4829_v38, 1  ;;  %v9618_v50 = vunpack.i.h.bf16 %v9616_v34 }
 0x40f   : > { %v4837_v60 = vrot.slane %v4836_v56, 1  ;;  %v4843_v17 = vmax.f32 %v4841_v1, %v4842_v13  ;;  %v4851_v53 = vrot.slane %v4850_v22, 1  ;;  %v4857_v4 = vmax.f32 %v4855_v28, %v4856_v40 }
 0x410   : > { %v4831_v15 = vmax.f32 %v4829_v38, %v4830_v8  ;;  %v5036_v11 = vsel %vm4980_vm11, %v4817_v48, %v4810_v7  ;;  %v9617_v41 = vunpack.i.l.bf16 %v9616_v34  ;;  %v5369_v36 = vsel %vm5367_vm3, %v5360_v52, %v9618_v50 }
 0x411   : > { %v5037_v30 = vsel %vm4982_vm12, %v4824_v9, %v5036_v11  ;;  %v4838_v29 = vmax.f32 %v4836_v56, %v4837_v60  ;;  %v4844_v42 = vrot.slane %v4843_v17, 1  ;;  %v5359_v59 = vsel %vm5358_vm6, %v12893_v55, %v9612_v21  ;;  %v9626_v39 = vpop.permute.xlu0 %9625  ;;  %v9631_v35 = vpop.permute.xlu1 %9630 }
 0x412   : > { %v4858_v25 = vrot.slane %v4857_v4, 1  ;;  %v5038_v14 = vsel %vm4984_vm13, %v4831_v15, %v5037_v30  ;;  %v5368_v0 = vsel %vm5367_vm3, %v5359_v59, %v9617_v41  ;;  %v4852_v20 = vmax.f32 %v4850_v22, %v4851_v53 }
 0x413   : > { %v4845_v49 = vmax.f32 %v4843_v17, %v4844_v42  ;;  %v5039_v18 = vsel %vm4986_vm14, %v4838_v29, %v5038_v14  ;;  %v5376_v3 = vpack.c.bf16 %v5369_v36, %v5368_v0  ;;  %v9622_v38 = vunpack.i.l.bf16 %v9621_v12 }
 0x414   : > { %v4859_v52 = vmax.f32 %v4857_v4, %v4858_v25  ;;  %v9628_v13 = vunpack.i.h.bf16 %v9626_v39  ;;  %v9627_v22 = vunpack.i.l.bf16 %v9626_v39  ;;  %v9633_v40 = vunpack.i.h.bf16 %v9631_v35 }
 0x415   : > { %5489 = vmatmul.mubr.bf16.vlgmr.msra.gmra.mrb[32].mxu0 %v5376_v3  ;;  %v5040_v51 = vsel %vm4988_vm5, %v4845_v49, %v5039_v18  ;;  %v9632_v34 = vunpack.i.l.bf16 %v9631_v35  ;;  %v5319_v60 = vsel %vm3486_vm15, %v12547_v44, %v9622_v38  ;;  %vm14021_vm10 = vcmask 392192  }
 0x416   : > { %7792 = vmatprep.mubr.msk.bf16.mxu0 %vm3486_vm15, %v5379_v57  ;;  %v5041_v43 = vsel %vm4990_vm7, %v4852_v20, %v5040_v51  ;;  %v5327_v53 = vsel %vm3551_vm4, %v5319_v60, %v9627_v22  ;;  %vm14022_vm14 = vmmov %vm14021_vm10  ;;  %vm14023_vm5 = vcmask 654336  }
 0x417   : > { %v5042_v55 = vsel %vm4992_vm9, %v4859_v52, %v5041_v43  ;;  %v5335_v15 = vsel %vm14021_vm10, %v5327_v53, %v9632_v34  ;;  %vm14024_vm7 = vmmov %vm14023_vm5 }
 0x418   : > { %v5050_v21 = vrot.slane %v5042_v55, 7  ;;  %vm14025_vm9 = vmmov %vm14021_vm10 }
 0x419   : > { %vm14026_vm10 = vmmov %vm14025_vm9 }
 0x41a   : > { %v5066_v16 = vsel %vm681_vm0, 0.0, %v5050_v21  ;;  %v5074_v62 = vsel %vm681_vm0, %v5050_v21, 0.0 }
 0x41b   : > { %v9699_v33 = vpack.i.bf16 %v5066_v16, %v12857_v54  ;;  %v5135_v46 = vrot.slane %v5066_v16, 1  ;;  %v5136_v37 = vrot.slane %v5074_v62, 1  ;;  %v5138_v47 = vrot.slane %v5066_v16, 2 }
 0x41c   : > { %v5139_v10 = vrot.slane %v5074_v62, 2  ;;  %v9709_v28 = vpack.i.bf16 %v14016_v63, %v5066_v16 }
 0x41d   : > { %9700 = vrot.lane.b32.xlu1 %v9699_v33, %s13988_s25  ;;  %v5137_v23 = vsel %vm847_vm2, %v5135_v46, %v5136_v37 }
 0x41e   : > { %v9704_v61 = vpack.i.bf16 %v5137_v23, %v12870_v45  ;;  %v12934_v57 = vsel %vm928_vm1, %v5138_v47, %v5139_v10  ;;  %v9719_v7 = vpack.i.bf16 %v12498_v5, %v5137_v23  ;;  %v9623_v45 = vunpack.i.h.bf16 %v9621_v12 }
 0x41f   : > { %v9714_v1 = vpack.i.bf16 %v12934_v57, %v12882_v2 }
 0x420   : > { %9705 = vrot.lane.b32.xlu0 %v9704_v61, %s13983_s20  ;;  %v9636_v56 = vpop.permute.xlu0 %9635  ;;  %v5320_v50 = vsel %vm3486_vm15, %v12619_v58, %v9623_v45 }
 0x421   : > { %9715 = vrot.lane.b32.xlu1 %v9714_v1, %s10088_s29  ;;  %v9638_v48 = vunpack.i.h.bf16 %v9636_v56  ;;  %v9637_v9 = vunpack.i.l.bf16 %v9636_v56  ;;  %v5328_v17 = vsel %vm3551_vm4, %v5320_v50, %v9628_v13 }
 0x422   : > { %v9641_v8 = vpop.permute.xlu1 %9640  ;;  %v5336_v11 = vsel %vm14022_vm14, %v5328_v17, %v9633_v40  ;;  %vm14027_vm14 = vmmov %vm14023_vm5  ;;  %v5383_v17 = vpack.c.bf16 %v12491_v31, %v12934_v57 }
 0x423   : > { %v9643_v41 = vunpack.i.h.bf16 %v9641_v8  ;;  %v9642_v36 = vunpack.i.l.bf16 %v9641_v8  ;;  %v5343_v30 = vsel %vm3683_vm8, %v5335_v15, %v9637_v9  ;;  %v5344_v29 = vsel %vm3683_vm8, %v5336_v11, %v9638_v48 }
 0x424   : > { %9710 = vrot.lane.b32.xlu0 %v9709_v28, %s13942_s27 }
 0x425   : > { %9720 = vrot.lane.b32.xlu1 %v9719_v7, %s10091_s2  ;;  %v5352_v44 = vsel %vm14023_vm5, %v5343_v30, %v9642_v36  ;;  %v5353_v25 = vsel %vm14024_vm7, %v5344_v29, %v9643_v41  ;;  %vm14028_vm7 = vmmov %vm14025_vm9  ;;  %s14033_s2 = smov 96  }
 0x42c   : > { %v9646_v4 = vpop.permute.xlu0 %9645 }
 0x42d   : > { %v9648_v42 = vunpack.i.h.bf16 %v9646_v4  ;;  %v9647_v58 = vunpack.i.l.bf16 %v9646_v4 }
 0x42f   : > { %v5361_v49 = vsel %vm5358_vm6, %v5352_v44, %v9647_v58  ;;  %v5362_v18 = vsel %vm5358_vm6, %v5353_v25, %v9648_v42 }
 0x430   : > { %v9651_v59 = vpop.permute.xlu1 %9650  ;;  %v9656_v51 = vpop.permute.xlu0 %9655 }
 0x431   : > { %v9653_v14 = vunpack.i.h.bf16 %v9651_v59  ;;  %v9652_v0 = vunpack.i.l.bf16 %v9651_v59  ;;  %v9658_v21 = vunpack.i.h.bf16 %v9656_v51  ;;  %v9657_v16 = vunpack.i.l.bf16 %v9656_v51 }
 0x433   : > { %v5370_v3 = vsel %vm5367_vm3, %v5361_v49, %v9652_v0  ;;  %v5371_v20 = vsel %vm5367_vm3, %v5362_v18, %v9653_v14  ;;  %v5322_v1 = vsel %vm3486_vm15, %v12741_v32, %v9658_v21  ;;  %v5321_v27 = vsel %vm3486_vm15, %v12688_v24, %v9657_v16 }
 0x434   : > { %v5378_v52 = vpack.c.bf16 %v5371_v20, %v5370_v3 }
 0x436   : > { %5497 = vmatmul.mubr.bf16.gmra.mrb[36].mxu0 %v5378_v52 }
 0x437   : > { %7793 = vmatprep.mubr.msk.bf16.mxu0 %vm3486_vm15, %v5381_v6 }
 0x43f   : > { %v9661_v43 = vpop.permute.xlu1 %9660 }
 0x440   : > { %v9663_v33 = vunpack.i.h.bf16 %v9661_v43  ;;  %v9662_v46 = vunpack.i.l.bf16 %v9661_v43 }
 0x442   : > { %v5329_v2 = vsel %vm3551_vm4, %v5321_v27, %v9662_v46  ;;  %v5330_v6 = vsel %vm3551_vm4, %v5322_v1, %v9663_v33  ;;  %v9910_v1 = vld [vmem:[%s13872_s7 + $0x80] sm:$0xff]   ;;  %v9911_v27 = vld [vmem:[%s13872_s7 + $0x88] sm:$0xff]  }
 0x443   : > { %8189 = vmatprep.subr.bf16.mxu0 %v9910_v1 }
 0x444   : > { %8190 = vmatpush3.bf16.msra.mxu0 %v9910_v1 }
 0x445   : > { %8191 = vmatprep.subr.bf16.mxu0 %v9911_v27 }
 0x448   : > { %8192 = vmatpush3.bf16.msra.mxu0 %v9911_v27 }
 0x44a   : > { %v9666_v55 = vpop.permute.xlu0 %9665 }
 0x44b   : > { %v9668_v37 = vunpack.i.h.bf16 %v9666_v55  ;;  %v9667_v47 = vunpack.i.l.bf16 %v9666_v55 }
 0x44d   : > { %v5337_v12 = vsel %vm14025_vm9, %v5329_v2, %v9667_v47  ;;  %v5338_v28 = vsel %vm14026_vm10, %v5330_v6, %v9668_v37  ;;  %vm14029_vm9 = vmmov %vm14028_vm7  ;;  %v14032_v2 = vmov 0.0   ;;  %v13009_v6 = vld [vmem:[%s13871_s6] ss:$0 sm:$0xff] }
 0x44e   : > { %v9671_v62 = vpop.permute.xlu1 %9670  ;;  %vm14031_vm10 = vmmov %vm14023_vm5  ;;  %8201 = vmatprep.subr.bf16.mxu0 %v14032_v2 }
 0x44f   : > { %v9673_v10 = vunpack.i.h.bf16 %v9671_v62  ;;  %v9672_v23 = vunpack.i.l.bf16 %v9671_v62 }
 0x451   : > { %v5345_v45 = vsel %vm3683_vm8, %v5337_v12, %v9672_v23  ;;  %v5346_v38 = vsel %vm3683_vm8, %v5338_v28, %v9673_v10 }
 0x461   : > { %v9676_v61 = vpop.permute.xlu0 %9675 }
 0x462   : > { %v9678_v7 = vunpack.i.h.bf16 %v9676_v61  ;;  %v9677_v39 = vunpack.i.l.bf16 %v9676_v61 }
 0x464   : > { %v5354_v24 = vsel %vm14027_vm14, %v5345_v45, %v9677_v39  ;;  %v5355_v22 = vsel %vm14023_vm5, %v5346_v38, %v9678_v7  ;;  %vm6492_vm14 = vcmask 1042432  }
 0x46c   : > { %v9681_v35 = vpop.permute.xlu1 %9680 }
 0x46d   : > { %v9683_v56 = vunpack.i.h.bf16 %v9681_v35  ;;  %v9682_v32 = vunpack.i.l.bf16 %v9681_v35 }
 0x46f   : > { %v9686_v13 = vpop.permute.xlu0 %9685  ;;  %v5363_v48 = vsel %vm5358_vm6, %v5354_v24, %v9682_v32  ;;  %v5364_v9 = vsel %vm5358_vm6, %v5355_v22, %v9683_v56 }
 0x470   : > { %v9688_v40 = vunpack.i.h.bf16 %v9686_v13  ;;  %v9687_v34 = vunpack.i.l.bf16 %v9686_v13  ;;  %v9691_v53 = vpop.permute.xlu1 %9690 }
 0x471   : > { %v9693_v15 = vunpack.i.h.bf16 %v9691_v53  ;;  %v9692_v11 = vunpack.i.l.bf16 %v9691_v53 }
 0x472   : > { %v5372_v8 = vsel %vm5367_vm3, %v5363_v48, %v9687_v34  ;;  %v5373_v50 = vsel %vm5367_vm3, %v5364_v9, %v9688_v40 }
 0x473   : > { %v5380_v60 = vpack.c.bf16 %v5373_v50, %v5372_v8  ;;  %v9696_v4 = vpop.permute.xlu0 %9695  ;;  %v5324_v58 = vsel %vm3486_vm15, %v12857_v54, %v9693_v15  ;;  %v5323_v59 = vsel %vm3486_vm15, %v12794_v19, %v9692_v11 }
 0x474   : > { %v9698_v41 = vunpack.i.h.bf16 %v9696_v4  ;;  %v9697_v36 = vunpack.i.l.bf16 %v9696_v4 }
 0x475   : > { %5505 = vmatmul.mubr.bf16.gmra.mrb[40].mxu0 %v5380_v60 }
 0x476   : > { %7794 = vmatprep.mubr.msk.bf16.mxu0 %vm3486_vm15, %v5383_v17  ;;  %v5332_v57 = vsel %vm3551_vm4, %v5324_v58, %v9698_v41  ;;  %v5331_v25 = vsel %vm3551_vm4, %v5323_v59, %v9697_v36  ;;  %vm14030_vm15 = vmmov %vm14023_vm5  ;;  %v9912_v41 = vld [vmem:[%s13872_s7 + $0x40] sm:$0xff]   ;;  %v9914_v58 = vld [vmem:[%s13872_s7 + $0x48] sm:$0xff]   ;;  %vm6493_vm5 = vcmask 1046532  }
 0x477   : > { %7961 = vmatprep.subr.bf16.mxu1 %v9912_v41  ;;  %v9915_v59 = vld [vmem:[%s13872_s7 + $0x8] sm:$0xff]  }
 0x48f   : > { %v9701_v30 = vpop.permute.xlu1 %9700 }
 0x490   : > { %v9703_v29 = vunpack.i.h.bf16 %v9701_v30  ;;  %v9702_v42 = vunpack.i.l.bf16 %v9701_v30 }
 0x492   : > { %v9706_v44 = vpop.permute.xlu0 %9705  ;;  %v5339_v18 = vsel %vm14028_vm7, %v5331_v25, %v9702_v42  ;;  %v5340_v3 = vsel %vm14029_vm9, %v5332_v57, %v9703_v29  ;;  %v9913_v29 = vld [vmem:[%s13872_s7] sm:$0xff]   ;;  %v9917_v57 = vld [vmem:[%s13872_s7 + $0x10] sm:$0xff]   ;;  %v9918_v25 = vld [vmem:[%s13872_s7 + $0x58] sm:$0xff]   ;;  %vm6511_vm7 = vcmask 1041408   ;;  %vm6512_vm9 = vcmask 1045508  }
 0x493   : > { %v9708_v14 = vunpack.i.h.bf16 %v9706_v44  ;;  %v9707_v0 = vunpack.i.l.bf16 %v9706_v44  ;;  %v9716_v49 = vpop.permute.xlu1 %9715  ;;  %7962 = vmatpush3.bf16.msra.mxu1 %v9913_v29  ;;  %v9916_v44 = vld [vmem:[%s13872_s7 + $0x50] sm:$0xff]  }
 0x494   : > { %v9718_v20 = vunpack.i.h.bf16 %v9716_v49  ;;  %v9717_v52 = vunpack.i.l.bf16 %v9716_v49  ;;  %7963 = vmatprep.subr.bf16.mxu1 %v9914_v58  ;;  %v9921_v49 = vld [vmem:[%s13872_s7 + $0x20] sm:$0xff]  }
 0x495   : > { %v5347_v51 = vsel %vm3683_vm8, %v5339_v18, %v9707_v0  ;;  %v5348_v54 = vsel %vm3683_vm8, %v5340_v3, %v9708_v14  ;;  %v9919_v14 = vld [vmem:[%s13872_s7 + $0x18] sm:$0xff]   ;;  %v9920_v0 = vld [vmem:[%s13872_s7 + $0x60] sm:$0xff]   ;;  %v9922_v18 = vld [vmem:[%s13872_s7 + $0x68] sm:$0xff]  }
 0x496   : > { %v9711_v43 = vpop.permute.xlu0 %9710  ;;  %v5356_v16 = vsel %vm14030_vm15, %v5347_v51, %v9717_v52  ;;  %v5357_v62 = vsel %vm14031_vm10, %v5348_v54, %v9718_v20  ;;  %v9923_v54 = vld [vmem:[%s13872_s7 + $0x28] sm:$0xff]   ;;  %vm13364_vm10 = vmor %vm6492_vm14, %vm6493_vm5 }
 0x497   : > { %v9713_v19 = vunpack.i.h.bf16 %v9711_v43  ;;  %v9712_v55 = vunpack.i.l.bf16 %v9711_v43  ;;  %v9721_v21 = vpop.permute.xlu1 %9720  ;;  %7964 = vmatpush3.bf16.msra.mxu1 %v9915_v59 }
 0x498   : > { %v9723_v33 = vunpack.i.h.bf16 %v9721_v21  ;;  %v9722_v46 = vunpack.i.l.bf16 %v9721_v21  ;;  %7965 = vmatprep.subr.bf16.mxu1 %v9916_v44  ;;  %v9924_v21 = vld [vmem:[%s13872_s7 + $0x70] sm:$0xff]  }
 0x499   : > { %v5365_v37 = vsel %vm5358_vm6, %v5356_v16, %v9712_v55  ;;  %v5366_v47 = vsel %vm5358_vm6, %v5357_v62, %v9713_v19 }
 0x49a   : > { %v5374_v10 = vsel %vm5367_vm3, %v5365_v37, %v9722_v46  ;;  %v5375_v23 = vsel %vm5367_vm3, %v5366_v47, %v9723_v33  ;;  %v9925_v37 = vld [vmem:[%s13872_s7 + $0x30] sm:$0xff]   ;;  %vm14034_vm3 = vcmask 1044480  }
 0x49b   : > { %v5382_v61 = vpack.c.bf16 %v5375_v23, %v5374_v10  ;;  %7966 = vmatpush3.bf16.msra.mxu1 %v9917_v57  ;;  %vm14035_vm15 = vmmov %vm14034_vm3 }
 0x49c   : > { %7967 = vmatprep.subr.bf16.mxu1 %v9918_v25  ;;  %vm14040_vm14 = vmmov %vm14035_vm15 }
 0x49d   : > { %5513 = vmatmul.mubr.bf16.gmra.mrb[44].mxu0 %v5382_v61  ;;  %v9926_v61 = vld [vmem:[%s13872_s7 + $0x78] sm:$0xff]  }
 0x49f   : > { %7968 = vmatpush3.bf16.msra.mxu1 %v9919_v14 }
 0x4a0   : > { %7969 = vmatprep.subr.bf16.mxu1 %v9920_v0 }
 0x4a3   : > { %7970 = vmatpush3.bf16.msra.mxu1 %v9921_v49 }
 0x4a4   : > { %7971 = vmatprep.subr.bf16.mxu1 %v9922_v18 }
 0x4a7   : > { %7972 = vmatpush3.bf16.msra.mxu1 %v9923_v54 }
 0x4a8   : > { %7973 = vmatprep.subr.bf16.mxu1 %v9924_v21 }
 0x4ab   : > { %7974 = vmatpush3.bf16.msra.mxu1 %v9925_v37 }
 0x4ac   : > { %7975 = vmatprep.subr.bf16.mxu1 %v9926_v61 }
 0x4e8   : > { %v5490_v12 = vpop.f32.mrb[32].mxu0 }
 0x4e9   : > { %v5491_v28 = vadd.f32 %v13009_v6, %v5490_v12  ;;  %v5492_v7 = vpop.f32.mrb[33].mxu0 }
 0x4ea   : > { %v5493_v39 = vpop.f32.mrb[34].mxu0 }
 0x4eb   : > { %v5521_v35 = vmax.f32 %v5491_v28, 0.0  ;;  %v5494_v45 = vadd.f32 %v13009_v6, %v5493_v39  ;;  %v5495_v38 = vpop.f32.mrb[35].mxu0 }
 0x4ed   : > { %v5537_v56 = vrot.slane %v5521_v35, 7  ;;  %v5522_v32 = vmax.f32 %v5494_v45, 0.0 }
 0x4ef   : > { %v13014_v13 = vsel %vm681_vm0, 0.0, %v5537_v56  ;;  %v5561_v24 = vsel %vm681_vm0, %v5537_v56, 0.0  ;;  %v5538_v22 = vrot.slane %v5522_v32, 7  ;;  %v9927_v32 = vld [vmem:[%s13872_s7 + $0x38] sm:$0xff]  }
 0x4f0   : > { %v5583_v40 = vrot.slane %v13014_v13, 1  ;;  %v5584_v34 = vrot.slane %v5561_v24, 1  ;;  %v5604_v48 = vrot.slane %v13014_v13, 2  ;;  %v5605_v9 = vrot.slane %v5561_v24, 2  ;;  %7976 = vmatpush3.bf16.msra.mxu1 %v9927_v32 }
 0x4f1   : > { %v13020_v8 = vsel %vm681_vm0, 0.0, %v5538_v22  ;;  %v13023_v50 = vsel %vm681_vm0, %v5538_v22, 0.0 }
 0x4f2   : > { %v5607_v60 = vrot.slane %v13020_v8, 2  ;;  %v5608_v17 = vrot.slane %v13023_v50, 2  ;;  %v9724_v53 = vpack.i.bf16 %v13020_v8, %v13014_v13  ;;  %v5606_v15 = vsel %vm928_vm1, %v5604_v48, %v5605_v9 }
 0x4f3   : > { %v13034_v11 = vsel %vm847_vm2, %v5583_v40, %v5584_v34  ;;  %v9734_v42 = vpack.i.bf16 %v5606_v15, %v12491_v31  ;;  %v5586_v33 = vrot.slane %v13020_v8, 1  ;;  %v5587_v46 = vrot.slane %v13023_v50, 1 }
 0x4f4   : > { %v13030_v4 = vsel %vm928_vm1, %v5607_v60, %v5608_v17  ;;  %9725 = vrot.lane.b32.xlu1 %v9724_v53, %s13942_s27  ;;  %v9729_v30 = vpack.i.bf16 %v13034_v11, %v12498_v5 }
 0x4f5   : > { %v9739_v36 = vpack.i.bf16 %v13030_v4, %v5606_v15  ;;  %v13106_v45 = vsel %vm847_vm2, %v5586_v33, %v5587_v46 }
 0x4f7   : > { %9740 = vrot.lane.b32.xlu0 %v9739_v36, %s13982_s22 }
 0x4f8   : > { %9730 = vrot.lane.b32.xlu1 %v9729_v30, %s13982_s22 }
 0x4fc   : > { %9735 = vrot.lane.b32.xlu1 %v9734_v42, %s13983_s20 }
 0x509   : > { %v5498_v3 = vpop.f32.mrb[36].mxu0 }
 0x50a   : > { %v5499_v20 = vadd.f32 %v13009_v6, %v5498_v3  ;;  %v5500_v52 = vpop.f32.mrb[37].mxu0 }
 0x50b   : > { %v5501_v51 = vpop.f32.mrb[38].mxu0 }
 0x50c   : > { %v5523_v43 = vmax.f32 %v5499_v20, 0.0  ;;  %v5502_v19 = vadd.f32 %v13009_v6, %v5501_v51  ;;  %v5503_v55 = vpop.f32.mrb[39].mxu0 }
 0x50e   : > { %v5539_v16 = vrot.slane %v5523_v43, 7  ;;  %v5524_v62 = vmax.f32 %v5502_v19, 0.0 }
 0x510   : > { %v13091_v47 = vsel %vm681_vm0, 0.0, %v5539_v16  ;;  %v5563_v10 = vsel %vm681_vm0, %v5539_v16, 0.0  ;;  %v5540_v23 = vrot.slane %v5524_v62, 7 }
 0x511   : > { %v5589_v1 = vrot.slane %v13091_v47, 1  ;;  %v5590_v27 = vrot.slane %v5563_v10, 1  ;;  %v5610_v12 = vrot.slane %v13091_v47, 2  ;;  %v5611_v28 = vrot.slane %v5563_v10, 2 }
 0x512   : > { %v13100_v7 = vsel %vm681_vm0, 0.0, %v5540_v23  ;;  %v5564_v39 = vsel %vm681_vm0, %v5540_v23, 0.0  ;;  %v9744_v35 = vpack.i.bf16 %v13091_v47, %v13020_v8 }
 0x513   : > { %v13109_v38 = vsel %vm847_vm2, %v5589_v1, %v5590_v27  ;;  %v5612_v56 = vsel %vm928_vm1, %v5610_v12, %v5611_v28  ;;  %v5613_v24 = vrot.slane %v13100_v7, 2  ;;  %v5614_v22 = vrot.slane %v5564_v39, 2 }
 0x514   : > { %9745 = vrot.lane.b32.xlu0 %v9744_v35, %s13983_s20  ;;  %v9749_v40 = vpack.i.bf16 %v13100_v7, %v13091_v47  ;;  %v5842_v34 = vpack.c.bf16 %v5612_v56, %v13030_v4  ;;  %v9754_v48 = vpack.i.bf16 %v13109_v38, %v13106_v45  ;;  %v9764_v9 = vpack.i.bf16 %v5612_v56, %v13030_v4 }
 0x515   : > { %v5615_v50 = vsel %vm928_vm1, %v5613_v24, %v5614_v22  ;;  %v5592_v58 = vrot.slane %v13100_v7, 1  ;;  %v5593_v59 = vrot.slane %v5564_v39, 1 }
 0x516   : > { %9750 = vrot.lane.b32.xlu1 %v9749_v40, %s14033_s2  ;;  %8193 = vmatprep.mubr.msk.bf16.mxu0 %vm3551_vm4, %v5842_v34  ;;  %v9769_v60 = vpack.i.bf16 %v5615_v50, %v5612_v56 }
 0x517   : > { %v13146_v51 = vsel %vm847_vm2, %v5592_v58, %v5593_v59 }
 0x518   : > { %9755 = vrot.lane.b32.xlu0 %v9754_v48, %s14033_s2 }
 0x51a   : > { %9760 = vrot.lane.b32.xlu1 %v9754_v48, %s13982_s22 }
 0x51c   : > { %9770 = vrot.lane.b32.xlu0 %v9769_v60, %s13982_s22 }
 0x51e   : > { %9765 = vrot.lane.b32.xlu1 %v9764_v9, %s13983_s20 }
 0x548   : > { %v5506_v17 = vpop.f32.mrb[40].mxu0 }
 0x549   : > { %v5507_v53 = vadd.f32 %v13009_v6, %v5506_v17  ;;  %v5508_v4 = vpop.f32.mrb[41].mxu0 }
 0x54a   : > { %v5509_v15 = vpop.f32.mrb[42].mxu0 }
 0x54b   : > { %v5525_v41 = vmax.f32 %v5507_v53, 0.0  ;;  %v5510_v36 = vadd.f32 %v13009_v6, %v5509_v15  ;;  %v5511_v30 = vpop.f32.mrb[43].mxu0 }
 0x54d   : > { %v5541_v29 = vrot.slane %v5525_v41, 7  ;;  %v5526_v42 = vmax.f32 %v5510_v36, 0.0 }
 0x54f   : > { %v13134_v44 = vsel %vm681_vm0, 0.0, %v5541_v29  ;;  %v5565_v57 = vsel %vm681_vm0, %v5541_v29, 0.0  ;;  %v5542_v25 = vrot.slane %v5526_v42, 7 }
 0x550   : > { %v5595_v14 = vrot.slane %v13134_v44, 1  ;;  %v5596_v0 = vrot.slane %v5565_v57, 1  ;;  %v5616_v49 = vrot.slane %v13134_v44, 2  ;;  %v5617_v18 = vrot.slane %v5565_v57, 2 }
 0x551   : > { %v13140_v3 = vsel %vm681_vm0, 0.0, %v5542_v25  ;;  %v5566_v20 = vsel %vm681_vm0, %v5542_v25, 0.0  ;;  %v9774_v52 = vpack.i.bf16 %v13134_v44, %v13100_v7 }
 0x552   : > { %v13149_v54 = vsel %vm847_vm2, %v5595_v14, %v5596_v0  ;;  %v5618_v43 = vsel %vm928_vm1, %v5616_v49, %v5617_v18  ;;  %v5619_v55 = vrot.slane %v13140_v3, 2  ;;  %v5620_v21 = vrot.slane %v5566_v20, 2 }
 0x553   : > { %v5845_v19 = vpack.c.bf16 %v5618_v43, %v5615_v50  ;;  %9775 = vrot.lane.b32.xlu0 %v9774_v52, %s13983_s20  ;;  %v9779_v16 = vpack.i.bf16 %v13140_v3, %v13134_v44  ;;  %v9784_v62 = vpack.i.bf16 %v13149_v54, %v13146_v51  ;;  %v9794_v33 = vpack.i.bf16 %v5618_v43, %v5615_v50 }
 0x554   : > { %v5621_v46 = vsel %vm928_vm1, %v5619_v55, %v5620_v21  ;;  %v5598_v56 = vrot.slane %v13140_v3, 1  ;;  %v5599_v32 = vrot.slane %v5566_v20, 1 }
 0x555   : > { %9780 = vrot.lane.b32.xlu1 %v9779_v16, %s14033_s2  ;;  %8194 = vmatmul.mubr.msk.bf16.vlgmr.msra.gmra.mrb[48].mxu0 %vm3551_vm4, %v5845_v19  ;;  %v9799_v37 = vpack.i.bf16 %v5621_v46, %v5618_v43 }
 0x556   : > { %v13181_v4 = vsel %vm847_vm2, %v5598_v56, %v5599_v32 }
 0x557   : > { %9785 = vrot.lane.b32.xlu0 %v9784_v62, %s14033_s2 }
 0x559   : > { %9790 = vrot.lane.b32.xlu1 %v9784_v62, %s13982_s22 }
 0x55b   : > { %9800 = vrot.lane.b32.xlu0 %v9799_v37, %s13982_s22 }
 0x55d   : > { %9795 = vrot.lane.b32.xlu1 %v9794_v33, %s13983_s20 }
 0x566   : > { %v13168_v24 = vpop.permute.xlu1 %9725 }
 0x569   : > { %v9741_v20 = vpop.permute.xlu0 %9740 }
 0x56a   : > { %v9731_v59 = vpop.permute.xlu1 %9730  ;;  %v9743_v33 = vunpack.i.h.bf16 %v9741_v20 }
 0x56b   : > { %v9733_v19 = vunpack.i.h.bf16 %v9731_v59  ;;  %v9732_v55 = vunpack.i.l.bf16 %v9731_v59 }
 0x56d   : > { %v5793_v37 = vsel %vm3551_vm4, %v13014_v13, %v9733_v19  ;;  %v5817_v13 = vsel %vm3551_vm4, %v13106_v45, %v9743_v33 }
 0x56e   : > { %v9736_v52 = vpop.permute.xlu1 %9735 }
 0x56f   : > { %v9737_v21 = vunpack.i.l.bf16 %v9736_v52 }
 0x570   : > { %v5514_v10 = vpop.f32.mrb[44].mxu0 }
 0x571   : > { %v5515_v23 = vadd.f32 %v13009_v6, %v5514_v10  ;;  %v5516_v61 = vpop.f32.mrb[45].mxu0  ;;  %v5792_v10 = vsel %vm3551_vm4, %v14016_v63, %v9732_v55 }
 0x572   : > { %v5517_v1 = vpop.f32.mrb[46].mxu0 }
 0x573   : > { %v5527_v27 = vmax.f32 %v5515_v23, 0.0  ;;  %v5518_v12 = vadd.f32 %v13009_v6, %v5517_v1  ;;  %v5519_v28 = vpop.f32.mrb[47].mxu0 }
 0x574   : > { %v9728_v28 = vunpack.i.h.bf16 %v13168_v24 }
 0x575   : > { %v5543_v39 = vrot.slane %v5527_v27, 7  ;;  %v5528_v35 = vmax.f32 %v5518_v12, 0.0  ;;  %v5800_v27 = vsel %vm3683_vm8, %v5792_v10, %v9737_v21 }
 0x577   : > { %v13171_v22 = vsel %vm681_vm0, 0.0, %v5543_v39  ;;  %v5567_v40 = vsel %vm681_vm0, %v5543_v39, 0.0  ;;  %v5544_v34 = vrot.slane %v5528_v35, 7  ;;  %v9727_v39 = vunpack.i.l.bf16 %v13168_v24 }
 0x578   : > { %v5601_v48 = vrot.slane %v13171_v22, 1  ;;  %v5602_v9 = vrot.slane %v5567_v40, 1  ;;  %v5622_v50 = vrot.slane %v13171_v22, 2  ;;  %v5623_v6 = vrot.slane %v5567_v40, 2 }
 0x579   : > { %v5560_v60 = vsel %vm681_vm0, 0.0, %v5544_v34  ;;  %v5568_v17 = vsel %vm681_vm0, %v5544_v34, 0.0  ;;  %v9804_v53 = vpack.i.bf16 %v13171_v22, %v13140_v3 }
 0x57a   : > { %v13184_v15 = vsel %vm847_vm2, %v5601_v48, %v5602_v9  ;;  %v5624_v41 = vsel %vm928_vm1, %v5622_v50, %v5623_v6  ;;  %v5638_v36 = vrot.slane %v5560_v60, 2  ;;  %v5639_v30 = vrot.slane %v5568_v17, 2 }
 0x57b   : > { %9805 = vrot.lane.b32.xlu0 %v9804_v53, %s13983_s20  ;;  %v5848_v29 = vpack.c.bf16 %v5624_v41, %v5621_v46  ;;  %v9819_v42 = vpack.i.bf16 %v13184_v15, %v13181_v4  ;;  %v9824_v58 = vpack.i.bf16 %v5624_v41, %v5621_v46  ;;  %v9809_v57 = vpack.i.bf16 %v14016_v63, %v5560_v60 }
 0x57c   : > { %v5640_v25 = vsel %vm928_vm1, %v5638_v36, %v5639_v30  ;;  %v5627_v49 = vrot.slane %v5560_v60, 1  ;;  %v5628_v18 = vrot.slane %v5568_v17, 1  ;;  %v9839_v43 = vpack.i.bf16 %v5560_v60, %v13171_v22 }
 0x57d   : > { %8197 = vmatprep.mubr.msk.bf16.mxu0 %vm3551_vm4, %v5848_v29  ;;  %9820 = vrot.lane.b32.xlu1 %v9819_v42, %s13982_s22  ;;  %v5851_v14 = vpack.c.bf16 %v12491_v31, %v5640_v25  ;;  %v9829_v0 = vpack.i.bf16 %v5640_v25, %v5624_v41  ;;  %v9738_v31 = vunpack.i.h.bf16 %v9736_v52  ;;  %v9742_v46 = vunpack.i.l.bf16 %v9741_v20 }
 0x57e   : > { %v13202_v16 = vsel %vm847_vm2, %v5627_v49, %v5628_v18  ;;  %vm10092_vm1 = vmmov 0   ;;  %vm6216_vm2 = vcmask 254976  }
 0x57f   : > { %9810 = vrot.lane.b32.xlu0 %v9809_v57, %s13983_s20  ;;  %8198 = vmatmul.mubr.msk.bf16.gmra.mrb[52].mxu0 %vm3551_vm4, %v5851_v14  ;;  %v9834_v1 = vpack.i.bf16 %v12498_v5, %v13202_v16  ;;  %v5801_v12 = vsel %vm3683_vm8, %v5793_v37, %v9738_v31  ;;  %v5816_v56 = vsel %vm3551_vm4, %v13034_v11, %v9742_v46 }
 0x580   : > { %v5808_v5 = vsel %vm5358_vm6, %v5800_v27, %v9727_v39  ;;  %v5809_v34 = vsel %vm5358_vm6, %v5801_v12, %v9728_v28  ;;  %8205 = vmatprep.mubr.msk.bf16.mxu0 %vm10092_vm1, %v14032_v2 }
 0x581   : > { %9825 = vrot.lane.b32.xlu1 %v9824_v58, %s13983_s20  ;;  %v5840_v60 = vpack.c.bf16 %v5809_v34, %v5808_v5 }
 0x583   : > { %9815 = vrot.lane.b32.xlu0 %v9819_v42, %s14033_s2 }
 0x585   : > { %9840 = vrot.lane.b32.xlu1 %v9839_v43, %s14033_s2 }
 0x586   : > { %v9746_v62 = vpop.permute.xlu0 %9745 }
 0x587   : > { %9830 = vrot.lane.b32.xlu0 %v9829_v0, %s13982_s22  ;;  %v9748_v23 = vunpack.i.h.bf16 %v9746_v62  ;;  %v9747_v61 = vunpack.i.l.bf16 %v9746_v62 }
 0x588   : > { %v9751_v45 = vpop.permute.xlu1 %9750 }
 0x589   : > { %v5824_v48 = vsel %vm3683_vm8, %v5816_v56, %v9747_v61  ;;  %v5825_v9 = vsel %vm3683_vm8, %v5817_v13, %v9748_v23  ;;  %v9753_v20 = vunpack.i.h.bf16 %v9751_v45  ;;  %v9752_v52 = vunpack.i.l.bf16 %v9751_v45 }
 0x58a   : > { %v9756_v35 = vpop.permute.xlu0 %9755 }
 0x58b   : > { %9835 = vrot.lane.b32.xlu0 %v9834_v1, %s14033_s2  ;;  %v9758_v32 = vunpack.i.h.bf16 %v9756_v35  ;;  %v9757_v40 = vunpack.i.l.bf16 %v9756_v35 }
 0x58c   : > { %v9761_v11 = vpop.permute.xlu1 %9760 }
 0x58d   : > { %v5832_v24 = vsel %vm5358_vm6, %v5824_v48, %v9757_v40  ;;  %v5833_v50 = vsel %vm5358_vm6, %v5825_v9, %v9758_v32  ;;  %v9763_v41 = vunpack.i.h.bf16 %v9761_v11  ;;  %v9762_v36 = vunpack.i.l.bf16 %v9761_v11 }
 0x58e   : > { %v5841_v6 = vpack.c.bf16 %v5833_v50, %v5832_v24  ;;  %v9771_v17 = vpop.permute.xlu0 %9770 }
 0x58f   : > { %v9773_v58 = vunpack.i.h.bf16 %v9771_v17  ;;  %v9772_v59 = vunpack.i.l.bf16 %v9771_v17  ;;  %v5795_v57 = vsel %vm3551_vm4, %v13091_v47, %v9763_v41  ;;  %v5794_v25 = vsel %vm3551_vm4, %v13020_v8, %v9762_v36 }
 0x590   : > { %6010 = vmatprep.mubr.bf16.mxu1 %v5841_v6  ;;  %v9766_v53 = vpop.permute.xlu1 %9765 }
 0x591   : > { %6011 = vmatmul.mubr.bf16.vlgmr.msra.gmra.mrb[32].mxu1 %v5840_v60  ;;  %v9768_v30 = vunpack.i.h.bf16 %v9766_v53  ;;  %v9767_v29 = vunpack.i.l.bf16 %v9766_v53  ;;  %v5819_v19 = vsel %vm3551_vm4, %v13146_v51, %v9773_v58  ;;  %v5818_v55 = vsel %vm3551_vm4, %v13109_v38, %v9772_v59 }
 0x593   : > { %v5802_v49 = vsel %vm3683_vm8, %v5794_v25, %v9767_v29  ;;  %v5803_v18 = vsel %vm3683_vm8, %v5795_v57, %v9768_v30 }
 0x594   : > { %v5810_v62 = vsel %vm5358_vm6, %v5802_v49, %v9752_v52  ;;  %v5811_v33 = vsel %vm5358_vm6, %v5803_v18, %v9753_v20 }
 0x595   : > { %v5843_v23 = vpack.c.bf16 %v5811_v33, %v5810_v62 }
 0x5c5   : > { %v9776_v42 = vpop.permute.xlu0 %9775 }
 0x5c6   : > { %v9778_v14 = vunpack.i.h.bf16 %v9776_v42  ;;  %v9777_v0 = vunpack.i.l.bf16 %v9776_v42 }
 0x5c7   : > { %v9781_v51 = vpop.permute.xlu1 %9780 }
 0x5c8   : > { %v5826_v21 = vsel %vm3683_vm8, %v5818_v55, %v9777_v0  ;;  %v5827_v8 = vsel %vm3683_vm8, %v5819_v19, %v9778_v14  ;;  %v9783_v60 = vunpack.i.h.bf16 %v9781_v51  ;;  %v9782_v45 = vunpack.i.l.bf16 %v9781_v51 }
 0x5c9   : > { %v9786_v43 = vpop.permute.xlu0 %9785 }
 0x5ca   : > { %v9788_v31 = vunpack.i.h.bf16 %v9786_v43  ;;  %v9787_v47 = vunpack.i.l.bf16 %v9786_v43 }
 0x5cb   : > { %v9791_v38 = vpop.permute.xlu1 %9790 }
 0x5cc   : > { %v5834_v46 = vsel %vm5358_vm6, %v5826_v21, %v9787_v47  ;;  %v5835_v37 = vsel %vm5358_vm6, %v5827_v8, %v9788_v31  ;;  %v9793_v12 = vunpack.i.h.bf16 %v9791_v38  ;;  %v9792_v28 = vunpack.i.l.bf16 %v9791_v38 }
 0x5cd   : > { %v5844_v10 = vpack.c.bf16 %v5835_v37, %v5834_v46  ;;  %v9801_v61 = vpop.permute.xlu0 %9800 }
 0x5ce   : > { %v9803_v56 = vunpack.i.h.bf16 %v9801_v61  ;;  %v9802_v32 = vunpack.i.l.bf16 %v9801_v61  ;;  %v5797_v5 = vsel %vm3551_vm4, %v13134_v44, %v9793_v12  ;;  %v5796_v34 = vsel %vm3551_vm4, %v13100_v7, %v9792_v28 }
 0x5cf   : > { %6018 = vmatprep.mubr.bf16.mxu1 %v5844_v10  ;;  %v9796_v1 = vpop.permute.xlu1 %9795 }
 0x5d0   : > { %6019 = vmatmul.mubr.bf16.gmra.mrb[36].mxu1 %v5843_v23  ;;  %v9798_v39 = vunpack.i.h.bf16 %v9796_v1  ;;  %v9797_v35 = vunpack.i.l.bf16 %v9796_v1  ;;  %v5821_v11 = vsel %vm3551_vm4, %v13181_v4, %v9803_v56  ;;  %v5820_v17 = vsel %vm3551_vm4, %v13149_v54, %v9802_v32 }
 0x5d2   : > { %v5804_v48 = vsel %vm3683_vm8, %v5796_v34, %v9797_v35  ;;  %v5805_v9 = vsel %vm3683_vm8, %v5797_v5, %v9798_v39 }
 0x5d3   : > { %v5812_v7 = vsel %vm5358_vm6, %v5804_v48, %v9782_v45  ;;  %v5813_v36 = vsel %vm5358_vm6, %v5805_v9, %v9783_v60 }
 0x5d4   : > { %v5846_v14 = vpack.c.bf16 %v5813_v36, %v5812_v7  ;;  %v9928_v7 = vld [vmem:[%s13874_s9 + $0x80] sm:$0xff]   ;;  %v9929_v36 = vld [vmem:[%s13874_s9 + $0x88] sm:$0xff]  }
 0x5d5   : > { %8202 = vmatpush3.bf16.msra.mxu0 %v9928_v7 }
 0x5d6   : > { %8203 = vmatprep.subr.bf16.mxu0 %v14032_v2 }
 0x5d9   : > { %8204 = vmatpush3.bf16.msra.mxu0 %v9929_v36 }
 0x5ed   : > { %v9806_v27 = vpop.permute.xlu0 %9805 }
 0x5ee   : > { %v9808_v24 = vunpack.i.h.bf16 %v9806_v27  ;;  %v9807_v50 = vunpack.i.l.bf16 %v9806_v27 }
 0x5ef   : > { %v9821_v13 = vpop.permute.xlu1 %9820 }
 0x5f0   : > { %v5828_v30 = vsel %vm3683_vm8, %v5820_v17, %v9807_v50  ;;  %v5829_v29 = vsel %vm3683_vm8, %v5821_v11, %v9808_v24  ;;  %v9823_v4 = vunpack.i.h.bf16 %v9821_v13  ;;  %v9822_v57 = vunpack.i.l.bf16 %v9821_v13 }
 0x5f1   : > { %v9811_v40 = vpop.permute.xlu0 %9810 }
 0x5f2   : > { %v5799_v31 = vsel %vm3551_vm4, %v13171_v22, %v9823_v4  ;;  %v5798_v47 = vsel %vm3551_vm4, %v13140_v3, %v9822_v57  ;;  %v9813_v21 = vunpack.i.h.bf16 %v9811_v40  ;;  %v9812_v8 = vunpack.i.l.bf16 %v9811_v40  ;;  %v13289_v40 = vld [vmem:[%s13873_s8] ss:$0 sm:$0xff]  ;;  %v9934_v4 = vld [vmem:[%s13874_s9 + $0x50] sm:$0xff]  }
 0x5f3   : > { %v9826_v6 = vpop.permute.xlu1 %9825 }
 0x5f4   : > { %v9828_v0 = vunpack.i.h.bf16 %v9826_v6  ;;  %v9827_v49 = vunpack.i.l.bf16 %v9826_v6 }
 0x5f5   : > { %v9816_v53 = vpop.permute.xlu0 %9815 }
 0x5f6   : > { %v9818_v44 = vunpack.i.h.bf16 %v9816_v53  ;;  %v9817_v41 = vunpack.i.l.bf16 %v9816_v53  ;;  %v5806_v33 = vsel %vm3683_vm8, %v5798_v47, %v9827_v49  ;;  %v5807_v46 = vsel %vm3683_vm8, %v5799_v31, %v9828_v0 }
 0x5f7   : > { %v9841_v42 = vpop.permute.xlu1 %9840 }
 0x5f8   : > { %v5836_v58 = vsel %vm5358_vm6, %v5828_v30, %v9817_v41  ;;  %v5837_v59 = vsel %vm5358_vm6, %v5829_v29, %v9818_v44  ;;  %v9843_v52 = vunpack.i.h.bf16 %v9841_v42  ;;  %v9842_v43 = vunpack.i.l.bf16 %v9841_v42  ;;  %v9930_v30 = vld [vmem:[%s13874_s9 + $0x40] sm:$0xff]   ;;  %v9932_v42 = vld [vmem:[%s13874_s9 + $0x48] sm:$0xff]  }
 0x5f9   : > { %v9831_v25 = vpop.permute.xlu0 %9830  ;;  %v5847_v54 = vpack.c.bf16 %v5837_v59, %v5836_v58  ;;  %v9931_v29 = vld [vmem:[%s13874_s9] sm:$0xff]   ;;  %8007 = vmatprep.subr.bf16.mxu1 %v9930_v30  ;;  %v9933_v59 = vld [vmem:[%s13874_s9 + $0x8] sm:$0xff]  }
 0x5fa   : > { %v9833_v18 = vunpack.i.h.bf16 %v9831_v25  ;;  %v9832_v20 = vunpack.i.l.bf16 %v9831_v25  ;;  %v5814_v23 = vsel %vm5358_vm6, %v5806_v33, %v9842_v43  ;;  %v5815_v22 = vsel %vm5358_vm6, %v5807_v46, %v9843_v52  ;;  %8008 = vmatpush3.bf16.msra.mxu1 %v9931_v29 }
 0x5fb   : > { %6026 = vmatprep.mubr.bf16.mxu1 %v5847_v54  ;;  %v5849_v61 = vpack.c.bf16 %v5815_v22, %v5814_v23  ;;  %8009 = vmatprep.subr.bf16.mxu1 %v9932_v42  ;;  %v9935_v54 = vld [vmem:[%s13874_s9 + $0x10] sm:$0xff]  }
 0x5fc   : > { %v5823_v19 = vsel %vm3551_vm4, %v13202_v16, %v9833_v18  ;;  %v5822_v55 = vsel %vm3551_vm4, %v13184_v15, %v9832_v20  ;;  %6027 = vmatmul.mubr.bf16.gmra.mrb[40].mxu1 %v5846_v14  ;;  %v9936_v14 = vld [vmem:[%s13874_s9 + $0x58] sm:$0xff]  }
 0x5fd   : > { %v9836_v62 = vpop.permute.xlu0 %9835  ;;  %v5830_v16 = vsel %vm3683_vm8, %v5822_v55, %v9812_v8  ;;  %v5831_v15 = vsel %vm3683_vm8, %v5823_v19, %v9813_v21  ;;  %v9937_v18 = vld [vmem:[%s13874_s9 + $0x18] sm:$0xff]  }
 0x5fe   : > { %v9838_v37 = vunpack.i.h.bf16 %v9836_v62  ;;  %v9837_v10 = vunpack.i.l.bf16 %v9836_v62  ;;  %8010 = vmatpush3.bf16.msra.mxu1 %v9933_v59 }
 0x5ff   : > { %8011 = vmatprep.subr.bf16.mxu1 %v9934_v4 }
 0x600   : > { %v5838_v51 = vsel %vm5358_vm6, %v5830_v16, %v9837_v10  ;;  %v5839_v3 = vsel %vm5358_vm6, %v5831_v15, %v9838_v37 }
 0x601   : > { %v5850_v38 = vpack.c.bf16 %v5839_v3, %v5838_v51 }
 0x602   : > { %8012 = vmatpush3.bf16.msra.mxu1 %v9935_v54 }
 0x603   : > { %6034 = vmatprep.mubr.bf16.mxu1 %v5850_v38  ;;  %8013 = vmatprep.subr.bf16.mxu1 %v9936_v14 }
 0x604   : > { %6035 = vmatmul.mubr.bf16.gmra.mrb[44].mxu1 %v5849_v61 }
 0x606   : > { %8014 = vmatpush3.bf16.msra.mxu1 %v9937_v18 }
 0x628   : > { %v13274_v1 = vpop.f32.mrb[48].mxu0 }
 0x629   : > { %v6077_v27 = vpop.f32.mrb[49].mxu0 }
 0x62a   : > { %v13276_v12 = vpop.f32.mrb[50].mxu0 }
 0x62b   : > { %v6080_v28 = vpop.f32.mrb[51].mxu0 }
 0x652   : > { %v13278_v39 = vpop.f32.mrb[52].mxu0 }
 0x653   : > { %v13280_v35 = vpop.f32.mrb[53].mxu0 }
 0x654   : > { %v13282_v13 = vpop.f32.mrb[54].mxu0 }
 0x655   : > { %v13284_v56 = vpop.f32.mrb[55].mxu0 }
 0x664   : > { %v7977_v32 = vpop.f32.mrb[32].mxu1 }
 0x665   : > { %v7978_v5 = vpop.f32.mrb[33].mxu1 }
 0x666   : > { %v7979_v34 = vadd.f32 %v7978_v5, %v7977_v32  ;;  %v7980_v48 = vpop.f32.mrb[34].mxu1 }
 0x667   : > { %v7981_v9 = vpop.f32.mrb[35].mxu1 }
 0x668   : > { %v6013_v24 = vadd.f32 %v7979_v34, %v13289_v40  ;;  %v7982_v50 = vadd.f32 %v7981_v9, %v7980_v48 }
 0x66a   : > { %v6078_v6 = vadd.f32 %v6077_v27, %v6013_v24  ;;  %v6016_v60 = vadd.f32 %v7982_v50, %v13289_v40 }
 0x66c   : > { %v6108_v45 = vmax.f32 %v6078_v6, 0.0  ;;  %v6081_v11 = vadd.f32 %v6080_v28, %v6016_v60 }
 0x66e   : > { %v6109_v17 = vmax.f32 %v6081_v11, 0.0  ;;  %v6116_v53 = vsel %vm3551_vm4, %v6108_v45, -inf }
 0x670   : > { %v6117_v44 = vsel %vm3551_vm4, %v6109_v17, -inf }
 0x671   : > { %v6118_v41 = vmax.f32 %v6116_v53, %v6117_v44 }
 0x673   : > { %v6139_v58 = vrot.slane %v6118_v41, %v12459_v26  ;;  %v6132_v57 = vcombine.high %v6118_v41, %v6118_v41 }
 0x675   : > { %v6147_v25 = vcombine.high %v6139_v58, %v6139_v58  ;;  %v6146_v0 = vrot.slane %v6132_v57, %v12459_v26  ;;  %v6217_v52 = vsel %vm6216_vm2, %v6139_v58, -inf }
 0x676   : > { %v6218_v55 = vrot.slane %v6217_v52, 4 }
 0x677   : > { %v6224_v49 = vsel %vm6216_vm2, %v6147_v25, -inf  ;;  %v6148_v20 = vcombine.high %v6146_v0, %v6146_v0  ;;  %v6231_v19 = vsel %vm6216_vm2, %v6146_v0, -inf }
 0x678   : > { %v6225_v43 = vrot.slane %v6224_v49, 4  ;;  %v6232_v31 = vrot.slane %v6231_v19, 4  ;;  %v6219_v8 = vmax.f32 %v6217_v52, %v6218_v55 }
 0x679   : > { %v6238_v47 = vsel %vm6216_vm2, %v6148_v20, -inf }
 0x67a   : > { %v6226_v21 = vmax.f32 %v6224_v49, %v6225_v43  ;;  %v6239_v62 = vrot.slane %v6238_v47, 4  ;;  %v6233_v33 = vmax.f32 %v6231_v19, %v6232_v31  ;;  %v6220_v10 = vrot.slane %v6219_v8, 2 }
 0x67c   : > { %v6227_v46 = vrot.slane %v6226_v21, 2  ;;  %v6240_v16 = vmax.f32 %v6238_v47, %v6239_v62  ;;  %v6234_v23 = vrot.slane %v6233_v33, 2  ;;  %v6221_v28 = vmax.f32 %v6219_v8, %v6220_v10 }
 0x67e   : > { %v6228_v3 = vmax.f32 %v6226_v21, %v6227_v46  ;;  %v6241_v32 = vrot.slane %v6240_v16, 2  ;;  %v6235_v5 = vmax.f32 %v6233_v33, %v6234_v23  ;;  %v6222_v6 = vrot.slane %v6221_v28, 1 }
 0x680   : > { %v6229_v9 = vrot.slane %v6228_v3, 1  ;;  %v6242_v60 = vmax.f32 %v6240_v16, %v6241_v32  ;;  %v6236_v45 = vrot.slane %v6235_v5, 1  ;;  %v6223_v41 = vmax.f32 %v6221_v28, %v6222_v6 }
 0x682   : > { %v6230_v17 = vmax.f32 %v6228_v3, %v6229_v9  ;;  %v6243_v7 = vrot.slane %v6242_v60, 1  ;;  %v6237_v30 = vmax.f32 %v6235_v5, %v6236_v45 }
 0x684   : > { %v6244_v58 = vmax.f32 %v6242_v60, %v6243_v7 }
 0x6a3   : > { %v7983_v37 = vpop.f32.mrb[36].mxu1 }
 0x6a4   : > { %v7984_v15 = vpop.f32.mrb[37].mxu1 }
 0x6a5   : > { %v7985_v22 = vadd.f32 %v7984_v15, %v7983_v37  ;;  %v7986_v51 = vpop.f32.mrb[38].mxu1 }
 0x6a6   : > { %v7987_v38 = vpop.f32.mrb[39].mxu1 }
 0x6a7   : > { %v6021_v61 = vadd.f32 %v7985_v22, %v13289_v40  ;;  %v7988_v27 = vadd.f32 %v7987_v38, %v7986_v51 }
 0x6a9   : > { %v6086_v34 = vadd.f32 %v13274_v1, %v6021_v61  ;;  %v6024_v48 = vadd.f32 %v7988_v27, %v13289_v40  ;;  %v6455_v1 = vsel %vm4980_vm11, %v6230_v17, %v6223_v41 }
 0x6aa   : > { %v6456_v57 = vsel %vm4982_vm12, %v6237_v30, %v6455_v1 }
 0x6ab   : > { %v6110_v24 = vmax.f32 %v6086_v34, 0.0  ;;  %v6089_v50 = vadd.f32 %v13276_v12, %v6024_v48  ;;  %v6457_v43 = vsel %vm4984_vm13, %v6244_v58, %v6456_v57 }
 0x6ac   : > { %v6467_v46 = vrot.slane %v6457_v43, 7 }
 0x6ad   : > { %v6111_v11 = vmax.f32 %v6089_v50, 0.0  ;;  %v6119_v53 = vsel %vm3551_vm4, %v6110_v24, -inf }
 0x6ae   : > { %v6475_v3 = vsel %vm681_vm0, 0.0, %v6467_v46 }
 0x6af   : > { %v6120_v44 = vsel %vm3551_vm4, %v6111_v11, -inf  ;;  %v13352_v34 = vsel %vm14034_vm3, %v6475_v3, 0.0  ;;  %vm13371_vm3 = vmor %vm6511_vm7, %vm6512_vm9  ;;  %vm7314_vm7 = vcmask 517120  }
 0x6b0   : > { %v6121_v36 = vmax.f32 %v6119_v53, %v6120_v44  ;;  %v6489_v50 = vcombine.high %v13352_v34, %v13352_v34  ;;  %v7819_v41 = vrot.slane %v13352_v34, 9 }
 0x6b2   : > { %v6149_v29 = vcombine.high %v6121_v36, %v6121_v36  ;;  %v6156_v42 = vrot.slane %v6121_v36, %v12459_v26  ;;  %v6501_v17 = vrot.slane %v6489_v50, 5  ;;  %v6520_v53 = vrot.slane %v6489_v50, 6 }
 0x6b3   : > { %v7823_v36 = vrot.slane %v13352_v34, 10 }
 0x6b4   : > { %v6163_v12 = vrot.slane %v6149_v29, %v12459_v26  ;;  %v6164_v59 = vcombine.high %v6156_v42, %v6156_v42  ;;  %v6245_v4 = vsel %vm6216_vm2, %v6156_v42, -inf  ;;  %v13380_v58 = vsel %vm13364_vm10, %v7819_v41, %v6501_v17 }
 0x6b5   : > { %v6246_v25 = vrot.slane %v6245_v4, 4 }
 0x6b6   : > { %v6165_v54 = vcombine.high %v6163_v12, %v6163_v12  ;;  %v6252_v14 = vsel %vm6216_vm2, %v6164_v59, -inf  ;;  %v6259_v0 = vsel %vm6216_vm2, %v6163_v12, -inf  ;;  %v13388_v59 = vsel %vm13371_vm3, %v7823_v36, %v6520_v53 }
 0x6b7   : > { %v6247_v49 = vmax.f32 %v6245_v4, %v6246_v25  ;;  %v6253_v18 = vrot.slane %v6252_v14, 4  ;;  %v6260_v20 = vrot.slane %v6259_v0, 4  ;;  %v13418_v53 = vsel %vm14040_vm14, %v14016_v63, 0.0 }
 0x6b8   : > { %v6266_v52 = vsel %vm6216_vm2, %v6165_v54, -inf  ;;  %v6488_v63 = vcombine.high %v13418_v53, %v13418_v53 }
 0x6b9   : > { %v6248_v19 = vrot.slane %v6247_v49, 2  ;;  %v6254_v55 = vmax.f32 %v6252_v14, %v6253_v18  ;;  %v6261_v31 = vmax.f32 %v6259_v0, %v6260_v20  ;;  %v6267_v47 = vrot.slane %v6266_v52, 4 }
 0x6bb   : > { %v6249_v21 = vmax.f32 %v6247_v49, %v6248_v19  ;;  %v6255_v8 = vrot.slane %v6254_v55, 2  ;;  %v6262_v62 = vrot.slane %v6261_v31, 2  ;;  %v6268_v33 = vmax.f32 %v6266_v52, %v6267_v47 }
 0x6bd   : > { %v6250_v37 = vrot.slane %v6249_v21, 1  ;;  %v6256_v10 = vmax.f32 %v6254_v55, %v6255_v8  ;;  %v6263_v16 = vmax.f32 %v6261_v31, %v6262_v62  ;;  %v6269_v15 = vrot.slane %v6268_v33, 2 }
 0x6bf   : > { %v6257_v23 = vrot.slane %v6256_v10, 1  ;;  %v6264_v22 = vrot.slane %v6263_v16, 1  ;;  %v6270_v51 = vmax.f32 %v6268_v33, %v6269_v15  ;;  %v6251_v38 = vmax.f32 %v6249_v21, %v6250_v37 }
 0x6c1   : > { %v6258_v61 = vmax.f32 %v6256_v10, %v6257_v23  ;;  %v6265_v27 = vmax.f32 %v6263_v16, %v6264_v22  ;;  %v6271_v28 = vrot.slane %v6270_v51, 1 }
 0x6c3   : > { %v6272_v32 = vmax.f32 %v6270_v51, %v6271_v28  ;;  %v6458_v5 = vsel %vm4980_vm11, %v6258_v61, %v6251_v38 }
 0x6c4   : > { %v6459_v48 = vsel %vm4982_vm12, %v6265_v27, %v6458_v5 }
 0x6c5   : > { %v6460_v9 = vsel %vm4984_vm13, %v6272_v32, %v6459_v48 }
 0x6c6   : > { %v6468_v24 = vrot.slane %v6460_v9, 7 }
 0x6c8   : > { %v6476_v6 = vsel %vm681_vm0, 0.0, %v6468_v24 }
 0x6c9   : > { %v13360_v60 = vsel %vm14035_vm15, %v6476_v6, 0.0 }
 0x6ca   : > { %v6490_v45 = vcombine.high %v13360_v60, %v13360_v60  ;;  %v6560_v44 = vcombine.low %v13352_v34, %v13360_v60  ;;  %v7820_v30 = vrot.slane %v13360_v60, 9  ;;  %v7824_v29 = vrot.slane %v13360_v60, 10 }
 0x6cc   : > { %v6505_v1 = vrot.slane %v6490_v45, 5  ;;  %v6524_v42 = vrot.slane %v6490_v45, 6 }
 0x6ce   : > { %v13384_v12 = vsel %vm13364_vm10, %v7820_v30, %v6505_v1  ;;  %v13392_v4 = vsel %vm13371_vm3, %v7824_v29, %v6524_v42 }
 0x6cf   : > { %v7989_v57 = vpop.f32.mrb[40].mxu1  ;;  %v6572_v25 = vcombine.low %v13388_v59, %v13392_v4  ;;  %v6568_v54 = vcombine.low %v13380_v58, %v13384_v12 }
 0x6d0   : > { %v7990_v14 = vpop.f32.mrb[41].mxu1 }
 0x6d1   : > { %v7991_v0 = vadd.f32 %v7990_v14, %v7989_v57  ;;  %v7992_v49 = vpop.f32.mrb[42].mxu1 }
 0x6d2   : > { %v7993_v18 = vpop.f32.mrb[43].mxu1 }
 0x6d3   : > { %v6029_v20 = vadd.f32 %v7991_v0, %v13289_v40  ;;  %v7994_v52 = vadd.f32 %v7993_v18, %v7992_v49 }
 0x6d5   : > { %v6094_v43 = vadd.f32 %v13280_v35, %v6029_v20  ;;  %v6032_v19 = vadd.f32 %v7994_v52, %v13289_v40 }
 0x6d7   : > { %v6112_v55 = vmax.f32 %v6094_v43, 0.0  ;;  %v6097_v31 = vadd.f32 %v13284_v56, %v6032_v19  ;;  %v7995_v47 = vpop.f32.mrb[44].mxu1 }
 0x6d8   : > { %v7996_v21 = vpop.f32.mrb[45].mxu1 }
 0x6d9   : > { %v6113_v8 = vmax.f32 %v6097_v31, 0.0  ;;  %v7997_v62 = vadd.f32 %v7996_v21, %v7995_v47  ;;  %v7998_v33 = vpop.f32.mrb[46].mxu1  ;;  %v6122_v37 = vsel %vm3551_vm4, %v6112_v55, -inf }
 0x6da   : > { %v7999_v46 = vpop.f32.mrb[47].mxu1 }
 0x6db   : > { %v6123_v10 = vsel %vm3551_vm4, %v6113_v8, -inf  ;;  %v6037_v16 = vadd.f32 %v7997_v62, %v13289_v40  ;;  %v8000_v15 = vadd.f32 %v7999_v46, %v7998_v33 }
 0x6dc   : > { %v6124_v23 = vmax.f32 %v6122_v37, %v6123_v10 }
 0x6dd   : > { %v6102_v35 = vadd.f32 %v13278_v39, %v6037_v16  ;;  %v6040_v22 = vadd.f32 %v8000_v15, %v13289_v40 }
 0x6de   : > { %v6166_v51 = vcombine.high %v6124_v23, %v6124_v23  ;;  %v6173_v56 = vrot.slane %v6124_v23, %v12459_v26 }
 0x6df   : > { %v6114_v3 = vmax.f32 %v6102_v35, 0.0  ;;  %v6105_v38 = vadd.f32 %v13282_v13, %v6040_v22 }
 0x6e0   : > { %v6180_v61 = vrot.slane %v6166_v51, %v12459_v26  ;;  %v6181_v27 = vcombine.high %v6173_v56, %v6173_v56  ;;  %v6273_v28 = vsel %vm6216_vm2, %v6173_v56, -inf }
 0x6e1   : > { %v6274_v32 = vrot.slane %v6273_v28, 4  ;;  %v6115_v5 = vmax.f32 %v6105_v38, 0.0  ;;  %v6125_v40 = vsel %vm3551_vm4, %v6114_v3, -inf }
 0x6e2   : > { %v6182_v48 = vcombine.high %v6180_v61, %v6180_v61  ;;  %v6280_v9 = vsel %vm6216_vm2, %v6181_v27, -inf  ;;  %v6287_v39 = vsel %vm6216_vm2, %v6180_v61, -inf }
 0x6e3   : > { %v6275_v24 = vmax.f32 %v6273_v28, %v6274_v32  ;;  %v6281_v50 = vrot.slane %v6280_v9, 4  ;;  %v6288_v6 = vrot.slane %v6287_v39, 4  ;;  %v6126_v45 = vsel %vm3551_vm4, %v6115_v5, -inf }
 0x6e4   : > { %v6294_v13 = vsel %vm6216_vm2, %v6182_v48, -inf  ;;  %v6127_v17 = vmax.f32 %v6125_v40, %v6126_v45  ;;  %v6497_v45 = vrot.slane %v6488_v63, 5 }
 0x6e5   : > { %v6276_v41 = vrot.slane %v6275_v24, 2  ;;  %v6282_v36 = vmax.f32 %v6280_v9, %v6281_v50  ;;  %v6289_v30 = vmax.f32 %v6287_v39, %v6288_v6  ;;  %v6295_v1 = vrot.slane %v6294_v13, 4 }
 0x6e6   : > { %v6183_v29 = vcombine.high %v6127_v17, %v6127_v17  ;;  %v6190_v42 = vrot.slane %v6127_v17, %v12459_v26  ;;  %v7818_v6 = vrot.slane %v13418_v53, 9 }
 0x6e7   : > { %v6277_v57 = vmax.f32 %v6275_v24, %v6276_v41  ;;  %v6283_v14 = vrot.slane %v6282_v36, 2  ;;  %v6290_v0 = vrot.slane %v6289_v30, 2  ;;  %v6296_v49 = vmax.f32 %v6294_v13, %v6295_v1 }
 0x6e8   : > { %v6197_v18 = vrot.slane %v6183_v29, %v12459_v26  ;;  %v6198_v20 = vcombine.high %v6190_v42, %v6190_v42  ;;  %v6301_v52 = vsel %vm6216_vm2, %v6190_v42, -inf  ;;  %v7822_v1 = vrot.slane %v13418_v53, 10 }
 0x6e9   : > { %v6278_v43 = vrot.slane %v6277_v57, 1  ;;  %v6284_v19 = vmax.f32 %v6282_v36, %v6283_v14  ;;  %v6291_v55 = vmax.f32 %v6289_v30, %v6290_v0  ;;  %v6297_v31 = vrot.slane %v6296_v49, 2  ;;  %v9938_v0 = vld [vmem:[%s13874_s9 + $0x60] sm:$0xff]  }
 0x6ea   : > { %v6199_v47 = vcombine.high %v6197_v18, %v6197_v18  ;;  %v6302_v21 = vrot.slane %v6301_v52, 4  ;;  %v6308_v8 = vsel %vm6216_vm2, %v6198_v20, -inf  ;;  %v6315_v62 = vsel %vm6216_vm2, %v6197_v18, -inf  ;;  %8015 = vmatprep.subr.bf16.mxu1 %v9938_v0 }
 0x6eb   : > { %v6279_v33 = vmax.f32 %v6277_v57, %v6278_v43  ;;  %v6285_v46 = vrot.slane %v6284_v19, 1  ;;  %v6292_v37 = vrot.slane %v6291_v55, 1  ;;  %v6298_v10 = vmax.f32 %v6296_v49, %v6297_v31  ;;  %v9939_v49 = vld [vmem:[%s13874_s9 + $0x20] sm:$0xff]  }
 0x6ec   : > { %v6303_v16 = vmax.f32 %v6301_v52, %v6302_v21  ;;  %v6309_v15 = vrot.slane %v6308_v8, 4  ;;  %v6316_v23 = vrot.slane %v6315_v62, 4  ;;  %v6322_v35 = vsel %vm6216_vm2, %v6199_v47, -inf  ;;  %vm14041_vm2 = vmmov %vm14040_vm14  ;;  %8016 = vmatpush3.bf16.msra.mxu1 %v9939_v49 }
 0x6ed   : > { %v6286_v22 = vmax.f32 %v6284_v19, %v6285_v46  ;;  %v6293_v51 = vmax.f32 %v6291_v55, %v6292_v37  ;;  %v6299_v56 = vrot.slane %v6298_v10, 1  ;;  %v6323_v3 = vrot.slane %v6322_v35, 4  ;;  %vm14046_vm5 = vmmov %vm14041_vm2 }
 0x6ee   : > { %v6304_v38 = vrot.slane %v6303_v16, 2  ;;  %v6310_v61 = vmax.f32 %v6308_v8, %v6309_v15  ;;  %v6317_v27 = vmax.f32 %v6315_v62, %v6316_v23  ;;  %v6516_v29 = vrot.slane %v6488_v63, 6 }
 0x6ef   : > { %v6300_v28 = vmax.f32 %v6298_v10, %v6299_v56  ;;  %v6461_v32 = vsel %vm4980_vm11, %v6286_v22, %v6279_v33  ;;  %v6324_v5 = vmax.f32 %v6322_v35, %v6323_v3  ;;  %v13443_v52 = vsel %vm13364_vm10, %v7818_v6, %v6497_v45  ;;  %v9940_v10 = vld [vmem:[%s13874_s9 + $0x68] sm:$0xff]  }
 0x6f0   : > { %v6462_v48 = vsel %vm4982_vm12, %v6293_v51, %v6461_v32  ;;  %v6305_v9 = vmax.f32 %v6303_v16, %v6304_v38  ;;  %v6311_v39 = vrot.slane %v6310_v61, 2  ;;  %v6318_v40 = vrot.slane %v6317_v27, 2  ;;  %v9941_v16 = vld [vmem:[%s13874_s9 + $0x28] sm:$0xff]   ;;  %8017 = vmatprep.subr.bf16.mxu1 %v9940_v10 }
 0x6f1   : > { %v6325_v24 = vrot.slane %v6324_v5, 2  ;;  %v6463_v50 = vsel %vm4984_vm13, %v6300_v28, %v6462_v48  ;;  %v13450_v8 = vsel %vm13371_vm3, %v7822_v1, %v6516_v29  ;;  %v6544_v35 = vcombine.low %v13443_v52, %v13380_v58  ;;  %8018 = vmatpush3.bf16.msra.mxu1 %v9941_v16  ;;  %v9943_v48 = vld [vmem:[%s13874_s9 + $0x30] sm:$0xff]  }
 0x6f2   : > { %v6306_v13 = vrot.slane %v6305_v9, 1  ;;  %v6312_v17 = vmax.f32 %v6310_v61, %v6311_v39  ;;  %v6319_v41 = vmax.f32 %v6317_v27, %v6318_v40  ;;  %v6469_v36 = vrot.slane %v6463_v50, 7  ;;  %v9944_v50 = vld [vmem:[%s13874_s9 + $0x78] sm:$0xff]  }
 0x6f3   : > { %v6326_v30 = vmax.f32 %v6324_v5, %v6325_v24  ;;  %v6552_v38 = vcombine.low %v13450_v8, %v13388_v59  ;;  %v9942_v5 = vld [vmem:[%s13874_s9 + $0x70] sm:$0xff]  }
 0x6f4   : > { %v6313_v42 = vrot.slane %v6312_v17, 1  ;;  %v6320_v57 = vrot.slane %v6319_v41, 1  ;;  %v6477_v14 = vsel %vm681_vm0, 0.0, %v6469_v36  ;;  %v6307_v63 = vmax.f32 %v6305_v9, %v6306_v13  ;;  %8019 = vmatprep.subr.bf16.mxu1 %v9942_v5  ;;  %v9945_v13 = vld [vmem:[%s13874_s9 + $0x38] sm:$0xff]  }
 0x6f5   : > { %v6327_v18 = vrot.slane %v6326_v30, 1  ;;  %v6482_v20 = vsel %vm14041_vm2, %v6477_v14, 0.0  ;;  %8020 = vmatpush3.bf16.msra.mxu1 %v9943_v48 }
 0x6f6   : > { %v6314_v43 = vmax.f32 %v6312_v17, %v6313_v42  ;;  %v6321_v19 = vmax.f32 %v6319_v41, %v6320_v57  ;;  %v6491_v55 = vcombine.high %v6482_v20, %v6482_v20  ;;  %v7821_v47 = vrot.slane %v6482_v20, 9  ;;  %8021 = vmatprep.subr.bf16.mxu1 %v9944_v50  ;;  %v9949_v50 = vld [vmem:[%s13876_s11 + $0xc0] sm:$0xff]  }
 0x6f7   : > { %v6328_v31 = vmax.f32 %v6326_v30, %v6327_v18  ;;  %v13446_v21 = vcombine.low %v13360_v60, %v6482_v20  ;;  %v7825_v46 = vrot.slane %v6482_v20, 10  ;;  %8054 = vmatprep.subr.bf16.mxu0 %v9949_v50  ;;  %v9975_v50 = vld [vmem:[%s13876_s11 + $0xb0] sm:$0xff]  }
 0x6f8   : > { %v6464_v62 = vsel %vm4980_vm11, %v6314_v43, %v6307_v63  ;;  %v6509_v33 = vrot.slane %v6491_v55, 5  ;;  %v6528_v37 = vrot.slane %v6491_v55, 6  ;;  %vm14042_vm11 = vmmov %vm14041_vm2 }
 0x6f9   : > { %v6465_v15 = vsel %vm4982_vm12, %v6321_v19, %v6464_v62  ;;  %8022 = vmatpush3.bf16.msra.mxu1 %v9945_v13  ;;  %v9950_v13 = vld [vmem:[%s13876_s11 + $0x8] sm:$0xff]   ;;  %vm14044_vm12 = vmmov %vm14041_vm2 }
 0x6fa   : > { %v13462_v23 = vsel %vm13364_vm10, %v7821_v47, %v6509_v33  ;;  %v6466_v22 = vsel %vm4984_vm13, %v6328_v31, %v6465_v15  ;;  %v6529_v51 = vsel %vm13371_vm3, %v7825_v46, %v6528_v37  ;;  %vm14045_vm13 = vmmov %vm14041_vm2 }
 0x6fb   : > { %v6545_v56 = vcombine.low %v13384_v12, %v13462_v23  ;;  %v6470_v3 = vrot.slane %v6466_v22, 7  ;;  %v6553_v61 = vcombine.low %v13392_v4, %v6529_v51 }
 0x6fd   : > { %v9844_v27 = vpack.i.bf16 %v6545_v56, %v6544_v35  ;;  %v6478_v28 = vsel %vm681_vm0, 0.0, %v6470_v3  ;;  %v9849_v32 = vpack.i.bf16 %v6553_v61, %v6552_v38 }
 0x6fe   : > { %v6483_v9 = vsel %vm14042_vm11, %v6478_v28, 0.0 }
 0x6ff   : > { %9845 = vrot.lane.b32.xlu1 %v9844_v27, %s13982_s22  ;;  %v6580_v39 = vcombine.low %v6483_v9, %v13418_v53  ;;  %v6531_v40 = vcombine.high %v6483_v9, %v6483_v9  ;;  %v6561_v24 = vcombine.low %v6482_v20, %v6483_v9  ;;  %v7827_v6 = vrot.slane %v6483_v9, 10 }
 0x700   : > { %v7826_v45 = vrot.slane %v6483_v9, 9 }
 0x701   : > { %v9854_v17 = vpack.i.bf16 %v6580_v39, %v13446_v21  ;;  %v6538_v41 = vrot.slane %v6531_v40, 6  ;;  %v9869_v36 = vpack.i.bf16 %v6561_v24, %v6560_v44  ;;  %v6534_v30 = vrot.slane %v6531_v40, 5  ;;  %v9946_v39 = vld [vmem:[%s13876_s11 + $0x40] sm:$0xff]   ;;  %v9948_v24 = vld [vmem:[%s13876_s11 + $0x48] sm:$0xff]  }
 0x702   : > { %v9947_v40 = vld [vmem:[%s13876_s11] sm:$0xff]   ;;  %8032 = vmatprep.subr.bf16.mxu1 %v9946_v39 }
 0x703   : > { %9855 = vrot.lane.b32.xlu0 %v9854_v17, %s13983_s20  ;;  %v6539_v1 = vsel %vm13371_vm3, %v7827_v6, %v6538_v41  ;;  %9850 = vrot.lane.b32.xlu1 %v9849_v32, %s13983_s20  ;;  %v6535_v29 = vsel %vm13364_vm10, %v7826_v45, %v6534_v30  ;;  %v9951_v6 = vld [vmem:[%s13876_s11 + $0x80] sm:$0xff]   ;;  %v9953_v45 = vld [vmem:[%s13876_s11 + $0xc8] sm:$0xff]  }
 0x704   : > { %v6594_v42 = vcombine.low %v6539_v1, %v13450_v8  ;;  %v6573_v57 = vcombine.low %v6529_v51, %v6539_v1  ;;  %v6587_v14 = vcombine.low %v6535_v29, %v13443_v52  ;;  %v6569_v60 = vcombine.low %v13462_v23, %v6535_v29  ;;  %v9952_v17 = vld [vmem:[%s13876_s11 + $0x50] sm:$0xff]   ;;  %v9955_v41 = vld [vmem:[%s13876_s11 + $0x88] sm:$0xff]   ;;  %v9956_v1 = vld [vmem:[%s13876_s11 + $0x58] sm:$0xff]  }
 0x705   : > { %v9954_v30 = vld [vmem:[%s13876_s11 + $0x10] sm:$0xff]  }
 0x706   : > { %v6611_v44 = vpack.c.bf16 %v6594_v42, %v6553_v61  ;;  %v9859_v0 = vpack.i.bf16 %v6573_v57, %v6572_v25  ;;  %v9864_v49 = vpack.i.bf16 %v6587_v14, %v6545_v56  ;;  %v6540_v25 = vcombine.low %v13418_v53, %v13352_v34  ;;  %v9959_v29 = vld [vmem:[%s13876_s11 + $0x90] sm:$0xff]   ;;  %v9961_v42 = vld [vmem:[%s13876_s11 + $0xd8] sm:$0xff]   ;;  %v9960_v14 = vld [vmem:[%s13876_s11 + $0x60] sm:$0xff]  }
 0x707   : > { %9870 = vrot.lane.b32.xlu1 %v9869_v36, %s14033_s2  ;;  %v9957_v36 = vld [vmem:[%s13876_s11 + $0xd0] sm:$0xff]   ;;  %v9958_v57 = vld [vmem:[%s13876_s11 + $0x18] sm:$0xff]  }
 0x708   : > { %8206 = vmatmul.mubr.msk.bf16.vlgmr.msra.gmra.mrb[56].mxu0 %vm3551_vm4, %v6611_v44  ;;  %9860 = vrot.lane.b32.xlu0 %v9859_v0, %s13982_s22  ;;  %v9965_v44 = vld [vmem:[%s13876_s11 + $0xe0] sm:$0xff]   ;;  %s10093_s22 = smov [#allocation2]  }
 0x709   : > { %8055 = vmatpush3.bf16.msra.mxu0 %v9951_v6  ;;  %v9962_v0 = vld [vmem:[%s13876_s11 + $0x20] sm:$0xff]  }
 0x70a   : > { %8056 = vmatprep.subr.bf16.mxu0 %v9953_v45 }
 0x70c   : > { %9865 = vrot.lane.b32.xlu0 %v9864_v49, %s14033_s2  ;;  %v9964_v49 = vld [vmem:[%s13876_s11 + $0x68] sm:$0xff]   ;;  %s10010_s2 = sshll.u32 %s10093_s22, 4  ;;  %s10011_s2 = int_to_ptr.vmem [resolvable:$false] %s10010_s2 }
 0x70d   : > { %8057 = vmatpush3.bf16.msra.mxu0 %v9955_v41  ;;  %s10012_s5 = scalar_lea.vmem %s10011_s2, 32 }
 0x70e   : > { %8058 = vmatprep.subr.bf16.mxu0 %v9957_v36 }
 0x711   : > { %8059 = vmatpush3.bf16.msra.mxu0 %v9959_v29 }
 0x712   : > { %8060 = vmatprep.subr.bf16.mxu0 %v9961_v42 }
 0x771   : > { %v9846_v18 = vpop.permute.xlu1 %9845 }
 0x772   : > { %v9848_v19 = vunpack.i.h.bf16 %v9846_v18  ;;  %v9847_v55 = vunpack.i.l.bf16 %v9846_v18  ;;  %v9967_v18 = vld [vmem:[%s13876_s11 + $0xa0] sm:$0xff]  }
 0x774   : > { %v6598_v16 = vsel %vm3551_vm4, %v13446_v21, %v9848_v19  ;;  %v6597_v15 = vsel %vm3551_vm4, %v6540_v25, %v9847_v55  ;;  %v7828_v55 = vld [vmem:[%s13875_s10] ss:$0 sm:$0xff] }
 0x775   : > { %v9856_v20 = vpop.permute.xlu0 %9855  ;;  %v9851_v63 = vpop.permute.xlu1 %9850 }
 0x776   : > { %v9853_v47 = vunpack.i.h.bf16 %v9851_v63  ;;  %v9852_v62 = vunpack.i.l.bf16 %v9851_v63  ;;  %v9858_v23 = vunpack.i.h.bf16 %v9856_v20  ;;  %v9857_v35 = vunpack.i.l.bf16 %v9856_v20  ;;  %v9969_v20 = vld [vmem:[%s13876_s11 + $0xe8] sm:$0xff]  }
 0x777   : > { %v9966_v63 = vld [vmem:[%s13876_s11 + $0x28] sm:$0xff]  }
 0x778   : > { %v6599_v51 = vsel %vm3683_vm8, %v6597_v15, %v9852_v62  ;;  %v6600_v34 = vsel %vm3683_vm8, %v6598_v16, %v9853_v47  ;;  %v9970_v16 = vld [vmem:[%s13876_s11 + $0x30] sm:$0xff]   ;;  %v9971_v15 = vld [vmem:[%s13876_s11 + $0xa8] sm:$0xff]  }
 0x779   : > { %v9871_v43 = vpop.permute.xlu1 %9870 }
 0x77a   : > { %v9861_v31 = vpop.permute.xlu0 %9860  ;;  %v9873_v33 = vunpack.i.h.bf16 %v9871_v43  ;;  %v9872_v46 = vunpack.i.l.bf16 %v9871_v43  ;;  %v9968_v43 = vld [vmem:[%s13876_s11 + $0x70] sm:$0xff]  }
 0x77b   : > { %v9863_v59 = vunpack.i.h.bf16 %v9861_v31  ;;  %v9862_v4 = vunpack.i.l.bf16 %v9861_v31 }
 0x77c   : > { %v6601_v38 = vsel %vm5358_vm6, %v6599_v51, %v9872_v46  ;;  %v6602_v58 = vsel %vm5358_vm6, %v6600_v34, %v9873_v33 }
 0x77d   : > { %v6604_v37 = vsel %vm3551_vm4, %v6569_v60, %v9863_v59  ;;  %v6603_v10 = vsel %vm3551_vm4, %v6568_v54, %v9862_v4  ;;  %v6609_v28 = vpack.c.bf16 %v6602_v58, %v6601_v38  ;;  %v9963_v60 = vld [vmem:[%s13876_s11 + $0x98] sm:$0xff]  }
 0x77e   : > { %v9866_v22 = vpop.permute.xlu0 %9865  ;;  %v6605_v12 = vsel %vm3683_vm8, %v6603_v10, %v9857_v35  ;;  %v6606_v54 = vsel %vm3683_vm8, %v6604_v37, %v9858_v23  ;;  %8061 = vmatpush3.bf16.msra.mxu0 %v9963_v60  ;;  %v9976_v60 = vld [vmem:[%s13876_s11 + $0xf8] sm:$0xff]  }
 0x77f   : > { %v9868_v56 = vunpack.i.h.bf16 %v9866_v22  ;;  %v9867_v3 = vunpack.i.l.bf16 %v9866_v22  ;;  %8062 = vmatprep.subr.bf16.mxu0 %v9965_v44  ;;  %v9977_v44 = vld [vmem:[%s13876_s11 + $0xb8] sm:$0xff]  }
 0x781   : > { %v6607_v21 = vsel %vm5358_vm6, %v6605_v12, %v9867_v3  ;;  %v6608_v61 = vsel %vm5358_vm6, %v6606_v54, %v9868_v56  ;;  %vm14043_vm6 = vmmov %vm14041_vm2 }
 0x782   : > { %v6610_v27 = vpack.c.bf16 %v6608_v61, %v6607_v21  ;;  %8063 = vmatpush3.bf16.msra.mxu0 %v9967_v18 }
 0x783   : > { %8064 = vmatprep.subr.bf16.mxu0 %v9969_v20 }
 0x784   : > { %6761 = vmatprep.mubr.bf16.mxu1 %v6610_v27 }
 0x785   : > { %6762 = vmatmul.mubr.bf16.vlgmr.msra.gmra.mrb[48].mxu1 %v6609_v28 }
 0x786   : > { %8033 = vmatpush3.bf16.msra.mxu1 %v9947_v40  ;;  %8065 = vmatpush3.bf16.msra.mxu0 %v9971_v15 }
 0x787   : > { %8034 = vmatprep.subr.bf16.mxu1 %v9948_v24  ;;  %v9974_v24 = vld [vmem:[%s13876_s11 + $0x38] sm:$0xff]  }
 0x78a   : > { %8035 = vmatpush3.bf16.msra.mxu1 %v9950_v13 }
 0x78b   : > { %8036 = vmatprep.subr.bf16.mxu1 %v9952_v17 }
 0x78e   : > { %8037 = vmatpush3.bf16.msra.mxu1 %v9954_v30 }
 0x78f   : > { %8038 = vmatprep.subr.bf16.mxu1 %v9956_v1 }
 0x792   : > { %8039 = vmatpush3.bf16.msra.mxu1 %v9958_v57 }
 0x793   : > { %8040 = vmatprep.subr.bf16.mxu1 %v9960_v14 }
 0x796   : > { %8041 = vmatpush3.bf16.msra.mxu1 %v9962_v0 }
 0x797   : > { %8042 = vmatprep.subr.bf16.mxu1 %v9964_v49 }
 0x79a   : > { %8043 = vmatpush3.bf16.msra.mxu1 %v9966_v63 }
 0x79b   : > { %8044 = vmatprep.subr.bf16.mxu1 %v9968_v43 }
 0x79e   : > { %8045 = vmatpush3.bf16.msra.mxu1 %v9970_v16 }
 0x7db   : > { %v6804_v32 = vpop.f32.mrb[56].mxu0 }
 0x7dc   : > { %v8207_v5 = vpop.f32.mrb[57].mxu0 }
 0x7dd   : > { %v6807_v48 = vpop.f32.mrb[58].mxu0  ;;  %v9973_v5 = vld [vmem:[%s13876_s11 + $0xf0] sm:$0xff]  }
 0x7de   : > { %v8208_v9 = vpop.f32.mrb[59].mxu0  ;;  %8066 = vmatprep.subr.bf16.mxu0 %v9973_v5 }
 0x7df   : > { %8067 = vmatpush3.bf16.msra.mxu0 %v9975_v50 }
 0x7e0   : > { %8068 = vmatprep.subr.bf16.mxu0 %v9976_v60  ;;  %v9986_v60 = vld [vmem:[%s13878_s13 + $0x50] sm:$0xff]  }
 0x7e3   : > { %8069 = vmatpush3.bf16.msra.mxu0 %v9977_v44  ;;  %v9987_v44 = vld [vmem:[%s13878_s13 + $0x10] sm:$0xff]  }
 0x858   : > { %v8023_v19 = vpop.f32.mrb[48].mxu1 }
 0x859   : > { %v8024_v31 = vpop.f32.mrb[49].mxu1 }
 0x85a   : > { %v8025_v47 = vadd.f32 %v8024_v31, %v8023_v19  ;;  %v8026_v62 = vpop.f32.mrb[50].mxu1 }
 0x85b   : > { %v8027_v59 = vpop.f32.mrb[51].mxu1 }
 0x85c   : > { %v6764_v4 = vadd.f32 %v8025_v47, %v7828_v55  ;;  %v8028_v25 = vadd.f32 %v8027_v59, %v8026_v62 }
 0x85e   : > { %v6805_v33 = vadd.f32 %v6804_v32, %v6764_v4  ;;  %v6767_v46 = vadd.f32 %v8028_v25, %v7828_v55  ;;  %v9972_v32 = vld [vmem:[%s13876_s11 + $0x78] sm:$0xff]  }
 0x85f   : > { %8046 = vmatprep.subr.bf16.mxu1 %v9972_v32 }
 0x860   : > { %v6811_v37 = vmax.f32 %v6805_v33, 0.0  ;;  %v6808_v10 = vadd.f32 %v6807_v48, %v6767_v46  ;;  %8047 = vmatpush3.bf16.msra.mxu1 %v9974_v24 }
 0x861   : > { %8209 = vmatprep.subr.bf16.mxu1 %v14032_v2 }
 0x862   : > { %v6815_v23 = vcombine.high %v6811_v37, %v6811_v37  ;;  %v6817_v35 = vrot.slane %v6811_v37, 7  ;;  %v6812_v22 = vmax.f32 %v6808_v10, 0.0 }
 0x864   : > { %v6818_v51 = vrot.slane %v6815_v23, 7  ;;  %v6825_v34 = vsel %vm681_vm0, 0.0, %v6817_v35  ;;  %v6816_v56 = vcombine.high %v6812_v22, %v6812_v22  ;;  %v6819_v3 = vrot.slane %v6812_v22, 7 }
 0x865   : > { %v13611_v38 = vsel %vm14043_vm6, %v6825_v34, 0.0 }
 0x866   : > { %v6826_v58 = vsel %vm681_vm0, 0.0, %v6818_v51  ;;  %v6836_v12 = vcombine.high %v13611_v38, %v13611_v38  ;;  %v6820_v54 = vrot.slane %v6816_v56, 7  ;;  %v6827_v21 = vsel %vm681_vm0, 0.0, %v6819_v3 }
 0x867   : > { %v13618_v61 = vsel %vm14044_vm12, %v6826_v58, 0.0  ;;  %v13621_v27 = vsel %vm14045_vm13, %v6827_v21, 0.0  ;;  %v7848_v28 = vrot.slane %v13611_v38, 9  ;;  %v7851_v43 = vrot.slane %v13611_v38, 10 }
 0x868   : > { %v6837_v48 = vcombine.high %v13618_v61, %v13618_v61  ;;  %v6828_v9 = vsel %vm681_vm0, 0.0, %v6820_v54  ;;  %v6838_v39 = vcombine.high %v13621_v27, %v13621_v27  ;;  %v6889_v40 = vcombine.low %v13611_v38, %v13618_v61 }
 0x869   : > { %v13644_v6 = vsel %vm14046_vm5, %v6828_v9, 0.0  ;;  %v6841_v45 = vrot.slane %v6836_v12, 5  ;;  %v7849_v13 = vrot.slane %v13618_v61, 9  ;;  %v7850_v17 = vrot.slane %v13621_v27, 9 }
 0x86a   : > { %v6864_v41 = vcombine.high %v13644_v6, %v13644_v6  ;;  %v6890_v36 = vcombine.low %v13621_v27, %v13644_v6  ;;  %v6845_v30 = vrot.slane %v6837_v48, 5  ;;  %v6849_v1 = vrot.slane %v6838_v39, 5 }
 0x86b   : > { %v13654_v29 = vsel %vm13364_vm10, %v7848_v28, %v6841_v45  ;;  %v6853_v42 = vrot.slane %v6836_v12, 6  ;;  %v7852_v57 = vrot.slane %v13618_v61, 10  ;;  %v6857_v14 = vrot.slane %v6837_v48, 6 }
 0x86c   : > { %v9874_v0 = vpack.i.bf16 %v6890_v36, %v6889_v40  ;;  %v6846_v49 = vsel %vm13364_vm10, %v7849_v13, %v6845_v30  ;;  %v6850_v18 = vsel %vm13364_vm10, %v7850_v17, %v6849_v1  ;;  %v6877_v20 = vcombine.low %v13443_v52, %v13654_v29  ;;  %v9979_v36 = vld [vmem:[%s13876_s11 + $0x108] sm:$0xff]  }
 0x86d   : > { %v6878_v63 = vcombine.low %v6846_v49, %v6850_v18  ;;  %v6858_v19 = vsel %vm13371_vm3, %v7852_v57, %v6857_v14  ;;  %v7854_v55 = vrot.slane %v13644_v6, 9  ;;  %v6867_v31 = vrot.slane %v6864_v41, 5  ;;  %v9984_v57 = vld [vmem:[%s13878_s13 + $0x48] sm:$0xff]  }
 0x86e   : > { %9875 = vrot.lane.b32.xlu0 %v9874_v0, %s13983_s20  ;;  %v7853_v47 = vrot.slane %v13621_v27, 10  ;;  %v6861_v62 = vrot.slane %v6838_v39, 6  ;;  %v6854_v4 = vsel %vm13371_vm3, %v7851_v43, %v6853_v42  ;;  %v7855_v25 = vrot.slane %v13644_v6, 10  ;;  %v9983_v42 = vld [vmem:[%s13878_s13] sm:$0xff]   ;;  %v9985_v14 = vld [vmem:[%s13878_s13 + $0x8] sm:$0xff]   ;;  %v9988_v0 = vld [vmem:[%s13878_s13 + $0x58] sm:$0xff]  }
 0x86f   : > { %v9879_v59 = vpack.i.bf16 %v6878_v63, %v6877_v20  ;;  %v6871_v33 = vrot.slane %v6864_v41, 6  ;;  %v6868_v46 = vsel %vm13364_vm10, %v7854_v55, %v6867_v31  ;;  %v6901_v37 = vcombine.low %v6854_v4, %v6858_v19  ;;  %v9991_v20 = vld [vmem:[%s13878_s13 + $0x20] sm:$0xff]   ;;  %v9992_v63 = vld [vmem:[%s13878_s13 + $0x68] sm:$0xff]   ;;  %v9995_v55 = vld [vmem:[%s13878_s13 + $0x30] sm:$0xff]  }
 0x870   : > { %v6862_v10 = vsel %vm13371_vm3, %v7853_v47, %v6861_v62  ;;  %v6874_v16 = vcombine.low %v13618_v61, %v13621_v27  ;;  %v6911_v15 = vcombine.low %v6868_v46, %v13443_v52  ;;  %v6897_v22 = vcombine.low %v13654_v29, %v6846_v49  ;;  %v9982_v29 = vld [vmem:[%s13878_s13 + $0x40] sm:$0xff]   ;;  %v9989_v49 = vld [vmem:[%s13878_s13 + $0x18] sm:$0xff]   ;;  %v9993_v43 = vld [vmem:[%s13878_s13 + $0x28] sm:$0xff]  }
 0x871   : > { %9880 = vrot.lane.b32.xlu1 %v9879_v59, %s13983_s20  ;;  %v6872_v23 = vsel %vm13371_vm3, %v7855_v25, %v6871_v33  ;;  %v6886_v35 = vcombine.low %v6858_v19, %v6862_v10  ;;  %v6898_v51 = vcombine.low %v6850_v18, %v6868_v46  ;;  %v6885_v52 = vcombine.low %v13450_v8, %v6854_v4  ;;  %v9990_v18 = vld [vmem:[%s13878_s13 + $0x60] sm:$0xff]   ;;  %v9994_v19 = vld [vmem:[%s13878_s13 + $0x70] sm:$0xff]  }
 0x872   : > { %v6915_v11 = vcombine.low %v6872_v23, %v13450_v8  ;;  %v9884_v34 = vpack.i.bf16 %v6901_v37, %v6911_v15  ;;  %v6902_v56 = vcombine.low %v6862_v10, %v6872_v23  ;;  %v6873_v27 = vcombine.low %v13418_v53, %v13611_v38  ;;  %v9978_v8 = vld [vmem:[%s13876_s11 + $0x100] sm:$0xff]   ;;  %8081 = vmatprep.subr.bf16.mxu0 %v9982_v29  ;;  %v9996_v29 = vld [vmem:[%s13878_s13 + $0x78] sm:$0xff]  }
 0x873   : > { %v6909_v38 = vcombine.low %v13644_v6, %v13418_v53  ;;  %v9980_v53 = vld [vmem:[%s13876_s11 + $0x110] sm:$0xff]   ;;  %v9981_v6 = vld [vmem:[%s13876_s11 + $0x118] sm:$0xff]   ;;  %v7856_v62 = vld [vmem:[%s13877_s12] ss:$0 sm:$0xff]  ;;  %vm7285_vm0 = vcmask 519168  }
 0x874   : > { %v6928_v3 = vpack.c.bf16 %v6915_v11, %v6886_v35  ;;  %9885 = vrot.lane.b32.xlu0 %v9884_v34, %s13983_s20 }
 0x875   : > { %6905 = vrot.lane.b32.xlu1 %v6902_v56, %s13983_s20 }
 0x8e0   : > { %v9876_v58 = vpop.permute.xlu0 %9875 }
 0x8e1   : > { %v9878_v12 = vunpack.i.h.bf16 %v9876_v58  ;;  %v9877_v54 = vunpack.i.l.bf16 %v9876_v58 }
 0x8e3   : > { %v9881_v7 = vpop.permute.xlu1 %9880  ;;  %v6919_v21 = vsel %vm3683_vm8, %v6885_v52, %v9877_v54  ;;  %v6920_v61 = vsel %vm3683_vm8, %v6886_v35, %v9878_v12 }
 0x8e4   : > { %v9883_v28 = vunpack.i.h.bf16 %v9881_v7  ;;  %v9882_v32 = vunpack.i.l.bf16 %v9881_v7  ;;  %v6925_v5 = vpack.c.bf16 %v6920_v61, %v6919_v21 }
 0x8e6   : > { %v6918_v48 = vsel %vm3683_vm8, %v6874_v16, %v9883_v28  ;;  %v6917_v9 = vsel %vm3683_vm8, %v6873_v27, %v9882_v32  ;;  %7186 = vmatprep.mubr.bf16.mxu1 %v6925_v5  ;;  %v9886_v40 = vpop.permute.xlu0 %9885 }
 0x8e7   : > { %v6924_v39 = vpack.c.bf16 %v6918_v48, %v6917_v9  ;;  %v6906_v24 = vpop.permute.xlu1 %6905  ;;  %v9888_v50 = vunpack.i.h.bf16 %v9886_v40  ;;  %v9887_v45 = vunpack.i.l.bf16 %v9886_v40 }
 0x8e8   : > { %v6922_v13 = vsel %vm3683_vm8, %v6898_v51, %v6906_v24 }
 0x8e9   : > { %7187 = vmatmul.mubr.bf16.vlgmr.msra.gmra.mrb[52].mxu1 %v6924_v39  ;;  %v6921_v17 = vsel %vm3683_vm8, %v6897_v22, %v9888_v50  ;;  %v6923_v41 = vsel %vm3683_vm8, %v6909_v38, %v9887_v45 }
 0x8ea   : > { %8210 = vmatpush3.bf16.msra.mxu1 %v9978_v8  ;;  %8217 = vmatprep.mubr.msk.bf16.mxu1 %vm10092_vm1, %v14032_v2  ;;  %v6926_v30 = vpack.c.bf16 %v6922_v13, %v6921_v17  ;;  %v6927_v1 = vpack.c.bf16 %v6923_v41, %v6918_v48 }
 0x8eb   : > { %8211 = vmatprep.subr.bf16.mxu1 %v14032_v2 }
 0x8ec   : > { %7227 = vmatprep.mubr.bf16.mxu0 %v6927_v1 }
 0x8ed   : > { %7228 = vmatmul.mubr.bf16.vlgmr.msra.gmra.mrb[60].mxu0 %v6926_v30 }
 0x8ee   : > { %8212 = vmatpush3.bf16.msra.mxu1 %v9979_v36  ;;  %8082 = vmatpush3.bf16.msra.mxu0 %v9983_v42  ;;  %v9997_v42 = vld [vmem:[%s13878_s13 + $0x38] sm:$0xff]  }
 0x8ef   : > { %8213 = vmatprep.subr.bf16.mxu1 %v14032_v2  ;;  %8083 = vmatprep.subr.bf16.mxu0 %v9984_v57 }
 0x8f2   : > { %8214 = vmatpush3.bf16.msra.mxu1 %v9980_v53  ;;  %8084 = vmatpush3.bf16.msra.mxu0 %v9985_v14  ;;  %v9998_v14 = vld [vmem:[%s13880_s15] sm:$0xff]  }
 0x8f3   : > { %8215 = vmatprep.subr.bf16.mxu1 %v14032_v2  ;;  %8085 = vmatprep.subr.bf16.mxu0 %v9986_v60 }
 0x8f6   : > { %8216 = vmatpush3.bf16.msra.mxu1 %v9981_v6  ;;  %8086 = vmatpush3.bf16.msra.mxu0 %v9987_v44  ;;  %v9999_v44 = vld [vmem:[%s13880_s15 + $0x8] sm:$0xff]  }
 0x8f7   : > { %8221 = vmatprep.subr.bf16.mxu1 %v14032_v2  ;;  %8087 = vmatprep.subr.bf16.mxu0 %v9988_v0 }
 0x8f9   : > { %8218 = vmatmul.mubr.msk.bf16.vlgmr.msra.gmra.mrb[56].mxu1 %vm3683_vm8, %v6928_v3 }
 0x8fa   : > { %8229 = vmatprep.mubr.msk.bf16.mxu1 %vm10092_vm1, %v14032_v2  ;;  %8088 = vmatpush3.bf16.msra.mxu0 %v9989_v49 }
 0x8fb   : > { %8089 = vmatprep.subr.bf16.mxu0 %v9990_v18  ;;  %8222 = vmatpush3.bf16.msra.mxu1 %v9998_v14 }
 0x8fc   : > { %8223 = vmatprep.subr.bf16.mxu1 %v14032_v2 }
 0x8fe   : > { %8090 = vmatpush3.bf16.msra.mxu0 %v9991_v20 }
 0x8ff   : > { %8091 = vmatprep.subr.bf16.mxu0 %v9992_v63  ;;  %8224 = vmatpush3.bf16.msra.mxu1 %v9999_v44 }
 0x900   : > { %8225 = vmatprep.subr.bf16.mxu1 %v14032_v2 }
 0x902   : > { %8092 = vmatpush3.bf16.msra.mxu0 %v9993_v43 }
 0x903   : > { %8093 = vmatprep.subr.bf16.mxu0 %v9994_v19 }
 0x906   : > { %8094 = vmatpush3.bf16.msra.mxu0 %v9995_v55 }
 0x907   : > { %8095 = vmatprep.subr.bf16.mxu0 %v9996_v29 }
 0x90a   : > { %8096 = vmatpush3.bf16.msra.mxu0 %v9997_v42 }
 0x9bc   : > { %v8048_v31 = vpop.f32.mrb[52].mxu1 }
 0x9bd   : > { %v8049_v47 = vpop.f32.mrb[53].mxu1 }
 0x9be   : > { %v8050_v59 = vadd.f32 %v8049_v47, %v8048_v31  ;;  %v8051_v4 = vpop.f32.mrb[54].mxu1 }
 0x9bf   : > { %v8052_v25 = vpop.f32.mrb[55].mxu1 }
 0x9c0   : > { %v8053_v33 = vadd.f32 %v8052_v25, %v8051_v4  ;;  %v7189_v46 = vadd.f32 %v8050_v59, %v7856_v62  ;;  %v8070_v37 = vpop.f32.mrb[60].mxu0 }
 0x9c1   : > { %v8071_v10 = vpop.f32.mrb[61].mxu0 }
 0x9c2   : > { %v7192_v16 = vadd.f32 %v8053_v33, %v7856_v62  ;;  %v8072_v15 = vadd.f32 %v8071_v10, %v8070_v37  ;;  %v8073_v23 = vpop.f32.mrb[62].mxu0 }
 0x9c3   : > { %v8074_v35 = vpop.f32.mrb[63].mxu0 }
 0x9c4   : > { %v8075_v22 = vadd.f32 %v8074_v35, %v8073_v23  ;;  %v7230_v11 = vadd.f32 %v8072_v15, %v7189_v46 }
 0x9c6   : > { %v7233_v51 = vadd.f32 %v8075_v22, %v7192_v16  ;;  %v10000_v22 = vld [vmem:[%s13880_s15 + $0x10] sm:$0xff]  }
 0x9c7   : > { %8226 = vmatpush3.bf16.msra.mxu1 %v10000_v22 }
 0x9c8   : > { %8227 = vmatprep.subr.bf16.mxu1 %v14032_v2 }
 0x9cc   : > { %v7270_v34 = vpop.f32.mrb[56].mxu1 }
 0x9cd   : > { %v7271_v56 = vadd.f32 %v7270_v34, %v7230_v11  ;;  %v8219_v3 = vpop.f32.mrb[57].mxu1  ;;  %v10001_v11 = vld [vmem:[%s13880_s15 + $0x18] sm:$0xff]   ;;  %v7385_v34 = vld [vmem:[%s13879_s14] sm:$0x1] }
 0x9ce   : > { %v7273_v58 = vpop.f32.mrb[58].mxu1  ;;  %8228 = vmatpush3.bf16.msra.mxu1 %v10001_v11 }
 0x9cf   : > { %v7277_v12 = vmax.f32 %v7271_v56, 0.0  ;;  %v7274_v54 = vadd.f32 %v7273_v58, %v7233_v51  ;;  %v8220_v52 = vpop.f32.mrb[59].mxu1  ;;  %8233 = vmatprep.subr.bf16.mxu1 %v14032_v2 }
 0x9d1   : > { %v7281_v7 = vcombine.high %v7277_v12, %v7277_v12  ;;  %v7278_v21 = vmax.f32 %v7274_v54, 0.0  ;;  %v7286_v61 = vsel %vm7285_vm0, %v7277_v12, -inf }
 0x9d3   : > { %v7287_v27 = vsel %vm7285_vm0, %v7281_v7, -inf  ;;  %v7282_v28 = vcombine.high %v7278_v21, %v7278_v21  ;;  %v7289_v5 = vsel %vm7285_vm0, %v7278_v21, -inf  ;;  %v10002_v7 = vld [vmem:[%s13882_s17] sm:$0xff]  }
 0x9d4   : > { %v7288_v32 = vmax.f32 %v7286_v61, %v7287_v27  ;;  %v10003_v61 = vld [vmem:[%s13882_s17 + $0x8] sm:$0xff]   ;;  %v7394_v27 = vld [vmem:[%s13881_s16] sm:$0x1] }
 0x9d5   : > { %v7290_v48 = vsel %vm7285_vm0, %v7282_v28, -inf }
 0x9d6   : > { %v7300_v9 = vrot.slane %v7288_v32, %v12459_v26  ;;  %v7291_v8 = vmax.f32 %v7289_v5, %v7290_v48 }
 0x9d8   : > { %v7301_v39 = vcombine.high %v7300_v9, %v7300_v9  ;;  %v7315_v40 = vsel %vm7314_vm7, %v7300_v9, -inf  ;;  %v7308_v24 = vrot.slane %v7291_v8, %v12459_v26 }
 0x9d9   : > { %v7316_v20 = vrot.slane %v7315_v40, 4 }
 0x9da   : > { %v7322_v50 = vsel %vm7314_vm7, %v7301_v39, -inf  ;;  %v7309_v45 = vcombine.high %v7308_v24, %v7308_v24  ;;  %v7329_v13 = vsel %vm7314_vm7, %v7308_v24, -inf }
 0x9db   : > { %v7323_v38 = vrot.slane %v7322_v50, 4  ;;  %v7330_v63 = vrot.slane %v7329_v13, 4  ;;  %v7317_v43 = vmax.f32 %v7315_v40, %v7316_v20 }
 0x9dc   : > { %v7336_v17 = vsel %vm7314_vm7, %v7309_v45, -inf }
 0x9dd   : > { %v7324_v41 = vmax.f32 %v7322_v50, %v7323_v38  ;;  %v7337_v36 = vrot.slane %v7336_v17, 4  ;;  %v7331_v19 = vmax.f32 %v7329_v13, %v7330_v63  ;;  %v7318_v55 = vrot.slane %v7317_v43, 2 }
 0x9df   : > { %v7325_v30 = vrot.slane %v7324_v41, 2  ;;  %v7338_v1 = vmax.f32 %v7336_v17, %v7337_v36  ;;  %v7332_v31 = vrot.slane %v7331_v19, 2  ;;  %v7319_v47 = vmax.f32 %v7317_v43, %v7318_v55 }
 0x9e1   : > { %v7339_v53 = vrot.slane %v7338_v1, 2  ;;  %v7326_v6 = vmax.f32 %v7324_v41, %v7325_v30  ;;  %v7333_v62 = vmax.f32 %v7331_v19, %v7332_v31  ;;  %v7320_v59 = vrot.slane %v7319_v47, 1 }
 0x9e3   : > { %v7327_v26 = vrot.slane %v7326_v6, 1  ;;  %v7340_v57 = vmax.f32 %v7338_v1, %v7339_v53  ;;  %v7334_v4 = vrot.slane %v7333_v62, 1  ;;  %v7321_v33 = vmax.f32 %v7319_v47, %v7320_v59 }
 0x9e5   : > { %v7341_v60 = vrot.slane %v7340_v57, 1  ;;  %v7328_v0 = vmax.f32 %v7326_v6, %v7327_v26  ;;  %v7335_v10 = vmax.f32 %v7333_v62, %v7334_v4 }
 0x9e7   : > { %v7342_v49 = vmax.f32 %v7340_v57, %v7341_v60 }
 0x9e9   : > { %v9889_v18 = vpack.i.bf16 %v7328_v0, %v7342_v49 }
 0x9eb   : > { %9890 = vrot.lane.b32.xlu0 %v9889_v18, %s13983_s20  ;;  %s593_s20 = sand.u32 1, %s10060_s30  }
 0x9ec   : > { %s594_s27 = scalar_lea.vmem [#allocation2], %s593_s20  ;;  %s7667_s1 = scalar_lea.sflag [#allocation3], %s593_s20 }
 0x9ed   : > { %s7679_s28 = sshll.u32 %s594_s27, 4  ;;  %s13825_s28 = int_to_ptr.vmem [resolvable:$true] %s7679_s28 }
 0x9ee   : > { %s10006_s4 = scalar_lea.vmem %s13825_s28, 16  ;;  %p10013_p0 = scmp.lt.s32.totalorder %s13825_s28, %s10011_s2 }
 0x9ef   : > { %p10007_p11 = scmp.ne.s32.totalorder %s13825_s28, %s10006_s4  ;;  %p10014_p1 = scmp.lt.s32.totalorder %s10012_s5, %s10006_s4 }
 0x9f1   : > { %p10008_p12 = pnand %p10007_p11, %p10232_p5  ;;  %p10015_p2 = por %p10014_p1, %p10013_p0 }
 0x9f3   : > { %p10009_p13 = pneg %p10008_p12 }
 0x9f5   : > { %p10016_p3 = pnand %p10015_p2, %p10009_p13 }
 0xa5d   : > { %v9891_v25 = vpop.permute.xlu0 %9890 }
 0xa5e   : > { %v9893_v46 = vunpack.i.h.bf16 %v9891_v25  ;;  %v9892_v37 = vunpack.i.l.bf16 %v9891_v25 }
 0xa60   : > { %v7351_v16 = vsel %vm3683_vm8, %v7321_v33, %v9893_v46  ;;  %v7352_v15 = vsel %vm3683_vm8, %v7335_v10, %v9892_v37 }
 0xa61   : > { %v7400_v23 = vpack.c.bf16 %v7351_v16, %v7351_v16  ;;  %v7401_v35 = vpack.c.bf16 %v7352_v15, %v7352_v15 }
 0xa63   : > { %7530 = vmatprep.mubr.bf16.mxu0 %v7401_v35 }
 0xa64   : > { %7531 = vmatmul.mubr.bf16.vlgmr.msra.gmra.mrb[64].mxu0 %v7400_v23 }
 0xb37   : > { %v8097_v51 = vpop.f32.mrb[64].mxu0 }
 0xb38   : > { %v8098_v56 = vpop.f32.mrb[65].mxu0 }
 0xb39   : > { %v8099_v3 = vadd.f32 %v8098_v56, %v8097_v51  ;;  %v8100_v58 = vpop.f32.mrb[66].mxu0 }
 0xb3a   : > { %v8101_v12 = vpop.f32.mrb[67].mxu0 }
 0xb3b   : > { %v7533_v54 = vadd.f32 %v8099_v3, %v7385_v34 }
 0xb3d   : > { %v7538_v52 = vmax.f32 %v7533_v54, 0.0 }
 0xb3f   : > { %v7539_v21 = vpack.c.bf16 %v7538_v52, %v7538_v52 }
 0xb41   : > { %8230 = vmatmul.mubr.msk.bf16.vlgmr.msra.gmra.mrb[60].mxu1 %vm3683_vm8, %v7539_v21  ;;  %vm7664_vm8 = vcmask 73728  }
 0xb42   : > { %8234 = vmatpush3.bf16.msra.mxu1 %v10002_v7  ;;  %8237 = vmatprep.mubr.msk.bf16.mxu1 %vm10092_vm1, %v14032_v2 }
 0xb43   : > { %8235 = vmatprep.subr.bf16.mxu1 %v14032_v2  ;;  %v7399_v2 = vld [vmem:[%s13883_s18] sm:$0x1] }
 0xb46   : > { %8236 = vmatpush3.bf16.msra.mxu1 %v10003_v61 }
 0xc14   : > { %v7601_v28 = vpop.f32.mrb[60].mxu1 }
 0xc15   : > { %v7602_v32 = vadd.f32 %v7601_v28, %v7394_v27  ;;  %v8231_v5 = vpop.f32.mrb[61].mxu1 }
 0xc16   : > { %v7604_v48 = vpop.f32.mrb[62].mxu1 }
 0xc17   : > { %v7607_v9 = vmax.f32 %v7602_v32, 0.0  ;;  %v8232_v8 = vpop.f32.mrb[63].mxu1 }
 0xc19   : > { %v7608_v39 = vpack.c.bf16 %v7607_v9, %v7607_v9 }
 0xc1b   : > { %8238 = vmatmul.mubr.msk.bf16.vlgmr.msra.gmra.mrb[64].mxu1 %vm3551_vm4, %v7608_v39 }
 0xcee   : > { %v7658_v40 = vpop.f32.mrb[64].mxu1 }
 0xcef   : > { %v7659_v24 = vadd.f32 %v7658_v40, %v7399_v2  ;;  %v8239_v50 = vpop.f32.mrb[65].mxu1 }
 0xcf0   : > { %v7661_v45 = vpop.f32.mrb[66].mxu1 }
 0xcf1   : > { %v8240_v13 = vpop.f32.mrb[67].mxu1  ;;  %7665 = vst.msk [vmem:[%s594_s27] sm:$0x1] %vm7664_vm8, %v7659_v24 }
 0xcf2   : > { %10019 = shalt.err (!%p10016_p3)
}
 0xcf3   : > { %s10020_s20 = scalar_lea.hbm %s13823_s0, 16  ;;  %s10024_s27 = scalar_lea.hbm %s13884_s19, 32 }
 0xcf4   : > { %p10021_p4 = scmp.ne.s32.totalorder %s13823_s0, %s10020_s20  ;;  %p10025_p9 = scmp.lt.u32.totalorder %s13823_s0, %s13884_s19 }
 0xcf5   : > { %p10026_p10 = scmp.lt.u32.totalorder %s10024_s27, %s10020_s20  ;;  %p10028_p12 = scmp.lt.u32.totalorder %s10020_s20, %s13823_s0 }
 0xcf6   : > { %p10022_p7 = pnand %p10021_p4, %p10232_p5 }
 0xcf7   : > { %p10027_p11 = por %p10026_p10, %p10025_p9 }
 0xcf8   : > { %p10023_p8 = pneg %p10022_p7 }
 0xcf9   : > { %p10029_p13 = por %p10028_p12, %p10027_p11 }
 0xcfb   : > { %p10030_p0 = pnand %p10029_p13, %p10023_p8 }
 0xcfd   : > { %10033 = shalt.err (!%p10030_p0)
}
 0xcfe   : > { %8242 = dma.vmem_to_hbm [thread:$0]  (%p10232_p5), %s13825_s28, 16, %s13823_s0, %s7667_s1  }
 0xcff PF: > { %s14047_s4 = sld [smem:[#allocation5_spill]]  ;;  %p8248_p1 = scmp.ge.s32.totalorder %s10068_s21, 2 }
 0xd01   : > { %p8245_p2 = pnand %p8248_p1, %p10236_p6 }
 0xd05   : > { %s7691_s2 = sand.u32 1, %s14047_s4  }
 0xd06   : > { %s7692_s5 = scalar_lea.sflag [#allocation3], %s7691_s2 }
 0xd07   : > { %10051 = dma.done.wait (!%p8245_p2), %s7692_s5, 16  }
 0xd08   : > { %10053 = vsyncadd (!%p8245_p2), %s7692_s5, 4294967280  ;;  %s14049_s21 = sld [smem:[#allocation7_spill]]  ;;  %s14050_s20 = sld [smem:[#allocation6_spill]] }
 0xd09   : > { %s14051_s26 = sld [smem:[#allocation8_spill]]  ;;  %s14052_s0 = smov %s10060_s30 }
 0xd0e   : > { %p29_p3 = scmp.ge.s32.totalorder %s14049_s21, 4   ;;  %s14053_s30 = smov %s14050_s20 }
 0xd0f   : > { %s14054_s20 = smov %s14051_s26 }
 0xd10   :  { %31 = sbr.rel (!%p29_p3) target bundleno = 10 (0xa), region = 131 }
 0xd17   :  { %7696 = vsyncpa [#allocation3], 1 }
 0xd18   :  { %7698 = vsyncpa [#allocation3 + $0x1], 1 }

</bundles_post_ra>
